<compile_context>
chip_gen: v7x
topology: tpu7x:2x2x1
jax: 0.10.0
libtpu: 0.0.40
codegen_flags: <defaults>
</compile_context>

<pallas_src>
import functools

import jax
import jax.numpy as jnp
from jax.experimental import pallas as pl
from jax.experimental.pallas import tpu as pltpu

KernelSize = 3
BN_EPS = 1e-5


def _conv_bn_relu_kernel(x0_ref, x1_ref, x2_ref, w_ref, shift_ref, o_ref,
                         col_ref, *, W, Cin, th):
    # x{kd}_ref : (H+2, W+2, Cin)  zero-padded plane at depth d+kd (bf16)
    # w_ref     : (27*Cin, Cout_p) BN-scale-folded weights, resident (bf16)
    # shift_ref : (1, Cout_p)      folded conv bias + BN shift (f32)
    # o_ref     : (th*W, Cout_p)   output rows [h*th, h*th+th) of depth plane d
    # col_ref   : (th*W, 27*Cin)   VMEM im2col scratch (never hits HBM)
    h = pl.program_id(2)
    row0 = h * th

    # In-VMEM im2col: 27 shifted windows -> columns of col_ref, ordered
    # (kd, kh, kw, cin) to match the weight reshape below.
    t = 0
    for x_ref in (x0_ref, x1_ref, x2_ref):                      # kd = 0, 1, 2
        for kh in range(KernelSize):
            rows = x_ref[pl.ds(row0 + kh, th), :, :]             # (th, W+2, Cin)
            for kw in range(KernelSize):
                win = rows[:, kw:kw + W, :]                      # (th, W, Cin)
                # NOTE: merging (th, W) may relayout when W % 8 != 0; accepted.
                col_ref[:, t * Cin:(t + 1) * Cin] = win.reshape(th * W, Cin)
                t += 1

    # Single K = 27*Cin matmul; accumulation stays in the MXU (f32).
    acc = jnp.dot(col_ref[...], w_ref[...], preferred_element_type=jnp.float32)
    y = acc + shift_ref[...]                                     # f32 epilogue
    o_ref[...] = jnp.maximum(y, 0.0).astype(o_ref.dtype)


def _pick_row_tile(H, W, Cin, Cout_p, out_itemsize, budget=24 * 1024 * 1024):
    """Largest row tile th (divisor of H) whose th-scaled VMEM footprint fits."""
    k_pad = pl.cdiv(KernelSize ** 3 * Cin, 128) * 128
    # Per output row: im2col scratch (bf16) + double-buffered output block +
    # f32 matmul result temporaries.
    per_row = W * (2 * k_pad + 2 * Cout_p * out_itemsize + 4 * Cout_p)
    cands = [t for t in range(1, H + 1)
             if H % t == 0 and ((t * W) % 8 == 0 or t == H)]
    ok = [t for t in cands if t * per_row <= budget]
    return max(ok) if ok else min(cands)


def conv3d_bn_relu(x, w, b, gamma, beta, running_mean, running_var, *,
                   out_dtype=jnp.float32, keep_padded_channels=False):
    """Fused 3x3x3 Conv3d(padding=1) + eval BN + ReLU.

    x: (N, D, H, W, Cin) NDHWC.  w: (3, 3, 3, Cin_w, Cout) with Cin_w <= Cin;
    extra (zero) input channels are matched by zero weight rows.
    Returns (N, D, H, W, Cout), or (N, D, H, W, Cout_p) if keep_padded_channels.
    """
    N, D, H, W, Cin = x.shape
    _, _, _, Cin_w, Cout = w.shape
    Cout_p = pl.cdiv(Cout, 128) * 128                 # lane-dense output channels
    out_itemsize = jnp.dtype(out_dtype).itemsize

    # Fold eval-mode BN into a weight scale and a per-channel shift.
    inv_std = gamma / jnp.sqrt(running_var + BN_EPS)
    w_f = (w * inv_std).astype(jnp.bfloat16)
    shift = ((b - running_mean) * inv_std + beta).astype(jnp.float32)

    # Pad weight Cin up to the (possibly channel-padded) input and Cout to 128.
    w_f = jnp.pad(w_f, ((0, 0), (0, 0), (0, 0),
                        (0, Cin - Cin_w), (0, Cout_p - Cout)))
    w_mat = w_f.reshape(KernelSize ** 3 * Cin, Cout_p)          # (27*Cin, Cout_p)
    shift = jnp.pad(shift, (0, Cout_p - Cout)).reshape(1, Cout_p)

    # conv padding=1 (spatial zero pad); bf16 halves input HBM traffic.
    xp = jnp.pad(x.astype(jnp.bfloat16),
                 ((0, 0), (1, 1), (1, 1), (1, 1), (0, 0)))

    th = _pick_row_tile(H, W, Cin, Cout_p, out_itemsize)
    Hb = H // th
    grid = (N, D, Hb)                                 # all axes independent

    kernel = functools.partial(_conv_bn_relu_kernel, W=W, Cin=Cin, th=th)

    cost = pl.CostEstimate(
        flops=2 * N * D * H * W * (KernelSize ** 3) * Cin * Cout_p,
        transcendentals=0,
        bytes_accessed=(3 * xp.size * xp.dtype.itemsize        # 3 depth views
                        + w_mat.size * w_mat.dtype.itemsize
                        + shift.size * 4
                        + N * D * H * W * Cout_p * out_itemsize))

    # VMEM footprint estimate -> vmem_limit (leave headroom; cap for v7x 64 MiB).
    k_pad = pl.cdiv(KernelSize ** 3 * Cin, 128) * 128
    cin_lane = pl.cdiv(Cin, 128) * 128
    plane_bytes = (H + 2) * (W + 2) * cin_lane * 2
    vmem_needed = (3 * 2 * plane_bytes                          # 3 views, 2 bufs
                   + 2 * w_mat.size * 2                         # resident weights
                   + th * W * (2 * k_pad + 2 * Cout_p * out_itemsize + 4 * Cout_p)
                   + (4 << 20))                                 # compiler slack
    vmem_limit = int(min(max(vmem_needed, 32 * 1024 * 1024), 48 * 1024 * 1024))

    out = pl.pallas_call(
        kernel,
        out_shape=jax.ShapeDtypeStruct((N, D, H * W, Cout_p), out_dtype),
        grid_spec=pltpu.PrefetchScalarGridSpec(
            num_scalar_prefetch=0,
            grid=grid,
            in_specs=[
                # Three aliased views of the padded input: depth taps d, d+1, d+2.
                # Block index is independent of h, so the planes stay resident
                # across the inner row-tile axis.
                pl.BlockSpec((None, None, H + 2, W + 2, Cin),
                             lambda n, d, h: (n, d, 0, 0, 0)),
                pl.BlockSpec((None, None, H + 2, W + 2, Cin),
                             lambda n, d, h: (n, d + 1, 0, 0, 0)),
                pl.BlockSpec((None, None, H + 2, W + 2, Cin),
                             lambda n, d, h: (n, d + 2, 0, 0, 0)),
                # Whole 27-tap weight: constant block index -> fetched once.
                pl.BlockSpec((KernelSize ** 3 * Cin, Cout_p),
                             lambda n, d, h: (0, 0)),
                # Folded bias/BN shift.
                pl.BlockSpec((1, Cout_p), lambda n, d, h: (0, 0)),
            ],
            # Lane-dense output tile, written exactly once per grid step.
            out_specs=pl.BlockSpec((None, None, th * W, Cout_p),
                                   lambda n, d, h: (n, d, h, 0)),
            scratch_shapes=[pltpu.VMEM((th * W, KernelSize ** 3 * Cin),
                                       jnp.bfloat16)],
        ),
        compiler_params=pltpu.CompilerParams(
            dimension_semantics=("parallel", "parallel", "parallel"),
            vmem_limit_bytes=vmem_limit),
        cost_estimate=cost,
    )(xp, xp, xp, w_mat, shift)

    out = out.reshape(N, D, H, W, Cout_p)
    if keep_padded_channels:
        return out
    return out[..., :Cout]


def init_double_conv_params(key, in_ch, out_ch):
    ks = jax.random.split(key, 10)
    p = {}
    # Conv weights stored directly in kernel layout (kd, kh, kw, Cin, Cout).
    p["w1"] = 0.1 * jax.random.normal(ks[0], (3, 3, 3, in_ch, out_ch), jnp.float32)
    p["b1"] = 0.1 * jax.random.normal(ks[1], (out_ch,), jnp.float32)
    p["g1"] = 1.0 + 0.05 * jax.random.normal(ks[2], (out_ch,), jnp.float32)
    p["be1"] = 0.05 * jax.random.normal(ks[3], (out_ch,), jnp.float32)
    p["m1"] = 0.05 * jax.random.normal(ks[4], (out_ch,), jnp.float32)
    p["v1"] = 0.5 + jnp.abs(jax.random.normal(ks[5], (out_ch,), jnp.float32))

    p["w2"] = 0.1 * jax.random.normal(ks[6], (3, 3, 3, out_ch, out_ch), jnp.float32)
    p["b2"] = 0.1 * jax.random.normal(ks[7], (out_ch,), jnp.float32)
    p["g2"] = 1.0 + 0.05 * jax.random.normal(ks[8], (out_ch,), jnp.float32)
    p["be2"] = 0.05 * jax.random.normal(ks[9], (out_ch,), jnp.float32)
    p["m2"] = jnp.zeros((out_ch,), jnp.float32)
    p["v2"] = jnp.ones((out_ch,), jnp.float32)
    return p


def double_conv_forward(x_ncdhw, params):
    """Forward of Double_conv.  x_ncdhw: (N, Cin, D, H, W) -> (N, Cout, D, H, W)."""
    x = jnp.transpose(x_ncdhw, (0, 2, 3, 4, 1))        # NCDHW -> NDHWC
    # conv1 output stays channel-padded (Cout_p) bf16; conv2 consumes it
    # directly (its Cin weight rows are zero-padded), saving an HBM pass.
    h = conv3d_bn_relu(x, params["w1"], params["b1"], params["g1"],
                       params["be1"], params["m1"], params["v1"],
                       out_dtype=jnp.bfloat16, keep_padded_channels=True)
    y = conv3d_bn_relu(h, params["w2"], params["b2"], params["g2"],
                       params["be2"], params["m2"], params["v2"],
                       out_dtype=jnp.float32, keep_padded_channels=False)
    return jnp.transpose(y, (0, 4, 1, 2, 3))           # NDHWC -> NCDHW


def _double_conv_reference(x_ncdhw, params):
    """Pure-JAX f32 reference (XLA conv), for tolerance checking."""
    def block(x, w, b, g, be, m, v):
        wt = jnp.transpose(w, (4, 3, 0, 1, 2))         # (Cout, Cin, kd, kh, kw)
        y = jax.lax.conv_general_dilated(
            x, wt, window_strides=(1, 1, 1),
            padding=((1, 1), (1, 1), (1, 1)),
            dimension_numbers=("NCDHW", "OIDHW", "NCDHW"))
        y = y + b[None, :, None, None, None]
        inv = (g / jnp.sqrt(v + BN_EPS))[None, :, None, None, None]
        y = (y - m[None, :, None, None, None]) * inv + be[None, :, None, None, None]
        return jnp.maximum(y, 0.0)

    x = block(x_ncdhw, params["w1"], params["b1"], params["g1"],
              params["be1"], params["m1"], params["v1"])
    x = block(x, params["w2"], params["b2"], params["g2"],
              params["be2"], params["m2"], params["v2"])
    return x


if __name__ == "__main__":
    key = jax.random.PRNGKey(0)
    kx, kp = jax.random.split(key)

    N, in_ch, out_ch = 2, 4, 8
    D = H = W = 8
    x = jax.random.normal(kx, (N, in_ch, D, H, W), jnp.float32)

    params = init_double_conv_params(kp, in_ch, out_ch)

    fwd = jax.jit(double_conv_forward)
    y = jax.block_until_ready(fwd(x, params))

    assert y.shape == (N, out_ch, D, H, W)
    assert bool(jnp.all(jnp.isfinite(y)))
    assert bool(jnp.all(y >= 0.0))                     # ReLU output

    # bf16 inputs/weights/intermediate vs the f32 XLA reference: loose tolerance.
    y_ref = _double_conv_reference(x, params)
    rel = jnp.max(jnp.abs(y - y_ref)) / jnp.maximum(jnp.max(jnp.abs(y_ref)), 1e-6)
    assert float(rel) < 7e-2, f"relative error too large: {float(rel)}"

    print("KERNEL_OK")
</pallas_src>

<mosaic_0001>
module attributes {stable_mosaic.version = 11 : i64} {
  func.func @_conv_bn_relu_kernel(%arg0: i32, %arg1: i32, %arg2: i32, %arg3: memref<1x1x10x10x4xbf16, #tpu.memory_space<vmem>>, %arg4: memref<1x1x10x10x4xbf16, #tpu.memory_space<vmem>>, %arg5: memref<1x1x10x10x4xbf16, #tpu.memory_space<vmem>>, %arg6: memref<108x128xbf16, #tpu.memory_space<vmem>>, %arg7: memref<1x128xf32, #tpu.memory_space<vmem>>, %arg8: memref<1x1x64x128xbf16, #tpu.memory_space<vmem>>, %arg9: memref<64x108xbf16, #tpu.memory_space<vmem>>) attributes {dimension_semantics = [#tpu.dimension_semantics<parallel>, #tpu.dimension_semantics<parallel>, #tpu.dimension_semantics<parallel>], iteration_bounds = array<i64: 2, 8, 1>, scalar_prefetch = 0 : i64, scratch_operands = 1 : i64, tpu.core_type = #tpu.core_type<tc>, window_params = [{transform_indices = @transform_0, window_bounds = array<i64: 1, 1, 10, 10, 4>}, {transform_indices = @transform_1, window_bounds = array<i64: 1, 1, 10, 10, 4>}, {transform_indices = @transform_2, window_bounds = array<i64: 1, 1, 10, 10, 4>}, {pipeline_mode = #tpu.pipeline_mode<synchronous>, transform_indices = @transform_3, window_bounds = array<i64: 108, 128>}, {pipeline_mode = #tpu.pipeline_mode<synchronous>, transform_indices = @transform_4, window_bounds = array<i64: 1, 128>}, {transform_indices = @transform_5, window_bounds = array<i64: 1, 1, 64, 128>}]} {
    %c8_i32 = arith.constant 8 : i32
    %0 = arith.muli %arg2, %c8_i32 : i32
    %c0_i32 = arith.constant 0 : i32
    %1 = arith.addi %0, %c0_i32 : i32
    %c0 = arith.constant 0 : index
    %c0_0 = arith.constant 0 : index
    %2 = arith.index_cast %1 : i32 to index
    %c0_1 = arith.constant 0 : index
    %c0_2 = arith.constant 0 : index
    %3 = vector.load %arg3[%c0, %c0_0, %2, %c0_1, %c0_2] : memref<1x1x10x10x4xbf16, #tpu.memory_space<vmem>>, vector<1x1x8x10x4xbf16>
    %4 = vector.shape_cast %3 : vector<1x1x8x10x4xbf16> to vector<8x10x4xbf16>
    %5 = vector.extract_strided_slice %4 {offsets = [0, 0, 0], sizes = [8, 8, 4], strides = [1, 1, 1]} : vector<8x10x4xbf16> to vector<8x8x4xbf16>
    %6 = vector.shape_cast %5 : vector<8x8x4xbf16> to vector<64x4xbf16>
    %c0_3 = arith.constant 0 : index
    %c0_4 = arith.constant 0 : index
    %7 = vector.load %arg9[%c0_3, %c0_4] : memref<64x108xbf16, #tpu.memory_space<vmem>>, vector<64x4xbf16>
    tpu.vector_store %arg9[%c0_3, %c0_4], %6 {strides = array<i32>} : memref<64x108xbf16, #tpu.memory_space<vmem>>, vector<64x4xbf16>,
    %8 = vector.extract_strided_slice %4 {offsets = [0, 1, 0], sizes = [8, 8, 4], strides = [1, 1, 1]} : vector<8x10x4xbf16> to vector<8x8x4xbf16>
    %9 = vector.shape_cast %8 : vector<8x8x4xbf16> to vector<64x4xbf16>
    %c0_5 = arith.constant 0 : index
    %c4 = arith.constant 4 : index
    %10 = vector.load %arg9[%c0_5, %c4] : memref<64x108xbf16, #tpu.memory_space<vmem>>, vector<64x4xbf16>
    tpu.vector_store %arg9[%c0_5, %c4], %9 {strides = array<i32>} : memref<64x108xbf16, #tpu.memory_space<vmem>>, vector<64x4xbf16>,
    %11 = vector.extract_strided_slice %4 {offsets = [0, 2, 0], sizes = [8, 8, 4], strides = [1, 1, 1]} : vector<8x10x4xbf16> to vector<8x8x4xbf16>
    %12 = vector.shape_cast %11 : vector<8x8x4xbf16> to vector<64x4xbf16>
    %c0_6 = arith.constant 0 : index
    %c8 = arith.constant 8 : index
    %13 = vector.load %arg9[%c0_6, %c8] : memref<64x108xbf16, #tpu.memory_space<vmem>>, vector<64x4xbf16>
    tpu.vector_store %arg9[%c0_6, %c8], %12 {strides = array<i32>} : memref<64x108xbf16, #tpu.memory_space<vmem>>, vector<64x4xbf16>,
    %c1_i32 = arith.constant 1 : i32
    %14 = arith.addi %0, %c1_i32 : i32
    %c0_7 = arith.constant 0 : index
    %c0_8 = arith.constant 0 : index
    %15 = arith.index_cast %14 : i32 to index
    %c0_9 = arith.constant 0 : index
    %c0_10 = arith.constant 0 : index
    %16 = vector.load %arg3[%c0_7, %c0_8, %15, %c0_9, %c0_10] : memref<1x1x10x10x4xbf16, #tpu.memory_space<vmem>>, vector<1x1x8x10x4xbf16>
    %17 = vector.shape_cast %16 : vector<1x1x8x10x4xbf16> to vector<8x10x4xbf16>
    %18 = vector.extract_strided_slice %17 {offsets = [0, 0, 0], sizes = [8, 8, 4], strides = [1, 1, 1]} : vector<8x10x4xbf16> to vector<8x8x4xbf16>
    %19 = vector.shape_cast %18 : vector<8x8x4xbf16> to vector<64x4xbf16>
    %c0_11 = arith.constant 0 : index
    %c12 = arith.constant 12 : index
    %20 = vector.load %arg9[%c0_11, %c12] : memref<64x108xbf16, #tpu.memory_space<vmem>>, vector<64x4xbf16>
    tpu.vector_store %arg9[%c0_11, %c12], %19 {strides = array<i32>} : memref<64x108xbf16, #tpu.memory_space<vmem>>, vector<64x4xbf16>,
    %21 = vector.extract_strided_slice %17 {offsets = [0, 1, 0], sizes = [8, 8, 4], strides = [1, 1, 1]} : vector<8x10x4xbf16> to vector<8x8x4xbf16>
    %22 = vector.shape_cast %21 : vector<8x8x4xbf16> to vector<64x4xbf16>
    %c0_12 = arith.constant 0 : index
    %c16 = arith.constant 16 : index
    %23 = vector.load %arg9[%c0_12, %c16] : memref<64x108xbf16, #tpu.memory_space<vmem>>, vector<64x4xbf16>
    tpu.vector_store %arg9[%c0_12, %c16], %22 {strides = array<i32>} : memref<64x108xbf16, #tpu.memory_space<vmem>>, vector<64x4xbf16>,
    %24 = vector.extract_strided_slice %17 {offsets = [0, 2, 0], sizes = [8, 8, 4], strides = [1, 1, 1]} : vector<8x10x4xbf16> to vector<8x8x4xbf16>
    %25 = vector.shape_cast %24 : vector<8x8x4xbf16> to vector<64x4xbf16>
    %c0_13 = arith.constant 0 : index
    %c20 = arith.constant 20 : index
    %26 = vector.load %arg9[%c0_13, %c20] : memref<64x108xbf16, #tpu.memory_space<vmem>>, vector<64x4xbf16>
    tpu.vector_store %arg9[%c0_13, %c20], %25 {strides = array<i32>} : memref<64x108xbf16, #tpu.memory_space<vmem>>, vector<64x4xbf16>,
    %c2_i32 = arith.constant 2 : i32
    %27 = arith.addi %0, %c2_i32 : i32
    %c0_14 = arith.constant 0 : index
    %c0_15 = arith.constant 0 : index
    %28 = arith.index_cast %27 : i32 to index
    %c0_16 = arith.constant 0 : index
    %c0_17 = arith.constant 0 : index
    %29 = vector.load %arg3[%c0_14, %c0_15, %28, %c0_16, %c0_17] : memref<1x1x10x10x4xbf16, #tpu.memory_space<vmem>>, vector<1x1x8x10x4xbf16>
    %30 = vector.shape_cast %29 : vector<1x1x8x10x4xbf16> to vector<8x10x4xbf16>
    %31 = vector.extract_strided_slice %30 {offsets = [0, 0, 0], sizes = [8, 8, 4], strides = [1, 1, 1]} : vector<8x10x4xbf16> to vector<8x8x4xbf16>
    %32 = vector.shape_cast %31 : vector<8x8x4xbf16> to vector<64x4xbf16>
    %c0_18 = arith.constant 0 : index
    %c24 = arith.constant 24 : index
    %33 = vector.load %arg9[%c0_18, %c24] : memref<64x108xbf16, #tpu.memory_space<vmem>>, vector<64x4xbf16>
    tpu.vector_store %arg9[%c0_18, %c24], %32 {strides = array<i32>} : memref<64x108xbf16, #tpu.memory_space<vmem>>, vector<64x4xbf16>,
    %34 = vector.extract_strided_slice %30 {offsets = [0, 1, 0], sizes = [8, 8, 4], strides = [1, 1, 1]} : vector<8x10x4xbf16> to vector<8x8x4xbf16>
    %35 = vector.shape_cast %34 : vector<8x8x4xbf16> to vector<64x4xbf16>
    %c0_19 = arith.constant 0 : index
    %c28 = arith.constant 28 : index
    %36 = vector.load %arg9[%c0_19, %c28] : memref<64x108xbf16, #tpu.memory_space<vmem>>, vector<64x4xbf16>
    tpu.vector_store %arg9[%c0_19, %c28], %35 {strides = array<i32>} : memref<64x108xbf16, #tpu.memory_space<vmem>>, vector<64x4xbf16>,
    %37 = vector.extract_strided_slice %30 {offsets = [0, 2, 0], sizes = [8, 8, 4], strides = [1, 1, 1]} : vector<8x10x4xbf16> to vector<8x8x4xbf16>
    %38 = vector.shape_cast %37 : vector<8x8x4xbf16> to vector<64x4xbf16>
    %c0_20 = arith.constant 0 : index
    %c32 = arith.constant 32 : index
    %39 = vector.load %arg9[%c0_20, %c32] : memref<64x108xbf16, #tpu.memory_space<vmem>>, vector<64x4xbf16>
    tpu.vector_store %arg9[%c0_20, %c32], %38 {strides = array<i32>} : memref<64x108xbf16, #tpu.memory_space<vmem>>, vector<64x4xbf16>,
    %c0_i32_21 = arith.constant 0 : i32
    %40 = arith.addi %0, %c0_i32_21 : i32
    %c0_22 = arith.constant 0 : index
    %c0_23 = arith.constant 0 : index
    %41 = arith.index_cast %40 : i32 to index
    %c0_24 = arith.constant 0 : index
    %c0_25 = arith.constant 0 : index
    %42 = vector.load %arg4[%c0_22, %c0_23, %41, %c0_24, %c0_25] : memref<1x1x10x10x4xbf16, #tpu.memory_space<vmem>>, vector<1x1x8x10x4xbf16>
    %43 = vector.shape_cast %42 : vector<1x1x8x10x4xbf16> to vector<8x10x4xbf16>
    %44 = vector.extract_strided_slice %43 {offsets = [0, 0, 0], sizes = [8, 8, 4], strides = [1, 1, 1]} : vector<8x10x4xbf16> to vector<8x8x4xbf16>
    %45 = vector.shape_cast %44 : vector<8x8x4xbf16> to vector<64x4xbf16>
    %c0_26 = arith.constant 0 : index
    %c36 = arith.constant 36 : index
    %46 = vector.load %arg9[%c0_26, %c36] : memref<64x108xbf16, #tpu.memory_space<vmem>>, vector<64x4xbf16>
    tpu.vector_store %arg9[%c0_26, %c36], %45 {strides = array<i32>} : memref<64x108xbf16, #tpu.memory_space<vmem>>, vector<64x4xbf16>,
    %47 = vector.extract_strided_slice %43 {offsets = [0, 1, 0], sizes = [8, 8, 4], strides = [1, 1, 1]} : vector<8x10x4xbf16> to vector<8x8x4xbf16>
    %48 = vector.shape_cast %47 : vector<8x8x4xbf16> to vector<64x4xbf16>
    %c0_27 = arith.constant 0 : index
    %c40 = arith.constant 40 : index
    %49 = vector.load %arg9[%c0_27, %c40] : memref<64x108xbf16, #tpu.memory_space<vmem>>, vector<64x4xbf16>
    tpu.vector_store %arg9[%c0_27, %c40], %48 {strides = array<i32>} : memref<64x108xbf16, #tpu.memory_space<vmem>>, vector<64x4xbf16>,
    %50 = vector.extract_strided_slice %43 {offsets = [0, 2, 0], sizes = [8, 8, 4], strides = [1, 1, 1]} : vector<8x10x4xbf16> to vector<8x8x4xbf16>
    %51 = vector.shape_cast %50 : vector<8x8x4xbf16> to vector<64x4xbf16>
    %c0_28 = arith.constant 0 : index
    %c44 = arith.constant 44 : index
    %52 = vector.load %arg9[%c0_28, %c44] : memref<64x108xbf16, #tpu.memory_space<vmem>>, vector<64x4xbf16>
    tpu.vector_store %arg9[%c0_28, %c44], %51 {strides = array<i32>} : memref<64x108xbf16, #tpu.memory_space<vmem>>, vector<64x4xbf16>,
    %c1_i32_29 = arith.constant 1 : i32
    %53 = arith.addi %0, %c1_i32_29 : i32
    %c0_30 = arith.constant 0 : index
    %c0_31 = arith.constant 0 : index
    %54 = arith.index_cast %53 : i32 to index
    %c0_32 = arith.constant 0 : index
    %c0_33 = arith.constant 0 : index
    %55 = vector.load %arg4[%c0_30, %c0_31, %54, %c0_32, %c0_33] : memref<1x1x10x10x4xbf16, #tpu.memory_space<vmem>>, vector<1x1x8x10x4xbf16>
    %56 = vector.shape_cast %55 : vector<1x1x8x10x4xbf16> to vector<8x10x4xbf16>
    %57 = vector.extract_strided_slice %56 {offsets = [0, 0, 0], sizes = [8, 8, 4], strides = [1, 1, 1]} : vector<8x10x4xbf16> to vector<8x8x4xbf16>
    %58 = vector.shape_cast %57 : vector<8x8x4xbf16> to vector<64x4xbf16>
    %c0_34 = arith.constant 0 : index
    %c48 = arith.constant 48 : index
    %59 = vector.load %arg9[%c0_34, %c48] : memref<64x108xbf16, #tpu.memory_space<vmem>>, vector<64x4xbf16>
    tpu.vector_store %arg9[%c0_34, %c48], %58 {strides = array<i32>} : memref<64x108xbf16, #tpu.memory_space<vmem>>, vector<64x4xbf16>,
    %60 = vector.extract_strided_slice %56 {offsets = [0, 1, 0], sizes = [8, 8, 4], strides = [1, 1, 1]} : vector<8x10x4xbf16> to vector<8x8x4xbf16>
    %61 = vector.shape_cast %60 : vector<8x8x4xbf16> to vector<64x4xbf16>
    %c0_35 = arith.constant 0 : index
    %c52 = arith.constant 52 : index
    %62 = vector.load %arg9[%c0_35, %c52] : memref<64x108xbf16, #tpu.memory_space<vmem>>, vector<64x4xbf16>
    tpu.vector_store %arg9[%c0_35, %c52], %61 {strides = array<i32>} : memref<64x108xbf16, #tpu.memory_space<vmem>>, vector<64x4xbf16>,
    %63 = vector.extract_strided_slice %56 {offsets = [0, 2, 0], sizes = [8, 8, 4], strides = [1, 1, 1]} : vector<8x10x4xbf16> to vector<8x8x4xbf16>
    %64 = vector.shape_cast %63 : vector<8x8x4xbf16> to vector<64x4xbf16>
    %c0_36 = arith.constant 0 : index
    %c56 = arith.constant 56 : index
    %65 = vector.load %arg9[%c0_36, %c56] : memref<64x108xbf16, #tpu.memory_space<vmem>>, vector<64x4xbf16>
    tpu.vector_store %arg9[%c0_36, %c56], %64 {strides = array<i32>} : memref<64x108xbf16, #tpu.memory_space<vmem>>, vector<64x4xbf16>,
    %c2_i32_37 = arith.constant 2 : i32
    %66 = arith.addi %0, %c2_i32_37 : i32
    %c0_38 = arith.constant 0 : index
    %c0_39 = arith.constant 0 : index
    %67 = arith.index_cast %66 : i32 to index
    %c0_40 = arith.constant 0 : index
    %c0_41 = arith.constant 0 : index
    %68 = vector.load %arg4[%c0_38, %c0_39, %67, %c0_40, %c0_41] : memref<1x1x10x10x4xbf16, #tpu.memory_space<vmem>>, vector<1x1x8x10x4xbf16>
    %69 = vector.shape_cast %68 : vector<1x1x8x10x4xbf16> to vector<8x10x4xbf16>
    %70 = vector.extract_strided_slice %69 {offsets = [0, 0, 0], sizes = [8, 8, 4], strides = [1, 1, 1]} : vector<8x10x4xbf16> to vector<8x8x4xbf16>
    %71 = vector.shape_cast %70 : vector<8x8x4xbf16> to vector<64x4xbf16>
    %c0_42 = arith.constant 0 : index
    %c60 = arith.constant 60 : index
    %72 = vector.load %arg9[%c0_42, %c60] : memref<64x108xbf16, #tpu.memory_space<vmem>>, vector<64x4xbf16>
    tpu.vector_store %arg9[%c0_42, %c60], %71 {strides = array<i32>} : memref<64x108xbf16, #tpu.memory_space<vmem>>, vector<64x4xbf16>,
    %73 = vector.extract_strided_slice %69 {offsets = [0, 1, 0], sizes = [8, 8, 4], strides = [1, 1, 1]} : vector<8x10x4xbf16> to vector<8x8x4xbf16>
    %74 = vector.shape_cast %73 : vector<8x8x4xbf16> to vector<64x4xbf16>
    %c0_43 = arith.constant 0 : index
    %c64 = arith.constant 64 : index
    %75 = vector.load %arg9[%c0_43, %c64] : memref<64x108xbf16, #tpu.memory_space<vmem>>, vector<64x4xbf16>
    tpu.vector_store %arg9[%c0_43, %c64], %74 {strides = array<i32>} : memref<64x108xbf16, #tpu.memory_space<vmem>>, vector<64x4xbf16>,
    %76 = vector.extract_strided_slice %69 {offsets = [0, 2, 0], sizes = [8, 8, 4], strides = [1, 1, 1]} : vector<8x10x4xbf16> to vector<8x8x4xbf16>
    %77 = vector.shape_cast %76 : vector<8x8x4xbf16> to vector<64x4xbf16>
    %c0_44 = arith.constant 0 : index
    %c68 = arith.constant 68 : index
    %78 = vector.load %arg9[%c0_44, %c68] : memref<64x108xbf16, #tpu.memory_space<vmem>>, vector<64x4xbf16>
    tpu.vector_store %arg9[%c0_44, %c68], %77 {strides = array<i32>} : memref<64x108xbf16, #tpu.memory_space<vmem>>, vector<64x4xbf16>,
    %c0_i32_45 = arith.constant 0 : i32
    %79 = arith.addi %0, %c0_i32_45 : i32
    %c0_46 = arith.constant 0 : index
    %c0_47 = arith.constant 0 : index
    %80 = arith.index_cast %79 : i32 to index
    %c0_48 = arith.constant 0 : index
    %c0_49 = arith.constant 0 : index
    %81 = vector.load %arg5[%c0_46, %c0_47, %80, %c0_48, %c0_49] : memref<1x1x10x10x4xbf16, #tpu.memory_space<vmem>>, vector<1x1x8x10x4xbf16>
    %82 = vector.shape_cast %81 : vector<1x1x8x10x4xbf16> to vector<8x10x4xbf16>
    %83 = vector.extract_strided_slice %82 {offsets = [0, 0, 0], sizes = [8, 8, 4], strides = [1, 1, 1]} : vector<8x10x4xbf16> to vector<8x8x4xbf16>
    %84 = vector.shape_cast %83 : vector<8x8x4xbf16> to vector<64x4xbf16>
    %c0_50 = arith.constant 0 : index
    %c72 = arith.constant 72 : index
    %85 = vector.load %arg9[%c0_50, %c72] : memref<64x108xbf16, #tpu.memory_space<vmem>>, vector<64x4xbf16>
    tpu.vector_store %arg9[%c0_50, %c72], %84 {strides = array<i32>} : memref<64x108xbf16, #tpu.memory_space<vmem>>, vector<64x4xbf16>,
    %86 = vector.extract_strided_slice %82 {offsets = [0, 1, 0], sizes = [8, 8, 4], strides = [1, 1, 1]} : vector<8x10x4xbf16> to vector<8x8x4xbf16>
    %87 = vector.shape_cast %86 : vector<8x8x4xbf16> to vector<64x4xbf16>
    %c0_51 = arith.constant 0 : index
    %c76 = arith.constant 76 : index
    %88 = vector.load %arg9[%c0_51, %c76] : memref<64x108xbf16, #tpu.memory_space<vmem>>, vector<64x4xbf16>
    tpu.vector_store %arg9[%c0_51, %c76], %87 {strides = array<i32>} : memref<64x108xbf16, #tpu.memory_space<vmem>>, vector<64x4xbf16>,
    %89 = vector.extract_strided_slice %82 {offsets = [0, 2, 0], sizes = [8, 8, 4], strides = [1, 1, 1]} : vector<8x10x4xbf16> to vector<8x8x4xbf16>
    %90 = vector.shape_cast %89 : vector<8x8x4xbf16> to vector<64x4xbf16>
    %c0_52 = arith.constant 0 : index
    %c80 = arith.constant 80 : index
    %91 = vector.load %arg9[%c0_52, %c80] : memref<64x108xbf16, #tpu.memory_space<vmem>>, vector<64x4xbf16>
    tpu.vector_store %arg9[%c0_52, %c80], %90 {strides = array<i32>} : memref<64x108xbf16, #tpu.memory_space<vmem>>, vector<64x4xbf16>,
    %c1_i32_53 = arith.constant 1 : i32
    %92 = arith.addi %0, %c1_i32_53 : i32
    %c0_54 = arith.constant 0 : index
    %c0_55 = arith.constant 0 : index
    %93 = arith.index_cast %92 : i32 to index
    %c0_56 = arith.constant 0 : index
    %c0_57 = arith.constant 0 : index
    %94 = vector.load %arg5[%c0_54, %c0_55, %93, %c0_56, %c0_57] : memref<1x1x10x10x4xbf16, #tpu.memory_space<vmem>>, vector<1x1x8x10x4xbf16>
    %95 = vector.shape_cast %94 : vector<1x1x8x10x4xbf16> to vector<8x10x4xbf16>
    %96 = vector.extract_strided_slice %95 {offsets = [0, 0, 0], sizes = [8, 8, 4], strides = [1, 1, 1]} : vector<8x10x4xbf16> to vector<8x8x4xbf16>
    %97 = vector.shape_cast %96 : vector<8x8x4xbf16> to vector<64x4xbf16>
    %c0_58 = arith.constant 0 : index
    %c84 = arith.constant 84 : index
    %98 = vector.load %arg9[%c0_58, %c84] : memref<64x108xbf16, #tpu.memory_space<vmem>>, vector<64x4xbf16>
    tpu.vector_store %arg9[%c0_58, %c84], %97 {strides = array<i32>} : memref<64x108xbf16, #tpu.memory_space<vmem>>, vector<64x4xbf16>,
    %99 = vector.extract_strided_slice %95 {offsets = [0, 1, 0], sizes = [8, 8, 4], strides = [1, 1, 1]} : vector<8x10x4xbf16> to vector<8x8x4xbf16>
    %100 = vector.shape_cast %99 : vector<8x8x4xbf16> to vector<64x4xbf16>
    %c0_59 = arith.constant 0 : index
    %c88 = arith.constant 88 : index
    %101 = vector.load %arg9[%c0_59, %c88] : memref<64x108xbf16, #tpu.memory_space<vmem>>, vector<64x4xbf16>
    tpu.vector_store %arg9[%c0_59, %c88], %100 {strides = array<i32>} : memref<64x108xbf16, #tpu.memory_space<vmem>>, vector<64x4xbf16>,
    %102 = vector.extract_strided_slice %95 {offsets = [0, 2, 0], sizes = [8, 8, 4], strides = [1, 1, 1]} : vector<8x10x4xbf16> to vector<8x8x4xbf16>
    %103 = vector.shape_cast %102 : vector<8x8x4xbf16> to vector<64x4xbf16>
    %c0_60 = arith.constant 0 : index
    %c92 = arith.constant 92 : index
    %104 = vector.load %arg9[%c0_60, %c92] : memref<64x108xbf16, #tpu.memory_space<vmem>>, vector<64x4xbf16>
    tpu.vector_store %arg9[%c0_60, %c92], %103 {strides = array<i32>} : memref<64x108xbf16, #tpu.memory_space<vmem>>, vector<64x4xbf16>,
    %c2_i32_61 = arith.constant 2 : i32
    %105 = arith.addi %0, %c2_i32_61 : i32
    %c0_62 = arith.constant 0 : index
    %c0_63 = arith.constant 0 : index
    %106 = arith.index_cast %105 : i32 to index
    %c0_64 = arith.constant 0 : index
    %c0_65 = arith.constant 0 : index
    %107 = vector.load %arg5[%c0_62, %c0_63, %106, %c0_64, %c0_65] : memref<1x1x10x10x4xbf16, #tpu.memory_space<vmem>>, vector<1x1x8x10x4xbf16>
    %108 = vector.shape_cast %107 : vector<1x1x8x10x4xbf16> to vector<8x10x4xbf16>
    %109 = vector.extract_strided_slice %108 {offsets = [0, 0, 0], sizes = [8, 8, 4], strides = [1, 1, 1]} : vector<8x10x4xbf16> to vector<8x8x4xbf16>
    %110 = vector.shape_cast %109 : vector<8x8x4xbf16> to vector<64x4xbf16>
    %c0_66 = arith.constant 0 : index
    %c96 = arith.constant 96 : index
    %111 = vector.load %arg9[%c0_66, %c96] : memref<64x108xbf16, #tpu.memory_space<vmem>>, vector<64x4xbf16>
    tpu.vector_store %arg9[%c0_66, %c96], %110 {strides = array<i32>} : memref<64x108xbf16, #tpu.memory_space<vmem>>, vector<64x4xbf16>,
    %112 = vector.extract_strided_slice %108 {offsets = [0, 1, 0], sizes = [8, 8, 4], strides = [1, 1, 1]} : vector<8x10x4xbf16> to vector<8x8x4xbf16>
    %113 = vector.shape_cast %112 : vector<8x8x4xbf16> to vector<64x4xbf16>
    %c0_67 = arith.constant 0 : index
    %c100 = arith.constant 100 : index
    %114 = vector.load %arg9[%c0_67, %c100] : memref<64x108xbf16, #tpu.memory_space<vmem>>, vector<64x4xbf16>
    tpu.vector_store %arg9[%c0_67, %c100], %113 {strides = array<i32>} : memref<64x108xbf16, #tpu.memory_space<vmem>>, vector<64x4xbf16>,
    %115 = vector.extract_strided_slice %108 {offsets = [0, 2, 0], sizes = [8, 8, 4], strides = [1, 1, 1]} : vector<8x10x4xbf16> to vector<8x8x4xbf16>
    %116 = vector.shape_cast %115 : vector<8x8x4xbf16> to vector<64x4xbf16>
    %c0_68 = arith.constant 0 : index
    %c104 = arith.constant 104 : index
    %117 = vector.load %arg9[%c0_68, %c104] : memref<64x108xbf16, #tpu.memory_space<vmem>>, vector<64x4xbf16>
    tpu.vector_store %arg9[%c0_68, %c104], %116 {strides = array<i32>} : memref<64x108xbf16, #tpu.memory_space<vmem>>, vector<64x4xbf16>,
    %c0_69 = arith.constant 0 : index
    %c0_70 = arith.constant 0 : index
    %118 = vector.load %arg9[%c0_69, %c0_70] : memref<64x108xbf16, #tpu.memory_space<vmem>>, vector<64x108xbf16>
    %c0_71 = arith.constant 0 : index
    %c0_72 = arith.constant 0 : index
    %119 = vector.load %arg6[%c0_71, %c0_72] : memref<108x128xbf16, #tpu.memory_space<vmem>>, vector<108x128xbf16>
    %cst = arith.constant dense<0.000000e+00> : vector<64x128xf32>
    %120 = tpu.matmul %118, %119, %cst {dimension_numbers = #tpu.dot_dimension_numbers<[1], [0], [0], [1], [0, 0, 1, 1], [], []>} : vector<64x108xbf16>, vector<108x128xbf16>, vector<64x128xf32> -> vector<64x128xf32>
    %c0_73 = arith.constant 0 : index
    %c0_74 = arith.constant 0 : index
    %121 = vector.load %arg7[%c0_73, %c0_74] : memref<1x128xf32, #tpu.memory_space<vmem>>, vector<1x128xf32>
    %122 = vector.broadcast %121 : vector<1x128xf32> to vector<64x128xf32>
    %123 = arith.addf %120, %122 : vector<64x128xf32>
    %cst_75 = arith.constant 0.000000e+00 : f32
    %124 = vector.broadcast %cst_75 : f32 to vector<64x128xf32>
    %125 = arith.maximumf %123, %124 : vector<64x128xf32>
    %126 = arith.truncf %125 : vector<64x128xf32> to vector<64x128xbf16>
    %c0_76 = arith.constant 0 : index
    %c0_77 = arith.constant 0 : index
    %c0_78 = arith.constant 0 : index
    %c0_79 = arith.constant 0 : index
    %127 = vector.load %arg8[%c0_76, %c0_77, %c0_78, %c0_79] : memref<1x1x64x128xbf16, #tpu.memory_space<vmem>>, vector<1x1x64x128xbf16>
    %128 = vector.shape_cast %127 : vector<1x1x64x128xbf16> to vector<64x128xbf16>
    %129 = vector.shape_cast %126 : vector<64x128xbf16> to vector<1x1x64x128xbf16>
    tpu.vector_store %arg8[%c0_76, %c0_77, %c0_78, %c0_79], %129 {strides = array<i32>} : memref<1x1x64x128xbf16, #tpu.memory_space<vmem>>, vector<1x1x64x128xbf16>,
    return
  }
  func.func @transform_0(%arg0: i32, %arg1: i32, %arg2: i32) -> (i32, i32, i32, i32, i32) {
    %c0_i32 = arith.constant 0 : i32
    %c0_i32_0 = arith.constant 0 : i32
    %c0_i32_1 = arith.constant 0 : i32
    %c0_i32_2 = arith.constant 0 : i32
    return %arg0, %arg1, %c0_i32, %c0_i32_0, %c0_i32_1 : i32, i32, i32, i32, i32
  }
  func.func @transform_1(%arg0: i32, %arg1: i32, %arg2: i32) -> (i32, i32, i32, i32, i32) {
    %c1_i32 = arith.constant 1 : i32
    %0 = arith.addi %arg1, %c1_i32 : i32
    %c0_i32 = arith.constant 0 : i32
    %c0_i32_0 = arith.constant 0 : i32
    %c0_i32_1 = arith.constant 0 : i32
    %c0_i32_2 = arith.constant 0 : i32
    return %arg0, %0, %c0_i32, %c0_i32_0, %c0_i32_1 : i32, i32, i32, i32, i32
  }
  func.func @transform_2(%arg0: i32, %arg1: i32, %arg2: i32) -> (i32, i32, i32, i32, i32) {
    %c2_i32 = arith.constant 2 : i32
    %0 = arith.addi %arg1, %c2_i32 : i32
    %c0_i32 = arith.constant 0 : i32
    %c0_i32_0 = arith.constant 0 : i32
    %c0_i32_1 = arith.constant 0 : i32
    %c0_i32_2 = arith.constant 0 : i32
    return %arg0, %0, %c0_i32, %c0_i32_0, %c0_i32_1 : i32, i32, i32, i32, i32
  }
  func.func @transform_3(%arg0: i32, %arg1: i32, %arg2: i32) -> (i32, i32) {
    %c0_i32 = arith.constant 0 : i32
    %c0_i32_0 = arith.constant 0 : i32
    %c0_i32_1 = arith.constant 0 : i32
    return %c0_i32, %c0_i32_0 : i32, i32
  }
  func.func @transform_4(%arg0: i32, %arg1: i32, %arg2: i32) -> (i32, i32) {
    %c0_i32 = arith.constant 0 : i32
    %c0_i32_0 = arith.constant 0 : i32
    %c0_i32_1 = arith.constant 0 : i32
    return %c0_i32, %c0_i32_0 : i32, i32
  }
  func.func @transform_5(%arg0: i32, %arg1: i32, %arg2: i32) -> (i32, i32, i32, i32) {
    %c0_i32 = arith.constant 0 : i32
    %c0_i32_0 = arith.constant 0 : i32
    return %arg0, %arg1, %arg2, %c0_i32 : i32, i32, i32, i32
  }
}

module attributes {stable_mosaic.version = 11 : i64} {
  func.func @_conv_bn_relu_kernel(%arg0: i32, %arg1: i32, %arg2: i32, %arg3: memref<1x1x10x10x128xbf16, #tpu.memory_space<vmem>>, %arg4: memref<1x1x10x10x128xbf16, #tpu.memory_space<vmem>>, %arg5: memref<1x1x10x10x128xbf16, #tpu.memory_space<vmem>>, %arg6: memref<3456x128xbf16, #tpu.memory_space<vmem>>, %arg7: memref<1x128xf32, #tpu.memory_space<vmem>>, %arg8: memref<1x1x64x128xf32, #tpu.memory_space<vmem>>, %arg9: memref<64x3456xbf16, #tpu.memory_space<vmem>>) attributes {dimension_semantics = [#tpu.dimension_semantics<parallel>, #tpu.dimension_semantics<parallel>, #tpu.dimension_semantics<parallel>], iteration_bounds = array<i64: 2, 8, 1>, scalar_prefetch = 0 : i64, scratch_operands = 1 : i64, tpu.core_type = #tpu.core_type<tc>, window_params = [{transform_indices = @transform_0, window_bounds = array<i64: 1, 1, 10, 10, 128>}, {transform_indices = @transform_1, window_bounds = array<i64: 1, 1, 10, 10, 128>}, {transform_indices = @transform_2, window_bounds = array<i64: 1, 1, 10, 10, 128>}, {pipeline_mode = #tpu.pipeline_mode<synchronous>, transform_indices = @transform_3, window_bounds = array<i64: 3456, 128>}, {pipeline_mode = #tpu.pipeline_mode<synchronous>, transform_indices = @transform_4, window_bounds = array<i64: 1, 128>}, {transform_indices = @transform_5, window_bounds = array<i64: 1, 1, 64, 128>}]} {
    %c8_i32 = arith.constant 8 : i32
    %0 = arith.muli %arg2, %c8_i32 : i32
    %c0_i32 = arith.constant 0 : i32
    %1 = arith.addi %0, %c0_i32 : i32
    %c0 = arith.constant 0 : index
    %c0_0 = arith.constant 0 : index
    %2 = arith.index_cast %1 : i32 to index
    %c0_1 = arith.constant 0 : index
    %c0_2 = arith.constant 0 : index
    %3 = vector.load %arg3[%c0, %c0_0, %2, %c0_1, %c0_2] : memref<1x1x10x10x128xbf16, #tpu.memory_space<vmem>>, vector<1x1x8x10x128xbf16>
    %4 = vector.shape_cast %3 : vector<1x1x8x10x128xbf16> to vector<8x10x128xbf16>
    %5 = vector.extract_strided_slice %4 {offsets = [0, 0, 0], sizes = [8, 8, 128], strides = [1, 1, 1]} : vector<8x10x128xbf16> to vector<8x8x128xbf16>
    %6 = vector.shape_cast %5 : vector<8x8x128xbf16> to vector<64x128xbf16>
    %c0_3 = arith.constant 0 : index
    %c0_4 = arith.constant 0 : index
    %7 = vector.load %arg9[%c0_3, %c0_4] : memref<64x3456xbf16, #tpu.memory_space<vmem>>, vector<64x128xbf16>
    tpu.vector_store %arg9[%c0_3, %c0_4], %6 {strides = array<i32>} : memref<64x3456xbf16, #tpu.memory_space<vmem>>, vector<64x128xbf16>,
    %8 = vector.extract_strided_slice %4 {offsets = [0, 1, 0], sizes = [8, 8, 128], strides = [1, 1, 1]} : vector<8x10x128xbf16> to vector<8x8x128xbf16>
    %9 = vector.shape_cast %8 : vector<8x8x128xbf16> to vector<64x128xbf16>
    %c0_5 = arith.constant 0 : index
    %c128 = arith.constant 128 : index
    %10 = vector.load %arg9[%c0_5, %c128] : memref<64x3456xbf16, #tpu.memory_space<vmem>>, vector<64x128xbf16>
    tpu.vector_store %arg9[%c0_5, %c128], %9 {strides = array<i32>} : memref<64x3456xbf16, #tpu.memory_space<vmem>>, vector<64x128xbf16>,
    %11 = vector.extract_strided_slice %4 {offsets = [0, 2, 0], sizes = [8, 8, 128], strides = [1, 1, 1]} : vector<8x10x128xbf16> to vector<8x8x128xbf16>
    %12 = vector.shape_cast %11 : vector<8x8x128xbf16> to vector<64x128xbf16>
    %c0_6 = arith.constant 0 : index
    %c256 = arith.constant 256 : index
    %13 = vector.load %arg9[%c0_6, %c256] : memref<64x3456xbf16, #tpu.memory_space<vmem>>, vector<64x128xbf16>
    tpu.vector_store %arg9[%c0_6, %c256], %12 {strides = array<i32>} : memref<64x3456xbf16, #tpu.memory_space<vmem>>, vector<64x128xbf16>,
    %c1_i32 = arith.constant 1 : i32
    %14 = arith.addi %0, %c1_i32 : i32
    %c0_7 = arith.constant 0 : index
    %c0_8 = arith.constant 0 : index
    %15 = arith.index_cast %14 : i32 to index
    %c0_9 = arith.constant 0 : index
    %c0_10 = arith.constant 0 : index
    %16 = vector.load %arg3[%c0_7, %c0_8, %15, %c0_9, %c0_10] : memref<1x1x10x10x128xbf16, #tpu.memory_space<vmem>>, vector<1x1x8x10x128xbf16>
    %17 = vector.shape_cast %16 : vector<1x1x8x10x128xbf16> to vector<8x10x128xbf16>
    %18 = vector.extract_strided_slice %17 {offsets = [0, 0, 0], sizes = [8, 8, 128], strides = [1, 1, 1]} : vector<8x10x128xbf16> to vector<8x8x128xbf16>
    %19 = vector.shape_cast %18 : vector<8x8x128xbf16> to vector<64x128xbf16>
    %c0_11 = arith.constant 0 : index
    %c384 = arith.constant 384 : index
    %20 = vector.load %arg9[%c0_11, %c384] : memref<64x3456xbf16, #tpu.memory_space<vmem>>, vector<64x128xbf16>
    tpu.vector_store %arg9[%c0_11, %c384], %19 {strides = array<i32>} : memref<64x3456xbf16, #tpu.memory_space<vmem>>, vector<64x128xbf16>,
    %21 = vector.extract_strided_slice %17 {offsets = [0, 1, 0], sizes = [8, 8, 128], strides = [1, 1, 1]} : vector<8x10x128xbf16> to vector<8x8x128xbf16>
    %22 = vector.shape_cast %21 : vector<8x8x128xbf16> to vector<64x128xbf16>
    %c0_12 = arith.constant 0 : index
    %c512 = arith.constant 512 : index
    %23 = vector.load %arg9[%c0_12, %c512] : memref<64x3456xbf16, #tpu.memory_space<vmem>>, vector<64x128xbf16>
    tpu.vector_store %arg9[%c0_12, %c512], %22 {strides = array<i32>} : memref<64x3456xbf16, #tpu.memory_space<vmem>>, vector<64x128xbf16>,
    %24 = vector.extract_strided_slice %17 {offsets = [0, 2, 0], sizes = [8, 8, 128], strides = [1, 1, 1]} : vector<8x10x128xbf16> to vector<8x8x128xbf16>
    %25 = vector.shape_cast %24 : vector<8x8x128xbf16> to vector<64x128xbf16>
    %c0_13 = arith.constant 0 : index
    %c640 = arith.constant 640 : index
    %26 = vector.load %arg9[%c0_13, %c640] : memref<64x3456xbf16, #tpu.memory_space<vmem>>, vector<64x128xbf16>
    tpu.vector_store %arg9[%c0_13, %c640], %25 {strides = array<i32>} : memref<64x3456xbf16, #tpu.memory_space<vmem>>, vector<64x128xbf16>,
    %c2_i32 = arith.constant 2 : i32
    %27 = arith.addi %0, %c2_i32 : i32
    %c0_14 = arith.constant 0 : index
    %c0_15 = arith.constant 0 : index
    %28 = arith.index_cast %27 : i32 to index
    %c0_16 = arith.constant 0 : index
    %c0_17 = arith.constant 0 : index
    %29 = vector.load %arg3[%c0_14, %c0_15, %28, %c0_16, %c0_17] : memref<1x1x10x10x128xbf16, #tpu.memory_space<vmem>>, vector<1x1x8x10x128xbf16>
    %30 = vector.shape_cast %29 : vector<1x1x8x10x128xbf16> to vector<8x10x128xbf16>
    %31 = vector.extract_strided_slice %30 {offsets = [0, 0, 0], sizes = [8, 8, 128], strides = [1, 1, 1]} : vector<8x10x128xbf16> to vector<8x8x128xbf16>
    %32 = vector.shape_cast %31 : vector<8x8x128xbf16> to vector<64x128xbf16>
    %c0_18 = arith.constant 0 : index
    %c768 = arith.constant 768 : index
    %33 = vector.load %arg9[%c0_18, %c768] : memref<64x3456xbf16, #tpu.memory_space<vmem>>, vector<64x128xbf16>
    tpu.vector_store %arg9[%c0_18, %c768], %32 {strides = array<i32>} : memref<64x3456xbf16, #tpu.memory_space<vmem>>, vector<64x128xbf16>,
    %34 = vector.extract_strided_slice %30 {offsets = [0, 1, 0], sizes = [8, 8, 128], strides = [1, 1, 1]} : vector<8x10x128xbf16> to vector<8x8x128xbf16>
    %35 = vector.shape_cast %34 : vector<8x8x128xbf16> to vector<64x128xbf16>
    %c0_19 = arith.constant 0 : index
    %c896 = arith.constant 896 : index
    %36 = vector.load %arg9[%c0_19, %c896] : memref<64x3456xbf16, #tpu.memory_space<vmem>>, vector<64x128xbf16>
    tpu.vector_store %arg9[%c0_19, %c896], %35 {strides = array<i32>} : memref<64x3456xbf16, #tpu.memory_space<vmem>>, vector<64x128xbf16>,
    %37 = vector.extract_strided_slice %30 {offsets = [0, 2, 0], sizes = [8, 8, 128], strides = [1, 1, 1]} : vector<8x10x128xbf16> to vector<8x8x128xbf16>
    %38 = vector.shape_cast %37 : vector<8x8x128xbf16> to vector<64x128xbf16>
    %c0_20 = arith.constant 0 : index
    %c1024 = arith.constant 1024 : index
    %39 = vector.load %arg9[%c0_20, %c1024] : memref<64x3456xbf16, #tpu.memory_space<vmem>>, vector<64x128xbf16>
    tpu.vector_store %arg9[%c0_20, %c1024], %38 {strides = array<i32>} : memref<64x3456xbf16, #tpu.memory_space<vmem>>, vector<64x128xbf16>,
    %c0_i32_21 = arith.constant 0 : i32
    %40 = arith.addi %0, %c0_i32_21 : i32
    %c0_22 = arith.constant 0 : index
    %c0_23 = arith.constant 0 : index
    %41 = arith.index_cast %40 : i32 to index
    %c0_24 = arith.constant 0 : index
    %c0_25 = arith.constant 0 : index
    %42 = vector.load %arg4[%c0_22, %c0_23, %41, %c0_24, %c0_25] : memref<1x1x10x10x128xbf16, #tpu.memory_space<vmem>>, vector<1x1x8x10x128xbf16>
    %43 = vector.shape_cast %42 : vector<1x1x8x10x128xbf16> to vector<8x10x128xbf16>
    %44 = vector.extract_strided_slice %43 {offsets = [0, 0, 0], sizes = [8, 8, 128], strides = [1, 1, 1]} : vector<8x10x128xbf16> to vector<8x8x128xbf16>
    %45 = vector.shape_cast %44 : vector<8x8x128xbf16> to vector<64x128xbf16>
    %c0_26 = arith.constant 0 : index
    %c1152 = arith.constant 1152 : index
    %46 = vector.load %arg9[%c0_26, %c1152] : memref<64x3456xbf16, #tpu.memory_space<vmem>>, vector<64x128xbf16>
    tpu.vector_store %arg9[%c0_26, %c1152], %45 {strides = array<i32>} : memref<64x3456xbf16, #tpu.memory_space<vmem>>, vector<64x128xbf16>,
    %47 = vector.extract_strided_slice %43 {offsets = [0, 1, 0], sizes = [8, 8, 128], strides = [1, 1, 1]} : vector<8x10x128xbf16> to vector<8x8x128xbf16>
    %48 = vector.shape_cast %47 : vector<8x8x128xbf16> to vector<64x128xbf16>
    %c0_27 = arith.constant 0 : index
    %c1280 = arith.constant 1280 : index
    %49 = vector.load %arg9[%c0_27, %c1280] : memref<64x3456xbf16, #tpu.memory_space<vmem>>, vector<64x128xbf16>
    tpu.vector_store %arg9[%c0_27, %c1280], %48 {strides = array<i32>} : memref<64x3456xbf16, #tpu.memory_space<vmem>>, vector<64x128xbf16>,
    %50 = vector.extract_strided_slice %43 {offsets = [0, 2, 0], sizes = [8, 8, 128], strides = [1, 1, 1]} : vector<8x10x128xbf16> to vector<8x8x128xbf16>
    %51 = vector.shape_cast %50 : vector<8x8x128xbf16> to vector<64x128xbf16>
    %c0_28 = arith.constant 0 : index
    %c1408 = arith.constant 1408 : index
    %52 = vector.load %arg9[%c0_28, %c1408] : memref<64x3456xbf16, #tpu.memory_space<vmem>>, vector<64x128xbf16>
    tpu.vector_store %arg9[%c0_28, %c1408], %51 {strides = array<i32>} : memref<64x3456xbf16, #tpu.memory_space<vmem>>, vector<64x128xbf16>,
    %c1_i32_29 = arith.constant 1 : i32
    %53 = arith.addi %0, %c1_i32_29 : i32
    %c0_30 = arith.constant 0 : index
    %c0_31 = arith.constant 0 : index
    %54 = arith.index_cast %53 : i32 to index
    %c0_32 = arith.constant 0 : index
    %c0_33 = arith.constant 0 : index
    %55 = vector.load %arg4[%c0_30, %c0_31, %54, %c0_32, %c0_33] : memref<1x1x10x10x128xbf16, #tpu.memory_space<vmem>>, vector<1x1x8x10x128xbf16>
    %56 = vector.shape_cast %55 : vector<1x1x8x10x128xbf16> to vector<8x10x128xbf16>
    %57 = vector.extract_strided_slice %56 {offsets = [0, 0, 0], sizes = [8, 8, 128], strides = [1, 1, 1]} : vector<8x10x128xbf16> to vector<8x8x128xbf16>
    %58 = vector.shape_cast %57 : vector<8x8x128xbf16> to vector<64x128xbf16>
    %c0_34 = arith.constant 0 : index
    %c1536 = arith.constant 1536 : index
    %59 = vector.load %arg9[%c0_34, %c1536] : memref<64x3456xbf16, #tpu.memory_space<vmem>>, vector<64x128xbf16>
    tpu.vector_store %arg9[%c0_34, %c1536], %58 {strides = array<i32>} : memref<64x3456xbf16, #tpu.memory_space<vmem>>, vector<64x128xbf16>,
    %60 = vector.extract_strided_slice %56 {offsets = [0, 1, 0], sizes = [8, 8, 128], strides = [1, 1, 1]} : vector<8x10x128xbf16> to vector<8x8x128xbf16>
    %61 = vector.shape_cast %60 : vector<8x8x128xbf16> to vector<64x128xbf16>
    %c0_35 = arith.constant 0 : index
    %c1664 = arith.constant 1664 : index
    %62 = vector.load %arg9[%c0_35, %c1664] : memref<64x3456xbf16, #tpu.memory_space<vmem>>, vector<64x128xbf16>
    tpu.vector_store %arg9[%c0_35, %c1664], %61 {strides = array<i32>} : memref<64x3456xbf16, #tpu.memory_space<vmem>>, vector<64x128xbf16>,
    %63 = vector.extract_strided_slice %56 {offsets = [0, 2, 0], sizes = [8, 8, 128], strides = [1, 1, 1]} : vector<8x10x128xbf16> to vector<8x8x128xbf16>
    %64 = vector.shape_cast %63 : vector<8x8x128xbf16> to vector<64x128xbf16>
    %c0_36 = arith.constant 0 : index
    %c1792 = arith.constant 1792 : index
    %65 = vector.load %arg9[%c0_36, %c1792] : memref<64x3456xbf16, #tpu.memory_space<vmem>>, vector<64x128xbf16>
    tpu.vector_store %arg9[%c0_36, %c1792], %64 {strides = array<i32>} : memref<64x3456xbf16, #tpu.memory_space<vmem>>, vector<64x128xbf16>,
    %c2_i32_37 = arith.constant 2 : i32
    %66 = arith.addi %0, %c2_i32_37 : i32
    %c0_38 = arith.constant 0 : index
    %c0_39 = arith.constant 0 : index
    %67 = arith.index_cast %66 : i32 to index
    %c0_40 = arith.constant 0 : index
    %c0_41 = arith.constant 0 : index
    %68 = vector.load %arg4[%c0_38, %c0_39, %67, %c0_40, %c0_41] : memref<1x1x10x10x128xbf16, #tpu.memory_space<vmem>>, vector<1x1x8x10x128xbf16>
    %69 = vector.shape_cast %68 : vector<1x1x8x10x128xbf16> to vector<8x10x128xbf16>
    %70 = vector.extract_strided_slice %69 {offsets = [0, 0, 0], sizes = [8, 8, 128], strides = [1, 1, 1]} : vector<8x10x128xbf16> to vector<8x8x128xbf16>
    %71 = vector.shape_cast %70 : vector<8x8x128xbf16> to vector<64x128xbf16>
    %c0_42 = arith.constant 0 : index
    %c1920 = arith.constant 1920 : index
    %72 = vector.load %arg9[%c0_42, %c1920] : memref<64x3456xbf16, #tpu.memory_space<vmem>>, vector<64x128xbf16>
    tpu.vector_store %arg9[%c0_42, %c1920], %71 {strides = array<i32>} : memref<64x3456xbf16, #tpu.memory_space<vmem>>, vector<64x128xbf16>,
    %73 = vector.extract_strided_slice %69 {offsets = [0, 1, 0], sizes = [8, 8, 128], strides = [1, 1, 1]} : vector<8x10x128xbf16> to vector<8x8x128xbf16>
    %74 = vector.shape_cast %73 : vector<8x8x128xbf16> to vector<64x128xbf16>
    %c0_43 = arith.constant 0 : index
    %c2048 = arith.constant 2048 : index
    %75 = vector.load %arg9[%c0_43, %c2048] : memref<64x3456xbf16, #tpu.memory_space<vmem>>, vector<64x128xbf16>
    tpu.vector_store %arg9[%c0_43, %c2048], %74 {strides = array<i32>} : memref<64x3456xbf16, #tpu.memory_space<vmem>>, vector<64x128xbf16>,
    %76 = vector.extract_strided_slice %69 {offsets = [0, 2, 0], sizes = [8, 8, 128], strides = [1, 1, 1]} : vector<8x10x128xbf16> to vector<8x8x128xbf16>
    %77 = vector.shape_cast %76 : vector<8x8x128xbf16> to vector<64x128xbf16>
    %c0_44 = arith.constant 0 : index
    %c2176 = arith.constant 2176 : index
    %78 = vector.load %arg9[%c0_44, %c2176] : memref<64x3456xbf16, #tpu.memory_space<vmem>>, vector<64x128xbf16>
    tpu.vector_store %arg9[%c0_44, %c2176], %77 {strides = array<i32>} : memref<64x3456xbf16, #tpu.memory_space<vmem>>, vector<64x128xbf16>,
    %c0_i32_45 = arith.constant 0 : i32
    %79 = arith.addi %0, %c0_i32_45 : i32
    %c0_46 = arith.constant 0 : index
    %c0_47 = arith.constant 0 : index
    %80 = arith.index_cast %79 : i32 to index
    %c0_48 = arith.constant 0 : index
    %c0_49 = arith.constant 0 : index
    %81 = vector.load %arg5[%c0_46, %c0_47, %80, %c0_48, %c0_49] : memref<1x1x10x10x128xbf16, #tpu.memory_space<vmem>>, vector<1x1x8x10x128xbf16>
    %82 = vector.shape_cast %81 : vector<1x1x8x10x128xbf16> to vector<8x10x128xbf16>
    %83 = vector.extract_strided_slice %82 {offsets = [0, 0, 0], sizes = [8, 8, 128], strides = [1, 1, 1]} : vector<8x10x128xbf16> to vector<8x8x128xbf16>
    %84 = vector.shape_cast %83 : vector<8x8x128xbf16> to vector<64x128xbf16>
    %c0_50 = arith.constant 0 : index
    %c2304 = arith.constant 2304 : index
    %85 = vector.load %arg9[%c0_50, %c2304] : memref<64x3456xbf16, #tpu.memory_space<vmem>>, vector<64x128xbf16>
    tpu.vector_store %arg9[%c0_50, %c2304], %84 {strides = array<i32>} : memref<64x3456xbf16, #tpu.memory_space<vmem>>, vector<64x128xbf16>,
    %86 = vector.extract_strided_slice %82 {offsets = [0, 1, 0], sizes = [8, 8, 128], strides = [1, 1, 1]} : vector<8x10x128xbf16> to vector<8x8x128xbf16>
    %87 = vector.shape_cast %86 : vector<8x8x128xbf16> to vector<64x128xbf16>
    %c0_51 = arith.constant 0 : index
    %c2432 = arith.constant 2432 : index
    %88 = vector.load %arg9[%c0_51, %c2432] : memref<64x3456xbf16, #tpu.memory_space<vmem>>, vector<64x128xbf16>
    tpu.vector_store %arg9[%c0_51, %c2432], %87 {strides = array<i32>} : memref<64x3456xbf16, #tpu.memory_space<vmem>>, vector<64x128xbf16>,
    %89 = vector.extract_strided_slice %82 {offsets = [0, 2, 0], sizes = [8, 8, 128], strides = [1, 1, 1]} : vector<8x10x128xbf16> to vector<8x8x128xbf16>
    %90 = vector.shape_cast %89 : vector<8x8x128xbf16> to vector<64x128xbf16>
    %c0_52 = arith.constant 0 : index
    %c2560 = arith.constant 2560 : index
    %91 = vector.load %arg9[%c0_52, %c2560] : memref<64x3456xbf16, #tpu.memory_space<vmem>>, vector<64x128xbf16>
    tpu.vector_store %arg9[%c0_52, %c2560], %90 {strides = array<i32>} : memref<64x3456xbf16, #tpu.memory_space<vmem>>, vector<64x128xbf16>,
    %c1_i32_53 = arith.constant 1 : i32
    %92 = arith.addi %0, %c1_i32_53 : i32
    %c0_54 = arith.constant 0 : index
    %c0_55 = arith.constant 0 : index
    %93 = arith.index_cast %92 : i32 to index
    %c0_56 = arith.constant 0 : index
    %c0_57 = arith.constant 0 : index
    %94 = vector.load %arg5[%c0_54, %c0_55, %93, %c0_56, %c0_57] : memref<1x1x10x10x128xbf16, #tpu.memory_space<vmem>>, vector<1x1x8x10x128xbf16>
    %95 = vector.shape_cast %94 : vector<1x1x8x10x128xbf16> to vector<8x10x128xbf16>
    %96 = vector.extract_strided_slice %95 {offsets = [0, 0, 0], sizes = [8, 8, 128], strides = [1, 1, 1]} : vector<8x10x128xbf16> to vector<8x8x128xbf16>
    %97 = vector.shape_cast %96 : vector<8x8x128xbf16> to vector<64x128xbf16>
    %c0_58 = arith.constant 0 : index
    %c2688 = arith.constant 2688 : index
    %98 = vector.load %arg9[%c0_58, %c2688] : memref<64x3456xbf16, #tpu.memory_space<vmem>>, vector<64x128xbf16>
    tpu.vector_store %arg9[%c0_58, %c2688], %97 {strides = array<i32>} : memref<64x3456xbf16, #tpu.memory_space<vmem>>, vector<64x128xbf16>,
    %99 = vector.extract_strided_slice %95 {offsets = [0, 1, 0], sizes = [8, 8, 128], strides = [1, 1, 1]} : vector<8x10x128xbf16> to vector<8x8x128xbf16>
    %100 = vector.shape_cast %99 : vector<8x8x128xbf16> to vector<64x128xbf16>
    %c0_59 = arith.constant 0 : index
    %c2816 = arith.constant 2816 : index
    %101 = vector.load %arg9[%c0_59, %c2816] : memref<64x3456xbf16, #tpu.memory_space<vmem>>, vector<64x128xbf16>
    tpu.vector_store %arg9[%c0_59, %c2816], %100 {strides = array<i32>} : memref<64x3456xbf16, #tpu.memory_space<vmem>>, vector<64x128xbf16>,
    %102 = vector.extract_strided_slice %95 {offsets = [0, 2, 0], sizes = [8, 8, 128], strides = [1, 1, 1]} : vector<8x10x128xbf16> to vector<8x8x128xbf16>
    %103 = vector.shape_cast %102 : vector<8x8x128xbf16> to vector<64x128xbf16>
    %c0_60 = arith.constant 0 : index
    %c2944 = arith.constant 2944 : index
    %104 = vector.load %arg9[%c0_60, %c2944] : memref<64x3456xbf16, #tpu.memory_space<vmem>>, vector<64x128xbf16>
    tpu.vector_store %arg9[%c0_60, %c2944], %103 {strides = array<i32>} : memref<64x3456xbf16, #tpu.memory_space<vmem>>, vector<64x128xbf16>,
    %c2_i32_61 = arith.constant 2 : i32
    %105 = arith.addi %0, %c2_i32_61 : i32
    %c0_62 = arith.constant 0 : index
    %c0_63 = arith.constant 0 : index
    %106 = arith.index_cast %105 : i32 to index
    %c0_64 = arith.constant 0 : index
    %c0_65 = arith.constant 0 : index
    %107 = vector.load %arg5[%c0_62, %c0_63, %106, %c0_64, %c0_65] : memref<1x1x10x10x128xbf16, #tpu.memory_space<vmem>>, vector<1x1x8x10x128xbf16>
    %108 = vector.shape_cast %107 : vector<1x1x8x10x128xbf16> to vector<8x10x128xbf16>
    %109 = vector.extract_strided_slice %108 {offsets = [0, 0, 0], sizes = [8, 8, 128], strides = [1, 1, 1]} : vector<8x10x128xbf16> to vector<8x8x128xbf16>
    %110 = vector.shape_cast %109 : vector<8x8x128xbf16> to vector<64x128xbf16>
    %c0_66 = arith.constant 0 : index
    %c3072 = arith.constant 3072 : index
    %111 = vector.load %arg9[%c0_66, %c3072] : memref<64x3456xbf16, #tpu.memory_space<vmem>>, vector<64x128xbf16>
    tpu.vector_store %arg9[%c0_66, %c3072], %110 {strides = array<i32>} : memref<64x3456xbf16, #tpu.memory_space<vmem>>, vector<64x128xbf16>,
    %112 = vector.extract_strided_slice %108 {offsets = [0, 1, 0], sizes = [8, 8, 128], strides = [1, 1, 1]} : vector<8x10x128xbf16> to vector<8x8x128xbf16>
    %113 = vector.shape_cast %112 : vector<8x8x128xbf16> to vector<64x128xbf16>
    %c0_67 = arith.constant 0 : index
    %c3200 = arith.constant 3200 : index
    %114 = vector.load %arg9[%c0_67, %c3200] : memref<64x3456xbf16, #tpu.memory_space<vmem>>, vector<64x128xbf16>
    tpu.vector_store %arg9[%c0_67, %c3200], %113 {strides = array<i32>} : memref<64x3456xbf16, #tpu.memory_space<vmem>>, vector<64x128xbf16>,
    %115 = vector.extract_strided_slice %108 {offsets = [0, 2, 0], sizes = [8, 8, 128], strides = [1, 1, 1]} : vector<8x10x128xbf16> to vector<8x8x128xbf16>
    %116 = vector.shape_cast %115 : vector<8x8x128xbf16> to vector<64x128xbf16>
    %c0_68 = arith.constant 0 : index
    %c3328 = arith.constant 3328 : index
    %117 = vector.load %arg9[%c0_68, %c3328] : memref<64x3456xbf16, #tpu.memory_space<vmem>>, vector<64x128xbf16>
    tpu.vector_store %arg9[%c0_68, %c3328], %116 {strides = array<i32>} : memref<64x3456xbf16, #tpu.memory_space<vmem>>, vector<64x128xbf16>,
    %c0_69 = arith.constant 0 : index
    %c0_70 = arith.constant 0 : index
    %118 = vector.load %arg9[%c0_69, %c0_70] : memref<64x3456xbf16, #tpu.memory_space<vmem>>, vector<64x3456xbf16>
    %c0_71 = arith.constant 0 : index
    %c0_72 = arith.constant 0 : index
    %119 = vector.load %arg6[%c0_71, %c0_72] : memref<3456x128xbf16, #tpu.memory_space<vmem>>, vector<3456x128xbf16>
    %cst = arith.constant dense<0.000000e+00> : vector<64x128xf32>
    %120 = tpu.matmul %118, %119, %cst {dimension_numbers = #tpu.dot_dimension_numbers<[1], [0], [0], [1], [0, 0, 1, 1], [], []>} : vector<64x3456xbf16>, vector<3456x128xbf16>, vector<64x128xf32> -> vector<64x128xf32>
    %c0_73 = arith.constant 0 : index
    %c0_74 = arith.constant 0 : index
    %121 = vector.load %arg7[%c0_73, %c0_74] : memref<1x128xf32, #tpu.memory_space<vmem>>, vector<1x128xf32>
    %122 = vector.broadcast %121 : vector<1x128xf32> to vector<64x128xf32>
    %123 = arith.addf %120, %122 : vector<64x128xf32>
    %cst_75 = arith.constant 0.000000e+00 : f32
    %124 = vector.broadcast %cst_75 : f32 to vector<64x128xf32>
    %125 = arith.maximumf %123, %124 : vector<64x128xf32>
    %c0_76 = arith.constant 0 : index
    %c0_77 = arith.constant 0 : index
    %c0_78 = arith.constant 0 : index
    %c0_79 = arith.constant 0 : index
    %126 = vector.load %arg8[%c0_76, %c0_77, %c0_78, %c0_79] : memref<1x1x64x128xf32, #tpu.memory_space<vmem>>, vector<1x1x64x128xf32>
    %127 = vector.shape_cast %126 : vector<1x1x64x128xf32> to vector<64x128xf32>
    %128 = vector.shape_cast %125 : vector<64x128xf32> to vector<1x1x64x128xf32>
    tpu.vector_store %arg8[%c0_76, %c0_77, %c0_78, %c0_79], %128 {strides = array<i32>} : memref<1x1x64x128xf32, #tpu.memory_space<vmem>>, vector<1x1x64x128xf32>,
    return
  }
  func.func @transform_0(%arg0: i32, %arg1: i32, %arg2: i32) -> (i32, i32, i32, i32, i32) {
    %c0_i32 = arith.constant 0 : i32
    %c0_i32_0 = arith.constant 0 : i32
    %c0_i32_1 = arith.constant 0 : i32
    %c0_i32_2 = arith.constant 0 : i32
    return %arg0, %arg1, %c0_i32, %c0_i32_0, %c0_i32_1 : i32, i32, i32, i32, i32
  }
  func.func @transform_1(%arg0: i32, %arg1: i32, %arg2: i32) -> (i32, i32, i32, i32, i32) {
    %c1_i32 = arith.constant 1 : i32
    %0 = arith.addi %arg1, %c1_i32 : i32
    %c0_i32 = arith.constant 0 : i32
    %c0_i32_0 = arith.constant 0 : i32
    %c0_i32_1 = arith.constant 0 : i32
    %c0_i32_2 = arith.constant 0 : i32
    return %arg0, %0, %c0_i32, %c0_i32_0, %c0_i32_1 : i32, i32, i32, i32, i32
  }
  func.func @transform_2(%arg0: i32, %arg1: i32, %arg2: i32) -> (i32, i32, i32, i32, i32) {
    %c2_i32 = arith.constant 2 : i32
    %0 = arith.addi %arg1, %c2_i32 : i32
    %c0_i32 = arith.constant 0 : i32
    %c0_i32_0 = arith.constant 0 : i32
    %c0_i32_1 = arith.constant 0 : i32
    %c0_i32_2 = arith.constant 0 : i32
    return %arg0, %0, %c0_i32, %c0_i32_0, %c0_i32_1 : i32, i32, i32, i32, i32
  }
  func.func @transform_3(%arg0: i32, %arg1: i32, %arg2: i32) -> (i32, i32) {
    %c0_i32 = arith.constant 0 : i32
    %c0_i32_0 = arith.constant 0 : i32
    %c0_i32_1 = arith.constant 0 : i32
    return %c0_i32, %c0_i32_0 : i32, i32
  }
  func.func @transform_4(%arg0: i32, %arg1: i32, %arg2: i32) -> (i32, i32) {
    %c0_i32 = arith.constant 0 : i32
    %c0_i32_0 = arith.constant 0 : i32
    %c0_i32_1 = arith.constant 0 : i32
    return %c0_i32, %c0_i32_0 : i32, i32
  }
  func.func @transform_5(%arg0: i32, %arg1: i32, %arg2: i32) -> (i32, i32, i32, i32) {
    %c0_i32 = arith.constant 0 : i32
    %c0_i32_0 = arith.constant 0 : i32
    return %arg0, %arg1, %arg2, %c0_i32 : i32, i32, i32, i32
  }
}

</mosaic_0001>

<bundles_post_ra>
// kernel: double_conv_forward.2
= control target key start
LH: loop header
LB: loop body
LE: loop exit
PB: predicated region body
PF: predicated region fallthrough
CT: control target
= control target key end

     0   :  { %s3734_s18 = smov 0   ;;  %s3736_s19 = smov 0   ;;  %s5332_s0 = inlined_call_operand.vmem [shape: bf16[2,10,10,10,4], index: 0, kind: input, shape index: {}, may-alias: {0,1,2}]   ;;  %s5333_s1 = inlined_call_operand.vmem [shape: bf16[2,10,10,10,4], index: 1, kind: input, shape index: {}, may-alias: {0,1,2}]   ;;  %s5334_s2 = inlined_call_operand.vmem [shape: bf16[2,10,10,10,4], index: 2, kind: input, shape index: {}, may-alias: {0,1,2}]   ;;  %s5335_s3 = inlined_call_operand.vmem [shape: bf16[108,128], index: 3, kind: input, shape index: {}]   ;;  %s5336_s4 = inlined_call_operand.vmem [shape: f32[1,128], index: 4, kind: input, shape index: {}]   ;;  %s5337_s5 = inlined_call_operand.vmem [shape: bf16[2,8,64,128], index: 5, kind: output, shape index: {}]  }
   0x1   :  { %s3738_s20 = smov 0   ;;  %s3740_s21 = smov 0  }
   0x2   :  { %s3742_s22 = smov 0  }
   0x3 LB: > { %s30_s23 = sadd.s32 1, %s3668_s20  ;;  %s34_s24 = sadd.s32 1, %s3672_s21  ;;  %s3676_s22 = sphi %s3742_s22, %s15_s22   ;;  %s3672_s21 = sphi %s3740_s21, %s5347_s21   ;;  %s3668_s20 = sphi %s3738_s20, %s5346_s20   ;;  %s3664_s19 = sphi %s3736_s19, %s5345_s19   ;;  %s3660_s18 = sphi %s3734_s18, %s5344_s18  }
   0x4   : > { %p32_p0 = scmp.ge.s32.totalorder %s30_s23, 8  ;;  %p3135_p1 = scmp.ge.s32.totalorder %s3676_s22, 1 }
   0x5   : > { %p256_p2 = scmp.lt.s32.totalorder %s3676_s22, 17 }
   0x6   : > { %s5349_s23 = smov (%p32_p0, %s30_s23), 0  ;;  %s5351_s24 = smov (!%p32_p0, %s34_s24), %s3672_s21 }
   0x7   : > { %p257_p3 = pnand %p3135_p1, %p256_p2  ;;  %p36_p4 = scmp.ge.s32.totalorder %s5351_s24, 2 }
   0x8   : > { %p316_p5 = scmp.lt.s32.totalorder (!%p257_p3), %s3664_s19, 1  ;;  %p318_p6 = scmp.lt.s32.totalorder (!%p257_p3), %s3660_s18, 9  ;;  %vm563_vm0 = vcmask (!%p257_p3), 1042432   ;;  %vm564_vm1 = vcmask (!%p257_p3), 1046532   ;;  %vm411_vm3 = vsmask.f32 (!%p257_p3), 3328 }
   0x9   : > { %s5353_s24 = smov (%p36_p4, %s5351_s24), 0  ;;  %260 = sbr.rel (%p257_p3) target bundleno = 623 (0x26f), region = 40 }
   0xa   : > { %s3678_s8 = smov (!%p257_p3), 12   ;;  %vm3828_vm2 = vmor (!%p257_p3), %vm563_vm0, %vm564_vm1  ;;  %vm412_vm4 = vsmask.f32 (!%p257_p3), 7440  ;;  %s3679_s9 = smov (!%p257_p3), 8   ;;  %vm406_vm6 = vcmask (!%p257_p3), 31744   ;;  %vm550_vm7 = vcmask (!%p257_p3), 64544  }
   0xb   : > { %vm3938_vm5 = vmor (!%p257_p3), %vm411_vm3, %vm412_vm4  ;;  %s3680_s10 = smov (!%p257_p3), 4   ;;  %s3681_s11 = smov (!%p257_p3), 16   ;;  %vm622_vm8 = vcmask (!%p257_p3), 97344   ;;  %vm679_vm9 = vcmask (!%p257_p3), 130144   ;;  %vm820_vm10 = vcmask (!%p257_p3), 162944   ;;  %vm889_vm11 = vcmask (!%p257_p3), 195744  }
   0xc   : > { %s325_s12 = sadd.s32 (!%p257_p3), 1, %s3660_s18  ;;  %s3682_s14 = smov (!%p257_p3), 20   ;;  %vm946_vm12 = vcmask (!%p257_p3), 228544   ;;  %vm1087_vm13 = vcmask (!%p257_p3), 261344   ;;  %vm1156_vm14 = vcmask (!%p257_p3), 294144   ;;  %vm1211_vm15 = vcmask (!%p257_p3), 326944  }
   0xd   : > { %p4103_p7 = scmp.lt.s32.totalorder (!%p257_p3), %s325_s12, 9  ;;  %s3683_s15 = smov (!%p257_p3), 24   ;;  %vm1352_vm0 = vcmask (!%p257_p3), 359744   ;;  %vm1421_vm1 = vcmask (!%p257_p3), 392544   ;;  %vm1476_vm3 = vcmask (!%p257_p3), 425344   ;;  %vm1617_vm4 = vcmask (!%p257_p3), 458144  }
   0xe   : > { %s3685_s6 = smov (!%p257_p3), 32   ;;  %s336_s13 = sadd.s32 (!%p257_p3), 2, %s3660_s18 }
   0xf   : > { %p4598_p8 = scmp.lt.s32.totalorder (!%p257_p3), %s336_s13, 9  ;;  %p350_p9 = scmp.lt.s32.totalorder (!%p257_p3), %s3660_s18, 7 }
  0x10   : > { %s5355_s19 = smov (!%p316_p5, %s3664_s19), 1  ;;  %s5357_s12 = smov (!%p4103_p7, %s325_s12), 9 }
  0x11   : > { %s319_s25 = scalar_select %p318_p6, %s3660_s18, 9 }
  0x12   : > { %s3771_s26 = smul.u32 200, %s5355_s19  ;;  %s5359_s13 = smov (!%p4598_p8, %s336_s13), 9 }
  0x13   : > { %s3520_s27 = smul.u32 20, %s319_s25  ;;  %s3684_s25 = smov 28  }
  0x14   : > { %s3522_s16 = smul.u32 20, %s5357_s12  ;;  %s3690_s12 = smov 52  }
  0x15   : > { %s322_s28 = sadd.s32 %s3771_s26, %s3520_s27  ;;  %s5361_s18 = smov (!%p350_p9, %s3660_s18), 7 }
  0x16   : > { %s3136_s29 = sshll.u32 %s322_s28, 2  ;;  %s4191_s17 = sadd.s32 %s3522_s16, %s3771_s26 }
  0x17   : > { %s3777_s7 = scalar_lea.vmem %s5332_s0, %s3136_s29  ;;  %s3137_s27 = sshll.u32 %s4191_s17, 2 }
  0x18   : > { %v3780_v0 = vld [vmem:[%s3777_s7 + $0x28] sm:$0xf]  ;;  %v3783_v1 = vld [vmem:[%s3777_s7 + $0x30] sm:$0xf]  ;;  %v3802_v12 = vld [vmem:[%s3777_s7 + $0x20] sm:$0xf]  ;;  %s4216_s30 = scalar_lea.vmem %s5333_s1, %s3137_s27 }
  0x19   : > { %v3786_v2 = vld [vmem:[%s3777_s7 + $0x8] sm:$0xf]  ;;  %v3180_v3 = vcombine.low %v3780_v0, %v3783_v1  ;;  %v741_v4 = vshrl.u32 %v3780_v0, 16  ;;  %v744_v5 = vshll.u32 %v3780_v0, 16  ;;  %v755_v6 = vshrl.u32 %v3783_v1, 16  ;;  %s3692_s16 = smov 60  }
  0x1a   : > { %v3794_v7 = vld [vmem:[%s3777_s7 + $0x10] sm:$0xf]  ;;  %v758_v8 = vshll.u32 %v3783_v1, 16  ;;  %v685_v10 = vshrl.u32 %v3786_v2, 16  ;;  %v688_v11 = vshll.u32 %v3786_v2, 16  ;;  %v3154_v26 = vrot.slane %v3802_v12, 9 }
  0x1b   : > { %v3178_v9 = vcombine.low %v3786_v2, %v3794_v7  ;;  %v3804_v13 = vrot.slane %v741_v4, 4  ;;  %v3806_v14 = vrot.slane %v744_v5, 5  ;;  %v3808_v15 = vrot.slane %v755_v6, 4  ;;  %671 = vrot.lane.b32.xlu1 %v3180_v3, %s3678_s8  ;;  %v3813_v17 = vld [vmem:[%s3777_s7 + $0x24] sm:$0x1]  ;;  %s3523_s17 = smul.u32 20, %s5359_s13 }
  0x1c   : > { %v699_v16 = vshrl.u32 %v3794_v7, 16  ;;  %v3815_v18 = vrot.slane %v758_v8, 5  ;;  %v3817_v19 = vrot.slane %v685_v10, 4  ;;  %v3819_v20 = vrot.slane %v688_v11, 5  ;;  %v3824_v22 = vld [vmem:[%s3777_s7 + $0x28] sm:$0xf] }
  0x1d   : > { %v702_v21 = vshll.u32 %v3794_v7, 16  ;;  %667 = vrot.lane.b32.xlu0 %v3178_v9, %s3678_s8  ;;  %v3835_v25 = vld [vmem:[%s3777_s7 + $0x2c] sm:$0x1]  ;;  %v584_v27 = vrot.slane %v3813_v17, 5  ;;  %v3155_v28 = vrot.slane %v3824_v22, 9  ;;  %v747_v38 = vor.u32 %v3806_v14, %v3804_v13  ;;  %s3693_s27 = smov 64  }
  0x1e   : > { %v3832_v24 = vrot.slane %v699_v16, 4  ;;  %v588_v30 = vrot.slane %v3835_v25, 5  ;;  %v3844_v31 = vld [vmem:[%s3777_s7] sm:$0xf]  ;;  %v3847_v32 = vld [vmem:[%s3777_s7 + $0x4] sm:$0x1]  ;;  %v761_v44 = vor.u32 %v3815_v18, %v3808_v15  ;;  %v691_v56 = vor.u32 %v3819_v20, %v3817_v19 }
  0x1f   : > { %v3840_v29 = vrot.slane %v702_v21, 5  ;;  %v585_v33 = vsel %vm3828_vm2, %v3154_v26, %v584_v27  ;;  %v3852_v34 = vld [vmem:[%s3777_s7 + $0x8] sm:$0xf]  ;;  %v3855_v35 = vld [vmem:[%s3777_s7 + $0xc] sm:$0x1]  ;;  %v3150_v36 = vrot.slane %v3844_v31, 9 }
  0x20   : > { %v568_v37 = vrot.slane %v3847_v32, 5  ;;  %v589_v39 = vsel %vm3828_vm2, %v3155_v28, %v588_v30  ;;  %v3151_v40 = vrot.slane %v3852_v34, 9  ;;  %v572_v41 = vrot.slane %v3855_v35, 5  ;;  %v3866_v42 = vld [vmem:[%s3777_s7 + $0x30] sm:$0xf]  ;;  %s3140_s13 = sshll.u32 %s5355_s19, 6 }
  0x21   : > { %v3869_v43 = vld [vmem:[%s3777_s7 + $0x34] sm:$0x1]  ;;  %v3160_v45 = vcombine.low %v585_v33, %v589_v39  ;;  %v3876_v47 = vld [vmem:[%s3777_s7 + $0x38] sm:$0xf]  ;;  %v3879_v48 = vld [vmem:[%s3777_s7 + $0x3c] sm:$0x1]  ;;  %v705_v8 = vor.u32 %v3840_v29, %v3832_v24 }
  0x22   : > { %v569_v46 = vsel %vm3828_vm2, %v3150_v36, %v568_v37  ;;  %v3156_v49 = vrot.slane %v3866_v42, 9  ;;  %v592_v50 = vrot.slane %v3869_v43, 5  ;;  %v573_v51 = vsel %vm3828_vm2, %v3151_v40, %v572_v41  ;;  %v370_v54 = vld [vmem:[%s3777_s7 + $0x10] sm:$0xf]  ;;  %v371_v55 = vld [vmem:[%s3777_s7 + $0x14] sm:$0x1] }
  0x23   : > { %v3157_v52 = vrot.slane %v3876_v47, 9  ;;  %v596_v53 = vrot.slane %v3879_v48, 5  ;;  %614 = vrot.lane.b32.xlu1 %v3160_v45, %s3679_s9  ;;  %v3158_v57 = vcombine.low %v569_v46, %v573_v51  ;;  %v372_v59 = vld [vmem:[%s3777_s7 + $0x18] sm:$0xf]  ;;  %v373_v60 = vld [vmem:[%s3777_s7 + $0x1c] sm:$0x1] }
  0x24   : > { %v593_v58 = vsel %vm3828_vm2, %v3156_v49, %v592_v50  ;;  %v3152_v61 = vrot.slane %v370_v54, 9  ;;  %v576_v62 = vrot.slane %v371_v55, 5  ;;  %v3153_v3 = vrot.slane %v372_v59, 9  ;;  %v3899_v5 = vld [vmem:[%s3777_s7 + $0x38] sm:$0xf] }
  0x25   : > { %v597_v63 = vsel %vm3828_vm2, %v3157_v52, %v596_v53  ;;  %v580_v4 = vrot.slane %v373_v60, 5  ;;  %v3902_v6 = vld [vmem:[%s3777_s7 + $0x40] sm:$0xf]  ;;  %610 = vrot.lane.b32.xlu0 %v3158_v57, %s3679_s9  ;;  %v769_v16 = vshrl.u32 %v3899_v5, 16  ;;  %v3913_v21 = vld [vmem:[%s3777_s7 + $0x18] sm:$0xf] }
  0x26   : > { %v3161_v9 = vcombine.low %v593_v58, %v597_v63  ;;  %v577_v10 = vsel %vm3828_vm2, %v3152_v61, %v576_v62  ;;  %v3181_v11 = vcombine.low %v3899_v5, %v3902_v6  ;;  %v3916_v26 = vld [vmem:[%s3777_s7 + $0x20] sm:$0xf]  ;;  %v772_v28 = vshll.u32 %v3899_v5, 16 }
  0x27   : > { %v581_v27 = vsel %vm3828_vm2, %v3153_v3, %v580_v4  ;;  %v783_v30 = vshrl.u32 %v3902_v6, 16  ;;  %v786_v33 = vshll.u32 %v3902_v6, 16  ;;  %v3179_v37 = vcombine.low %v3913_v21, %v3916_v26 }
  0x28   : > { %616 = vrot.lane.b32.xlu1 %v3161_v9, %s3679_s9  ;;  %v3159_v36 = vcombine.low %v577_v10, %v581_v27  ;;  %v713_v39 = vshrl.u32 %v3913_v21, 16  ;;  %v716_v40 = vshll.u32 %v3913_v21, 16  ;;  %v727_v41 = vshrl.u32 %v3916_v26, 16 }
  0x29   : > { %v730_v45 = vshll.u32 %v3916_v26, 16  ;;  %v443_v46 = vshrl.u32 %v370_v54, 16  ;;  %v446_v49 = vshll.u32 %v370_v54, 16  ;;  %v452_v50 = vshll.u32 %v371_v55, 16 }
  0x2a   : > { %612 = vrot.lane.b32.xlu0 %v3159_v36, %s3679_s9  ;;  %v457_v51 = vshrl.u32 %v372_v59, 16  ;;  %v460_v52 = vshll.u32 %v372_v59, 16  ;;  %v466_v53 = vshll.u32 %v373_v60, 16  ;;  %v415_v61 = vshrl.u32 %v3844_v31, 16  ;;  %s3687_s9 = smov 40  }
  0x2b   : > { %v445_v57 = vrot.slane %v443_v46, 4  ;;  %v448_v58 = vrot.slane %v446_v49, 5  ;;  %v418_v62 = vshll.u32 %v3844_v31, 16  ;;  %v454_v63 = vrot.slane %v452_v50, 5 }
  0x2c   : > { %673 = vrot.lane.b32.xlu1 %v3181_v11, %s3678_s8  ;;  %v459_v3 = vrot.slane %v457_v51, 4  ;;  %v462_v4 = vrot.slane %v460_v52, 5  ;;  %v468_v9 = vrot.slane %v466_v53, 5  ;;  %v417_v54 = vrot.slane %v415_v61, 4 }
  0x2d   : > { %v449_v10 = vor.u32 %v448_v58, %v445_v57  ;;  %v420_v27 = vrot.slane %v418_v62, 5  ;;  %v424_v55 = vshll.u32 %v3847_v32, 16  ;;  %v429_v60 = vshrl.u32 %v3852_v34, 16 }
  0x2e   : > { %669 = vrot.lane.b32.xlu0 %v3179_v37, %s3678_s8  ;;  %v463_v31 = vor.u32 %v462_v4, %v459_v3  ;;  %v432_v11 = vshll.u32 %v3852_v34, 16  ;;  %v438_v36 = vshll.u32 %v3855_v35, 16  ;;  %v499_v32 = vshrl.u32 %v3866_v42, 16  ;;  %s3686_s8 = smov 36  }
  0x2f   : > { %v450_v46 = vrot.slane %v449_v10, 4  ;;  %v421_v49 = vor.u32 %v420_v27, %v417_v54  ;;  %v426_v50 = vrot.slane %v424_v55, 5  ;;  %v431_v37 = vrot.slane %v429_v60, 4 }
  0x30   : > { %v464_v51 = vrot.slane %v463_v31, 4  ;;  %v434_v52 = vrot.slane %v432_v11, 5  ;;  %v440_v53 = vrot.slane %v438_v36, 5  ;;  %v501_v61 = vrot.slane %v499_v32, 4 }
  0x31   : > { %v455_v57 = vsel %vm3938_vm5, %v450_v46, %v454_v63  ;;  %v422_v58 = vrot.slane %v421_v49, 4  ;;  %v502_v62 = vshll.u32 %v3866_v42, 16  ;;  %v508_v3 = vshll.u32 %v3869_v43, 16 }
  0x32   : > { %v469_v34 = vsel %vm3938_vm5, %v464_v51, %v468_v9  ;;  %v435_v35 = vor.u32 %v434_v52, %v431_v37  ;;  %v513_v4 = vshrl.u32 %v3876_v47, 16  ;;  %v516_v55 = vshll.u32 %v3876_v47, 16  ;;  %v3965_v52 = vld [vmem:[%s3777_s7 + $0x2c] sm:$0x1] }
  0x33   : > { %v3147_v10 = vcombine.low %v455_v57, %v469_v34  ;;  %v427_v54 = vsel %vm3938_vm5, %v422_v58, %v426_v50  ;;  %v504_v27 = vrot.slane %v502_v62, 5  ;;  %v510_v31 = vrot.slane %v508_v3, 5  ;;  %v3969_v62 = vld [vmem:[%s3777_s7 + $0x34] sm:$0x1]  ;;  %v3979_v3 = vld [vmem:[%s3777_s7 + $0xc] sm:$0x1] }
  0x34   : > { %v436_v63 = vrot.slane %v435_v35, 4  ;;  %v515_v60 = vrot.slane %v513_v4, 4  ;;  %v522_v42 = vshll.u32 %v3879_v48, 16  ;;  %v518_v43 = vrot.slane %v516_v55, 5 }
  0x35   : > { %540 = vrot.lane.b32.xlu1 %v3147_v10, %s3680_s10  ;;  %v505_v9 = vor.u32 %v504_v27, %v501_v61  ;;  %v471_v11 = vshrl.u32 %v3802_v12, 16  ;;  %v474_v36 = vshll.u32 %v3802_v12, 16  ;;  %v480_v49 = vshll.u32 %v3813_v17, 16  ;;  %v3986_v27 = vld [vmem:[%s3777_s7 + $0x14] sm:$0x1] }
  0x36   : > { %v441_v46 = vsel %vm3938_vm5, %v436_v63, %v440_v53  ;;  %v524_v47 = vrot.slane %v522_v42, 5  ;;  %v485_v50 = vshrl.u32 %v3824_v22, 16  ;;  %v519_v51 = vor.u32 %v518_v43, %v515_v60 }
  0x37   : > { %v3146_v48 = vcombine.low %v427_v54, %v441_v46  ;;  %v506_v32 = vrot.slane %v505_v9, 4  ;;  %v473_v37 = vrot.slane %v471_v11, 4  ;;  %v476_v57 = vrot.slane %v474_v36, 5  ;;  %v4000_v9 = vld [vmem:[%s3777_s7 + $0x3c] sm:$0x1] }
  0x38   : > { %v482_v58 = vrot.slane %v480_v49, 5  ;;  %v487_v61 = vrot.slane %v485_v50, 4  ;;  %v488_v12 = vshll.u32 %v3824_v22, 16  ;;  %v520_v53 = vrot.slane %v519_v51, 4  ;;  %v4012_v11 = vld [vmem:[%s3777_s7 + $0x44] sm:$0x1] }
  0x39   : > { %538 = vrot.lane.b32.xlu0 %v3146_v48, %s3680_s10  ;;  %v511_v17 = vsel %vm3938_vm5, %v506_v32, %v510_v31  ;;  %v494_v34 = vshll.u32 %v3835_v25, 16  ;;  %v748_v35 = vrot.slane %v747_v38, 4  ;;  %v477_v4 = vor.u32 %v476_v57, %v473_v37  ;;  %v4022_v50 = vld [vmem:[%s3777_s7 + $0x1c] sm:$0x1] }
  0x3a   : > { %v490_v10 = vrot.slane %v488_v12, 5  ;;  %v750_v22 = vshll.u32 %v3965_v52, 16  ;;  %v762_v54 = vrot.slane %v761_v44, 4  ;;  %v525_v25 = vsel %vm3938_vm5, %v520_v53, %v524_v47 }
  0x3b   : > { %v496_v55 = vrot.slane %v494_v34, 5  ;;  %v764_v13 = vshll.u32 %v3969_v62, 16  ;;  %v692_v14 = vrot.slane %v691_v56, 4  ;;  %v3149_v38 = vcombine.low %v511_v17, %v525_v25 }
  0x3c   : > { %v478_v63 = vrot.slane %v477_v4, 4  ;;  %v491_v31 = vor.u32 %v490_v10, %v487_v61  ;;  %v752_v60 = vrot.slane %v750_v22, 5  ;;  %v694_v15 = vshll.u32 %v3979_v3, 16  ;;  %v4033_v61 = vld [vmem:[%s3777_s7 + $0x24] sm:$0x1] }
  0x3d   : > { %v766_v42 = vrot.slane %v764_v13, 5  ;;  %v706_v18 = vrot.slane %v705_v8, 4  ;;  %v708_v44 = vshll.u32 %v3986_v27, 16  ;;  %544 = vrot.lane.b32.xlu1 %v3149_v38, %s3680_s10  ;;  %v771_v43 = vrot.slane %v769_v16, 4 }
  0x3e   : > { %v483_v19 = vsel %vm3938_vm5, %v478_v63, %v482_v58  ;;  %v492_v20 = vrot.slane %v491_v31, 4  ;;  %v753_v56 = vsel %vm3938_vm5, %v748_v35, %v752_v60  ;;  %v696_v29 = vrot.slane %v694_v15, 5 }
  0x3f   : > { %v767_v24 = vsel %vm3938_vm5, %v762_v54, %v766_v42  ;;  %v710_v8 = vrot.slane %v708_v44, 5  ;;  %v774_v36 = vrot.slane %v772_v28, 5  ;;  %v778_v49 = vshll.u32 %v4000_v9, 16 }
  0x40   : > { %v497_v46 = vsel %vm3938_vm5, %v492_v20, %v496_v55  ;;  %v3184_v47 = vcombine.low %v753_v56, %v767_v24  ;;  %v785_v16 = vrot.slane %v783_v30, 4  ;;  %v697_v32 = vsel %vm3938_vm5, %v692_v14, %v696_v29  ;;  %v4074_v24 = vld [vmem:[%s3777_s7 + $0x30] sm:$0xf]  ;;  %v4077_v29 = vld [vmem:[%s3777_s7 + $0x38] sm:$0xf] }
  0x41   : > { %v3148_v48 = vcombine.low %v483_v19, %v497_v46  ;;  %v711_v51 = vsel %vm3938_vm5, %v706_v18, %v710_v8  ;;  %v775_v28 = vor.u32 %v774_v36, %v771_v43  ;;  %v780_v57 = vrot.slane %v778_v49, 5  ;;  %v4090_v49 = vld [vmem:[%s3777_s7 + $0x10] sm:$0xf] }
  0x42   : > { %812 = vrot.lane.b32.xlu1 %v3184_v47, %s3681_s11  ;;  %v3182_v37 = vcombine.low %v697_v32, %v711_v51  ;;  %v788_v58 = vrot.slane %v786_v33, 5  ;;  %v792_v30 = vshll.u32 %v4012_v11, 16  ;;  %v715_v17 = vrot.slane %v713_v39, 4 }
  0x43   : > { %542 = vrot.lane.b32.xlu0 %v3148_v48, %s3680_s10  ;;  %v776_v12 = vrot.slane %v775_v28, 4  ;;  %v718_v53 = vrot.slane %v716_v40, 5  ;;  %v722_v34 = vshll.u32 %v4022_v50, 16  ;;  %v729_v33 = vrot.slane %v727_v41, 4  ;;  %v4113_v28 = vld [vmem:[%s3777_s7 + $0x40] sm:$0xf] }
  0x44   : > { %v789_v35 = vor.u32 %v788_v58, %v785_v16  ;;  %v794_v4 = vrot.slane %v792_v30, 5  ;;  %v732_v10 = vrot.slane %v730_v45, 5  ;;  %v736_v39 = vshll.u32 %v4033_v61, 16  ;;  %v4093_v16 = vld [vmem:[%s3777_s7 + $0x18] sm:$0xf]  ;;  %s3688_s10 = smov 44  }
  0x45   : > { %v781_v22 = vsel %vm3938_vm5, %v776_v12, %v780_v57  ;;  %v719_v54 = vor.u32 %v718_v53, %v715_v17  ;;  %v724_v25 = vrot.slane %v722_v34, 5  ;;  %v3190_v40 = vrot.slane %v3780_v0, 9  ;;  %v4125_v12 = vld [vmem:[%s3777_s7 + $0x20] sm:$0xf]  ;;  %v4128_v17 = vld [vmem:[%s3777_s7 + $0x28] sm:$0xf] }
  0x46   : > { %v790_v55 = vrot.slane %v789_v35, 4  ;;  %v733_v13 = vor.u32 %v732_v10, %v729_v33  ;;  %v851_v14 = vrot.slane %v3965_v52, 5  ;;  %v738_v41 = vrot.slane %v736_v39, 5  ;;  %v4135_v33 = vld [vmem:[%s3777_s7 + $0x34] sm:$0x1] }
  0x47   : > { %808 = vrot.lane.b32.xlu0 %v3182_v37, %s3681_s11  ;;  %v720_v38 = vrot.slane %v719_v54, 4  ;;  %v3191_v45 = vrot.slane %v3783_v1, 9  ;;  %v855_v63 = vrot.slane %v3969_v62, 5  ;;  %v3186_v0 = vrot.slane %v3786_v2, 9  ;;  %v4116_v37 = vld [vmem:[%s3777_s7 + $0x48] sm:$0xf] }
  0x48   : > { %v795_v31 = vsel %vm3938_vm5, %v790_v55, %v794_v4  ;;  %v734_v60 = vrot.slane %v733_v13, 4  ;;  %v852_v42 = vsel %vm3828_vm2, %v3190_v40, %v851_v14  ;;  %v835_v62 = vrot.slane %v3979_v3, 5  ;;  %v4143_v39 = vld [vmem:[%s3777_s7 + $0x3c] sm:$0x1] }
  0x49   : > { %v3185_v52 = vcombine.low %v781_v22, %v795_v31  ;;  %v725_v15 = vsel %vm3938_vm5, %v720_v38, %v724_v25  ;;  %v856_v1 = vsel %vm3828_vm2, %v3191_v45, %v855_v63  ;;  %v3187_v19 = vrot.slane %v3794_v7, 9  ;;  %v4152_v38 = vld [vmem:[%s3777_s7 + $0x14] sm:$0x1] }
  0x4a   : > { %v739_v18 = vsel %vm3938_vm5, %v734_v60, %v738_v41  ;;  %v3196_v44 = vcombine.low %v852_v42, %v856_v1  ;;  %v839_v20 = vrot.slane %v3986_v27, 5  ;;  %v836_v56 = vsel %vm3828_vm2, %v3186_v0, %v835_v62  ;;  %v4166_v1 = vld [vmem:[%s3777_s7 + $0x1c] sm:$0x1] }
  0x4b   : > { %814 = vrot.lane.b32.xlu1 %v3185_v52, %s3681_s11  ;;  %v3183_v2 = vcombine.low %v725_v15, %v739_v18  ;;  %v3192_v43 = vrot.slane %v3899_v5, 9  ;;  %v859_v3 = vrot.slane %v4000_v9, 5  ;;  %v3193_v27 = vrot.slane %v3902_v6, 9 }
  0x4c   : > { %v840_v7 = vsel %vm3828_vm2, %v3187_v19, %v839_v20  ;;  %v863_v8 = vrot.slane %v4012_v11, 5  ;;  %v3188_v36 = vrot.slane %v3913_v21, 9  ;;  %v843_v9 = vrot.slane %v4022_v50, 5 }
  0x4d   : > { %810 = vrot.lane.b32.xlu0 %v3183_v2, %s3681_s11  ;;  %v3194_v46 = vcombine.low %v836_v56, %v840_v7  ;;  %v860_v5 = vsel %vm3828_vm2, %v3192_v43, %v859_v3  ;;  %v3189_v47 = vrot.slane %v3916_v26, 9  ;;  %v847_v21 = vrot.slane %v4033_v61, 5  ;;  %v4171_v43 = vld [vmem:[%s3777_s7 + $0x44] sm:$0x1]  ;;  %s3689_s11 = smov 48  }
  0x4e   : > { %v864_v6 = vsel %vm3828_vm2, %v3193_v27, %v863_v8  ;;  %v3216_v11 = vcombine.low %v4074_v24, %v4077_v29  ;;  %v1008_v48 = vshrl.u32 %v4074_v24, 16  ;;  %v844_v50 = vsel %vm3828_vm2, %v3188_v36, %v843_v9 }
  0x4f   : > { %881 = vrot.lane.b32.xlu1 %v3196_v44, %s3682_s14  ;;  %v3197_v26 = vcombine.low %v860_v5, %v864_v6  ;;  %v1011_v32 = vshll.u32 %v4074_v24, 16  ;;  %v1022_v51 = vshrl.u32 %v4077_v29, 16  ;;  %v848_v57 = vsel %vm3828_vm2, %v3189_v47, %v847_v21 }
  0x50   : > { %v1025_v58 = vshll.u32 %v4077_v29, 16  ;;  %v3214_v30 = vcombine.low %v4090_v49, %v4093_v16  ;;  %v952_v61 = vshrl.u32 %v4090_v49, 16  ;;  %v3195_v53 = vcombine.low %v844_v50, %v848_v57  ;;  %v4186_v57 = vld [vmem:[%s3777_s7 + $0x24] sm:$0x1] }
  0x51   : > { %877 = vrot.lane.b32.xlu0 %v3194_v46, %s3682_s14  ;;  %v955_v34 = vshll.u32 %v4090_v49, 16  ;;  %v966_v35 = vshrl.u32 %v4093_v16, 16  ;;  %v969_v4 = vshll.u32 %v4093_v16, 16  ;;  %v3217_v10 = vcombine.low %v4113_v28, %v4116_v37 }
  0x52   : > { %v1036_v22 = vshrl.u32 %v4113_v28, 16  ;;  %v1039_v54 = vshll.u32 %v4113_v28, 16  ;;  %v1050_v25 = vshrl.u32 %v4116_v37, 16  ;;  %v1053_v55 = vshll.u32 %v4116_v37, 16 }
  0x53   : > { %883 = vrot.lane.b32.xlu1 %v3197_v26, %s3682_s14  ;;  %v3215_v13 = vcombine.low %v4125_v12, %v4128_v17  ;;  %v980_v40 = vshrl.u32 %v4125_v12, 16  ;;  %v983_v14 = vshll.u32 %v4125_v12, 16  ;;  %v994_v41 = vshrl.u32 %v4128_v17, 16 }
  0x54   : > { %v997_v45 = vshll.u32 %v4128_v17, 16  ;;  %v1010_v63 = vrot.slane %v1008_v48, 4  ;;  %v1013_v31 = vrot.slane %v1011_v32, 5  ;;  %v1017_v60 = vshll.u32 %v4135_v33, 16 }
  0x55   : > { %879 = vrot.lane.b32.xlu0 %v3195_v53, %s3682_s14  ;;  %v1024_v42 = vrot.slane %v1022_v51, 4  ;;  %v1027_v0 = vrot.slane %v1025_v58, 5  ;;  %v1031_v52 = vshll.u32 %v4143_v39, 16  ;;  %v954_v62 = vrot.slane %v952_v61, 4  ;;  %s3691_s14 = smov 56  }
  0x56   : > { %v1014_v15 = vor.u32 %v1013_v31, %v1010_v63  ;;  %v957_v18 = vrot.slane %v955_v34, 5  ;;  %v961_v44 = vshll.u32 %v4152_v38, 16  ;;  %v1019_v19 = vrot.slane %v1017_v60, 5 }
  0x57   : > { %938 = vrot.lane.b32.xlu1 %v3216_v11, %s3683_s15  ;;  %v1028_v20 = vor.u32 %v1027_v0, %v1024_v42  ;;  %v1033_v2 = vrot.slane %v1031_v52, 5  ;;  %v968_v56 = vrot.slane %v966_v35, 4  ;;  %v971_v8 = vrot.slane %v969_v4, 5  ;;  %v4179_v11 = vld [vmem:[%s3777_s7 + $0x4c] sm:$0x1] }
  0x58   : > { %v1015_v3 = vrot.slane %v1014_v15, 4  ;;  %v958_v7 = vor.u32 %v957_v18, %v954_v62  ;;  %v963_v27 = vrot.slane %v961_v44, 5  ;;  %v975_v46 = vshll.u32 %v4166_v1, 16 }
  0x59   : > { %934 = vrot.lane.b32.xlu0 %v3214_v30, %s3683_s15  ;;  %v1029_v36 = vrot.slane %v1028_v20, 4  ;;  %v1038_v5 = vrot.slane %v1036_v22, 4  ;;  %v1041_v9 = vrot.slane %v1039_v54, 5  ;;  %v972_v21 = vor.u32 %v971_v8, %v968_v56 }
  0x5a   : > { %v1020_v47 = vsel %vm3938_vm5, %v1015_v3, %v1019_v19  ;;  %v959_v6 = vrot.slane %v958_v7, 4  ;;  %v1045_v48 = vshll.u32 %v4171_v43, 16  ;;  %v977_v50 = vrot.slane %v975_v46, 5 }
  0x5b   : > { %940 = vrot.lane.b32.xlu1 %v3217_v10, %s3683_s15  ;;  %v1034_v26 = vsel %vm3938_vm5, %v1029_v36, %v1033_v2  ;;  %v1042_v32 = vor.u32 %v1041_v9, %v1038_v5  ;;  %v1052_v51 = vrot.slane %v1050_v25, 4  ;;  %v973_v61 = vrot.slane %v972_v21, 4  ;;  %v4196_v10 = vld [vmem:[%s3777_s7 + $0x2c] sm:$0x1] }
  0x5c   : > { %v3220_v58 = vcombine.low %v1020_v47, %v1034_v26  ;;  %v964_v30 = vsel %vm3938_vm5, %v959_v6, %v963_v27  ;;  %v1047_v53 = vrot.slane %v1045_v48, 5  ;;  %v1055_v35 = vrot.slane %v1053_v55, 5  ;;  %v4242_v6 = vld [vmem:[%s4216_s30 + $0x28] sm:$0xf] }
  0x5d   : > { %936 = vrot.lane.b32.xlu0 %v3215_v13, %s3683_s15  ;;  %v1043_v34 = vrot.slane %v1042_v32, 4  ;;  %v1059_v4 = vshll.u32 %v4179_v11, 16  ;;  %v982_v22 = vrot.slane %v980_v40, 4  ;;  %v978_v54 = vsel %vm3938_vm5, %v973_v61, %v977_v50  ;;  %v4256_v32 = vld [vmem:[%s4216_s30 + $0x8] sm:$0xf] }
  0x5e   : > { %v985_v25 = vrot.slane %v983_v14, 5  ;;  %v989_v63 = vshll.u32 %v4186_v57, 16  ;;  %v996_v31 = vrot.slane %v994_v41, 4  ;;  %v3218_v60 = vcombine.low %v964_v30, %v978_v54  ;;  %v4283_v54 = vld [vmem:[%s4216_s30 + $0x10] sm:$0xf] }
  0x5f   : > { %1079 = vrot.lane.b32.xlu1 %v3220_v58, %s3684_s25  ;;  %v1048_v13 = vsel %vm3938_vm5, %v1043_v34, %v1047_v53  ;;  %v1056_v55 = vor.u32 %v1055_v35, %v1052_v51  ;;  %v1061_v42 = vrot.slane %v1059_v4, 5  ;;  %v999_v40 = vrot.slane %v997_v45, 5  ;;  %v4271_v53 = vld [vmem:[%s4216_s30 + $0x30] sm:$0xf]  ;;  %v4274_v34 = vld [vmem:[%s4216_s30 + $0x38] sm:$0xf] }
  0x60   : > { %v986_v0 = vor.u32 %v985_v25, %v982_v22  ;;  %v991_v52 = vrot.slane %v989_v63, 5  ;;  %v1003_v14 = vshll.u32 %v4196_v10, 16  ;;  %v3226_v15 = vrot.slane %v4074_v24, 9  ;;  %v4286_v25 = vld [vmem:[%s4216_s30 + $0x18] sm:$0xf] }
  0x61   : > { %1075 = vrot.lane.b32.xlu0 %v3218_v60, %s3684_s25  ;;  %v1057_v41 = vrot.slane %v1056_v55, 4  ;;  %v1118_v62 = vrot.slane %v4135_v33, 5  ;;  %v3227_v18 = vrot.slane %v4077_v29, 9  ;;  %v1000_v19 = vor.u32 %v999_v40, %v996_v31  ;;  %v4292_v55 = vld [vmem:[%s4216_s30 + $0x24] sm:$0x1] }
  0x62   : > { %v987_v44 = vrot.slane %v986_v0, 4  ;;  %v1005_v20 = vrot.slane %v1003_v14, 5  ;;  %v1122_v2 = vrot.slane %v4143_v39, 5  ;;  %v3222_v33 = vrot.slane %v4090_v49, 9  ;;  %v4233_v49 = vld [vmem:[%s4216_s30 + $0x20] sm:$0xf] }
  0x63   : > { %v1062_v45 = vsel %vm3938_vm5, %v1057_v41, %v1061_v42  ;;  %v1119_v24 = vsel %vm3828_vm2, %v3226_v15, %v1118_v62  ;;  %v1102_v29 = vrot.slane %v4152_v38, 5  ;;  %v1001_v3 = vrot.slane %v1000_v19, 4  ;;  %v4301_v14 = vld [vmem:[%s4216_s30 + $0x2c] sm:$0x1] }
  0x64   : > { %v3221_v56 = vcombine.low %v1048_v13, %v1062_v45  ;;  %v992_v39 = vsel %vm3938_vm5, %v987_v44, %v991_v52  ;;  %v1123_v7 = vsel %vm3828_vm2, %v3227_v18, %v1122_v2  ;;  %v3223_v36 = vrot.slane %v4093_v16, 9  ;;  %v4310_v44 = vld [vmem:[%s4216_s30 + $0x4] sm:$0x1] }
  0x65   : > { %v3232_v27 = vcombine.low %v1119_v24, %v1123_v7  ;;  %v1103_v8 = vsel %vm3828_vm2, %v3222_v33, %v1102_v29  ;;  %v1106_v46 = vrot.slane %v4166_v1, 5  ;;  %v1006_v38 = vsel %vm3938_vm5, %v1001_v3, %v1005_v20  ;;  %v4318_v3 = vld [vmem:[%s4216_s30 + $0xc] sm:$0x1] }
  0x66   : > { %1081 = vrot.lane.b32.xlu1 %v3221_v56, %s3684_s25  ;;  %v3228_v5 = vrot.slane %v4113_v28, 9  ;;  %v1126_v9 = vrot.slane %v4171_v43, 5  ;;  %v3229_v47 = vrot.slane %v4116_v37, 9  ;;  %v3219_v16 = vcombine.low %v992_v39, %v1006_v38  ;;  %v4253_v43 = vld [vmem:[%s4216_s30] sm:$0xf] }
  0x67   : > { %v1107_v1 = vsel %vm3828_vm2, %v3223_v36, %v1106_v46  ;;  %v1130_v21 = vrot.slane %v4179_v11, 5  ;;  %v3224_v48 = vrot.slane %v4125_v12, 9  ;;  %v1110_v28 = vrot.slane %v4186_v57, 5 }
  0x68   : > { %v3230_v26 = vcombine.low %v1103_v8, %v1107_v1  ;;  %v1127_v50 = vsel %vm3828_vm2, %v3228_v5, %v1126_v9  ;;  %v3225_v37 = vrot.slane %v4128_v17, 9  ;;  %1077 = vrot.lane.b32.xlu0 %v3219_v16, %s3684_s25  ;;  %v1114_v12 = vrot.slane %v4196_v10, 5  ;;  %v4323_v9 = vld [vmem:[%s4216_s30 + $0x34] sm:$0x1]  ;;  %s4664_s25 = sadd.s32 %s3523_s17, %s3771_s26  ;;  %s3701_s17 = smov 96  }
  0x69   : > { %v1131_v11 = vsel %vm3828_vm2, %v3229_v47, %v1130_v21  ;;  %v3236_v51 = vcombine.low %v4233_v49, %v4242_v6  ;;  %v1273_v57 = vshrl.u32 %v4233_v49, 16  ;;  %v1111_v58 = vsel %vm3828_vm2, %v3224_v48, %v1110_v28  ;;  %s3138_s26 = sshll.u32 %s4664_s25, 2 }
  0x6a   : > { %1148 = vrot.lane.b32.xlu1 %v3232_v27, %s3685_s6  ;;  %v3233_v17 = vcombine.low %v1127_v50, %v1131_v11  ;;  %v1276_v30 = vshll.u32 %v4233_v49, 16  ;;  %v1287_v61 = vshrl.u32 %v4242_v6, 16  ;;  %v1115_v35 = vsel %vm3828_vm2, %v3225_v37, %v1114_v12 }
  0x6b   : > { %v1290_v4 = vshll.u32 %v4242_v6, 16  ;;  %v3234_v10 = vcombine.low %v4253_v43, %v4256_v32  ;;  %v1217_v22 = vshrl.u32 %v4253_v43, 16  ;;  %v3231_v63 = vcombine.low %v1111_v58, %v1115_v35  ;;  %v4337_v35 = vld [vmem:[%s4216_s30 + $0x14] sm:$0x1] }
  0x6c   : > { %v1220_v31 = vshll.u32 %v4253_v43, 16  ;;  %v1231_v60 = vshrl.u32 %v4256_v32, 16  ;;  %v1234_v13 = vshll.u32 %v4256_v32, 16  ;;  %1144 = vrot.lane.b32.xlu0 %v3230_v26, %s3685_s6  ;;  %v3237_v42 = vcombine.low %v4271_v53, %v4274_v34 }
  0x6d   : > { %v1301_v0 = vshrl.u32 %v4271_v53, 16  ;;  %v1304_v52 = vshll.u32 %v4271_v53, 16  ;;  %v1315_v40 = vshrl.u32 %v4274_v34, 16  ;;  %v1318_v41 = vshll.u32 %v4274_v34, 16 }
  0x6e   : > { %1150 = vrot.lane.b32.xlu1 %v3233_v17, %s3685_s6  ;;  %v3235_v15 = vcombine.low %v4283_v54, %v4286_v25  ;;  %v1245_v62 = vshrl.u32 %v4283_v54, 16  ;;  %v1248_v18 = vshll.u32 %v4283_v54, 16  ;;  %v1259_v19 = vshrl.u32 %v4286_v25, 16 }
  0x6f   : > { %v1262_v20 = vshll.u32 %v4286_v25, 16  ;;  %v1275_v2 = vrot.slane %v1273_v57, 4  ;;  %v1278_v45 = vrot.slane %v1276_v30, 5  ;;  %v1282_v24 = vshll.u32 %v4292_v55, 16 }
  0x70   : > { %v1289_v33 = vrot.slane %v1287_v61, 4  ;;  %v1292_v29 = vrot.slane %v1290_v4, 5  ;;  %v1296_v56 = vshll.u32 %v4301_v14, 16  ;;  %1146 = vrot.lane.b32.xlu0 %v3231_v63, %s3685_s6  ;;  %v1219_v7 = vrot.slane %v1217_v22, 4  ;;  %s3694_s6 = smov 68  }
  0x71   : > { %v1279_v39 = vor.u32 %v1278_v45, %v1275_v2  ;;  %v1222_v27 = vrot.slane %v1220_v31, 5  ;;  %v1226_v8 = vshll.u32 %v4310_v44, 16  ;;  %v1284_v36 = vrot.slane %v1282_v24, 5 }
  0x72   : > { %1203 = vrot.lane.b32.xlu1 %v3236_v51, %s3686_s8  ;;  %v1293_v46 = vor.u32 %v1292_v29, %v1289_v33  ;;  %v1298_v38 = vrot.slane %v1296_v56, 5  ;;  %v1233_v5 = vrot.slane %v1231_v60, 4  ;;  %v1236_v21 = vrot.slane %v1234_v13, 5  ;;  %v4330_v51 = vld [vmem:[%s4216_s30 + $0x3c] sm:$0x1] }
  0x73   : > { %v1280_v47 = vrot.slane %v1279_v39, 4  ;;  %v1223_v16 = vor.u32 %v1222_v27, %v1219_v7  ;;  %v1228_v1 = vrot.slane %v1226_v8, 5  ;;  %v1240_v26 = vshll.u32 %v4318_v3, 16 }
  0x74   : > { %v1294_v48 = vrot.slane %v1293_v46, 4  ;;  %v1303_v50 = vrot.slane %v1301_v0, 4  ;;  %v1306_v28 = vrot.slane %v1304_v52, 5  ;;  %1199 = vrot.lane.b32.xlu0 %v3234_v10, %s3686_s8  ;;  %v1237_v12 = vor.u32 %v1236_v21, %v1233_v5  ;;  %v4343_v0 = vld [vmem:[%s4216_s30 + $0x1c] sm:$0x1] }
  0x75   : > { %v1285_v37 = vsel %vm3938_vm5, %v1280_v47, %v1284_v36  ;;  %v1224_v11 = vrot.slane %v1223_v16, 4  ;;  %v1310_v57 = vshll.u32 %v4323_v9, 16  ;;  %v1242_v58 = vrot.slane %v1240_v26, 5 }
  0x76   : > { %1205 = vrot.lane.b32.xlu1 %v3237_v42, %s3686_s8  ;;  %v1299_v17 = vsel %vm3938_vm5, %v1294_v48, %v1298_v38  ;;  %v1307_v30 = vor.u32 %v1306_v28, %v1303_v50  ;;  %v1317_v61 = vrot.slane %v1315_v40, 4  ;;  %v1238_v22 = vrot.slane %v1237_v12, 4 }
  0x77   : > { %v3240_v4 = vcombine.low %v1285_v37, %v1299_v17  ;;  %v1229_v10 = vsel %vm3938_vm5, %v1224_v11, %v1228_v1  ;;  %v1312_v63 = vrot.slane %v1310_v57, 5  ;;  %v1320_v60 = vrot.slane %v1318_v41, 5  ;;  %v4382_v11 = vld [vmem:[%s4216_s30 + $0x30] sm:$0xf] }
  0x78   : > { %v1308_v31 = vrot.slane %v1307_v30, 4  ;;  %v1324_v13 = vshll.u32 %v4330_v51, 16  ;;  %v1247_v42 = vrot.slane %v1245_v62, 4  ;;  %1201 = vrot.lane.b32.xlu0 %v3235_v15, %s3686_s8  ;;  %v1243_v52 = vsel %vm3938_vm5, %v1238_v22, %v1242_v58  ;;  %v4396_v30 = vld [vmem:[%s4216_s30 + $0x10] sm:$0xf]  ;;  %s3696_s8 = smov 76  }
  0x79   : > { %v1250_v40 = vrot.slane %v1248_v18, 5  ;;  %v1254_v2 = vshll.u32 %v4337_v35, 16  ;;  %v1261_v45 = vrot.slane %v1259_v19, 4  ;;  %v3238_v24 = vcombine.low %v1229_v10, %v1243_v52  ;;  %v4423_v52 = vld [vmem:[%s4216_s30 + $0x18] sm:$0xf] }
  0x7a   : > { %1344 = vrot.lane.b32.xlu1 %v3240_v4, %s3687_s9  ;;  %v1313_v41 = vsel %vm3938_vm5, %v1308_v31, %v1312_v63  ;;  %v1321_v33 = vor.u32 %v1320_v60, %v1317_v61  ;;  %v1326_v29 = vrot.slane %v1324_v13, 5  ;;  %v1264_v39 = vrot.slane %v1262_v20, 5  ;;  %v4411_v63 = vld [vmem:[%s4216_s30 + $0x38] sm:$0xf]  ;;  %v4414_v31 = vld [vmem:[%s4216_s30 + $0x40] sm:$0xf] }
  0x7b   : > { %v1251_v56 = vor.u32 %v1250_v40, %v1247_v42  ;;  %v1256_v62 = vrot.slane %v1254_v2, 5  ;;  %v1268_v15 = vshll.u32 %v4343_v0, 16  ;;  %v3246_v18 = vrot.slane %v4233_v49, 9  ;;  %v4426_v40 = vld [vmem:[%s4216_s30 + $0x20] sm:$0xf] }
  0x7c   : > { %v1322_v7 = vrot.slane %v1321_v33, 4  ;;  %v1383_v27 = vrot.slane %v4292_v55, 5  ;;  %v3247_v19 = vrot.slane %v4242_v6, 9  ;;  %1340 = vrot.lane.b32.xlu0 %v3238_v24, %s3687_s9  ;;  %v1265_v36 = vor.u32 %v1264_v39, %v1261_v45  ;;  %v4432_v33 = vld [vmem:[%s4216_s30 + $0x2c] sm:$0x1] }
  0x7d   : > { %v1252_v8 = vrot.slane %v1251_v56, 4  ;;  %v1270_v46 = vrot.slane %v1268_v15, 5  ;;  %v1387_v38 = vrot.slane %v4301_v14, 5  ;;  %v3242_v49 = vrot.slane %v4253_v43, 9  ;;  %v4373_v43 = vld [vmem:[%s4216_s30 + $0x28] sm:$0xf] }
  0x7e   : > { %v1327_v20 = vsel %vm3938_vm5, %v1322_v7, %v1326_v29  ;;  %v1384_v5 = vsel %vm3828_vm2, %v3246_v18, %v1383_v27  ;;  %v1367_v55 = vrot.slane %v4310_v44, 5  ;;  %v1266_v16 = vrot.slane %v1265_v36, 4  ;;  %v4441_v15 = vld [vmem:[%s4216_s30 + $0x34] sm:$0x1] }
  0x7f   : > { %v3241_v6 = vcombine.low %v1313_v41, %v1327_v20  ;;  %v1257_v47 = vsel %vm3938_vm5, %v1252_v8, %v1256_v62  ;;  %v1388_v1 = vsel %vm3828_vm2, %v3247_v19, %v1387_v38  ;;  %v3243_v48 = vrot.slane %v4256_v32, 9  ;;  %v4450_v8 = vld [vmem:[%s4216_s30 + $0xc] sm:$0x1] }
  0x80   : > { %v3252_v14 = vcombine.low %v1384_v5, %v1388_v1  ;;  %v1368_v21 = vsel %vm3828_vm2, %v3242_v49, %v1367_v55  ;;  %v1371_v26 = vrot.slane %v4318_v3, 5  ;;  %v1271_v44 = vsel %vm3938_vm5, %v1266_v16, %v1270_v46  ;;  %v4458_v16 = vld [vmem:[%s4216_s30 + $0x14] sm:$0x1] }
  0x81   : > { %1346 = vrot.lane.b32.xlu1 %v3241_v6, %s3687_s9  ;;  %v3248_v50 = vrot.slane %v4271_v53, 9  ;;  %v1391_v28 = vrot.slane %v4323_v9, 5  ;;  %v3249_v37 = vrot.slane %v4274_v34, 9  ;;  %v3239_v32 = vcombine.low %v1257_v47, %v1271_v44  ;;  %v4393_v9 = vld [vmem:[%s4216_s30 + $0x8] sm:$0xf] }
  0x82   : > { %v1372_v3 = vsel %vm3828_vm2, %v3243_v48, %v1371_v26  ;;  %v1395_v12 = vrot.slane %v4330_v51, 5  ;;  %v3244_v57 = vrot.slane %v4283_v54, 9  ;;  %v1375_v53 = vrot.slane %v4337_v35, 5 }
  0x83   : > { %v3250_v17 = vcombine.low %v1368_v21, %v1372_v3  ;;  %v1392_v58 = vsel %vm3828_vm2, %v3248_v50, %v1391_v28  ;;  %v3245_v34 = vrot.slane %v4286_v25, 9  ;;  %1342 = vrot.lane.b32.xlu0 %v3239_v32, %s3687_s9  ;;  %v1379_v54 = vrot.slane %v4343_v0, 5  ;;  %v4463_v28 = vld [vmem:[%s4216_s30 + $0x3c] sm:$0x1]  ;;  %s3697_s9 = smov 80  }
  0x84   : > { %v1396_v51 = vsel %vm3828_vm2, %v3249_v37, %v1395_v12  ;;  %v3272_v61 = vcombine.low %v4373_v43, %v4382_v11  ;;  %v1538_v35 = vshrl.u32 %v4373_v43, 16  ;;  %v1376_v4 = vsel %vm3828_vm2, %v3244_v57, %v1375_v53 }
  0x85   : > { %1413 = vrot.lane.b32.xlu1 %v3252_v14, %s3688_s10  ;;  %v3253_v25 = vcombine.low %v1392_v58, %v1396_v51  ;;  %v1541_v10 = vshll.u32 %v4373_v43, 16  ;;  %v1552_v22 = vshrl.u32 %v4382_v11, 16  ;;  %v1380_v60 = vsel %vm3828_vm2, %v3245_v34, %v1379_v54 }
  0x86   : > { %v1555_v13 = vshll.u32 %v4382_v11, 16  ;;  %v3270_v0 = vcombine.low %v4393_v9, %v4396_v30  ;;  %v1482_v42 = vshrl.u32 %v4393_v9, 16  ;;  %v3251_v2 = vcombine.low %v1376_v4, %v1380_v60  ;;  %v4477_v60 = vld [vmem:[%s4216_s30 + $0x1c] sm:$0x1] }
  0x87   : > { %v1485_v45 = vshll.u32 %v4393_v9, 16  ;;  %v1496_v24 = vshrl.u32 %v4396_v30, 16  ;;  %v1499_v41 = vshll.u32 %v4396_v30, 16  ;;  %1409 = vrot.lane.b32.xlu0 %v3250_v17, %s3688_s10  ;;  %v3273_v29 = vcombine.low %v4411_v63, %v4414_v31 }
  0x88   : > { %v1566_v56 = vshrl.u32 %v4411_v63, 16  ;;  %v1569_v62 = vshll.u32 %v4411_v63, 16  ;;  %v1580_v39 = vshrl.u32 %v4414_v31, 16  ;;  %v1583_v7 = vshll.u32 %v4414_v31, 16 }
  0x89   : > { %1415 = vrot.lane.b32.xlu1 %v3253_v25, %s3688_s10  ;;  %v3271_v18 = vcombine.low %v4423_v52, %v4426_v40  ;;  %v1510_v27 = vshrl.u32 %v4423_v52, 16  ;;  %v1513_v19 = vshll.u32 %v4423_v52, 16  ;;  %v1524_v36 = vshrl.u32 %v4426_v40, 16 }
  0x8a   : > { %v1527_v46 = vshll.u32 %v4426_v40, 16  ;;  %v1540_v38 = vrot.slane %v1538_v35, 4  ;;  %v1543_v20 = vrot.slane %v1541_v10, 5  ;;  %v1547_v5 = vshll.u32 %v4432_v33, 16 }
  0x8b   : > { %v1554_v49 = vrot.slane %v1552_v22, 4  ;;  %v1557_v55 = vrot.slane %v1555_v13, 5  ;;  %v1561_v6 = vshll.u32 %v4441_v15, 16  ;;  %1411 = vrot.lane.b32.xlu0 %v3251_v2, %s3688_s10  ;;  %v1484_v1 = vrot.slane %v1482_v42, 4  ;;  %s3698_s10 = smov 84  }
  0x8c   : > { %v1544_v47 = vor.u32 %v1543_v20, %v1540_v38  ;;  %v1487_v14 = vrot.slane %v1485_v45, 5  ;;  %v1491_v21 = vshll.u32 %v4450_v8, 16  ;;  %v1549_v48 = vrot.slane %v1547_v5, 5 }
  0x8d   : > { %1468 = vrot.lane.b32.xlu1 %v3272_v61, %s3689_s11  ;;  %v1558_v26 = vor.u32 %v1557_v55, %v1554_v49  ;;  %v1563_v44 = vrot.slane %v1561_v6, 5  ;;  %v1498_v50 = vrot.slane %v1496_v24, 4  ;;  %v1501_v12 = vrot.slane %v1499_v41, 5  ;;  %v4470_v61 = vld [vmem:[%s4216_s30 + $0x44] sm:$0x1] }
  0x8e   : > { %v1545_v37 = vrot.slane %v1544_v47, 4  ;;  %v1488_v32 = vor.u32 %v1487_v14, %v1484_v1  ;;  %v1493_v3 = vrot.slane %v1491_v21, 5  ;;  %v1505_v17 = vshll.u32 %v4458_v16, 16 }
  0x8f   : > { %v1559_v57 = vrot.slane %v1558_v26, 4  ;;  %v1568_v58 = vrot.slane %v1566_v56, 4  ;;  %v1571_v53 = vrot.slane %v1569_v62, 5  ;;  %1464 = vrot.lane.b32.xlu0 %v3270_v0, %s3689_s11  ;;  %v1502_v54 = vor.u32 %v1501_v12, %v1498_v50  ;;  %v4483_v56 = vld [vmem:[%s4216_s30 + $0x24] sm:$0x1]  ;;  %v4485_v62 = vpop.permute.xlu1 %671 }
  0x90   : > { %v1550_v34 = vsel %vm3938_vm5, %v1545_v37, %v1549_v48  ;;  %v1489_v51 = vrot.slane %v1488_v32, 4  ;;  %v1575_v35 = vshll.u32 %v4463_v28, 16  ;;  %v1507_v4 = vrot.slane %v1505_v17, 5  ;;  %v4498_v48 = vpop.permute.xlu0 %667 }
  0x91   : > { %1470 = vrot.lane.b32.xlu1 %v3273_v29, %s3689_s11  ;;  %v1564_v25 = vsel %vm3938_vm5, %v1559_v57, %v1563_v44  ;;  %v1572_v10 = vor.u32 %v1571_v53, %v1568_v58  ;;  %v1582_v22 = vrot.slane %v1580_v39, 4  ;;  %v1503_v42 = vrot.slane %v1502_v54, 4 }
  0x92   : > { %v3276_v13 = vcombine.low %v1550_v34, %v1564_v25  ;;  %v1494_v0 = vsel %vm3938_vm5, %v1489_v51, %v1493_v3  ;;  %v1577_v2 = vrot.slane %v1575_v35, 5  ;;  %v1585_v24 = vrot.slane %v1583_v7, 5  ;;  %v4528_v25 = vld [vmem:[%s4216_s30 + $0x38] sm:$0xf] }
  0x93   : > { %v1573_v45 = vrot.slane %v1572_v10, 4  ;;  %v1589_v41 = vshll.u32 %v4470_v61, 16  ;;  %v1512_v29 = vrot.slane %v1510_v27, 4  ;;  %1466 = vrot.lane.b32.xlu0 %v3271_v18, %s3689_s11  ;;  %v1508_v39 = vsel %vm3938_vm5, %v1503_v42, %v1507_v4  ;;  %v4544_v42 = vld [vmem:[%s4216_s30 + $0x18] sm:$0xf]  ;;  %s3699_s11 = smov 88  }
  0x94   : > { %v1515_v38 = vrot.slane %v1513_v19, 5  ;;  %v1519_v20 = vshll.u32 %v4477_v60, 16  ;;  %v1526_v5 = vrot.slane %v1524_v36, 4  ;;  %v3274_v7 = vcombine.low %v1494_v0, %v1508_v39  ;;  %v4541_v0 = vld [vmem:[%s4216_s30 + $0x10] sm:$0xf] }
  0x95   : > { %1609 = vrot.lane.b32.xlu1 %v3276_v13, %s3690_s12  ;;  %v1578_v49 = vsel %vm3938_vm5, %v1573_v45, %v1577_v2  ;;  %v1586_v55 = vor.u32 %v1585_v24, %v1582_v22  ;;  %v1591_v27 = vrot.slane %v1589_v41, 5  ;;  %v1529_v1 = vrot.slane %v1527_v46, 5  ;;  %v4508_v32 = vpop.permute.xlu1 %614  ;;  %v4565_v39 = vld [vmem:[%s4216_s30 + $0x48] sm:$0xf] }
  0x96   : > { %v1516_v6 = vor.u32 %v1515_v38, %v1512_v29  ;;  %v1521_v47 = vrot.slane %v1519_v20, 5  ;;  %v1533_v18 = vshll.u32 %v4483_v56, 16  ;;  %v3282_v19 = vrot.slane %v4373_v43, 9  ;;  %v4562_v29 = vld [vmem:[%s4216_s30 + $0x40] sm:$0xf] }
  0x97   : > { %v1587_v14 = vrot.slane %v1586_v55, 4  ;;  %v1648_v21 = vrot.slane %v4432_v33, 5  ;;  %v3283_v36 = vrot.slane %v4382_v11, 9  ;;  %1605 = vrot.lane.b32.xlu0 %v3274_v7, %s3690_s12  ;;  %v1530_v44 = vor.u32 %v1529_v1, %v1526_v5  ;;  %v4534_v22 = vpop.permute.xlu0 %610  ;;  %v4577_v55 = vld [vmem:[%s4216_s30 + $0x28] sm:$0xf] }
  0x98   : > { %v1517_v26 = vrot.slane %v1516_v6, 4  ;;  %v1535_v50 = vrot.slane %v1533_v18, 5  ;;  %v1652_v37 = vrot.slane %v4441_v15, 5  ;;  %v3278_v33 = vrot.slane %v4393_v9, 9  ;;  %v4583_v18 = vld [vmem:[%s4216_s30 + $0x34] sm:$0x1] }
  0x99   : > { %v1592_v46 = vsel %vm3938_vm5, %v1587_v14, %v1591_v27  ;;  %v1649_v43 = vsel %vm3828_vm2, %v3282_v19, %v1648_v21  ;;  %v1632_v11 = vrot.slane %v4450_v8, 5  ;;  %v1531_v57 = vrot.slane %v1530_v44, 4  ;;  %v4519_v8 = vld [vmem:[%s4216_s30 + $0x30] sm:$0xf] }
  0x9a   : > { %v3277_v3 = vcombine.low %v1578_v49, %v1592_v46  ;;  %v1522_v12 = vsel %vm3938_vm5, %v1517_v26, %v1521_v47  ;;  %v1653_v15 = vsel %vm3828_vm2, %v3283_v36, %v1652_v37  ;;  %v3279_v53 = vrot.slane %v4396_v30, 9  ;;  %v4574_v49 = vld [vmem:[%s4216_s30 + $0x20] sm:$0xf]  ;;  %v4592_v26 = vld [vmem:[%s4216_s30 + $0x3c] sm:$0x1] }
  0x9b   : > { %v3288_v17 = vcombine.low %v1649_v43, %v1653_v15  ;;  %v1633_v58 = vsel %vm3828_vm2, %v3278_v33, %v1632_v11  ;;  %v1636_v9 = vrot.slane %v4458_v16, 5  ;;  %v1536_v34 = vsel %vm3938_vm5, %v1531_v57, %v1535_v50  ;;  %v4609_v33 = vld [vmem:[%s4216_s30 + $0x14] sm:$0x1] }
  0x9c   : > { %1611 = vrot.lane.b32.xlu1 %v3277_v3, %s3690_s12  ;;  %v3284_v51 = vrot.slane %v4411_v63, 9  ;;  %v1656_v54 = vrot.slane %v4463_v28, 5  ;;  %v3285_v35 = vrot.slane %v4414_v31, 9  ;;  %v3275_v30 = vcombine.low %v1522_v12, %v1536_v34  ;;  %v4594_v44 = vpop.permute.xlu0 %612 }
  0x9d   : > { %v1637_v16 = vsel %vm3828_vm2, %v3279_v53, %v1636_v9  ;;  %v1660_v4 = vrot.slane %v4470_v61, 5  ;;  %v3280_v10 = vrot.slane %v4423_v52, 9  ;;  %v1640_v28 = vrot.slane %v4477_v60, 5 }
  0x9e   : > { %v3286_v13 = vcombine.low %v1633_v58, %v1637_v16  ;;  %v1657_v63 = vsel %vm3828_vm2, %v3284_v51, %v1656_v54  ;;  %v3281_v31 = vrot.slane %v4426_v40, 9  ;;  %1607 = vrot.lane.b32.xlu0 %v3275_v30, %s3690_s12  ;;  %v1644_v61 = vrot.slane %v4483_v56, 5  ;;  %v4553_v40 = vpop.permute.xlu1 %616  ;;  %v4619_v51 = vld [vmem:[%s4216_s30 + $0x1c] sm:$0x1]  ;;  %s3139_s12 = sshll.u32 %s5361_s18, 3 }
  0x9f   : > { %v1661_v52 = vsel %vm3828_vm2, %v3285_v35, %v1660_v4  ;;  %v3308_v2 = vcombine.low %v4519_v8, %v4528_v25  ;;  %v1803_v60 = vshrl.u32 %v4519_v8, 16  ;;  %v1641_v24 = vsel %vm3828_vm2, %v3280_v10, %v1640_v28 }
  0xa0   : > { %1678 = vrot.lane.b32.xlu1 %v3288_v17, %s3691_s14  ;;  %v3289_v45 = vcombine.low %v1657_v63, %v1661_v52  ;;  %v1806_v41 = vshll.u32 %v4519_v8, 16  ;;  %v1817_v56 = vshrl.u32 %v4528_v25, 16  ;;  %v1645_v38 = vsel %vm3828_vm2, %v3281_v31, %v1644_v61  ;;  %v4630_v63 = vld [vmem:[%s4216_s30 + $0x44] sm:$0x1] }
  0xa1   : > { %v1820_v20 = vshll.u32 %v4528_v25, 16  ;;  %v3306_v5 = vcombine.low %v4541_v0, %v4544_v42  ;;  %v1747_v7 = vshrl.u32 %v4541_v0, 16  ;;  %v3287_v27 = vcombine.low %v1641_v24, %v1645_v38 }
  0xa2   : > { %v1750_v6 = vshll.u32 %v4541_v0, 16  ;;  %v1761_v47 = vshrl.u32 %v4544_v42, 16  ;;  %v1764_v1 = vshll.u32 %v4544_v42, 16  ;;  %1674 = vrot.lane.b32.xlu0 %v3286_v13, %s3691_s14  ;;  %v3309_v14 = vcombine.low %v4562_v29, %v4565_v39  ;;  %v4613_v15 = vpop.permute.xlu1 %673 }
  0xa3   : > { %v1831_v19 = vshrl.u32 %v4562_v29, 16  ;;  %v1834_v21 = vshll.u32 %v4562_v29, 16  ;;  %v1845_v36 = vshrl.u32 %v4565_v39, 16  ;;  %v1848_v50 = vshll.u32 %v4565_v39, 16 }
  0xa4   : > { %1680 = vrot.lane.b32.xlu1 %v3289_v45, %s3691_s14  ;;  %v3307_v37 = vcombine.low %v4574_v49, %v4577_v55  ;;  %v1775_v46 = vshrl.u32 %v4574_v49, 16  ;;  %v1778_v43 = vshll.u32 %v4574_v49, 16  ;;  %v1789_v11 = vshrl.u32 %v4577_v55, 16 }
  0xa5   : > { %v1792_v3 = vshll.u32 %v4577_v55, 16  ;;  %v1805_v12 = vrot.slane %v1803_v60, 4  ;;  %v1808_v57 = vrot.slane %v1806_v41, 5  ;;  %v1812_v17 = vshll.u32 %v4583_v18, 16  ;;  %v4632_v60 = vpop.permute.xlu0 %669 }
  0xa6   : > { %v1819_v58 = vrot.slane %v1817_v56, 4  ;;  %v1822_v53 = vrot.slane %v1820_v20, 5  ;;  %v1826_v9 = vshll.u32 %v4592_v26, 16  ;;  %1676 = vrot.lane.b32.xlu0 %v3287_v27, %s3691_s14  ;;  %v1749_v54 = vrot.slane %v1747_v7, 4  ;;  %v4639_v7 = vld [vmem:[%s4216_s30 + $0x4c] sm:$0x1] }
  0xa7   : > { %v1809_v34 = vor.u32 %v1808_v57, %v1805_v12  ;;  %v1752_v35 = vrot.slane %v1750_v6, 5  ;;  %v1756_v30 = vshll.u32 %v4609_v33, 16  ;;  %v1814_v16 = vrot.slane %v1812_v17, 5  ;;  %v4642_v6 = vpop.permute.xlu1 %540  ;;  %s3700_s14 = smov 92  }
  0xa8   : > { %1733 = vrot.lane.b32.xlu1 %v3308_v2, %s3692_s16  ;;  %v1823_v4 = vor.u32 %v1822_v53, %v1819_v58  ;;  %v1828_v10 = vrot.slane %v1826_v9, 5  ;;  %v1763_v13 = vrot.slane %v1761_v47, 4  ;;  %v1766_v61 = vrot.slane %v1764_v1, 5 }
  0xa9   : > { %v1810_v28 = vrot.slane %v1809_v34, 4  ;;  %v1753_v31 = vor.u32 %v1752_v35, %v1749_v54  ;;  %v1758_v52 = vrot.slane %v1756_v30, 5  ;;  %v1770_v24 = vshll.u32 %v4619_v51, 16 }
  0xaa   : > { %v1824_v45 = vrot.slane %v1823_v4, 4  ;;  %v1833_v41 = vrot.slane %v1831_v19, 4  ;;  %v1836_v2 = vrot.slane %v1834_v21, 5  ;;  %1729 = vrot.lane.b32.xlu0 %v3306_v5, %s3692_s16  ;;  %v1767_v20 = vor.u32 %v1766_v61, %v1763_v13  ;;  %v4649_v21 = vld [vmem:[%s4216_s30 + $0x24] sm:$0x1] }
  0xab   : > { %v1815_v56 = vsel %vm3938_vm5, %v1810_v28, %v1814_v16  ;;  %v1754_v38 = vrot.slane %v1753_v31, 4  ;;  %v1840_v27 = vshll.u32 %v4630_v63, 16  ;;  %v1772_v1 = vrot.slane %v1770_v24, 5  ;;  %v4661_v4 = vpop.permute.xlu0 %538 }
  0xac   : > { %1735 = vrot.lane.b32.xlu1 %v3309_v14, %s3692_s16  ;;  %v1829_v47 = vsel %vm3938_vm5, %v1824_v45, %v1828_v10  ;;  %v1837_v5 = vor.u32 %v1836_v2, %v1833_v41  ;;  %v1847_v19 = vrot.slane %v1845_v36, 4  ;;  %v1768_v17 = vrot.slane %v1767_v20, 4  ;;  %v4655_v14 = vld [vmem:[%s4216_s30 + $0x2c] sm:$0x1]  ;;  %s4695_s30 = scalar_lea.vmem %s5334_s2, %s3138_s26 }
  0xad   : > { %v3312_v12 = vcombine.low %v1815_v56, %v1829_v47  ;;  %v1759_v57 = vsel %vm3938_vm5, %v1754_v38, %v1758_v52  ;;  %v1842_v58 = vrot.slane %v1840_v27, 5  ;;  %v1850_v9 = vrot.slane %v1848_v50, 5 }
  0xae   : > { %v1838_v53 = vrot.slane %v1837_v5, 4  ;;  %v1854_v34 = vshll.u32 %v4639_v7, 16  ;;  %v1777_v54 = vrot.slane %v1775_v46, 4  ;;  %1731 = vrot.lane.b32.xlu0 %v3307_v37, %s3692_s16  ;;  %v1773_v36 = vsel %vm3938_vm5, %v1768_v17, %v1772_v1  ;;  %s357_s16 = sadd.s32 %s3140_s13, %s3139_s12 }
  0xaf   : > { %v1780_v35 = vrot.slane %v1778_v43, 5  ;;  %v1784_v30 = vshll.u32 %v4649_v21, 16  ;;  %v1791_v16 = vrot.slane %v1789_v11, 4  ;;  %v3310_v50 = vcombine.low %v1759_v57, %v1773_v36  ;;  %v4672_v31 = vpop.permute.xlu1 %544  ;;  %v4713_v36 = vld [vmem:[%s4695_s30 + $0x20] sm:$0xf] }
  0xb0   : > { %1874 = vrot.lane.b32.xlu1 %v3312_v12, %s3693_s27  ;;  %v1843_v46 = vsel %vm3938_vm5, %v1838_v53, %v1842_v58  ;;  %v1851_v37 = vor.u32 %v1850_v9, %v1847_v19  ;;  %v1856_v10 = vrot.slane %v1854_v34, 5  ;;  %v1794_v43 = vrot.slane %v1792_v3, 5  ;;  %v3630_v53 = vld [vmem:[%s3777_s7 + $0x10] sm:$0xf]  ;;  %v3632_v34 = vld [vmem:[%s3777_s7] sm:$0xf] }
  0xb1   : > { %v1781_v13 = vor.u32 %v1780_v35, %v1777_v54  ;;  %v1786_v28 = vrot.slane %v1784_v30, 5  ;;  %v1798_v11 = vshll.u32 %v4655_v14, 16  ;;  %v3318_v61 = vrot.slane %v4519_v8, 9 }
  0xb2   : > { %v1852_v52 = vrot.slane %v1851_v37, 4  ;;  %v1913_v45 = vrot.slane %v4583_v18, 5  ;;  %v3319_v24 = vrot.slane %v4528_v25, 9  ;;  %1870 = vrot.lane.b32.xlu0 %v3310_v50, %s3693_s27  ;;  %v1795_v2 = vor.u32 %v1794_v43, %v1791_v16 }
  0xb3   : > { %v1782_v41 = vrot.slane %v1781_v13, 4  ;;  %v1800_v56 = vrot.slane %v1798_v11, 5  ;;  %v1917_v38 = vrot.slane %v4592_v26, 5  ;;  %v3314_v8 = vrot.slane %v4541_v0, 9  ;;  %v3637_v11 = vld [vmem:[%s3777_s7 + $0x28] sm:$0xf] }
  0xb4   : > { %v1857_v3 = vsel %vm3938_vm5, %v1852_v52, %v1856_v10  ;;  %v1914_v20 = vsel %vm3828_vm2, %v3318_v61, %v1913_v45  ;;  %v1897_v18 = vrot.slane %v4609_v33, 5  ;;  %v1796_v47 = vrot.slane %v1795_v2, 4  ;;  %v4704_v57 = vpop.permute.xlu1 %812  ;;  %v4743_v52 = vld [vmem:[%s4695_s30] sm:$0xf]  ;;  %v4746_v61 = vld [vmem:[%s4695_s30 + $0x8] sm:$0xf] }
  0xb5   : > { %v3313_v27 = vcombine.low %v1843_v46, %v1857_v3  ;;  %v1787_v25 = vsel %vm3938_vm5, %v1782_v41, %v1786_v28  ;;  %v1918_v1 = vsel %vm3828_vm2, %v3319_v24, %v1917_v38  ;;  %v4690_v26 = vpop.permute.xlu0 %542  ;;  %v3315_v5 = vrot.slane %v4544_v42, 9  ;;  %v3631_v42 = vld [vmem:[%s3777_s7 + $0x18] sm:$0xf]  ;;  %v4719_v46 = vld [vmem:[%s4695_s30 + $0x28] sm:$0xf] }
  0xb6   : > { %v3324_v0 = vcombine.low %v1914_v20, %v1918_v1  ;;  %v1898_v33 = vsel %vm3828_vm2, %v3314_v8, %v1897_v18  ;;  %v1901_v19 = vrot.slane %v4619_v51, 5  ;;  %v1801_v12 = vsel %vm3938_vm5, %v1796_v47, %v1800_v56  ;;  %v3633_v51 = vld [vmem:[%s3777_s7 + $0x8] sm:$0xf]  ;;  %v3635_v28 = vld [vmem:[%s3777_s7 + $0x38] sm:$0xf] }
  0xb7   : > { %1876 = vrot.lane.b32.xlu1 %v3313_v27, %s3693_s27  ;;  %v3311_v17 = vcombine.low %v1787_v25, %v1801_v12  ;;  %v3143_v9 = vcombine.low %v3630_v53, %v3631_v42  ;;  %v3142_v54 = vcombine.low %v3632_v34, %v3633_v51  ;;  %v3320_v30 = vrot.slane %v4562_v29, 9  ;;  %v4766_v2 = vld [vmem:[%s4695_s30 + $0x30] sm:$0xf]  ;;  %v4769_v56 = vld [vmem:[%s4695_s30 + $0x38] sm:$0xf] }
  0xb8   : > { %v1902_v58 = vsel %vm3828_vm2, %v3315_v5, %v1901_v19  ;;  %v1921_v16 = vrot.slane %v4630_v63, 5  ;;  %v3321_v50 = vrot.slane %v4565_v39, 9  ;;  %v1925_v29 = vrot.slane %v4639_v7, 5  ;;  %v4781_v27 = vld [vmem:[%s4695_s30 + $0x10] sm:$0xf] }
  0xb9   : > { %v3322_v35 = vcombine.low %v1898_v33, %v1902_v58  ;;  %v4721_v37 = vpop.permute.xlu0 %808  ;;  %1872 = vrot.lane.b32.xlu0 %v3311_v17, %s3693_s27  ;;  %408 = vst.msk [vmem:[#allocation2 + $0x8] sm:$0xff] %vm406_vm6, %v3143_v9  ;;  %407 = vst.msk [vmem:[#allocation2] sm:$0xff] %vm406_vm6, %v3142_v54  ;;  %v3316_v63 = vrot.slane %v4574_v49, 9  ;;  %v1905_v39 = vrot.slane %v4649_v21, 5  ;;  %v3317_v10 = vrot.slane %v4577_v55, 9 }
  0xba   : > { %552 = vst.msk [vmem:[#allocation2 + $0x8] sm:$0xff] %vm550_vm7, %v4642_v6  ;;  %551 = vst.msk [vmem:[#allocation2] sm:$0xff] %vm550_vm7, %v4661_v4  ;;  %v1922_v7 = vsel %vm3828_vm2, %v3320_v30, %v1921_v16  ;;  %v1909_v13 = vrot.slane %v4655_v14, 5  ;;  %v3634_v49 = vld [vmem:[%s3777_s7 + $0x30] sm:$0xf]  ;;  %v1926_v6 = vsel %vm3828_vm2, %v3321_v50, %v1925_v29  ;;  %v3328_v4 = vcombine.low %v4713_v36, %v4719_v46 }
  0xbb   : > { %1943 = vrot.lane.b32.xlu1 %v3324_v0, %s3694_s6  ;;  %v3145_v43 = vcombine.low %v3634_v49, %v3635_v28  ;;  %v3636_v21 = vld [vmem:[%s3777_s7 + $0x20] sm:$0xf]  ;;  %624 = vst.msk [vmem:[#allocation2 + $0x8] sm:$0xff] %vm622_vm8, %v4594_v44  ;;  %623 = vst.msk [vmem:[#allocation2] sm:$0xff] %vm622_vm8, %v4534_v22  ;;  %v1906_v14 = vsel %vm3828_vm2, %v3316_v63, %v1905_v39  ;;  %v2068_v45 = vshrl.u32 %v4713_v36, 16  ;;  %v2071_v22 = vshll.u32 %v4713_v36, 16 }
  0xbc   : > { %v3144_v55 = vcombine.low %v3636_v21, %v3637_v11  ;;  %v3325_v24 = vcombine.low %v1922_v7, %v1926_v6  ;;  %v1910_v41 = vsel %vm3828_vm2, %v3317_v10, %v1909_v13  ;;  %v2082_v44 = vshrl.u32 %v4719_v46, 16  ;;  %v4784_v25 = vld [vmem:[%s4695_s30 + $0x18] sm:$0xf]  ;;  %v4795_v0 = vld [vmem:[%s4695_s30 + $0x24] sm:$0x1]  ;;  %680 = vst.msk [vmem:[#allocation2] sm:$0xff] %vm679_vm9, %v4498_v48 }
  0xbd   : > { %410 = vst.msk [vmem:[#allocation2 + $0x18] sm:$0xff] %vm406_vm6, %v3145_v43  ;;  %v815_v38 = vpop.permute.xlu1 %814  ;;  %1939 = vrot.lane.b32.xlu0 %v3322_v35, %s3694_s6  ;;  %v3323_v3 = vcombine.low %v1906_v14, %v1910_v41  ;;  %v2085_v20 = vshll.u32 %v4719_v46, 16  ;;  %v3326_v8 = vcombine.low %v4743_v52, %v4746_v61  ;;  %v2012_v18 = vshrl.u32 %v4743_v52, 16  ;;  %v4806_v5 = vld [vmem:[%s4695_s30 + $0x2c] sm:$0x1]  ;;  %s3695_s7 = smov 72  }
  0xbe   : > { %409 = vst.msk [vmem:[#allocation2 + $0x10] sm:$0xff] %vm406_vm6, %v3144_v55  ;;  %v2026_v47 = vshrl.u32 %v4746_v61, 16  ;;  %v2029_v1 = vshll.u32 %v4746_v61, 16  ;;  %v2099_v33 = vshll.u32 %v4766_v2, 16  ;;  %v2113_v48 = vshll.u32 %v4769_v56, 16 }
  0xbf   : > { %554 = vst.msk [vmem:[#allocation2 + $0x18] sm:$0xff] %vm550_vm7, %v4672_v31  ;;  %553 = vst.msk [vmem:[#allocation2 + $0x10] sm:$0xff] %vm550_vm7, %v4690_v26  ;;  %1945 = vrot.lane.b32.xlu1 %v3325_v24, %s3694_s6  ;;  %v2015_v31 = vshll.u32 %v4743_v52, 16  ;;  %v811_v26 = vpop.permute.xlu0 %810  ;;  %v4820_v19 = vld [vmem:[%s4695_s30 + $0x4] sm:$0x1]  ;;  %v2054_v17 = vshrl.u32 %v4784_v25, 16 }
  0xc0   : > { %626 = vst.msk [vmem:[#allocation2 + $0x18] sm:$0xff] %vm622_vm8, %v4553_v40  ;;  %625 = vst.msk [vmem:[#allocation2 + $0x10] sm:$0xff] %vm622_vm8, %v4508_v32  ;;  %v3329_v32 = vcombine.low %v4766_v2, %v4769_v56  ;;  %v2096_v40 = vshrl.u32 %v4766_v2, 16  ;;  %v2057_v58 = vshll.u32 %v4784_v25, 16  ;;  %v2070_v53 = vrot.slane %v2068_v45, 4 }
  0xc1   : > { %682 = vst.msk [vmem:[#allocation2 + $0x10] sm:$0xff] %vm679_vm9, %v4485_v62  ;;  %681 = vst.msk [vmem:[#allocation2 + $0x8] sm:$0xff] %vm679_vm9, %v4632_v60  ;;  %v2110_v62 = vshrl.u32 %v4769_v56, 16  ;;  %v2040_v60 = vshrl.u32 %v4781_v27, 16  ;;  %v882_v12 = vpop.permute.xlu1 %881  ;;  %1941 = vrot.lane.b32.xlu0 %v3323_v3, %s3694_s6  ;;  %v2073_v42 = vrot.slane %v2071_v22, 5  ;;  %v2077_v9 = vshll.u32 %v4795_v0, 16 }
  0xc2   : > { %683 = vst.msk [vmem:[#allocation2 + $0x18] sm:$0xff] %vm679_vm9, %v4613_v15  ;;  %v3327_v15 = vcombine.low %v4781_v27, %v4784_v25  ;;  %v2084_v34 = vrot.slane %v2082_v44, 4  ;;  %v2087_v51 = vrot.slane %v2085_v20, 5  ;;  %v2091_v35 = vshll.u32 %v4806_v5, 16  ;;  %v4830_v30 = vld [vmem:[%s4695_s30 + $0xc] sm:$0x1] }
  0xc3   : > { %823 = vst.msk [vmem:[#allocation2 + $0x10] sm:$0xff] %vm820_vm10, %v4704_v57  ;;  %821 = vst.msk [vmem:[#allocation2] sm:$0xff] %vm820_vm10, %v4721_v37  ;;  %v2043_v57 = vshll.u32 %v4781_v27, 16  ;;  %1998 = vrot.lane.b32.xlu1 %v3328_v4, %s3695_s7  ;;  %v878_v54 = vpop.permute.xlu0 %877  ;;  %v2014_v16 = vrot.slane %v2012_v18, 4  ;;  %v2017_v50 = vrot.slane %v2015_v31, 5  ;;  %v2021_v37 = vshll.u32 %v4820_v19, 16 }
  0xc4   : > { %824 = vst.msk [vmem:[#allocation2 + $0x18] sm:$0xff] %vm820_vm10, %v815_v38  ;;  %822 = vst.msk [vmem:[#allocation2 + $0x8] sm:$0xff] %vm820_vm10, %v811_v26  ;;  %v2074_v29 = vor.u32 %v2073_v42, %v2070_v53  ;;  %v2079_v63 = vrot.slane %v2077_v9, 5  ;;  %v2088_v39 = vor.u32 %v2087_v51, %v2084_v34  ;;  %v2028_v10 = vrot.slane %v2026_v47, 4  ;;  %v4835_v21 = vld [vmem:[%s4695_s30 + $0x34] sm:$0x1] }
  0xc5   : > { %v884_v7 = vpop.permute.xlu1 %883  ;;  %1994 = vrot.lane.b32.xlu0 %v3326_v8, %s3695_s7  ;;  %v2093_v13 = vrot.slane %v2091_v35, 5  ;;  %v2018_v49 = vor.u32 %v2017_v50, %v2014_v16  ;;  %v2023_v28 = vrot.slane %v2021_v37, 5  ;;  %v2031_v43 = vrot.slane %v2029_v1, 5  ;;  %892 = vst.msk [vmem:[#allocation2 + $0x10] sm:$0xff] %vm889_vm11, %v882_v12  ;;  %890 = vst.msk [vmem:[#allocation2] sm:$0xff] %vm889_vm11, %v878_v54 }
  0xc6   : > { %v2075_v11 = vrot.slane %v2074_v29, 4  ;;  %v2089_v55 = vrot.slane %v2088_v39, 4  ;;  %v2035_v6 = vshll.u32 %v4830_v30, 16  ;;  %v4840_v24 = vld [vmem:[%s4695_s30 + $0x3c] sm:$0x1]  ;;  %v2098_v41 = vrot.slane %v2096_v40, 4 }
  0xc7   : > { %2000 = vrot.lane.b32.xlu1 %v3329_v32, %s3695_s7  ;;  %v880_v14 = vpop.permute.xlu0 %879  ;;  %v2019_v4 = vrot.slane %v2018_v49, 4  ;;  %v2032_v45 = vor.u32 %v2031_v43, %v2028_v10  ;;  %v2101_v22 = vrot.slane %v2099_v33, 5  ;;  %893 = vst.msk [vmem:[#allocation2 + $0x18] sm:$0xff] %vm889_vm11, %v884_v7  ;;  %v2105_v20 = vshll.u32 %v4835_v21, 16  ;;  %v4851_v26 = vld [vmem:[%s4695_s30 + $0x14] sm:$0x1] }
  0xc8   : > { %891 = vst.msk [vmem:[#allocation2 + $0x8] sm:$0xff] %vm889_vm11, %v880_v14  ;;  %v2080_v44 = vsel %vm3938_vm5, %v2075_v11, %v2079_v63  ;;  %v2094_v38 = vsel %vm3938_vm5, %v2089_v55, %v2093_v13  ;;  %v2037_v3 = vrot.slane %v2035_v6, 5  ;;  %v2112_v40 = vrot.slane %v2110_v62, 4  ;;  %v4858_v9 = vld [vmem:[%s4695_s30 + $0x1c] sm:$0x1] }
  0xc9   : > { %v939_v8 = vpop.permute.xlu1 %938  ;;  %1996 = vrot.lane.b32.xlu0 %v3327_v15, %s3695_s7  ;;  %v3332_v18 = vcombine.low %v2080_v44, %v2094_v38  ;;  %v2024_v31 = vsel %vm3938_vm5, %v2019_v4, %v2023_v28  ;;  %v2033_v47 = vrot.slane %v2032_v45, 4  ;;  %v2102_v1 = vor.u32 %v2101_v22, %v2098_v41  ;;  %s3702_s7 = smov 100  }
  0xca   : > { %v2107_v32 = vrot.slane %v2105_v20, 5  ;;  %v2115_v33 = vrot.slane %v2113_v48, 5  ;;  %v2119_v12 = vshll.u32 %v4840_v24, 16  ;;  %v2042_v34 = vrot.slane %v2040_v60, 4  ;;  %949 = vst.msk [vmem:[#allocation2 + $0x10] sm:$0xff] %vm946_vm12, %v939_v8 }
  0xcb   : > { %v935_v53 = vpop.permute.xlu0 %934  ;;  %2139 = vrot.lane.b32.xlu1 %v3332_v18, %s3696_s8  ;;  %v2038_v15 = vsel %vm3938_vm5, %v2033_v47, %v2037_v3  ;;  %v2103_v42 = vrot.slane %v2102_v1, 4  ;;  %v2045_v51 = vrot.slane %v2043_v57, 5  ;;  %v2049_v35 = vshll.u32 %v4851_v26, 16  ;;  %v4899_v3 = vld [vmem:[%s4695_s30 + $0x28] sm:$0xf] }
  0xcc   : > { %v3330_v62 = vcombine.low %v2024_v31, %v2038_v15  ;;  %v2116_v48 = vor.u32 %v2115_v33, %v2112_v40  ;;  %v2121_v54 = vrot.slane %v2119_v12, 5  ;;  %v2056_v29 = vrot.slane %v2054_v17, 4  ;;  %947 = vst.msk [vmem:[#allocation2] sm:$0xff] %vm946_vm12, %v935_v53  ;;  %v4902_v20 = vld [vmem:[%s4695_s30 + $0x30] sm:$0xf] }
  0xcd   : > { %v941_v16 = vpop.permute.xlu1 %940  ;;  %v2108_v50 = vsel %vm3938_vm5, %v2103_v42, %v2107_v32  ;;  %v2046_v37 = vor.u32 %v2045_v51, %v2042_v34  ;;  %v2059_v63 = vrot.slane %v2057_v58, 5  ;;  %v2051_v57 = vrot.slane %v2049_v35, 5  ;;  %v4908_v32 = vld [vmem:[%s4695_s30 + $0x8] sm:$0xf]  ;;  %v4932_v34 = vld [vmem:[%s4695_s30 + $0x38] sm:$0xf] }
  0xce   : > { %2135 = vrot.lane.b32.xlu0 %v3330_v62, %s3696_s8  ;;  %v2117_v60 = vrot.slane %v2116_v48, 4  ;;  %v2063_v39 = vshll.u32 %v4858_v9, 16  ;;  %v3338_v10 = vrot.slane %v4713_v36, 9  ;;  %v2178_v28 = vrot.slane %v4795_v0, 5  ;;  %950 = vst.msk [vmem:[#allocation2 + $0x18] sm:$0xff] %vm946_vm12, %v941_v16 }
  0xcf   : > { %v937_v7 = vpop.permute.xlu0 %936  ;;  %v2047_v13 = vrot.slane %v2046_v37, 4  ;;  %v2060_v49 = vor.u32 %v2059_v63, %v2056_v29  ;;  %v3339_v43 = vrot.slane %v4719_v46, 9  ;;  %v2182_v58 = vrot.slane %v4806_v5, 5  ;;  %v4935_v51 = vld [vmem:[%s4695_s30 + $0x40] sm:$0xf] }
  0xd0   : > { %v2122_v17 = vsel %vm3938_vm5, %v2117_v60, %v2121_v54  ;;  %v2065_v11 = vrot.slane %v2063_v39, 5  ;;  %v3334_v55 = vrot.slane %v4743_v52, 9  ;;  %v2179_v4 = vsel %vm3828_vm2, %v3338_v10, %v2178_v28  ;;  %948 = vst.msk [vmem:[#allocation2 + $0x8] sm:$0xff] %vm946_vm12, %v937_v7  ;;  %v4942_v16 = vld [vmem:[%s4695_s30 + $0x18] sm:$0xf] }
  0xd1   : > { %v3333_v6 = vcombine.low %v2108_v50, %v2122_v17  ;;  %v2052_v14 = vsel %vm3938_vm5, %v2047_v13, %v2051_v57  ;;  %v2061_v36 = vrot.slane %v2060_v49, 4  ;;  %v1080_v45 = vpop.permute.xlu1 %1079  ;;  %v2183_v46 = vsel %vm3828_vm2, %v3339_v43, %v2182_v58  ;;  %v4945_v50 = vld [vmem:[%s4695_s30 + $0x20] sm:$0xf]  ;;  %v4952_v57 = vld [vmem:[%s4695_s30 + $0x2c] sm:$0x1] }
  0xd2   : > { %v2162_v0 = vrot.slane %v4820_v19, 5  ;;  %v3335_v41 = vrot.slane %v4746_v61, 9  ;;  %v2166_v52 = vrot.slane %v4830_v30, 5  ;;  %v3344_v22 = vcombine.low %v2179_v4, %v2183_v46  ;;  %1090 = vst.msk [vmem:[#allocation2 + $0x10] sm:$0xff] %vm1087_vm13, %v1080_v45  ;;  %v4961_v49 = vld [vmem:[%s4695_s30 + $0x34] sm:$0x1] }
  0xd3   : > { %2141 = vrot.lane.b32.xlu1 %v3333_v6, %s3696_s8  ;;  %v2066_v5 = vsel %vm3938_vm5, %v2061_v36, %v2065_v11  ;;  %v3340_v44 = vrot.slane %v4766_v2, 9  ;;  %v2186_v30 = vrot.slane %v4835_v21, 5  ;;  %v1076_v2 = vpop.permute.xlu0 %1075  ;;  %v3341_v31 = vrot.slane %v4769_v56, 9  ;;  %v4917_v56 = vld [vmem:[%s4695_s30 + $0x10] sm:$0xf] }
  0xd4   : > { %v3331_v38 = vcombine.low %v2052_v14, %v2066_v5  ;;  %v2163_v19 = vsel %vm3828_vm2, %v3334_v55, %v2162_v0  ;;  %v2167_v61 = vsel %vm3828_vm2, %v3335_v41, %v2166_v52  ;;  %v2190_v47 = vrot.slane %v4840_v24, 5  ;;  %1088 = vst.msk [vmem:[#allocation2] sm:$0xff] %vm1087_vm13, %v1076_v2  ;;  %v4969_v55 = vld [vmem:[%s4695_s30 + $0xc] sm:$0x1] }
  0xd5   : > { %v3342_v18 = vcombine.low %v2163_v19, %v2167_v61  ;;  %v3336_v1 = vrot.slane %v4781_v27, 9  ;;  %v2187_v21 = vsel %vm3828_vm2, %v3340_v44, %v2186_v30  ;;  %v2170_v8 = vrot.slane %v4851_v26, 5 }
  0xd6   : > { %2137 = vrot.lane.b32.xlu0 %v3331_v38, %s3696_s8  ;;  %v3337_v40 = vrot.slane %v4784_v25, 9  ;;  %v2174_v33 = vrot.slane %v4858_v9, 5  ;;  %v2191_v27 = vsel %vm3828_vm2, %v3341_v31, %v2190_v47  ;;  %v3364_v24 = vcombine.low %v4899_v3, %v4902_v20 }
  0xd7   : > { %2208 = vrot.lane.b32.xlu1 %v3344_v22, %s3697_s9  ;;  %v2333_v26 = vshrl.u32 %v4899_v3, 16  ;;  %v2336_v12 = vshll.u32 %v4899_v3, 16  ;;  %v3345_v53 = vcombine.low %v2187_v21, %v2191_v27  ;;  %v2171_v15 = vsel %vm3828_vm2, %v3336_v1, %v2170_v8  ;;  %v4978_v22 = vld [vmem:[%s4695_s30 + $0x14] sm:$0x1] }
  0xd8   : > { %v1082_v25 = vpop.permute.xlu1 %1081  ;;  %v2175_v42 = vsel %vm3828_vm2, %v3337_v40, %v2174_v33  ;;  %v2347_v9 = vshrl.u32 %v4902_v20, 16  ;;  %v2350_v48 = vshll.u32 %v4902_v20, 16  ;;  %v3362_v54 = vcombine.low %v4908_v32, %v4917_v56  ;;  %v4982_v40 = vld [vmem:[%s4695_s30 + $0x3c] sm:$0x1] }
  0xd9   : > { %v3343_v62 = vcombine.low %v2171_v15, %v2175_v42  ;;  %v2277_v35 = vshrl.u32 %v4908_v32, 16  ;;  %v2280_v37 = vshll.u32 %v4908_v32, 16  ;;  %v2291_v29 = vshrl.u32 %v4917_v56, 16  ;;  %1091 = vst.msk [vmem:[#allocation2 + $0x18] sm:$0xff] %vm1087_vm13, %v1082_v25  ;;  %v4990_v15 = vld [vmem:[%s4695_s30 + $0x44] sm:$0x1] }
  0xda   : > { %2204 = vrot.lane.b32.xlu0 %v3342_v18, %s3697_s9  ;;  %v2294_v63 = vshll.u32 %v4917_v56, 16  ;;  %v1078_v60 = vpop.permute.xlu0 %1077  ;;  %v3365_v39 = vcombine.low %v4932_v34, %v4935_v51  ;;  %v2361_v10 = vshrl.u32 %v4932_v34, 16  ;;  %v2364_v7 = vshll.u32 %v4932_v34, 16 }
  0xdb   : > { %2210 = vrot.lane.b32.xlu1 %v3345_v53, %s3697_s9  ;;  %v2375_v13 = vshrl.u32 %v4935_v51, 16  ;;  %1089 = vst.msk [vmem:[#allocation2 + $0x8] sm:$0xff] %vm1087_vm13, %v1078_v60  ;;  %v2378_v43 = vshll.u32 %v4935_v51, 16  ;;  %v3363_v17 = vcombine.low %v4942_v16, %v4945_v50  ;;  %v2305_v11 = vshrl.u32 %v4942_v16, 16 }
  0xdc   : > { %v1149_v28 = vpop.permute.xlu1 %1148  ;;  %v2308_v58 = vshll.u32 %v4942_v16, 16  ;;  %v2319_v6 = vshrl.u32 %v4945_v50, 16  ;;  %v2322_v14 = vshll.u32 %v4945_v50, 16  ;;  %v2335_v36 = vrot.slane %v2333_v26, 4 }
  0xdd   : > { %v2338_v4 = vrot.slane %v2336_v12, 5  ;;  %v2342_v45 = vshll.u32 %v4952_v57, 16  ;;  %v2349_v46 = vrot.slane %v2347_v9, 4  ;;  %v2352_v0 = vrot.slane %v2350_v48, 5  ;;  %1159 = vst.msk [vmem:[#allocation2 + $0x10] sm:$0xff] %vm1156_vm14, %v1149_v28 }
  0xde   : > { %2206 = vrot.lane.b32.xlu0 %v3343_v62, %s3697_s9  ;;  %v2356_v41 = vshll.u32 %v4961_v49, 16  ;;  %v1145_v52 = vpop.permute.xlu0 %1144  ;;  %v2279_v44 = vrot.slane %v2277_v35, 4  ;;  %v2282_v38 = vrot.slane %v2280_v37, 5  ;;  %v2286_v19 = vshll.u32 %v4969_v55, 16  ;;  %v4998_v37 = vld [vmem:[%s4695_s30 + $0x1c] sm:$0x1] }
  0xdf   : > { %2263 = vrot.lane.b32.xlu1 %v3364_v24, %s3698_s10  ;;  %v2339_v5 = vor.u32 %v2338_v4, %v2335_v36  ;;  %v2344_v30 = vrot.slane %v2342_v45, 5  ;;  %v2353_v2 = vor.u32 %v2352_v0, %v2349_v46  ;;  %v2293_v31 = vrot.slane %v2291_v29, 4  ;;  %1157 = vst.msk [vmem:[#allocation2] sm:$0xff] %vm1156_vm14, %v1145_v52  ;;  %v5008_v46 = vld [vmem:[%s4695_s30 + $0x24] sm:$0x1] }
  0xe0   : > { %v1151_v61 = vpop.permute.xlu1 %1150  ;;  %v2358_v18 = vrot.slane %v2356_v41, 5  ;;  %v2283_v1 = vor.u32 %v2282_v38, %v2279_v44  ;;  %v2288_v21 = vrot.slane %v2286_v19, 5  ;;  %v2296_v8 = vrot.slane %v2294_v63, 5 }
  0xe1   : > { %v2340_v47 = vrot.slane %v2339_v5, 4  ;;  %v2354_v33 = vrot.slane %v2353_v2, 4  ;;  %v2300_v27 = vshll.u32 %v4978_v22, 16  ;;  %v2363_v24 = vrot.slane %v2361_v10, 4  ;;  %1160 = vst.msk [vmem:[#allocation2 + $0x18] sm:$0xff] %vm1156_vm14, %v1151_v61 }
  0xe2   : > { %2259 = vrot.lane.b32.xlu0 %v3362_v54, %s3698_s10  ;;  %v1147_v26 = vpop.permute.xlu0 %1146  ;;  %v2284_v25 = vrot.slane %v2283_v1, 4  ;;  %v2297_v53 = vor.u32 %v2296_v8, %v2293_v31  ;;  %v2366_v42 = vrot.slane %v2364_v7, 5  ;;  %v2370_v54 = vshll.u32 %v4982_v40, 16 }
  0xe3   : > { %2265 = vrot.lane.b32.xlu1 %v3365_v39, %s3698_s10  ;;  %v2345_v12 = vsel %vm3938_vm5, %v2340_v47, %v2344_v30  ;;  %1158 = vst.msk [vmem:[#allocation2 + $0x8] sm:$0xff] %vm1156_vm14, %v1147_v26  ;;  %v2359_v62 = vsel %vm3938_vm5, %v2354_v33, %v2358_v18  ;;  %v2302_v48 = vrot.slane %v2300_v27, 5  ;;  %v2377_v35 = vrot.slane %v2375_v13, 4 }
  0xe4   : > { %v4992_v9 = vpop.permute.xlu1 %1203  ;;  %v3368_v29 = vcombine.low %v2345_v12, %v2359_v62  ;;  %v2289_v63 = vsel %vm3938_vm5, %v2284_v25, %v2288_v21  ;;  %v2298_v60 = vrot.slane %v2297_v53, 4  ;;  %v2367_v39 = vor.u32 %v2366_v42, %v2363_v24  ;;  %v5040_v42 = vld [vmem:[%s4695_s30 + $0x30] sm:$0xf] }
  0xe5   : > { %v2372_v10 = vrot.slane %v2370_v54, 5  ;;  %v2380_v7 = vrot.slane %v2378_v43, 5  ;;  %v2384_v28 = vshll.u32 %v4990_v15, 16  ;;  %v2307_v36 = vrot.slane %v2305_v11, 4  ;;  %v5048_v54 = vld [vmem:[%s4695_s30 + $0x38] sm:$0xf] }
  0xe6   : > { %2261 = vrot.lane.b32.xlu0 %v3363_v17, %s3698_s10  ;;  %v1200_v4 = vpop.permute.xlu0 %1199  ;;  %v2303_v13 = vsel %vm3938_vm5, %v2298_v60, %v2302_v48  ;;  %v2368_v45 = vrot.slane %v2367_v39, 4  ;;  %v2310_v0 = vrot.slane %v2308_v58, 5  ;;  %v2314_v17 = vshll.u32 %v4998_v37, 16  ;;  %1214 = vst.msk [vmem:[#allocation2 + $0x10] sm:$0xff] %vm1211_vm15, %v4992_v9  ;;  %v5061_v39 = vld [vmem:[%s4695_s30 + $0x10] sm:$0xf] }
  0xe7   : > { %2404 = vrot.lane.b32.xlu1 %v3368_v29, %s3699_s11  ;;  %v3366_v43 = vcombine.low %v2289_v63, %v2303_v13  ;;  %v2381_v52 = vor.u32 %v2380_v7, %v2377_v35  ;;  %v2386_v5 = vrot.slane %v2384_v28, 5  ;;  %v2321_v11 = vrot.slane %v2319_v6, 4  ;;  %1212 = vst.msk [vmem:[#allocation2] sm:$0xff] %vm1211_vm15, %v1200_v4  ;;  %v3623_v9 = vld [vmem:[%s5335_s3] sm:$0xff]  }
  0xe8   : > { %v1206_v41 = vpop.permute.xlu1 %1205  ;;  %v2373_v44 = vsel %vm3938_vm5, %v2368_v45, %v2372_v10  ;;  %v2311_v38 = vor.u32 %v2310_v0, %v2307_v36  ;;  %v2316_v19 = vrot.slane %v2314_v17, 5  ;;  %v2324_v61 = vrot.slane %v2322_v14, 5  ;;  %3482 = vmatprep.subr.bf16.mxu0 %v3623_v9  ;;  %v5087_v17 = vld [vmem:[%s4695_s30 + $0x40] sm:$0xf]  ;;  %3504 = vmatprep.subr.bf16.mxu1 %v3623_v9 }
  0xe9   : > { %v2382_v58 = vrot.slane %v2381_v52, 4  ;;  %v2328_v30 = vshll.u32 %v5008_v46, 16  ;;  %v3374_v2 = vrot.slane %v4899_v3, 9  ;;  %v2443_v18 = vrot.slane %v4952_v57, 5  ;;  %1215 = vst.msk [vmem:[#allocation2 + $0x18] sm:$0xff] %vm1211_vm15, %v1206_v41  ;;  %3483 = vmatpush3.bf16.msra.mxu0 %v3623_v9  ;;  %3511 = vmatpush3.bf16.msra.mxu1 %v3623_v9 }
  0xea   : > { %2400 = vrot.lane.b32.xlu0 %v3366_v43, %s3699_s11  ;;  %v1202_v31 = vpop.permute.xlu0 %1201  ;;  %v2312_v47 = vrot.slane %v2311_v38, 4  ;;  %v2325_v6 = vor.u32 %v2324_v61, %v2321_v11  ;;  %v3375_v1 = vrot.slane %v4902_v20, 9  ;;  %v2447_v21 = vrot.slane %v4961_v49, 5  ;;  %v5090_v41 = vld [vmem:[%s4695_s30 + $0x48] sm:$0xf] }
  0xeb   : > { %v2387_v14 = vsel %vm3938_vm5, %v2382_v58, %v2386_v5  ;;  %v2330_v8 = vrot.slane %v2328_v30, 5  ;;  %v2444_v33 = vsel %vm3828_vm2, %v3374_v2, %v2443_v18  ;;  %v3370_v27 = vrot.slane %v4908_v32, 9  ;;  %1213 = vst.msk [vmem:[#allocation2 + $0x8] sm:$0xff] %vm1211_vm15, %v1202_v31  ;;  %v5108_v18 = vld [vmem:[%s4695_s30 + $0x28] sm:$0xf] }
  0xec   : > { %v5030_v3 = vpop.permute.xlu1 %1344  ;;  %v3369_v57 = vcombine.low %v2373_v44, %v2387_v14  ;;  %v2317_v24 = vsel %vm3938_vm5, %v2312_v47, %v2316_v19  ;;  %v2326_v26 = vrot.slane %v2325_v6, 4  ;;  %v2448_v20 = vsel %vm3828_vm2, %v3375_v1, %v2447_v21  ;;  %v5097_v44 = vld [vmem:[%s4695_s30 + $0x20] sm:$0xf]  ;;  %v3624_v19 = vld [vmem:[%s5335_s3 + $0x8] sm:$0xff]  }
  0xed   : > { %v3380_v49 = vcombine.low %v2444_v33, %v2448_v20  ;;  %v2427_v12 = vrot.slane %v4969_v55, 5  ;;  %v3371_v25 = vrot.slane %v4917_v56, 9  ;;  %v2431_v53 = vrot.slane %v4978_v22, 5  ;;  %3484 = vmatprep.subr.bf16.mxu0 %v3624_v19  ;;  %1355 = vst.msk [vmem:[#allocation2 + $0x10] sm:$0xff] %vm1352_vm0, %v5030_v3  ;;  %3505 = vmatprep.subr.bf16.mxu1 %v3624_v19 }
  0xee   : > { %2406 = vrot.lane.b32.xlu1 %v3369_v57, %s3699_s11  ;;  %v2331_v32 = vsel %vm3938_vm5, %v2326_v26, %v2330_v8  ;;  %v3376_v62 = vrot.slane %v4932_v34, 9  ;;  %v2451_v48 = vrot.slane %v4982_v40, 5  ;;  %v1341_v55 = vpop.permute.xlu0 %1340  ;;  %v3377_v29 = vrot.slane %v4935_v51, 9  ;;  %3485 = vmatpush3.bf16.msra.mxu0 %v3624_v19 }
  0xef   : > { %v3367_v35 = vcombine.low %v2317_v24, %v2331_v32  ;;  %v2428_v56 = vsel %vm3828_vm2, %v3370_v27, %v2427_v12  ;;  %v2432_v22 = vsel %vm3828_vm2, %v3371_v25, %v2431_v53  ;;  %v2455_v63 = vrot.slane %v4990_v15, 5  ;;  %1353 = vst.msk [vmem:[#allocation2] sm:$0xff] %vm1352_vm0, %v1341_v55  ;;  %3512 = vmatpush3.bf16.msra.mxu1 %v3624_v19  ;;  %v5139_v53 = vld [vmem:[%s4695_s30 + $0x34] sm:$0x1] }
  0xf0   : > { %v3378_v34 = vcombine.low %v2428_v56, %v2432_v22  ;;  %v2452_v40 = vsel %vm3828_vm2, %v3376_v62, %v2451_v48  ;;  %v3372_v60 = vrot.slane %v4942_v16, 9  ;;  %v2435_v51 = vrot.slane %v4998_v37, 5  ;;  %v5073_v16 = vld [vmem:[%s4695_s30 + $0x18] sm:$0xf]  ;;  %v5150_v56 = vld [vmem:[%s4695_s30 + $0x3c] sm:$0x1] }
  0xf1   : > { %2402 = vrot.lane.b32.xlu0 %v3367_v35, %s3699_s11  ;;  %v3373_v10 = vrot.slane %v4945_v50, 9  ;;  %v2439_v7 = vrot.slane %v5008_v46, 5  ;;  %v3400_v15 = vcombine.low %v5040_v42, %v5048_v54  ;;  %v2456_v36 = vsel %vm3828_vm2, %v3377_v29, %v2455_v63  ;;  %v5159_v63 = vld [vmem:[%s4695_s30 + $0x14] sm:$0x1]  ;;  %s3703_s11 = smov 104  }
  0xf2   : > { %2473 = vrot.lane.b32.xlu1 %v3380_v49, %s3700_s14  ;;  %v2598_v37 = vshrl.u32 %v5040_v42, 16  ;;  %v2601_v50 = vshll.u32 %v5040_v42, 16  ;;  %v2612_v4 = vshrl.u32 %v5048_v54, 16  ;;  %v3381_v13 = vcombine.low %v2452_v40, %v2456_v36 }
  0xf3   : > { %v1347_v28 = vpop.permute.xlu1 %1346  ;;  %v2436_v45 = vsel %vm3828_vm2, %v3372_v60, %v2435_v51  ;;  %v2440_v46 = vsel %vm3828_vm2, %v3373_v10, %v2439_v7  ;;  %v2615_v0 = vshll.u32 %v5048_v54, 16  ;;  %v3410_v52 = vrot.slane %v5040_v42, 9 }
  0xf4   : > { %v3379_v43 = vcombine.low %v2436_v45, %v2440_v46  ;;  %v3411_v5 = vrot.slane %v5048_v54, 9  ;;  %v3398_v11 = vcombine.low %v5061_v39, %v5073_v16  ;;  %v2542_v61 = vshrl.u32 %v5061_v39, 16  ;;  %1356 = vst.msk [vmem:[#allocation2 + $0x18] sm:$0xff] %vm1352_vm0, %v1347_v28 }
  0xf5   : > { %v1343_v38 = vpop.permute.xlu0 %1342  ;;  %2469 = vrot.lane.b32.xlu0 %v3378_v34, %s3700_s14  ;;  %v2545_v58 = vshll.u32 %v5061_v39, 16  ;;  %v2556_v30 = vshrl.u32 %v5073_v16, 16  ;;  %v2559_v2 = vshll.u32 %v5073_v16, 16  ;;  %v3406_v47 = vrot.slane %v5061_v39, 9 }
  0xf6   : > { %2475 = vrot.lane.b32.xlu1 %v3381_v13, %s3700_s14  ;;  %v3407_v6 = vrot.slane %v5073_v16, 9  ;;  %v3401_v1 = vcombine.low %v5087_v17, %v5090_v41  ;;  %v2626_v21 = vshrl.u32 %v5087_v17, 16  ;;  %v2629_v14 = vshll.u32 %v5087_v17, 16  ;;  %1354 = vst.msk [vmem:[#allocation2 + $0x8] sm:$0xff] %vm1352_vm0, %v1343_v38  ;;  %v5178_v13 = vld [vmem:[%s4695_s30 + $0x1c] sm:$0x1] }
  0xf7   : > { %v5110_v31 = vpop.permute.xlu1 %1413  ;;  %v2640_v8 = vshrl.u32 %v5090_v41, 16  ;;  %v2643_v33 = vshll.u32 %v5090_v41, 16  ;;  %v3412_v27 = vrot.slane %v5087_v17, 9  ;;  %v3413_v57 = vrot.slane %v5090_v41, 9  ;;  %v3629_v17 = vld [vmem:[%s5335_s3 + $0x30] sm:$0x3f]  }
  0xf8   : > { %v3399_v3 = vcombine.low %v5097_v44, %v5108_v18  ;;  %v2570_v24 = vshrl.u32 %v5097_v44, 16  ;;  %v5130_v20 = vrot.slane %v2626_v21, 4  ;;  %v5132_v49 = vrot.slane %v2629_v14, 5  ;;  %1424 = vst.msk [vmem:[#allocation2 + $0x10] sm:$0xff] %vm1421_vm1, %v5110_v31 }
  0xf9   : > { %v5127_v26 = vpop.permute.xlu0 %1409  ;;  %2471 = vrot.lane.b32.xlu0 %v3379_v43, %s3700_s14  ;;  %v5134_v12 = vrot.slane %v2640_v8, 4  ;;  %v5136_v25 = vrot.slane %v2643_v33, 5  ;;  %v2573_v48 = vshll.u32 %v5097_v44, 16  ;;  %v2584_v55 = vshrl.u32 %v5108_v18, 16 }
  0xfa   : > { %2528 = vrot.lane.b32.xlu1 %v3400_v15, %s3701_s17  ;;  %v5144_v62 = vrot.slane %v2570_v24, 4  ;;  %v2587_v35 = vshll.u32 %v5108_v18, 16  ;;  %v3408_v22 = vrot.slane %v5097_v44, 9  ;;  %v3409_v29 = vrot.slane %v5108_v18, 9  ;;  %v3625_v15 = vld [vmem:[%s5335_s3 + $0x10] sm:$0xff]   ;;  %1422 = vst.msk [vmem:[#allocation2] sm:$0xff] %vm1421_vm1, %v5127_v26 }
  0xfb   : > { %v5141_v32 = vpop.permute.xlu1 %1415  ;;  %v2600_v34 = vrot.slane %v2598_v37, 4  ;;  %v2603_v40 = vrot.slane %v2601_v50, 5  ;;  %v5161_v60 = vrot.slane %v2573_v48, 5  ;;  %v5163_v9 = vrot.slane %v2584_v55, 4  ;;  %3486 = vmatprep.subr.bf16.mxu0 %v3625_v15  ;;  %3506 = vmatprep.subr.bf16.mxu1 %v3625_v15  ;;  %v5205_v55 = vld [vmem:[%s4695_s30 + $0x44] sm:$0x1] }
  0xfc   : > { %v5165_v51 = vrot.slane %v2587_v35, 5  ;;  %v2607_v10 = vshll.u32 %v5139_v53, 16  ;;  %v2614_v36 = vrot.slane %v2612_v4, 4  ;;  %v2617_v37 = vrot.slane %v2615_v0, 5  ;;  %3487 = vmatpush3.bf16.msra.mxu0 %v3625_v15  ;;  %3513 = vmatpush3.bf16.msra.mxu1 %v3625_v15  ;;  %1425 = vst.msk [vmem:[#allocation2 + $0x18] sm:$0xff] %vm1421_vm1, %v5141_v32 }
  0xfd   : > { %v1412_v7 = vpop.permute.xlu0 %1411  ;;  %2524 = vrot.lane.b32.xlu0 %v3398_v11, %s3701_s17  ;;  %v2604_v28 = vor.u32 %v2603_v40, %v2600_v34  ;;  %v2621_v50 = vshll.u32 %v5150_v56, 16  ;;  %v2708_v43 = vrot.slane %v5139_v53, 5  ;;  %v2712_v11 = vrot.slane %v5150_v56, 5 }
  0xfe   : > { %2530 = vrot.lane.b32.xlu1 %v3401_v1, %s3701_s17  ;;  %v2609_v46 = vrot.slane %v2607_v10, 5  ;;  %v2544_v38 = vrot.slane %v2542_v61, 4  ;;  %v2618_v19 = vor.u32 %v2617_v37, %v2614_v36  ;;  %v2547_v21 = vrot.slane %v2545_v58, 5  ;;  %v3626_v58 = vld [vmem:[%s5335_s3 + $0x18] sm:$0xff]   ;;  %v5218_v37 = vld [vmem:[%s4695_s30 + $0x24] sm:$0x1] }
  0xff   : > { %v5180_v45 = vpop.permute.xlu1 %1468  ;;  %v2605_v4 = vrot.slane %v2604_v28, 4  ;;  %v2623_v0 = vrot.slane %v2621_v50, 5  ;;  %v2551_v1 = vshll.u32 %v5159_v63, 16  ;;  %v2558_v14 = vrot.slane %v2556_v30, 4  ;;  %v5211_v28 = vld [vmem:[%s4695_s30 + $0x4c] sm:$0x1]  ;;  %3488 = vmatprep.subr.bf16.mxu0 %v3626_v58  ;;  %3507 = vmatprep.subr.bf16.mxu1 %v3626_v58 }
 0x100   : > { %v2561_v8 = vrot.slane %v2559_v2, 5  ;;  %v2565_v61 = vshll.u32 %v5178_v13, 16  ;;  %v2619_v48 = vrot.slane %v2618_v19, 4  ;;  %v2548_v30 = vor.u32 %v2547_v21, %v2544_v38  ;;  %3489 = vmatpush3.bf16.msra.mxu0 %v3626_v58  ;;  %1423 = vst.msk [vmem:[#allocation2 + $0x8] sm:$0xff] %vm1421_vm1, %v1412_v7  ;;  %3514 = vmatpush3.bf16.msra.mxu1 %v3626_v58  ;;  %v5233_v19 = vld [vmem:[%s4695_s30 + $0x2c] sm:$0x1] }
 0x101   : > { %v5195_v33 = vpop.permute.xlu0 %1464  ;;  %2526 = vrot.lane.b32.xlu0 %v3399_v3, %s3701_s17  ;;  %v2610_v24 = vsel %vm3938_vm5, %v2605_v4, %v2609_v46  ;;  %v2692_v2 = vrot.slane %v5159_v63, 5  ;;  %v2553_v34 = vrot.slane %v2551_v1, 5  ;;  %v2696_v15 = vrot.slane %v5178_v13, 5  ;;  %1479 = vst.msk [vmem:[#allocation2 + $0x10] sm:$0xff] %vm1476_vm3, %v5180_v45  ;;  %s3141_s17 = sshll.u32 %s357_s16, 2 }
 0x102   : > { %v2562_v40 = vor.u32 %v2561_v8, %v2558_v14  ;;  %v2567_v10 = vrot.slane %v2565_v61, 5  ;;  %v2624_v3 = vsel %vm3938_vm5, %v2619_v48, %v2623_v0  ;;  %v2549_v36 = vrot.slane %v2548_v30, 4  ;;  %1477 = vst.msk [vmem:[#allocation2] sm:$0xff] %vm1476_vm3, %v5195_v33  ;;  %s359_s25 = scalar_lea.vmem %s5337_s5, %s3141_s17 }
 0x103   : > { %v5207_v35 = vpop.permute.xlu1 %1470  ;;  %v2632_v63 = vor.u32 %v5132_v49, %v5130_v20  ;;  %v3404_v50 = vcombine.low %v2610_v24, %v2624_v3  ;;  %v2635_v13 = vshll.u32 %v5205_v55, 16  ;;  %v2646_v38 = vor.u32 %v5136_v25, %v5134_v12  ;;  %v3627_v20 = vld [vmem:[%s5335_s3 + $0x20] sm:$0xff]  }
 0x104   : > { %v2563_v46 = vrot.slane %v2562_v40, 4  ;;  %v2554_v49 = vsel %vm3938_vm5, %v2549_v36, %v2553_v34  ;;  %v2649_v26 = vshll.u32 %v5211_v28, 16  ;;  %v2576_v12 = vor.u32 %v5161_v60, %v5144_v62  ;;  %3490 = vmatprep.subr.bf16.mxu0 %v3627_v20  ;;  %3508 = vmatprep.subr.bf16.mxu1 %v3627_v20  ;;  %1480 = vst.msk [vmem:[#allocation2 + $0x18] sm:$0xff] %vm1476_vm3, %v5207_v35 }
 0x105   : > { %v1467_v4 = vpop.permute.xlu0 %1466  ;;  %v2633_v31 = vrot.slane %v2632_v63, 4  ;;  %2669 = vrot.lane.b32.xlu1 %v3404_v50, %s3702_s7  ;;  %v2637_v32 = vrot.slane %v2635_v13, 5  ;;  %v2647_v7 = vrot.slane %v2646_v38, 4  ;;  %v2579_v0 = vshll.u32 %v5218_v37, 16  ;;  %3491 = vmatpush3.bf16.msra.mxu0 %v3627_v20 }
 0x106   : > { %v2568_v25 = vsel %vm3938_vm5, %v2563_v46, %v2567_v10  ;;  %v2651_v14 = vrot.slane %v2649_v26, 5  ;;  %v2577_v8 = vrot.slane %v2576_v12, 4  ;;  %v2590_v61 = vor.u32 %v5165_v51, %v5163_v9  ;;  %3515 = vmatpush3.bf16.msra.mxu1 %v3627_v20  ;;  %v3628_v9 = vld [vmem:[%s5335_s3 + $0x28] sm:$0xff]   ;;  %1478 = vst.msk [vmem:[#allocation2 + $0x8] sm:$0xff] %vm1476_vm3, %v1467_v4 }
 0x107   : > { %v1610_v21 = vpop.permute.xlu1 %1609  ;;  %v3402_v1 = vcombine.low %v2554_v49, %v2568_v25  ;;  %v2638_v62 = vsel %vm3938_vm5, %v2633_v31, %v2637_v32  ;;  %v2581_v60 = vrot.slane %v2579_v0, 5  ;;  %v2593_v58 = vshll.u32 %v5233_v19, 16  ;;  %3492 = vmatprep.subr.bf16.mxu0 %v3628_v9  ;;  %3509 = vmatprep.subr.bf16.mxu1 %v3628_v9 }
 0x108   : > { %v2709_v24 = vsel %vm3828_vm2, %v3410_v52, %v2708_v43  ;;  %v2652_v51 = vsel %vm3938_vm5, %v2647_v7, %v2651_v14  ;;  %v2591_v48 = vrot.slane %v2590_v61, 4  ;;  %v2713_v42 = vsel %vm3828_vm2, %v3411_v5, %v2712_v11  ;;  %1620 = vst.msk [vmem:[#allocation2 + $0x10] sm:$0xff] %vm1617_vm4, %v1610_v21 }
 0x109   : > { %2665 = vrot.lane.b32.xlu0 %v3402_v1, %s3702_s7  ;;  %v2693_v52 = vsel %vm3828_vm2, %v3406_v47, %v2692_v2  ;;  %v1606_v53 = vpop.permute.xlu0 %1605  ;;  %v3405_v43 = vcombine.low %v2638_v62, %v2652_v51  ;;  %v2582_v30 = vsel %vm3938_vm5, %v2577_v8, %v2581_v60  ;;  %v2595_v34 = vrot.slane %v2593_v58, 5  ;;  %3493 = vmatpush3.bf16.msra.mxu0 %v3628_v9 }
 0x10a   : > { %v3416_v40 = vcombine.low %v2709_v24, %v2713_v42  ;;  %v2697_v54 = vsel %vm3828_vm2, %v3407_v6, %v2696_v15  ;;  %v2716_v39 = vrot.slane %v5205_v55, 5  ;;  %v2720_v5 = vrot.slane %v5211_v28, 5  ;;  %3516 = vmatpush3.bf16.msra.mxu1 %v3628_v9  ;;  %1618 = vst.msk [vmem:[#allocation2] sm:$0xff] %vm1617_vm4, %v1606_v53 }
 0x10b   : > { %2671 = vrot.lane.b32.xlu1 %v3405_v43, %s3702_s7  ;;  %v2596_v47 = vsel %vm3938_vm5, %v2591_v48, %v2595_v34  ;;  %v3414_v56 = vcombine.low %v2693_v52, %v2697_v54  ;;  %v2700_v16 = vrot.slane %v5218_v37, 5  ;;  %v2704_v6 = vrot.slane %v5233_v19, 5 }
 0x10c   : > { %v3403_v2 = vcombine.low %v2582_v30, %v2596_v47  ;;  %v2717_v59 = vsel %vm3828_vm2, %v3412_v27, %v2716_v39  ;;  %v2721_v45 = vsel %vm3828_vm2, %v3413_v57, %v2720_v5  ;;  %vm1686_vm5 = vcmask 490944  }
 0x10d   : > { %v3417_v33 = vcombine.low %v2717_v59, %v2721_v45  ;;  %v2701_v41 = vsel %vm3828_vm2, %v3408_v22, %v2700_v16  ;;  %v2705_v27 = vsel %vm3828_vm2, %v3409_v29, %v2704_v6  ;;  %vm2830_vm6 = vcmask 1045504   ;;  %v3418_v45 = vld [vmem:[%s5336_s4] ss:$0 sm:$0xff] }
 0x10e   : > { %v1612_v11 = vpop.permute.xlu1 %1611  ;;  %2667 = vrot.lane.b32.xlu0 %v3403_v2, %s3702_s7  ;;  %v3415_v35 = vcombine.low %v2701_v41, %v2705_v27  ;;  %3518 = vmatprep.subr.msk.bf16.mxu0 %vm2830_vm6, %v3629_v17  ;;  %v2832_v15 = vsel %vm2830_vm6, %v3629_v17, 0  ;;  %vm1741_vm2 = vcmask 523744   ;;  %vm1882_vm7 = vcmask 556544  }
 0x10f   : > { %1621 = vst.msk [vmem:[#allocation2 + $0x18] sm:$0xff] %vm1617_vm4, %v1612_v11  ;;  %2738 = vrot.lane.b32.xlu1 %v3416_v40, %s3703_s11  ;;  %3519 = vmatprep.subr.msk.bf16.mxu1 %vm2830_vm6, %v3629_v17  ;;  %vm1951_vm8 = vcmask 589344   ;;  %vm2006_vm9 = vcmask 622144   ;;  %vm2147_vm10 = vcmask 654944   ;;  %vm2216_vm11 = vcmask 687744  }
 0x110   : > { %v1608_v55 = vpop.permute.xlu0 %1607  ;;  %3495 = vmatpush3.bf16.msra.mxu0 %v2832_v15  ;;  %3517 = vmatpush3.bf16.msra.mxu1 %v2832_v15  ;;  %vm2271_vm12 = vcmask 720544   ;;  %vm2412_vm13 = vcmask 753344   ;;  %vm2481_vm14 = vcmask 786144   ;;  %vm2536_vm15 = vcmask 818944  }
 0x111   : > { %1619 = vst.msk [vmem:[#allocation2 + $0x8] sm:$0xff] %vm1617_vm4, %v1608_v55  ;;  %vm2677_vm0 = vcmask 851744   ;;  %vm2746_vm1 = vcmask 884544   ;;  %vm2817_vm3 = vcmask 883712  }
 0x112   : > { %v1679_v57 = vpop.permute.xlu1 %1678  ;;  %2734 = vrot.lane.b32.xlu0 %v3414_v56, %s3703_s11 }
 0x113   : > { %1689 = vst.msk [vmem:[#allocation2 + $0x10] sm:$0xff] %vm1686_vm5, %v1679_v57  ;;  %2740 = vrot.lane.b32.xlu1 %v3417_v33, %s3703_s11 }
 0x114   : > { %v1675_v10 = vpop.permute.xlu0 %1674 }
 0x115   : > { %1687 = vst.msk [vmem:[#allocation2] sm:$0xff] %vm1686_vm5, %v1675_v10 }
 0x116   : > { %v1681_v44 = vpop.permute.xlu1 %1680  ;;  %2736 = vrot.lane.b32.xlu0 %v3415_v35, %s3703_s11 }
 0x117   : > { %1690 = vst.msk [vmem:[#allocation2 + $0x18] sm:$0xff] %vm1686_vm5, %v1681_v44 }
 0x118   : > { %v1677_v23 = vpop.permute.xlu0 %1676 }
 0x119   : > { %1688 = vst.msk [vmem:[#allocation2 + $0x8] sm:$0xff] %vm1686_vm5, %v1677_v23 }
 0x11a   : > { %v1734_v18 = vpop.permute.xlu1 %1733 }
 0x11b   : > { %1744 = vst.msk [vmem:[#allocation2 + $0x10] sm:$0xff] %vm1741_vm2, %v1734_v18 }
 0x11c   : > { %v1730_v22 = vpop.permute.xlu0 %1729 }
 0x11d   : > { %1742 = vst.msk [vmem:[#allocation2] sm:$0xff] %vm1741_vm2, %v1730_v22 }
 0x11e   : > { %v1736_v29 = vpop.permute.xlu1 %1735 }
 0x11f   : > { %1745 = vst.msk [vmem:[#allocation2 + $0x18] sm:$0xff] %vm1741_vm2, %v1736_v29 }
 0x120   : > { %v1732_v28 = vpop.permute.xlu0 %1731 }
 0x121   : > { %1743 = vst.msk [vmem:[#allocation2 + $0x8] sm:$0xff] %vm1741_vm2, %v1732_v28 }
 0x122   : > { %v1875_v3 = vpop.permute.xlu1 %1874 }
 0x123   : > { %1885 = vst.msk [vmem:[#allocation2 + $0x10] sm:$0xff] %vm1882_vm7, %v1875_v3 }
 0x124   : > { %v1871_v36 = vpop.permute.xlu0 %1870 }
 0x125   : > { %1883 = vst.msk [vmem:[#allocation2] sm:$0xff] %vm1882_vm7, %v1871_v36 }
 0x129   : > { %v1877_v63 = vpop.permute.xlu1 %1876 }
 0x12a   : > { %1886 = vst.msk [vmem:[#allocation2 + $0x18] sm:$0xff] %vm1882_vm7, %v1877_v63 }
 0x12b   : > { %v1873_v37 = vpop.permute.xlu0 %1872 }
 0x12c   : > { %1884 = vst.msk [vmem:[#allocation2 + $0x8] sm:$0xff] %vm1882_vm7, %v1873_v37 }
 0x12d   : > { %v1944_v50 = vpop.permute.xlu1 %1943 }
 0x12e   : > { %1954 = vst.msk [vmem:[#allocation2 + $0x10] sm:$0xff] %vm1951_vm8, %v1944_v50 }
 0x12f   : > { %v1940_v46 = vpop.permute.xlu0 %1939 }
 0x130   : > { %1952 = vst.msk [vmem:[#allocation2] sm:$0xff] %vm1951_vm8, %v1940_v46 }
 0x131   : > { %v1946_v13 = vpop.permute.xlu1 %1945 }
 0x132   : > { %1955 = vst.msk [vmem:[#allocation2 + $0x18] sm:$0xff] %vm1951_vm8, %v1946_v13 }
 0x133   : > { %v1942_v38 = vpop.permute.xlu0 %1941 }
 0x134   : > { %1953 = vst.msk [vmem:[#allocation2 + $0x8] sm:$0xff] %vm1951_vm8, %v1942_v38 }
 0x135   : > { %v1999_v4 = vpop.permute.xlu1 %1998 }
 0x136   : > { %2009 = vst.msk [vmem:[#allocation2 + $0x10] sm:$0xff] %vm2006_vm9, %v1999_v4 }
 0x137   : > { %v1995_v20 = vpop.permute.xlu0 %1994 }
 0x138   : > { %2007 = vst.msk [vmem:[#allocation2] sm:$0xff] %vm2006_vm9, %v1995_v20 }
 0x139   : > { %v2001_v49 = vpop.permute.xlu1 %2000 }
 0x13a   : > { %2010 = vst.msk [vmem:[#allocation2 + $0x18] sm:$0xff] %vm2006_vm9, %v2001_v49 }
 0x13b   : > { %v1997_v31 = vpop.permute.xlu0 %1996 }
 0x13c   : > { %2008 = vst.msk [vmem:[#allocation2 + $0x8] sm:$0xff] %vm2006_vm9, %v1997_v31 }
 0x13d   : > { %v2140_v26 = vpop.permute.xlu1 %2139 }
 0x13e   : > { %2150 = vst.msk [vmem:[#allocation2 + $0x10] sm:$0xff] %vm2147_vm10, %v2140_v26 }
 0x140   : > { %v2136_v19 = vpop.permute.xlu0 %2135 }
 0x141   : > { %2148 = vst.msk [vmem:[#allocation2] sm:$0xff] %vm2147_vm10, %v2136_v19 }
 0x145   : > { %v2142_v12 = vpop.permute.xlu1 %2141 }
 0x146   : > { %2151 = vst.msk [vmem:[#allocation2 + $0x18] sm:$0xff] %vm2147_vm10, %v2142_v12 }
 0x148   : > { %v2138_v25 = vpop.permute.xlu0 %2137 }
 0x149   : > { %2149 = vst.msk [vmem:[#allocation2 + $0x8] sm:$0xff] %vm2147_vm10, %v2138_v25  ;;  %v2209_v32 = vpop.permute.xlu1 %2208 }
 0x14a   : > { %2219 = vst.msk [vmem:[#allocation2 + $0x10] sm:$0xff] %vm2216_vm11, %v2209_v32 }
 0x14c   : > { %v2205_v7 = vpop.permute.xlu0 %2204 }
 0x14d   : > { %2217 = vst.msk [vmem:[#allocation2] sm:$0xff] %vm2216_vm11, %v2205_v7  ;;  %v2211_v0 = vpop.permute.xlu1 %2210 }
 0x14e   : > { %2220 = vst.msk [vmem:[#allocation2 + $0x18] sm:$0xff] %vm2216_vm11, %v2211_v0 }
 0x150   : > { %v2207_v21 = vpop.permute.xlu0 %2206 }
 0x151   : > { %2218 = vst.msk [vmem:[#allocation2 + $0x8] sm:$0xff] %vm2216_vm11, %v2207_v21  ;;  %v2264_v1 = vpop.permute.xlu1 %2263 }
 0x152   : > { %2274 = vst.msk [vmem:[#allocation2 + $0x10] sm:$0xff] %vm2271_vm12, %v2264_v1 }
 0x154   : > { %v2260_v14 = vpop.permute.xlu0 %2259 }
 0x155   : > { %2272 = vst.msk [vmem:[#allocation2] sm:$0xff] %vm2271_vm12, %v2260_v14  ;;  %v2266_v8 = vpop.permute.xlu1 %2265 }
 0x156   : > { %2275 = vst.msk [vmem:[#allocation2 + $0x18] sm:$0xff] %vm2271_vm12, %v2266_v8 }
 0x158   : > { %v2262_v61 = vpop.permute.xlu0 %2261 }
 0x159   : > { %2273 = vst.msk [vmem:[#allocation2 + $0x8] sm:$0xff] %vm2271_vm12, %v2262_v61  ;;  %v2405_v62 = vpop.permute.xlu1 %2404 }
 0x15a   : > { %2415 = vst.msk [vmem:[#allocation2 + $0x10] sm:$0xff] %vm2412_vm13, %v2405_v62 }
 0x15c   : > { %v2401_v60 = vpop.permute.xlu0 %2400 }
 0x15d   : > { %2413 = vst.msk [vmem:[#allocation2] sm:$0xff] %vm2412_vm13, %v2401_v60 }
 0x160   : > { %v2407_v58 = vpop.permute.xlu1 %2406 }
 0x161   : > { %2416 = vst.msk [vmem:[#allocation2 + $0x18] sm:$0xff] %vm2412_vm13, %v2407_v58 }
 0x163   : > { %v2403_v24 = vpop.permute.xlu0 %2402 }
 0x164   : > { %2414 = vst.msk [vmem:[#allocation2 + $0x8] sm:$0xff] %vm2412_vm13, %v2403_v24  ;;  %v2474_v9 = vpop.permute.xlu1 %2473 }
 0x165   : > { %2484 = vst.msk [vmem:[#allocation2 + $0x10] sm:$0xff] %vm2481_vm14, %v2474_v9 }
 0x167   : > { %v2470_v51 = vpop.permute.xlu0 %2469 }
 0x168   : > { %2482 = vst.msk [vmem:[#allocation2] sm:$0xff] %vm2481_vm14, %v2470_v51  ;;  %v2476_v48 = vpop.permute.xlu1 %2475 }
 0x169   : > { %2485 = vst.msk [vmem:[#allocation2 + $0x18] sm:$0xff] %vm2481_vm14, %v2476_v48 }
 0x16b   : > { %v2472_v42 = vpop.permute.xlu0 %2471 }
 0x16c   : > { %2483 = vst.msk [vmem:[#allocation2 + $0x8] sm:$0xff] %vm2481_vm14, %v2472_v42  ;;  %v2529_v52 = vpop.permute.xlu1 %2528 }
 0x16d   : > { %2539 = vst.msk [vmem:[#allocation2 + $0x10] sm:$0xff] %vm2536_vm15, %v2529_v52 }
 0x16f   : > { %v2525_v53 = vpop.permute.xlu0 %2524 }
 0x170   : > { %2537 = vst.msk [vmem:[#allocation2] sm:$0xff] %vm2536_vm15, %v2525_v53  ;;  %v2531_v43 = vpop.permute.xlu1 %2530 }
 0x171   : > { %2540 = vst.msk [vmem:[#allocation2 + $0x18] sm:$0xff] %vm2536_vm15, %v2531_v43 }
 0x173   : > { %v2527_v30 = vpop.permute.xlu0 %2526 }
 0x174   : > { %2538 = vst.msk [vmem:[#allocation2 + $0x8] sm:$0xff] %vm2536_vm15, %v2527_v30 }
 0x177   : > { %v2670_v34 = vpop.permute.xlu1 %2669 }
 0x178   : > { %2680 = vst.msk [vmem:[#allocation2 + $0x10] sm:$0xff] %vm2677_vm0, %v2670_v34 }
 0x17b   : > { %v2666_v40 = vpop.permute.xlu0 %2665 }
 0x17c   : > { %2678 = vst.msk [vmem:[#allocation2] sm:$0xff] %vm2677_vm0, %v2666_v40 }
 0x17d   : > { %v2672_v54 = vpop.permute.xlu1 %2671 }
 0x17e   : > { %2681 = vst.msk [vmem:[#allocation2 + $0x18] sm:$0xff] %vm2677_vm0, %v2672_v54 }
 0x180   : > { %v2668_v39 = vpop.permute.xlu0 %2667 }
 0x181   : > { %2679 = vst.msk [vmem:[#allocation2 + $0x8] sm:$0xff] %vm2677_vm0, %v2668_v39  ;;  %v2739_v5 = vpop.permute.xlu1 %2738 }
 0x182   : > { %2749 = vst.msk [vmem:[#allocation2 + $0x10] sm:$0xff] %vm2746_vm1, %v2739_v5 }
 0x184   : > { %v2735_v47 = vpop.permute.xlu0 %2734 }
 0x185   : > { %2747 = vst.msk [vmem:[#allocation2] sm:$0xff] %vm2746_vm1, %v2735_v47  ;;  %v2741_v56 = vpop.permute.xlu1 %2740 }
 0x186   : > { %2750 = vst.msk [vmem:[#allocation2 + $0x18] sm:$0xff] %vm2746_vm1, %v2741_v56 }
 0x188   : > { %v2737_v16 = vpop.permute.xlu0 %2736 }
 0x189   : > { %2748 = vst.msk [vmem:[#allocation2 + $0x8] sm:$0xff] %vm2746_vm1, %v2737_v16  ;;  %v2753_v6 = vld [vmem:[#allocation2 + $0x10] sm:$0xff] }
 0x18a   : > { %3500 = vmatprep.mubr.msk.bf16.mxu1 %vm2817_vm3, %v2753_v6 }
 0x18c   : > { %v2751_v11 = vld [vmem:[#allocation2] sm:$0xff] }
 0x18d   : > { %3496 = vmatprep.mubr.msk.bf16.mxu0 %vm2817_vm3, %v2751_v11  ;;  %v2754_v2 = vld [vmem:[#allocation2 + $0x18] sm:$0xff] }
 0x18e   : > { %3501 = vmatmul.mubr.msk.bf16.vlgmr.msra.gmra.mrb[0].mxu1 %vm2817_vm3, %v2754_v2 }
 0x190   : > { %v2752_v59 = vld [vmem:[#allocation2 + $0x8] sm:$0xff] }
 0x191   : > { %3497 = vmatmul.mubr.msk.bf16.vlgmr.msra.gmra.mrb[0].mxu0 %vm2817_vm3, %v2752_v59 }
 0x261   : > { %v3502_v33 = vpop.f32.mrb[0].mxu1 }
 0x262   : > { %v2893_v55 = vadd.f32 %v3502_v33, %v3418_v45  ;;  %v2884_v17 = vpop.f32.mrb[1].mxu1 }
 0x263   : > { %v2885_v41 = vadd.f32 %v3418_v45, %v2884_v17  ;;  %v3503_v27 = vpop.f32.mrb[2].mxu1 }
 0x264   : > { %v3498_v57 = vpop.f32.mrb[0].mxu0  ;;  %v2896_v35 = vadd.f32 %v3503_v27, %v3418_v45  ;;  %v2887_v10 = vpop.f32.mrb[3].mxu1  ;;  %v2905_v18 = vmax.f32 %v2893_v55, 0.0 }
 0x265   : > { %v2877_v15 = vadd.f32 %v3498_v57, %v3418_v45  ;;  %v2868_v44 = vpop.f32.mrb[1].mxu0  ;;  %v2888_v23 = vadd.f32 %v3418_v45, %v2887_v10  ;;  %v2903_v3 = vmax.f32 %v2885_v41, 0.0 }
 0x266   : > { %v2869_v22 = vadd.f32 %v3418_v45, %v2868_v44  ;;  %v3499_v29 = vpop.f32.mrb[2].mxu0  ;;  %v2906_v28 = vmax.f32 %v2896_v35, 0.0 }
 0x267   : > { %v2880_v36 = vadd.f32 %v3499_v29, %v3418_v45  ;;  %v2871_v63 = vpop.f32.mrb[3].mxu0  ;;  %v2904_v37 = vmax.f32 %v2888_v23, 0.0  ;;  %v2901_v13 = vmax.f32 %v2877_v15, 0.0 }
 0x268   : > { %v3466_v50 = vpack.c.bf16 %v2906_v28, %v2905_v18  ;;  %v2872_v46 = vadd.f32 %v3418_v45, %v2871_v63  ;;  %v2899_v20 = vmax.f32 %v2869_v22, 0.0 }
 0x269   : > { %v2902_v38 = vmax.f32 %v2880_v36, 0.0  ;;  %v3461_v4 = vpack.c.bf16 %v2904_v37, %v2903_v3 }
 0x26a   : > { %3470 = vst [vmem:[%s359_s25 + $0x18] sm:$0xff] %v3466_v50   ;;  %v2900_v49 = vmax.f32 %v2872_v46, 0.0 }
 0x26b   : > { %v3456_v31 = vpack.c.bf16 %v2902_v38, %v2901_v13  ;;  %3469 = vst [vmem:[%s359_s25 + $0x10] sm:$0xff] %v3461_v4  }
 0x26c   : > { %v3451_v26 = vpack.c.bf16 %v2900_v49, %v2899_v20 }
 0x26d   : > { %3468 = vst [vmem:[%s359_s25 + $0x8] sm:$0xff] %v3456_v31  }
 0x26e   : > { %3452 = vst [vmem:[%s359_s25] sm:$0xff] %v3451_v26  }
 0x26f PF: > { %s15_s22 = sadd.s32 1, %s3676_s22   ;;  %s5344_s18 = smov %s3668_s20 }
 0x270   : > { %p12_p10 = scmp.ge.s32.totalorder %s15_s22, 18   ;;  %s5345_s19 = smov %s3672_s21 }
 0x271   : > { %s5346_s20 = smov %s5349_s23  ;;  %s5347_s21 = smov %s5353_s24 }
 0x272   :  { %14 = sbr.rel (!%p12_p10) target bundleno = 3 (0x3), region = 85 }

// kernel: double_conv_forward.3
= control target key start
LH: loop header
LB: loop body
LE: loop exit
PB: predicated region body
PF: predicated region fallthrough
CT: control target
= control target key end

     0   :  { %s6897_s18 = smov 0   ;;  %s6899_s19 = smov 0   ;;  %s8773_s0 = inlined_call_operand.vmem [shape: bf16[2,10,10,10,128], index: 0, kind: input, shape index: {}, may-alias: {0,1,2}]   ;;  %s8774_s1 = inlined_call_operand.vmem [shape: bf16[2,10,10,10,128], index: 1, kind: input, shape index: {}, may-alias: {0,1,2}]   ;;  %s8775_s2 = inlined_call_operand.vmem [shape: bf16[2,10,10,10,128], index: 2, kind: input, shape index: {}, may-alias: {0,1,2}]   ;;  %s8776_s3 = inlined_call_operand.vmem [shape: bf16[3456,128], index: 3, kind: input, shape index: {}]   ;;  %s8777_s4 = inlined_call_operand.vmem [shape: f32[1,128], index: 4, kind: input, shape index: {}]   ;;  %s8778_s5 = inlined_call_operand.vmem [shape: f32[2,8,64,128], index: 5, kind: output, shape index: {}]  }
   0x1   :  { %s6901_s20 = smov 0   ;;  %s6903_s21 = smov 0  }
   0x2   :  { %s6905_s22 = smov 0  }
   0x3 LB: > { %s30_s23 = sadd.s32 1, %s6857_s20  ;;  %s34_s24 = sadd.s32 1, %s6861_s21  ;;  %s6865_s22 = sphi %s6905_s22, %s15_s22   ;;  %s6861_s21 = sphi %s6903_s21, %s8788_s21   ;;  %s6857_s20 = sphi %s6901_s20, %s8787_s20   ;;  %s6853_s19 = sphi %s6899_s19, %s8786_s19   ;;  %s6849_s18 = sphi %s6897_s18, %s8785_s18  }
   0x4   : > { %p32_p0 = scmp.ge.s32.totalorder %s30_s23, 8  ;;  %p5473_p1 = scmp.ge.s32.totalorder %s6865_s22, 1 }
   0x5   : > { %p256_p2 = scmp.lt.s32.totalorder %s6865_s22, 17 }
   0x6   : > { %s8790_s23 = smov (%p32_p0, %s30_s23), 0  ;;  %s8792_s24 = smov (!%p32_p0, %s34_s24), %s6861_s21 }
   0x7   : > { %p257_p3 = pnand %p5473_p1, %p256_p2  ;;  %p36_p4 = scmp.ge.s32.totalorder %s8792_s24, 2 }
   0x8   : > { %v6575_v0 = vld [vmem:[%s8776_s3 + $0x40] sm:$0xff] (!%p257_p3)   ;;  %v6579_v4 = vld [vmem:[%s8776_s3 + $0x48] sm:$0xff] (!%p257_p3)   ;;  %v6583_v8 = vld [vmem:[%s8776_s3 + $0x50] sm:$0xff] (!%p257_p3)   ;;  %p316_p5 = scmp.lt.s32.totalorder (!%p257_p3), %s6853_s19, 1  ;;  %p318_p6 = scmp.lt.s32.totalorder (!%p257_p3), %s6849_s18, 9  ;;  %vm553_vm0 = vcmask (!%p257_p3), 1042432  }
   0x9   : > { %s8794_s24 = smov (%p36_p4, %s8792_s24), 0  ;;  %260 = sbr.rel (%p257_p3) target bundleno = 505 (0x1f9), region = 40 }
   0xa   : > { %v6576_v1 = vld [vmem:[%s8776_s3] sm:$0xff] (!%p257_p3)   ;;  %5975 = vmatprep.subr.bf16.mxu0 (!%p257_p3), %v6575_v0  ;;  %v6580_v5 = vld [vmem:[%s8776_s3 + $0x8] sm:$0xff] (!%p257_p3)   ;;  %v6584_v9 = vld [vmem:[%s8776_s3 + $0x10] sm:$0xff] (!%p257_p3)   ;;  %vm410_vm1 = vsmask.f32 (!%p257_p3), 3328  ;;  %vm554_vm2 = vcmask (!%p257_p3), 1046532  }
   0xb   : > { %v6577_v2 = vld [vmem:[%s8776_s3 + $0xc0] sm:$0xff] (!%p257_p3)   ;;  %5976 = vmatpush3.bf16.msra.mxu0 (!%p257_p3), %v6576_v1  ;;  %v6581_v6 = vld [vmem:[%s8776_s3 + $0xc8] sm:$0xff] (!%p257_p3)   ;;  %v6585_v10 = vld [vmem:[%s8776_s3 + $0xd0] sm:$0xff] (!%p257_p3)   ;;  %vm411_vm3 = vsmask.f32 (!%p257_p3), 7440  ;;  %s336_s7 = sadd.s32 (!%p257_p3), 2, %s6849_s18 }
   0xc   : > { %v6578_v3 = vld [vmem:[%s8776_s3 + $0x80] sm:$0xff] (!%p257_p3)   ;;  %6015 = vmatprep.subr.bf16.mxu1 (!%p257_p3), %v6577_v2  ;;  %5977 = vmatprep.subr.bf16.mxu0 (!%p257_p3), %v6579_v4  ;;  %v6582_v7 = vld [vmem:[%s8776_s3 + $0x88] sm:$0xff] (!%p257_p3)   ;;  %v6586_v11 = vld [vmem:[%s8776_s3 + $0x90] sm:$0xff] (!%p257_p3)   ;;  %p7826_p8 = scmp.lt.s32.totalorder (!%p257_p3), %s336_s7, 9  ;;  %p350_p9 = scmp.lt.s32.totalorder (!%p257_p3), %s6849_s18, 7 }
   0xd   : > { %6016 = vmatpush3.bf16.msra.mxu1 (!%p257_p3), %v6578_v3  ;;  %v6587_v12 = vld [vmem:[%s8776_s3 + $0x58] sm:$0xff] (!%p257_p3)   ;;  %v6591_v16 = vld [vmem:[%s8776_s3 + $0x60] sm:$0xff] (!%p257_p3)   ;;  %v6595_v20 = vld [vmem:[%s8776_s3 + $0x68] sm:$0xff] (!%p257_p3)  }
   0xe   : > { %6017 = vmatprep.subr.bf16.mxu1 (!%p257_p3), %v6581_v6  ;;  %v6588_v13 = vld [vmem:[%s8776_s3 + $0x18] sm:$0xff] (!%p257_p3)   ;;  %v6592_v17 = vld [vmem:[%s8776_s3 + $0x20] sm:$0xff] (!%p257_p3)   ;;  %v6596_v21 = vld [vmem:[%s8776_s3 + $0x28] sm:$0xff] (!%p257_p3)  }
   0xf   : > { %5978 = vmatpush3.bf16.msra.mxu0 (!%p257_p3), %v6580_v5  ;;  %v6589_v14 = vld [vmem:[%s8776_s3 + $0xd8] sm:$0xff] (!%p257_p3)   ;;  %v6593_v18 = vld [vmem:[%s8776_s3 + $0xe0] sm:$0xff] (!%p257_p3)   ;;  %v6597_v22 = vld [vmem:[%s8776_s3 + $0xe8] sm:$0xff] (!%p257_p3)  }
  0x10   : > { %5979 = vmatprep.subr.bf16.mxu0 %v6583_v8  ;;  %s8796_s19 = smov (!%p316_p5, %s6853_s19), 1  ;;  %v6590_v15 = vld [vmem:[%s8776_s3 + $0x98] sm:$0xff]   ;;  %v6594_v19 = vld [vmem:[%s8776_s3 + $0xa0] sm:$0xff]   ;;  %v6598_v23 = vld [vmem:[%s8776_s3 + $0xa8] sm:$0xff]   ;;  %s8800_s7 = smov (!%p7826_p8, %s336_s7), 9 }
  0x11   : > { %6018 = vmatpush3.bf16.msra.mxu1 %v6582_v7  ;;  %s319_s10 = scalar_select %p318_p6, %s6849_s18, 9  ;;  %v6599_v24 = vld [vmem:[%s8776_s3 + $0x70] sm:$0xff]   ;;  %v6603_v28 = vld [vmem:[%s8776_s3 + $0x78] sm:$0xff]   ;;  %v6608_v46 = vld [vmem:[%s8776_s3 + $0x140] sm:$0xff]  }
  0x12   : > { %6019 = vmatprep.subr.bf16.mxu1 %v6585_v10  ;;  %s6989_s17 = smul.u32 200, %s8796_s19  ;;  %v6600_v25 = vld [vmem:[%s8776_s3 + $0x30] sm:$0xff]   ;;  %v6604_v29 = vld [vmem:[%s8776_s3 + $0x38] sm:$0xff]   ;;  %vm7074_vm4 = vmor %vm410_vm1, %vm411_vm3  ;;  %s5478_s25 = sshll.u32 %s8796_s19, 6 }
  0x13   : > { %5980 = vmatpush3.bf16.msra.mxu0 %v6584_v9  ;;  %s6531_s27 = smul.u32 20, %s319_s10  ;;  %v6601_v26 = vld [vmem:[%s8776_s3 + $0xf0] sm:$0xff]   ;;  %v6605_v30 = vld [vmem:[%s8776_s3 + $0xf8] sm:$0xff]   ;;  %v6611_v57 = vld [vmem:[%s8776_s3 + $0x1c0] sm:$0xff]  }
  0x14   : > { %5981 = vmatprep.subr.bf16.mxu0 %v6587_v12  ;;  %v6602_v27 = vld [vmem:[%s8776_s3 + $0xb0] sm:$0xff]   ;;  %v6606_v45 = vld [vmem:[%s8776_s3 + $0xb8] sm:$0xff]   ;;  %vm7090_vm5 = vmor %vm553_vm0, %vm554_vm2  ;;  %s6534_s15 = smul.u32 20, %s8800_s7 }
  0x15   : > { %6020 = vmatpush3.bf16.msra.mxu1 %v6586_v11  ;;  %s322_s10 = sadd.s32 %s6989_s17, %s6531_s27  ;;  %s325_s27 = sadd.s32 1, %s6849_s18  ;;  %v6610_v5 = vld [vmem:[%s8776_s3 + $0x100] sm:$0xff]  }
  0x16   : > { %6021 = vmatprep.subr.bf16.mxu1 %v6589_v14  ;;  %s5474_s26 = sshll.u32 %s322_s10, 2  ;;  %p7034_p7 = scmp.lt.s32.totalorder %s325_s27, 9  ;;  %v6612_v10 = vld [vmem:[%s8776_s3 + $0x180] sm:$0xff]  }
  0x17   : > { %5982 = vmatpush3.bf16.msra.mxu0 %v6588_v13  ;;  %s7032_s13 = scalar_lea.vmem %s8773_s0, %s5474_s26  ;;  %s8802_s18 = smov (!%p350_p9, %s6849_s18), 7 }
  0x18   : > { %5983 = vmatprep.subr.bf16.mxu0 %v6591_v16  ;;  %v7045_v31 = vld [vmem:[%s7032_s13] sm:$0xf]  ;;  %v367_v32 = vld [vmem:[%s7032_s13 + $0x4] sm:$0x1]  ;;  %v7049_v33 = vld [vmem:[%s7032_s13 + $0x8] sm:$0xf] }
  0x19   : > { %6022 = vmatpush3.bf16.msra.mxu1 %v6590_v15  ;;  %v369_v34 = vld [vmem:[%s7032_s13 + $0xc] sm:$0x1]  ;;  %s8798_s27 = smov (!%p7034_p7, %s325_s27), 9  ;;  %v414_v35 = vshrl.u32 %v7045_v31, 16  ;;  %v417_v36 = vshll.u32 %v7045_v31, 16  ;;  %v423_v37 = vshll.u32 %v367_v32, 16  ;;  %v5480_v8 = vcombine.low %v7045_v31, %v7049_v33 }
  0x1a   : > { %6023 = vmatprep.subr.bf16.mxu1 %v6593_v18  ;;  %v428_v38 = vshrl.u32 %v7049_v33, 16  ;;  %v431_v39 = vshll.u32 %v7049_v33, 16  ;;  %v437_v40 = vshll.u32 %v369_v34, 16  ;;  %v7067_v50 = vld [vmem:[%s7032_s13 + $0x8] sm:$0xf]  ;;  %v558_v59 = vrot.slane %v367_v32, 5 }
  0x1b   : > { %5984 = vmatpush3.bf16.msra.mxu0 %v6592_v17  ;;  %v416_v41 = vrot.slane %v414_v35, 4  ;;  %v419_v42 = vrot.slane %v417_v36, 5  ;;  %v425_v43 = vrot.slane %v423_v37, 5  ;;  %v7070_v51 = vld [vmem:[%s7032_s13 + $0x10] sm:$0xf]  ;;  %v657_v55 = vshrl.u32 %v7067_v50, 16 }
  0x1c   : > { %5985 = vmatprep.subr.bf16.mxu0 %v6595_v20  ;;  %v430_v44 = vrot.slane %v428_v38, 4  ;;  %v433_v47 = vrot.slane %v431_v39, 5  ;;  %v439_v48 = vrot.slane %v437_v40, 5  ;;  %v5516_v54 = vcombine.low %v7067_v50, %v7070_v51  ;;  %s6533_s9 = smul.u32 20, %s8798_s27  ;;  %v6613_v15 = vld [vmem:[%s8776_s3 + $0x148] sm:$0xff]   ;;  %v6618_v35 = vld [vmem:[%s8776_s3 + $0x150] sm:$0xff]  }
  0x1d   : > { %6024 = vmatpush3.bf16.msra.mxu1 %v6594_v19  ;;  %v420_v49 = vor.u32 %v419_v42, %v416_v41  ;;  %v660_v56 = vshll.u32 %v7067_v50, 16  ;;  %v671_v60 = vshrl.u32 %v7070_v51, 16  ;;  %v562_v62 = vrot.slane %v369_v34, 5  ;;  %v6614_v18 = vld [vmem:[%s8776_s3 + $0x108] sm:$0xff]   ;;  %v7123_v20 = vld [vmem:[%s7032_s13 + $0x10] sm:$0xf] }
  0x1e   : > { %6025 = vmatprep.subr.bf16.mxu1 %v6597_v22  ;;  %v434_v53 = vor.u32 %v433_v47, %v430_v44  ;;  %v659_v63 = vrot.slane %v657_v55, 4  ;;  %v674_v0 = vshll.u32 %v7070_v51, 16  ;;  %4456 = vmatprep.mubr.bf16.mxu1 %v5516_v54  ;;  %v5488_v6 = vrot.slane %v7045_v31, 9  ;;  %v6615_v19 = vld [vmem:[%s8776_s3 + $0x1c8] sm:$0xff]   ;;  %v7142_v41 = vld [vmem:[%s7032_s13 + $0x18] sm:$0xf]  ;;  %s7323_s12 = sadd.s32 %s6533_s9, %s6989_s17 }
  0x1f   : > { %5986 = vmatpush3.bf16.msra.mxu0 %v6596_v21  ;;  %v421_v58 = vrot.slane %v420_v49, 4  ;;  %v662_v3 = vrot.slane %v660_v56, 5  ;;  %v673_v4 = vrot.slane %v671_v60, 4  ;;  %v5489_v9 = vrot.slane %v7049_v33, 9  ;;  %v371_v21 = vld [vmem:[%s7032_s13 + $0x14] sm:$0x1] }
  0x20   : > { %5987 = vmatprep.subr.bf16.mxu0 %v6599_v24  ;;  %v435_v61 = vrot.slane %v434_v53, 4  ;;  %v559_v12 = vsel %vm7090_vm5, %v5488_v6, %v558_v59  ;;  %v676_v13 = vrot.slane %v674_v0, 5  ;;  %v5524_v16 = vrot.slane %v7067_v50, 9  ;;  %v373_v24 = vld [vmem:[%s7032_s13 + $0x1c] sm:$0x1]  ;;  %v6616_v34 = vld [vmem:[%s8776_s3 + $0x188] sm:$0xff]  }
  0x21   : > { %6026 = vmatpush3.bf16.msra.mxu1 %v6598_v23  ;;  %v426_v2 = vsel %vm7074_vm4, %v421_v58, %v425_v43  ;;  %v563_v14 = vsel %vm7090_vm5, %v5489_v9, %v562_v62  ;;  %v663_v22 = vor.u32 %v662_v3, %v659_v63  ;;  %v7127_v23 = vld [vmem:[%s7032_s13 + $0x18] sm:$0xf]  ;;  %v5525_v36 = vrot.slane %v7070_v51, 9  ;;  %v7145_v42 = vld [vmem:[%s7032_s13 + $0x20] sm:$0xf]  ;;  %v6620_v53 = vld [vmem:[%s8776_s3 + $0x110] sm:$0xff]  }
  0x22   : > { %6027 = vmatprep.subr.bf16.mxu1 %v6601_v26  ;;  %v440_v7 = vsel %vm7074_vm4, %v435_v61, %v439_v48  ;;  %v5496_v17 = vcombine.low %v559_v12, %v563_v14  ;;  %v445_v26 = vshll.u32 %v7123_v20, 16  ;;  %v677_v31 = vor.u32 %v676_v13, %v673_v4  ;;  %v6621_v55 = vld [vmem:[%s8776_s3 + $0x1d0] sm:$0xff]   ;;  %v6624_v9 = vld [vmem:[%s8776_s3 + $0x118] sm:$0xff]   ;;  %v375_v12 = vld [vmem:[%s7032_s13 + $0x24] sm:$0x1]  ;;  %s5475_s16 = sshll.u32 %s7323_s12, 2 }
  0x23   : > { %5988 = vmatpush3.bf16.msra.mxu0 %v6600_v25  ;;  %v5484_v11 = vcombine.low %v426_v2, %v440_v7  ;;  %v442_v25 = vshrl.u32 %v7123_v20, 16  ;;  %v7147_v43 = vrot.slane %v663_v22, 4  ;;  %v685_v49 = vshrl.u32 %v7142_v41, 16  ;;  %v6622_v3 = vld [vmem:[%s8776_s3 + $0x190] sm:$0xff]   ;;  %v6623_v7 = vld [vmem:[%s8776_s3 + $0x158] sm:$0xff]   ;;  %v6648_v51 = vld [vmem:[%s8776_s3 + $0x200] sm:$0xff]   ;;  %s7595_s28 = scalar_lea.vmem %s8774_s1, %s5475_s16  ;;  %s7969_s16 = sadd.s32 %s6534_s15, %s6989_s17 }
  0x24   : > { %5989 = vmatprep.subr.bf16.mxu0 %v6603_v28  ;;  %v456_v28 = vshrl.u32 %v7127_v23, 16  ;;  %v447_v33 = vrot.slane %v445_v26, 5  ;;  %v7151_v47 = vrot.slane %v677_v31, 4  ;;  %v5490_v54 = vrot.slane %v7123_v20, 9  ;;  %v376_v14 = vld [vmem:[%s7032_s13 + $0x28] sm:$0xf] }
  0x25   : > { %6028 = vmatpush3.bf16.msra.mxu1 %v6602_v27  ;;  %4391 = vmatprep.mubr.bf16.mxu0 %v5484_v11  ;;  %v451_v27 = vshll.u32 %v371_v21, 16  ;;  %v444_v32 = vrot.slane %v442_v25, 4  ;;  %v5491_v58 = vrot.slane %v7127_v23, 9  ;;  %v570_v59 = vrot.slane %v373_v24, 5  ;;  %v7188_v11 = vld [vmem:[%s7032_s13 + $0x20] sm:$0xf] }
  0x26   : > { %6029 = vmatprep.subr.bf16.mxu1 %v6605_v30  ;;  %v465_v30 = vshll.u32 %v373_v24, 16  ;;  %v458_v38 = vrot.slane %v456_v28, 4  ;;  %v5481_v61 = vcombine.low %v7123_v20, %v7127_v23  ;;  %v688_v63 = vshll.u32 %v7142_v41, 16  ;;  %v6626_v25 = vld [vmem:[%s8776_s3 + $0x198] sm:$0xff]   ;;  %v6628_v26 = vld [vmem:[%s8776_s3 + $0x160] sm:$0xff]   ;;  %s5476_s11 = sshll.u32 %s7969_s16, 2 }
  0x27   : > { %5990 = vmatpush3.bf16.msra.mxu0 %v6604_v29  ;;  %v459_v29 = vshll.u32 %v7127_v23, 16  ;;  %v453_v37 = vrot.slane %v451_v27, 5  ;;  %v448_v40 = vor.u32 %v447_v33, %v444_v32  ;;  %v571_v2 = vsel %vm7090_vm5, %v5491_v58, %v570_v59  ;;  %v7204_v32 = vld [vmem:[%s7032_s13 + $0x28] sm:$0xf]  ;;  %v7207_v33 = vld [vmem:[%s7032_s13 + $0x30] sm:$0xf]  ;;  %s8066_s9 = scalar_lea.vmem %s8775_s2, %s5476_s11 }
  0x28   : > { %6055 = vmatprep.subr.bf16.mxu0 %v6608_v46  ;;  %v5517_v46 = vcombine.low %v7142_v41, %v7145_v42  ;;  %v5526_v13 = vrot.slane %v7142_v41, 9  ;;  %v484_v20 = vshrl.u32 %v376_v14, 16  ;;  %v716_v59 = vshll.u32 %v7204_v32, 16  ;;  %v7348_v50 = vld [vmem:[%s7032_s13 + $0x18] sm:$0xf] }
  0x29   : > { %6030 = vmatpush3.bf16.msra.mxu1 %v6606_v45  ;;  %v461_v39 = vrot.slane %v459_v29, 5  ;;  %v467_v45 = vrot.slane %v465_v30, 5  ;;  %v449_v48 = vrot.slane %v448_v40, 4  ;;  %v5527_v30 = vrot.slane %v7145_v42, 9 }
  0x2a   : > { %6095 = vmatprep.subr.bf16.mxu1 %v6611_v57  ;;  %4392 = vmatmul.mubr.bf16.vlgmr.msra.gmra.mrb[0].mxu0 %v5480_v8  ;;  %v566_v57 = vrot.slane %v371_v21, 5  ;;  %v702_v8 = vshll.u32 %v7145_v42, 16  ;;  %v487_v21 = vshll.u32 %v376_v14, 16  ;;  %v486_v28 = vrot.slane %v484_v20, 4 }
  0x2b   : > { %6056 = vmatpush3.bf16.msra.mxu0 %v6610_v5  ;;  %v462_v44 = vor.u32 %v461_v39, %v458_v38  ;;  %v454_v60 = vsel %vm7074_vm4, %v449_v48, %v453_v37  ;;  %v699_v5 = vshrl.u32 %v7145_v42, 16  ;;  %v5518_v37 = vcombine.low %v7204_v32, %v7207_v33 }
  0x2c   : > { %4457 = vmatmul.mubr.bf16.vlgmr.msra.gmra.mrb[0].mxu1 %v5496_v17  ;;  %6057 = vmatprep.subr.bf16.mxu0 %v6613_v15  ;;  %v567_v0 = vsel %vm7090_vm5, %v5490_v54, %v566_v57  ;;  %v377_v15 = vld [vmem:[%s7032_s13 + $0x2c] sm:$0x1]  ;;  %v470_v17 = vshrl.u32 %v7188_v11, 16  ;;  %v489_v29 = vrot.slane %v487_v21, 5  ;;  %v7211_v38 = vrot.slane %v685_v49, 4 }
  0x2d   : > { %6096 = vmatpush3.bf16.msra.mxu1 %v6612_v10  ;;  %v463_v56 = vrot.slane %v462_v44, 4  ;;  %4464 = vmatprep.mubr.bf16.mxu1 %v5517_v46  ;;  %v5497_v6 = vcombine.low %v567_v0, %v571_v2  ;;  %v6625_v10 = vld [vmem:[%s8776_s3 + $0x1d8] sm:$0xff]   ;;  %v493_v22 = vshll.u32 %v377_v15, 16  ;;  %v713_v40 = vshrl.u32 %v7204_v32, 16  ;;  %v6630_v44 = vld [vmem:[%s8776_s3 + $0x120] sm:$0xff]  }
  0x2e   : > { %6097 = vmatprep.subr.bf16.mxu1 %v6615_v19  ;;  %v479_v19 = vshll.u32 %v375_v12, 16  ;;  %v472_v23 = vrot.slane %v470_v17, 4  ;;  %v6631_v46 = vld [vmem:[%s8776_s3 + $0x1e0] sm:$0xff]   ;;  %v690_v48 = vrot.slane %v688_v63, 5  ;;  %v574_v54 = vrot.slane %v375_v12, 5 }
  0x2f   : > { %6058 = vmatpush3.bf16.msra.mxu0 %v6614_v18  ;;  %v468_v62 = vsel %vm7074_vm4, %v463_v56, %v467_v45  ;;  %v473_v18 = vshll.u32 %v7188_v11, 16  ;;  %v5492_v45 = vrot.slane %v7188_v11, 9  ;;  %v578_v49 = vrot.slane %v377_v15, 5  ;;  %v7254_v12 = vld [vmem:[%s7032_s13 + $0x38] sm:$0xf] }
  0x30   : > { %6059 = vmatprep.subr.bf16.mxu0 %v6618_v35  ;;  %v5485_v4 = vcombine.low %v454_v60, %v468_v62  ;;  %v481_v27 = vrot.slane %v479_v19, 5  ;;  %v495_v35 = vrot.slane %v493_v22, 5  ;;  %v5482_v57 = vcombine.low %v7188_v11, %v376_v14  ;;  %v6632_v62 = vld [vmem:[%s8776_s3 + $0x1a0] sm:$0xff]  }
  0x31   : > { %6098 = vmatpush3.bf16.msra.mxu1 %v6616_v34  ;;  %v475_v24 = vrot.slane %v473_v18, 5  ;;  %v490_v34 = vor.u32 %v489_v29, %v486_v28  ;;  %v575_v60 = vsel %vm7090_vm5, %v5492_v45, %v574_v54  ;;  %v727_v0 = vshrl.u32 %v7207_v33, 16 }
  0x32   : > { %6099 = vmatprep.subr.bf16.mxu1 %v6621_v55  ;;  %4399 = vmatprep.mubr.bf16.mxu0 %v5485_v4  ;;  %v5493_v55 = vrot.slane %v376_v14, 9  ;;  %v730_v4 = vshll.u32 %v7207_v33, 16  ;;  %v7251_v11 = vrot.slane %v699_v5, 4  ;;  %v381_v14 = vld [vmem:[%s7032_s13 + $0x3c] sm:$0x1]  ;;  %v691_v18 = vor.u32 %v690_v48, %v7211_v38 }
  0x33   : > { %6060 = vmatpush3.bf16.msra.mxu0 %v6620_v53  ;;  %v476_v31 = vor.u32 %v475_v24, %v472_v23  ;;  %v491_v53 = vrot.slane %v490_v34, 4  ;;  %v512_v20 = vshrl.u32 %v7254_v12, 16  ;;  %v515_v5 = vshll.u32 %v7254_v12, 16  ;;  %v6636_v24 = vld [vmem:[%s8776_s3 + $0x1a8] sm:$0xff]   ;;  %v7271_v34 = vld [vmem:[%s7032_s13 + $0x38] sm:$0xf] }
  0x34   : > { %4465 = vmatmul.mubr.bf16.gmra.mrb[4].mxu1 %v5497_v6  ;;  %4400 = vmatmul.mubr.bf16.gmra.mrb[4].mxu0 %v5481_v61  ;;  %v579_v61 = vsel %vm7090_vm5, %v5493_v55, %v578_v49  ;;  %v6634_v6 = vld [vmem:[%s8776_s3 + $0x128] sm:$0xff]   ;;  %v521_v21 = vshll.u32 %v381_v14, 16  ;;  %v704_v29 = vrot.slane %v702_v8, 5  ;;  %v6640_v8 = vld [vmem:[%s8776_s3 + $0x130] sm:$0xff]   ;;  %v5528_v54 = vrot.slane %v7204_v32, 9 }
  0x35   : > { %6100 = vmatpush3.bf16.msra.mxu1 %v6622_v3  ;;  %6061 = vmatprep.subr.bf16.mxu0 %v6623_v7  ;;  %v477_v39 = vrot.slane %v476_v31, 4  ;;  %v496_v58 = vsel %vm7074_vm4, %v491_v53, %v495_v35  ;;  %v5498_v2 = vcombine.low %v575_v60, %v579_v61  ;;  %v6633_v3 = vld [vmem:[%s8776_s3 + $0x168] sm:$0xff]   ;;  %v517_v28 = vrot.slane %v515_v5, 5  ;;  %v7274_v35 = vld [vmem:[%s7032_s13 + $0x40] sm:$0xf]  ;;  %v6641_v53 = vld [vmem:[%s8776_s3 + $0x1f0] sm:$0xff]  }
  0x36   : > { %6101 = vmatprep.subr.bf16.mxu1 %v6625_v10  ;;  %4472 = vmatprep.mubr.bf16.mxu1 %v5518_v37  ;;  %v6635_v7 = vld [vmem:[%s8776_s3 + $0x1e8] sm:$0xff]   ;;  %v379_v10 = vld [vmem:[%s7032_s13 + $0x34] sm:$0x1]  ;;  %v523_v38 = vrot.slane %v521_v21, 5  ;;  %v705_v61 = vor.u32 %v704_v29, %v7251_v11  ;;  %v6643_v11 = vld [vmem:[%s8776_s3 + $0x178] sm:$0xff]  }
  0x37   : > { %6062 = vmatpush3.bf16.msra.mxu0 %v6624_v9  ;;  %v482_v56 = vsel %vm7074_vm4, %v477_v39, %v481_v27  ;;  %v7246_v9 = vld [vmem:[%s7032_s13 + $0x30] sm:$0xf]  ;;  %v507_v19 = vshll.u32 %v379_v10, 16  ;;  %v514_v27 = vrot.slane %v512_v20, 4  ;;  %v5519_v39 = vcombine.low %v7271_v34, %v7274_v35  ;;  %v6647_v29 = vld [vmem:[%s8776_s3 + $0x240] sm:$0xff]  }
  0x38   : > { %6063 = vmatprep.subr.bf16.mxu0 %v6628_v26  ;;  %v5486_v63 = vcombine.low %v482_v56, %v496_v58  ;;  %v498_v15 = vshrl.u32 %v7246_v9, 16  ;;  %v501_v17 = vshll.u32 %v7246_v9, 16  ;;  %v5494_v48 = vrot.slane %v7246_v9, 9 }
  0x39   : > { %6102 = vmatpush3.bf16.msra.mxu1 %v6626_v25  ;;  %v6638_v25 = vld [vmem:[%s8776_s3 + $0x170] sm:$0xff]   ;;  %v509_v26 = vrot.slane %v507_v19, 5  ;;  %v518_v37 = vor.u32 %v517_v28, %v514_v27  ;;  %v582_v49 = vrot.slane %v379_v10, 5  ;;  %v5495_v56 = vrot.slane %v7254_v12, 9 }
  0x3a   : > { %6103 = vmatprep.subr.bf16.mxu1 %v6631_v46  ;;  %4407 = vmatprep.mubr.bf16.mxu0 %v5486_v63  ;;  %v500_v22 = vrot.slane %v498_v15, 4  ;;  %v503_v23 = vrot.slane %v501_v17, 5  ;;  %v741_v46 = vshrl.u32 %v7271_v34, 16  ;;  %v5483_v60 = vcombine.low %v7246_v9, %v7254_v12  ;;  %v6645_v15 = vld [vmem:[%s8776_s3 + $0x1f8] sm:$0xff]   ;;  %v5501_v17 = vld [vmem:[%s7032_s13 + $0xc] sm:$0x1] }
  0x3b   : > { %6064 = vmatpush3.bf16.msra.mxu0 %v6630_v44  ;;  %v7278_v44 = vrot.slane %v691_v18, 4  ;;  %v519_v55 = vrot.slane %v518_v37, 4  ;;  %v744_v63 = vshll.u32 %v7271_v34, 16  ;;  %v755_v9 = vshrl.u32 %v7274_v35, 16  ;;  %v5503_v18 = vld [vmem:[%s7032_s13 + $0x14] sm:$0x1] }
  0x3c   : > { %4473 = vmatmul.mubr.bf16.gmra.mrb[8].mxu1 %v5498_v2  ;;  %4408 = vmatmul.mubr.bf16.gmra.mrb[8].mxu0 %v5482_v57  ;;  %v504_v31 = vor.u32 %v503_v23, %v500_v22  ;;  %v586_v57 = vrot.slane %v381_v14, 5  ;;  %v583_v2 = vsel %vm7090_vm5, %v5494_v48, %v582_v49  ;;  %v758_v12 = vshll.u32 %v7274_v35, 16  ;;  %v6644_v14 = vld [vmem:[%s8776_s3 + $0x138] sm:$0xff]   ;;  %v7342_v37 = vld [vmem:[%s7032_s13 + $0x10] sm:$0xf] }
  0x3d   : > { %6104 = vmatpush3.bf16.msra.mxu1 %v6632_v62  ;;  %6065 = vmatprep.subr.bf16.mxu0 %v6633_v3  ;;  %v524_v62 = vsel %vm7074_vm4, %v519_v55, %v523_v38  ;;  %v7318_v19 = vrot.slane %v705_v61, 4  ;;  %v666_v20 = vshll.u32 %v5501_v17, 16  ;;  %v680_v5 = vshll.u32 %v5503_v18, 16  ;;  %v6646_v23 = vld [vmem:[%s8776_s3 + $0x1b8] sm:$0xff]   ;;  %v7345_v38 = vld [vmem:[%s7032_s13 + $0x14] sm:$0x1] }
  0x3e   : > { %6105 = vmatprep.subr.bf16.mxu1 %v6635_v7  ;;  %v505_v45 = vrot.slane %v504_v31, 4  ;;  %4480 = vmatprep.mubr.bf16.mxu1 %v5519_v39  ;;  %v587_v3 = vsel %vm7090_vm5, %v5495_v56, %v586_v57  ;;  %v798_v21 = vrot.slane %v5501_v17, 5  ;;  %v802_v22 = vrot.slane %v5503_v18, 5  ;;  %v7360_v39 = vld [vmem:[%s7032_s13 + $0x1c] sm:$0x1] }
  0x3f   : > { %6066 = vmatpush3.bf16.msra.mxu0 %v6634_v6  ;;  %v6642_v6 = vld [vmem:[%s8776_s3 + $0x1b0] sm:$0xff]   ;;  %v5499_v10 = vcombine.low %v583_v2, %v587_v3  ;;  %v911_v55 = vshrl.u32 %v7348_v50, 16  ;;  %v914_v49 = vshll.u32 %v7348_v50, 16  ;;  %v920_v57 = vshll.u32 %v7360_v39, 16 }
  0x40   : > { %6067 = vmatprep.subr.bf16.mxu0 %v6638_v25  ;;  %v510_v58 = vsel %vm7074_vm4, %v505_v45, %v509_v26  ;;  %v668_v25 = vrot.slane %v666_v20, 5  ;;  %v682_v26 = vrot.slane %v680_v5, 5  ;;  %v799_v27 = vsel %vm7090_vm5, %v5524_v16, %v798_v21  ;;  %v6651_v20 = vld [vmem:[%s8776_s3 + $0x280] sm:$0xff]   ;;  %v5505_v5 = vld [vmem:[%s7032_s13 + $0x1c] sm:$0x1] }
  0x41   : > { %6106 = vmatpush3.bf16.msra.mxu1 %v6636_v24  ;;  %v5487_v7 = vcombine.low %v510_v58, %v524_v62  ;;  %v5529_v24 = vrot.slane %v7207_v33, 9  ;;  %v803_v28 = vsel %vm7090_vm5, %v5525_v36, %v802_v22  ;;  %v897_v45 = vshrl.u32 %v7342_v37, 16  ;;  %v5507_v21 = vld [vmem:[%s7032_s13 + $0x24] sm:$0x1] }
  0x42   : > { %6107 = vmatprep.subr.bf16.mxu1 %v6641_v53  ;;  %v5532_v31 = vcombine.low %v799_v27, %v803_v28  ;;  %v669_v16 = vsel %vm7074_vm4, %v7147_v43, %v668_v25  ;;  %v683_v36 = vsel %vm7074_vm4, %v7151_v47, %v682_v26  ;;  %v906_v53 = vshll.u32 %v7345_v38, 16  ;;  %v6650_v43 = vld [vmem:[%s8776_s3 + $0x2c0] sm:$0xff]  }
  0x43   : > { %6068 = vmatpush3.bf16.msra.mxu0 %v6640_v8  ;;  %4415 = vmatprep.mubr.bf16.mxu0 %v5487_v7  ;;  %v900_v8 = vshll.u32 %v7342_v37, 16  ;;  %v5520_v48 = vcombine.low %v669_v16, %v683_v36  ;;  %v899_v47 = vrot.slane %v897_v45, 4  ;;  %v7373_v58 = vrot.slane %v713_v40, 4  ;;  %v7417_v45 = vld [vmem:[%s7032_s13 + $0x20] sm:$0xf] }
  0x44   : > { %4481 = vmatmul.mubr.bf16.gmra.mrb[12].mxu1 %v5499_v10  ;;  %4416 = vmatmul.mubr.bf16.gmra.mrb[12].mxu0 %v5483_v60  ;;  %v913_v60 = vrot.slane %v911_v55, 4  ;;  %v916_v61 = vrot.slane %v914_v49, 5  ;;  %v7377_v62 = vrot.slane %v716_v59, 5  ;;  %v7381_v2 = vrot.slane %v727_v0, 4  ;;  %v6653_v0 = vld [vmem:[%s8776_s3 + $0x208] sm:$0xff]  }
  0x45   : > { %6108 = vmatpush3.bf16.msra.mxu1 %v6642_v6  ;;  %6069 = vmatprep.subr.bf16.mxu0 %v6643_v11  ;;  %v902_v56 = vrot.slane %v900_v8, 5  ;;  %v908_v6 = vrot.slane %v906_v53, 5  ;;  %v1038_v7 = vrot.slane %v7345_v38, 5  ;;  %v922_v10 = vrot.slane %v920_v57, 5  ;;  %v6652_v11 = vld [vmem:[%s8776_s3 + $0x248] sm:$0xff]  }
  0x46   : > { %6109 = vmatprep.subr.bf16.mxu1 %v6645_v15  ;;  %4521 = vmatprep.mubr.bf16.mxu0 %v5532_v31  ;;  %v917_v40 = vor.u32 %v916_v61, %v913_v60  ;;  %v1042_v15 = vrot.slane %v7360_v39, 5  ;;  %v5552_v18 = vcombine.low %v7342_v37, %v7348_v50  ;;  %v806_v25 = vrot.slane %v5505_v5, 5  ;;  %v6656_v31 = vld [vmem:[%s8776_s3 + $0x250] sm:$0xff]   ;;  %v7420_v8 = vld [vmem:[%s7032_s13 + $0x24] sm:$0x1] }
  0x47   : > { %6070 = vmatpush3.bf16.msra.mxu0 %v6644_v14  ;;  %v903_v3 = vor.u32 %v902_v56, %v899_v47  ;;  %v810_v26 = vrot.slane %v5507_v21, 5  ;;  %v694_v27 = vshll.u32 %v5505_v5, 16  ;;  %v7426_v55 = vld [vmem:[%s7032_s13 + $0x28] sm:$0xf]  ;;  %v925_v42 = vshrl.u32 %v7417_v45, 16  ;;  %v6662_v5 = vld [vmem:[%s8776_s3 + $0x218] sm:$0xff]  }
  0x48   : > { %6135 = vmatprep.subr.bf16.mxu0 %v6647_v29  ;;  %v918_v14 = vrot.slane %v917_v40, 4  ;;  %v708_v29 = vshll.u32 %v5507_v21, 16  ;;  %v934_v47 = vshll.u32 %v7420_v8, 16  ;;  %v939_v56 = vshrl.u32 %v7426_v55, 16 }
  0x49   : > { %6110 = vmatpush3.bf16.msra.mxu1 %v6646_v23  ;;  %v904_v59 = vrot.slane %v903_v3, 4  ;;  %v6654_v23 = vld [vmem:[%s8776_s3 + $0x2c8] sm:$0xff]   ;;  %v811_v16 = vsel %vm7090_vm5, %v5527_v30, %v810_v26  ;;  %v696_v36 = vrot.slane %v694_v27, 5  ;;  %v927_v60 = vrot.slane %v925_v42, 4 }
  0x4a   : > { %6175 = vmatprep.subr.bf16.mxu1 %v6650_v43  ;;  %v923_v22 = vsel %vm7074_vm4, %v918_v14, %v922_v10  ;;  %v710_v41 = vrot.slane %v708_v29, 5  ;;  %v6655_v30 = vld [vmem:[%s8776_s3 + $0x288] sm:$0xff]   ;;  %v928_v43 = vshll.u32 %v7417_v45, 16  ;;  %v942_v61 = vshll.u32 %v7426_v55, 16  ;;  %v6660_v14 = vld [vmem:[%s8776_s3 + $0x290] sm:$0xff]  }
  0x4b   : > { %v909_v17 = vsel %vm7074_vm4, %v904_v59, %v908_v6  ;;  %v697_v49 = vsel %vm7074_vm4, %v7278_v44, %v696_v36  ;;  %v6659_v44 = vld [vmem:[%s8776_s3 + $0x2d0] sm:$0xff]   ;;  %v936_v10 = vrot.slane %v934_v47, 5  ;;  %v6661_v59 = vld [vmem:[%s8776_s3 + $0x258] sm:$0xff]   ;;  %v732_v21 = vrot.slane %v730_v4, 5 }
  0x4c   : > { %4522 = vmatmul.mubr.bf16.vlgmr.msra.gmra.mrb[16].mxu0 %v5520_v48  ;;  %v5556_v28 = vcombine.low %v909_v17, %v923_v22  ;;  %v6657_v48 = vld [vmem:[%s8776_s3 + $0x210] sm:$0xff]   ;;  %v711_v57 = vsel %vm7074_vm4, %v7318_v19, %v710_v41  ;;  %v930_v40 = vrot.slane %v928_v43, 5  ;;  %v719_v17 = vor.u32 %v7377_v62, %v7373_v58  ;;  %v5509_v58 = vld [vmem:[%s7032_s13 + $0x2c] sm:$0x1] }
  0x4d   : > { %6136 = vmatpush3.bf16.msra.mxu0 %v6648_v51  ;;  %v807_v51 = vsel %vm7090_vm5, %v5526_v13, %v806_v25  ;;  %v7429_v13 = vld [vmem:[%s7032_s13 + $0x2c] sm:$0x1]  ;;  %v5521_v6 = vcombine.low %v697_v49, %v711_v57  ;;  %v5511_v62 = vld [vmem:[%s7032_s13 + $0x34] sm:$0x1]  ;;  %v733_v27 = vor.u32 %v732_v21, %v7381_v2  ;;  %v5553_v4 = vcombine.low %v7417_v45, %v7426_v55  ;;  %v7489_v49 = vld [vmem:[%s7032_s13 + $0x30] sm:$0xf] }
  0x4e   : > { %6137 = vmatprep.subr.bf16.mxu0 %v6652_v11  ;;  %4586 = vmatprep.mubr.bf16.mxu1 %v5556_v28  ;;  %v5533_v53 = vcombine.low %v807_v51, %v811_v16  ;;  %v948_v3 = vshll.u32 %v7429_v13, 16  ;;  %v941_v11 = vrot.slane %v939_v56, 4  ;;  %v720_v26 = vrot.slane %v719_v17, 4  ;;  %v6664_v51 = vld [vmem:[%s8776_s3 + $0x298] sm:$0xff]   ;;  %v7492_v43 = vld [vmem:[%s7032_s13 + $0x34] sm:$0x1] }
  0x4f   : > { %4587 = vmatmul.mubr.bf16.vlgmr.msra.gmra.mrb[16].mxu1 %v5552_v18  ;;  %v931_v18 = vor.u32 %v930_v40, %v927_v60  ;;  %v814_v29 = vrot.slane %v5509_v58, 5  ;;  %v722_v2 = vshll.u32 %v5509_v58, 16  ;;  %v734_v36 = vrot.slane %v733_v27, 4  ;;  %v7495_v60 = vld [vmem:[%s7032_s13 + $0x38] sm:$0xf]  ;;  %v6669_v17 = vld [vmem:[%s8776_s3 + $0x2a0] sm:$0xff]  }
  0x50   : > { %6176 = vmatpush3.bf16.msra.mxu1 %v6651_v20  ;;  %4529 = vmatprep.mubr.bf16.mxu0 %v5533_v53  ;;  %v950_v19 = vrot.slane %v948_v3, 5  ;;  %v6665_v53 = vld [vmem:[%s8776_s3 + $0x260] sm:$0xff]   ;;  %v953_v32 = vshrl.u32 %v7489_v49, 16  ;;  %v956_v33 = vshll.u32 %v7489_v49, 16  ;;  %v6670_v21 = vld [vmem:[%s8776_s3 + $0x268] sm:$0xff]  }
  0x51   : > { %6138 = vmatpush3.bf16.msra.mxu0 %v6653_v0  ;;  %6177 = vmatprep.subr.bf16.mxu1 %v6654_v23  ;;  %v944_v0 = vrot.slane %v942_v61, 5  ;;  %v932_v22 = vrot.slane %v931_v18, 4  ;;  %v6663_v23 = vld [vmem:[%s8776_s3 + $0x2d8] sm:$0xff]   ;;  %v815_v42 = vsel %vm7090_vm5, %v5528_v54, %v814_v29  ;;  %v724_v56 = vrot.slane %v722_v2, 5  ;;  %v6671_v58 = vld [vmem:[%s8776_s3 + $0x228] sm:$0xff]  }
  0x52   : > { %6139 = vmatprep.subr.bf16.mxu0 %v6656_v31  ;;  %v818_v31 = vrot.slane %v5511_v62, 5  ;;  %v7498_v61 = vld [vmem:[%s7032_s13 + $0x3c] sm:$0x1]  ;;  %v962_v54 = vshll.u32 %v7492_v43, 16  ;;  %v6672_v27 = vld [vmem:[%s8776_s3 + $0x2e8] sm:$0xff]  }
  0x53   : > { %v945_v20 = vor.u32 %v944_v0, %v941_v11  ;;  %v937_v28 = vsel %vm7074_vm4, %v932_v22, %v936_v10  ;;  %v725_v3 = vsel %vm7074_vm4, %v720_v26, %v724_v56  ;;  %v976_v40 = vshll.u32 %v7498_v61, 16  ;;  %v6666_v10 = vld [vmem:[%s8776_s3 + $0x220] sm:$0xff]   ;;  %v6673_v2 = vld [vmem:[%s8776_s3 + $0x2a8] sm:$0xff]  }
  0x54   : > { %4530 = vmatmul.mubr.bf16.gmra.mrb[20].mxu0 %v5521_v6  ;;  %6178 = vmatpush3.bf16.msra.mxu1 %v6655_v30  ;;  %v819_v30 = vsel %vm7090_vm5, %v5529_v24, %v818_v31  ;;  %v967_v24 = vshrl.u32 %v7495_v60, 16  ;;  %v970_v6 = vshll.u32 %v7495_v60, 16  ;;  %v6668_v11 = vld [vmem:[%s8776_s3 + $0x2e0] sm:$0xff]   ;;  %v955_v0 = vrot.slane %v953_v32, 4 }
  0x55   : > { %6140 = vmatpush3.bf16.msra.mxu0 %v6657_v48  ;;  %6179 = vmatprep.subr.bf16.mxu1 %v6659_v44  ;;  %v946_v25 = vrot.slane %v945_v20, 4  ;;  %v736_v48 = vshll.u32 %v5511_v62, 16  ;;  %v5534_v47 = vcombine.low %v815_v42, %v819_v30  ;;  %v5554_v26 = vcombine.low %v7489_v49, %v7495_v60  ;;  %v6674_v42 = vld [vmem:[%s8776_s3 + $0x270] sm:$0xff]  }
  0x56   : > { %6141 = vmatprep.subr.bf16.mxu0 %v6661_v59  ;;  %v969_v18 = vrot.slane %v967_v24, 4  ;;  %v972_v20 = vrot.slane %v970_v6, 5  ;;  %v5530_v31 = vrot.slane %v7271_v34, 9  ;;  %v7566_v6 = vld [vmem:[%s7032_s13 + $0x4c] sm:$0x1] }
  0x57   : > { %v951_v16 = vsel %vm7074_vm4, %v946_v25, %v950_v19  ;;  %v738_v57 = vrot.slane %v736_v48, 5  ;;  %4537 = vmatprep.mubr.bf16.mxu0 %v5534_v47  ;;  %v958_v19 = vrot.slane %v956_v33, 5  ;;  %v7557_v33 = vld [vmem:[%s7032_s13 + $0x40] sm:$0xf] }
  0x58   : > { %6180 = vmatpush3.bf16.msra.mxu1 %v6660_v14  ;;  %v5557_v41 = vcombine.low %v937_v28, %v951_v16  ;;  %v964_v14 = vrot.slane %v962_v54, 5  ;;  %v5513_v28 = vld [vmem:[%s7032_s13 + $0x3c] sm:$0x1]  ;;  %v5531_v16 = vrot.slane %v7274_v35, 9  ;;  %v7560_v54 = vld [vmem:[%s7032_s13 + $0x44] sm:$0x1] }
  0x59   : > { %6142 = vmatpush3.bf16.msra.mxu0 %v6662_v5  ;;  %6181 = vmatprep.subr.bf16.mxu1 %v6663_v23  ;;  %v739_v44 = vsel %vm7074_vm4, %v734_v36, %v738_v57  ;;  %v978_v5 = vrot.slane %v976_v40, 5  ;;  %v959_v22 = vor.u32 %v958_v19, %v955_v0  ;;  %v973_v23 = vor.u32 %v972_v20, %v969_v18 }
  0x5a   : > { %6143 = vmatprep.subr.bf16.mxu0 %v6665_v53  ;;  %4594 = vmatprep.mubr.bf16.mxu1 %v5557_v41  ;;  %v5522_v59 = vcombine.low %v725_v3, %v739_v44  ;;  %v743_v53 = vrot.slane %v741_v46, 4  ;;  %v746_v41 = vrot.slane %v744_v63, 5  ;;  %v750_v56 = vshll.u32 %v5513_v28, 16  ;;  %v7563_v44 = vld [vmem:[%s7032_s13 + $0x48] sm:$0xf] }
  0x5b   : > { %4595 = vmatmul.mubr.bf16.gmra.mrb[20].mxu1 %v5553_v4  ;;  %v960_v25 = vrot.slane %v959_v22, 4  ;;  %v974_v62 = vrot.slane %v973_v23, 4  ;;  %v5515_v4 = vld [vmem:[%s7032_s13 + $0x44] sm:$0x1]  ;;  %v757_v57 = vrot.slane %v755_v9, 4  ;;  %v760_v63 = vrot.slane %v758_v12, 5 }
  0x5c   : > { %6182 = vmatpush3.bf16.msra.mxu1 %v6664_v51  ;;  %4538 = vmatmul.mubr.bf16.gmra.mrb[24].mxu0 %v5522_v59  ;;  %v822_v51 = vrot.slane %v5513_v28, 5  ;;  %v826_v48 = vrot.slane %v5515_v4, 5  ;;  %v747_v34 = vor.u32 %v746_v41, %v743_v53  ;;  %v764_v32 = vshll.u32 %v5515_v4, 16  ;;  %v6679_v28 = vld [vmem:[%s8776_s3 + $0x278] sm:$0xff]   ;;  %v1092_v41 = vld [vmem:[%s7595_s28 + $0x8] sm:$0xf] }
  0x5d   : > { %6144 = vmatpush3.bf16.msra.mxu0 %v6666_v10  ;;  %6183 = vmatprep.subr.bf16.mxu1 %v6668_v11  ;;  %v965_v29 = vsel %vm7074_vm4, %v960_v25, %v964_v14  ;;  %v979_v36 = vsel %vm7074_vm4, %v974_v62, %v978_v5  ;;  %v752_v3 = vrot.slane %v750_v56, 5  ;;  %v981_v9 = vshrl.u32 %v7557_v33, 16  ;;  %v6675_v11 = vld [vmem:[%s8776_s3 + $0x230] sm:$0xff]  }
  0x5e   : > { %6145 = vmatprep.subr.bf16.mxu0 %v6670_v21  ;;  %v5558_v30 = vcombine.low %v965_v29, %v979_v36  ;;  %v823_v47 = vsel %vm7090_vm5, %v5530_v31, %v822_v51  ;;  %v827_v46 = vsel %vm7090_vm5, %v5531_v16, %v826_v48  ;;  %v748_v40 = vrot.slane %v747_v34, 4  ;;  %v6677_v21 = vld [vmem:[%s8776_s3 + $0x2f0] sm:$0xff]   ;;  %v6680_v51 = vld [vmem:[%s8776_s3 + $0x238] sm:$0xff]   ;;  %v1090_v36 = vld [vmem:[%s7595_s28] sm:$0xf] }
  0x5f   : > { %v5535_v24 = vcombine.low %v823_v47, %v827_v46  ;;  %v761_v10 = vor.u32 %v760_v63, %v757_v57  ;;  %v766_v35 = vrot.slane %v764_v32, 5  ;;  %v984_v12 = vshll.u32 %v7557_v33, 16  ;;  %v6683_v34 = vld [vmem:[%s8776_s3 + $0x2b8] sm:$0xff]   ;;  %v6684_v63 = vld [vmem:[%s8776_s3 + $0x340] sm:$0xff]  }
  0x60   : > { %6184 = vmatpush3.bf16.msra.mxu1 %v6669_v17  ;;  %4602 = vmatprep.mubr.bf16.mxu1 %v5558_v30  ;;  %v983_v59 = vrot.slane %v981_v9, 4  ;;  %v990_v0 = vshll.u32 %v7560_v54, 16  ;;  %v995_v19 = vshrl.u32 %v7563_v44, 16  ;;  %v998_v14 = vshll.u32 %v7563_v44, 16 }
  0x61   : > { %6146 = vmatpush3.bf16.msra.mxu0 %v6671_v58  ;;  %6185 = vmatprep.subr.bf16.mxu1 %v6672_v27  ;;  %v753_v17 = vsel %vm7074_vm4, %v748_v40, %v752_v3  ;;  %v762_v18 = vrot.slane %v761_v10, 4  ;;  %v986_v20 = vrot.slane %v984_v12, 5  ;;  %v1004_v5 = vshll.u32 %v7566_v6, 16  ;;  %v6678_v58 = vld [vmem:[%s8776_s3 + $0x2b0] sm:$0xff]  }
  0x62   : > { %6147 = vmatprep.subr.bf16.mxu0 %v6674_v42  ;;  %4545 = vmatprep.mubr.bf16.mxu0 %v5535_v24  ;;  %v992_v22 = vrot.slane %v990_v0, 5  ;;  %v997_v23 = vrot.slane %v995_v19, 4  ;;  %v1000_v25 = vrot.slane %v998_v14, 5  ;;  %v5555_v53 = vcombine.low %v7557_v33, %v7563_v44  ;;  %v1093_v19 = vld [vmem:[%s7595_s28 + $0xc] sm:$0x1] }
  0x63   : > { %4603 = vmatmul.mubr.bf16.gmra.mrb[24].mxu1 %v5554_v26  ;;  %v767_v62 = vsel %vm7074_vm4, %v762_v18, %v766_v35  ;;  %v987_v26 = vor.u32 %v986_v20, %v983_v59  ;;  %v1006_v27 = vrot.slane %v1004_v5, 5  ;;  %v1135_v42 = vshrl.u32 %v1090_v36, 16 }
  0x64   : > { %6186 = vmatpush3.bf16.msra.mxu1 %v6673_v2  ;;  %v5523_v4 = vcombine.low %v753_v17, %v767_v62  ;;  %v1001_v29 = vor.u32 %v1000_v25, %v997_v23  ;;  %v6681_v2 = vld [vmem:[%s8776_s3 + $0x2f8] sm:$0xff]   ;;  %v1138_v30 = vshll.u32 %v1090_v36, 16  ;;  %v5572_v56 = vcombine.low %v1090_v36, %v1092_v41  ;;  %v6688_v62 = vld [vmem:[%s8776_s3 + $0x348] sm:$0xff]  }
  0x65   : > { %6148 = vmatpush3.bf16.msra.mxu0 %v6675_v11  ;;  %6187 = vmatprep.subr.bf16.mxu1 %v6677_v21  ;;  %v988_v31 = vrot.slane %v987_v26, 4  ;;  %v1149_v57 = vshrl.u32 %v1092_v41, 16  ;;  %v1152_v46 = vshll.u32 %v1092_v41, 16  ;;  %v1137_v24 = vrot.slane %v1135_v42, 4  ;;  %v6685_v11 = vld [vmem:[%s8776_s3 + $0x300] sm:$0xff]  }
  0x66   : > { %6149 = vmatprep.subr.bf16.mxu0 %v6679_v28  ;;  %4546 = vmatmul.mubr.bf16.gmra.mrb[28].mxu0 %v5523_v4  ;;  %v1002_v16 = vrot.slane %v1001_v29, 4  ;;  %v1140_v3 = vrot.slane %v1138_v30, 5  ;;  %v5560_v9 = vrot.slane %v7342_v37, 9  ;;  %v5561_v35 = vrot.slane %v7348_v50, 9  ;;  %v1091_v37 = vld [vmem:[%s7595_s28 + $0x4] sm:$0x1] }
  0x67   : > { %v993_v48 = vsel %vm7074_vm4, %v988_v31, %v992_v22  ;;  %v1151_v40 = vrot.slane %v1149_v57, 4  ;;  %v1154_v10 = vrot.slane %v1152_v46, 5  ;;  %4651 = vmatprep.mubr.bf16.mxu0 %v5572_v56  ;;  %v5580_v12 = vrot.slane %v1090_v36, 9  ;;  %v6686_v50 = vld [vmem:[%s8776_s3 + $0x3c0] sm:$0xff]   ;;  %v6689_v31 = vld [vmem:[%s8776_s3 + $0x308] sm:$0xff]  }
  0x68   : > { %6188 = vmatpush3.bf16.msra.mxu1 %v6678_v58  ;;  %v1007_v47 = vsel %vm7074_vm4, %v1002_v16, %v1006_v27  ;;  %v1141_v59 = vor.u32 %v1140_v3, %v1137_v24  ;;  %v1039_v0 = vsel %vm7090_vm5, %v5560_v9, %v1038_v7  ;;  %v5581_v14 = vrot.slane %v1092_v41, 9  ;;  %v6687_v26 = vld [vmem:[%s8776_s3 + $0x380] sm:$0xff]   ;;  %v6690_v16 = vld [vmem:[%s8776_s3 + $0x3c8] sm:$0xff]   ;;  %v1096_v36 = vld [vmem:[%s7595_s28 + $0x18] sm:$0xf] }
  0x69   : > { %6150 = vmatpush3.bf16.msra.mxu0 %v6680_v51  ;;  %6189 = vmatprep.subr.bf16.mxu1 %v6681_v2  ;;  %v5559_v32 = vcombine.low %v993_v48, %v1007_v47  ;;  %v1155_v17 = vor.u32 %v1154_v10, %v1151_v40  ;;  %v1043_v18 = vsel %vm7090_vm5, %v5561_v35, %v1042_v15  ;;  %v1144_v20 = vshll.u32 %v1091_v37, 16  ;;  %v1094_v2 = vld [vmem:[%s7595_s28 + $0x10] sm:$0xf]  ;;  %v6692_v47 = vld [vmem:[%s8776_s3 + $0x388] sm:$0xff]  }
  0x6a   : > { %6215 = vmatprep.subr.bf16.mxu0 %v6684_v63  ;;  %v1158_v38 = vshll.u32 %v1093_v19, 16  ;;  %v1142_v5 = vrot.slane %v1141_v59, 4  ;;  %v5568_v21 = vcombine.low %v1039_v0, %v1043_v18  ;;  %v1276_v7 = vrot.slane %v1091_v37, 5  ;;  %v6695_v0 = vld [vmem:[%s8776_s3 + $0x3d0] sm:$0xff]  }
  0x6b   : > { %4610 = vmatprep.mubr.bf16.mxu1 %v5559_v32  ;;  %v1280_v22 = vrot.slane %v1093_v19, 5  ;;  %v1156_v23 = vrot.slane %v1155_v17, 4  ;;  %v1146_v25 = vrot.slane %v1144_v20, 5  ;;  %v5562_v51 = vrot.slane %v7417_v45, 9  ;;  %v1097_v32 = vld [vmem:[%s7595_s28 + $0x1c] sm:$0x1] }
  0x6c   : > { %6190 = vmatpush3.bf16.msra.mxu1 %v6683_v34  ;;  %v1160_v58 = vrot.slane %v1158_v38, 5  ;;  %v1277_v39 = vsel %vm7090_vm5, %v5580_v12, %v1276_v7  ;;  %v1046_v48 = vrot.slane %v7420_v8, 5  ;;  %v1163_v41 = vshrl.u32 %v1094_v2, 16  ;;  %v6693_v8 = vld [vmem:[%s8776_s3 + $0x350] sm:$0xff]  }
  0x6d   : > { %4611 = vmatmul.mubr.bf16.gmra.mrb[28].mxu1 %v5555_v53  ;;  %6255 = vmatprep.subr.bf16.mxu1 %v6686_v50  ;;  %v1281_v15 = vsel %vm7090_vm5, %v5581_v14, %v1280_v22  ;;  %v1147_v28 = vsel %vm7074_vm4, %v1142_v5, %v1146_v25  ;;  %v5573_v53 = vcombine.low %v1094_v2, %v1096_v36  ;;  %v1166_v42 = vshll.u32 %v1094_v2, 16  ;;  %v1095_v34 = vld [vmem:[%s7595_s28 + $0x14] sm:$0x1]  ;;  %v6698_v22 = vld [vmem:[%s8776_s3 + $0x318] sm:$0xff]  }
  0x6e   : > { %4652 = vmatmul.mubr.bf16.vlgmr.msra.gmra.mrb[32].mxu0 %v5568_v21  ;;  %v5588_v27 = vcombine.low %v1277_v39, %v1281_v15  ;;  %v1161_v4 = vsel %vm7074_vm4, %v1156_v23, %v1160_v58  ;;  %v1177_v30 = vshrl.u32 %v1096_v36, 16  ;;  %v1180_v45 = vshll.u32 %v1096_v36, 16  ;;  %v6696_v20 = vld [vmem:[%s8776_s3 + $0x390] sm:$0xff]   ;;  %v6697_v21 = vld [vmem:[%s8776_s3 + $0x358] sm:$0xff]   ;;  %v1098_v58 = vld [vmem:[%s7595_s28 + $0x20] sm:$0xf] }
  0x6f   : > { %6216 = vmatpush3.bf16.msra.mxu0 %v6685_v11  ;;  %v5576_v29 = vcombine.low %v1147_v28, %v1161_v4  ;;  %v1047_v56 = vsel %vm7090_vm5, %v5562_v51, %v1046_v48  ;;  %v5563_v57 = vrot.slane %v7426_v55, 9  ;;  %v1050_v46 = vrot.slane %v7429_v13, 5  ;;  %4659 = vmatprep.mubr.bf16.mxu0 %v5573_v53  ;;  %v6694_v55 = vld [vmem:[%s8776_s3 + $0x310] sm:$0xff]   ;;  %v6699_v25 = vld [vmem:[%s8776_s3 + $0x3d8] sm:$0xff]   ;;  %v1100_v39 = vld [vmem:[%s7595_s28 + $0x28] sm:$0xf] }
  0x70   : > { %6217 = vmatprep.subr.bf16.mxu0 %v6688_v62  ;;  %4716 = vmatprep.mubr.bf16.mxu1 %v5588_v27  ;;  %v5582_v24 = vrot.slane %v1094_v2, 9  ;;  %v1284_v3 = vrot.slane %v1095_v34, 5  ;;  %v5583_v9 = vrot.slane %v1096_v36, 9  ;;  %v1288_v40 = vrot.slane %v1097_v32, 5  ;;  %v6702_v51 = vld [vmem:[%s8776_s3 + $0x360] sm:$0xff]  }
  0x71   : > { %v1051_v63 = vsel %vm7090_vm5, %v5563_v57, %v1050_v46  ;;  %v1165_v10 = vrot.slane %v1163_v41, 4  ;;  %v1168_v12 = vrot.slane %v1166_v42, 5  ;;  %v1172_v11 = vshll.u32 %v1095_v34, 16  ;;  %v6703_v53 = vld [vmem:[%s8776_s3 + $0x320] sm:$0xff]  }
  0x72   : > { %v5569_v13 = vcombine.low %v1047_v56, %v1051_v63  ;;  %v1285_v35 = vsel %vm7090_vm5, %v5582_v24, %v1284_v3  ;;  %v1179_v59 = vrot.slane %v1177_v30, 4  ;;  %v1289_v37 = vsel %vm7090_vm5, %v5583_v9, %v1288_v40  ;;  %v1099_v42 = vld [vmem:[%s7595_s28 + $0x24] sm:$0x1] }
  0x73   : > { %6218 = vmatpush3.bf16.msra.mxu0 %v6689_v31  ;;  %v1182_v19 = vrot.slane %v1180_v45, 5  ;;  %v1186_v14 = vshll.u32 %v1097_v32, 16  ;;  %v5589_v50 = vcombine.low %v1285_v35, %v1289_v37  ;;  %v1169_v17 = vor.u32 %v1168_v12, %v1165_v10  ;;  %v6701_v31 = vld [vmem:[%s8776_s3 + $0x398] sm:$0xff]   ;;  %v6705_v10 = vld [vmem:[%s8776_s3 + $0x3a0] sm:$0xff]  }
  0x74   : > { %6219 = vmatprep.subr.bf16.mxu0 %v6693_v8  ;;  %v1174_v18 = vrot.slane %v1172_v11, 5  ;;  %v1191_v15 = vshrl.u32 %v1098_v58, 16  ;;  %v5574_v28 = vcombine.low %v1098_v58, %v1100_v39  ;;  %v1205_v4 = vshrl.u32 %v1100_v39, 16 }
  0x75   : > { %4717 = vmatmul.mubr.bf16.vlgmr.msra.gmra.mrb[32].mxu1 %v5576_v29  ;;  %v1183_v38 = vor.u32 %v1182_v19, %v1179_v59  ;;  %v1188_v5 = vrot.slane %v1186_v14, 5  ;;  %v1170_v7 = vrot.slane %v1169_v17, 4  ;;  %v1208_v29 = vshll.u32 %v1100_v39, 16  ;;  %v6706_v59 = vld [vmem:[%s8776_s3 + $0x368] sm:$0xff]   ;;  %v1104_v17 = vld [vmem:[%s7595_s28 + $0x38] sm:$0xf] }
  0x76   : > { %6256 = vmatpush3.bf16.msra.mxu1 %v6687_v26  ;;  %4660 = vmatmul.mubr.bf16.gmra.mrb[36].mxu0 %v5569_v13  ;;  %v1194_v26 = vshll.u32 %v1098_v58, 16  ;;  %v5564_v2 = vrot.slane %v7489_v49, 9  ;;  %v1054_v36 = vrot.slane %v7492_v43, 5  ;;  %v5565_v48 = vrot.slane %v7495_v60, 9  ;;  %v1101_v49 = vld [vmem:[%s7595_s28 + $0x2c] sm:$0x1] }
  0x77   : > { %6257 = vmatprep.subr.bf16.mxu1 %v6690_v16  ;;  %6220 = vmatpush3.bf16.msra.mxu0 %v6694_v55  ;;  %v1184_v23 = vrot.slane %v1183_v38, 4  ;;  %v1175_v62 = vsel %vm7074_vm4, %v1170_v7, %v1174_v18  ;;  %v1058_v41 = vrot.slane %v7498_v61, 5  ;;  %v5584_v30 = vrot.slane %v1098_v58, 9  ;;  %v6704_v61 = vld [vmem:[%s8776_s3 + $0x3e0] sm:$0xff]   ;;  %v6708_v14 = vld [vmem:[%s8776_s3 + $0x3e8] sm:$0xff]   ;;  %v6711_v58 = vld [vmem:[%s8776_s3 + $0x370] sm:$0xff]  }
  0x78   : > { %4724 = vmatprep.mubr.bf16.mxu1 %v5589_v50  ;;  %6221 = vmatprep.subr.bf16.mxu0 %v6697_v21  ;;  %v1292_v45 = vrot.slane %v1099_v42, 5  ;;  %v5585_v43 = vrot.slane %v1100_v39, 9  ;;  %v1296_v56 = vrot.slane %v1101_v49, 5  ;;  %v1193_v57 = vrot.slane %v1191_v15, 4  ;;  %v1102_v50 = vld [vmem:[%s7595_s28 + $0x30] sm:$0xf] }
  0x79   : > { %v1189_v27 = vsel %vm7074_vm4, %v1184_v23, %v1188_v5  ;;  %4667 = vmatprep.mubr.bf16.mxu0 %v5574_v28  ;;  %v1059_v60 = vsel %vm7090_vm5, %v5565_v48, %v1058_v41  ;;  %v1196_v46 = vrot.slane %v1194_v26, 5  ;;  %v1200_v63 = vshll.u32 %v1099_v42, 16  ;;  %v6710_v21 = vld [vmem:[%s8776_s3 + $0x3a8] sm:$0xff]   ;;  %v1105_v28 = vld [vmem:[%s7595_s28 + $0x3c] sm:$0x1]  ;;  %v6713_v42 = vld [vmem:[%s8776_s3 + $0x3f0] sm:$0xff]  }
  0x7a   : > { %6258 = vmatpush3.bf16.msra.mxu1 %v6692_v47  ;;  %v5577_v16 = vcombine.low %v1175_v62, %v1189_v27  ;;  %v1055_v47 = vsel %vm7090_vm5, %v5564_v2, %v1054_v36  ;;  %v1293_v34 = vsel %vm7090_vm5, %v5584_v30, %v1292_v45  ;;  %v1207_v32 = vrot.slane %v1205_v4, 4  ;;  %v1103_v27 = vld [vmem:[%s7595_s28 + $0x34] sm:$0x1] }
  0x7b   : > { %6259 = vmatprep.subr.bf16.mxu1 %v6695_v0  ;;  %6222 = vmatpush3.bf16.msra.mxu0 %v6698_v22  ;;  %v5570_v8 = vcombine.low %v1055_v47, %v1059_v60  ;;  %v1297_v24 = vsel %vm7090_vm5, %v5585_v43, %v1296_v56  ;;  %v1197_v3 = vor.u32 %v1196_v46, %v1193_v57  ;;  %v1210_v9 = vrot.slane %v1208_v29, 5  ;;  %v6707_v0 = vld [vmem:[%s8776_s3 + $0x328] sm:$0xff]   ;;  %v6714_v30 = vld [vmem:[%s8776_s3 + $0x3b0] sm:$0xff]   ;;  %v6715_v56 = vld [vmem:[%s8776_s3 + $0x378] sm:$0xff]  }
  0x7c   : > { %6223 = vmatprep.subr.bf16.mxu0 %v6702_v51  ;;  %v1214_v55 = vshll.u32 %v1101_v49, 16  ;;  %v5590_v13 = vcombine.low %v1293_v34, %v1297_v24  ;;  %v1202_v40 = vrot.slane %v1200_v63, 5  ;;  %v5575_v18 = vcombine.low %v1102_v50, %v1104_v17  ;;  %v6717_v63 = vld [vmem:[%s8776_s3 + $0x3f8] sm:$0xff]   ;;  %v5593_v24 = vld [vmem:[%s7595_s28 + $0xc] sm:$0x1] }
  0x7d   : > { %4725 = vmatmul.mubr.bf16.gmra.mrb[36].mxu1 %v5577_v16  ;;  %v1198_v35 = vrot.slane %v1197_v3, 4  ;;  %v1211_v12 = vor.u32 %v1210_v9, %v1207_v32  ;;  %v1222_v38 = vshll.u32 %v1102_v50, 16  ;;  %v1233_v5 = vshrl.u32 %v1104_v17, 16  ;;  %v7786_v32 = vld [vmem:[%s7595_s28 + $0x8] sm:$0xf] }
  0x7e   : > { %6260 = vmatpush3.bf16.msra.mxu1 %v6696_v20  ;;  %4668 = vmatmul.mubr.bf16.gmra.mrb[40].mxu0 %v5570_v8  ;;  %v1216_v11 = vrot.slane %v1214_v55, 5  ;;  %v1219_v20 = vshrl.u32 %v1102_v50, 16  ;;  %v1236_v22 = vshll.u32 %v1104_v17, 16  ;;  %v5566_v23 = vrot.slane %v7557_v33, 9  ;;  %v6716_v8 = vld [vmem:[%s8776_s3 + $0x338] sm:$0xff]  }
  0x7f   : > { %6261 = vmatprep.subr.bf16.mxu1 %v6699_v25  ;;  %6224 = vmatpush3.bf16.msra.mxu0 %v6703_v53  ;;  %v1203_v37 = vsel %vm7074_vm4, %v1198_v35, %v1202_v40  ;;  %v1212_v19 = vrot.slane %v1211_v12, 4  ;;  %v1062_v25 = vrot.slane %v7560_v54, 5  ;;  %v5567_v39 = vrot.slane %v7563_v44, 9  ;;  %v6712_v44 = vld [vmem:[%s8776_s3 + $0x330] sm:$0xff]  }
  0x80   : > { %4732 = vmatprep.mubr.bf16.mxu1 %v5590_v13  ;;  %6225 = vmatprep.subr.bf16.mxu0 %v6706_v59  ;;  %v1066_v15 = vrot.slane %v7566_v6, 5  ;;  %v5586_v33 = vrot.slane %v1102_v50, 9  ;;  %v5587_v4 = vrot.slane %v1104_v17, 9  ;;  %v1300_v29 = vrot.slane %v1103_v27, 5  ;;  %v5594_v9 = vld [vmem:[%s7595_s28 + $0x10] sm:$0xf] }
  0x81   : > { %v1217_v7 = vsel %vm7074_vm4, %v1212_v19, %v1216_v11  ;;  %4675 = vmatprep.mubr.bf16.mxu0 %v5575_v18  ;;  %v1063_v26 = vsel %vm7090_vm5, %v5566_v23, %v1062_v25  ;;  %v1221_v6 = vrot.slane %v1219_v20, 4  ;;  %v1224_v16 = vrot.slane %v1222_v38, 5  ;;  %v5595_v55 = vld [vmem:[%s7595_s28 + $0x14] sm:$0x1]  ;;  %v6718_v59 = vld [vmem:[%s8776_s3 + $0x3b8] sm:$0xff]  }
  0x82   : > { %6262 = vmatpush3.bf16.msra.mxu1 %v6701_v31  ;;  %v5578_v62 = vcombine.low %v1203_v37, %v1217_v7  ;;  %v1067_v54 = vsel %vm7090_vm5, %v5567_v39, %v1066_v15  ;;  %v1304_v31 = vrot.slane %v1105_v28, 5  ;;  %v1228_v2 = vshll.u32 %v1103_v27, 16 }
  0x83   : > { %6263 = vmatprep.subr.bf16.mxu1 %v6704_v61  ;;  %6226 = vmatpush3.bf16.msra.mxu0 %v6707_v0  ;;  %v5571_v51 = vcombine.low %v1063_v26, %v1067_v54  ;;  %v1301_v36 = vsel %vm7090_vm5, %v5586_v33, %v1300_v29  ;;  %v1235_v53 = vrot.slane %v1233_v5, 4  ;;  %v1238_v41 = vrot.slane %v1236_v22, 5  ;;  %v6720_v5 = vld [vmem:[%s8776_s3 + $0x440] sm:$0xff]   ;;  %v7806_v22 = vld [vmem:[%s7595_s28 + $0x18] sm:$0xf] }
  0x84   : > { %6227 = vmatprep.subr.bf16.mxu0 %v6711_v58  ;;  %v1305_v48 = vsel %vm7090_vm5, %v5587_v4, %v1304_v31  ;;  %v1225_v49 = vor.u32 %v1224_v16, %v1221_v6  ;;  %v1230_v45 = vrot.slane %v1228_v2, 5  ;;  %v1242_v43 = vshll.u32 %v1105_v28, 16  ;;  %v6722_v54 = vld [vmem:[%s8776_s3 + $0x400] sm:$0xff]  }
  0x85   : > { %4733 = vmatmul.mubr.bf16.gmra.mrb[40].mxu1 %v5578_v62  ;;  %v5591_v47 = vcombine.low %v1301_v36, %v1305_v48  ;;  %v1239_v60 = vor.u32 %v1238_v41, %v1235_v53  ;;  %v1373_v13 = vshrl.u32 %v7786_v32, 16  ;;  %v1376_v40 = vshll.u32 %v7786_v32, 16  ;;  %v6723_v31 = vld [vmem:[%s8776_s3 + $0x4c0] sm:$0xff]  }
  0x86   : > { %6264 = vmatpush3.bf16.msra.mxu1 %v6705_v10  ;;  %4676 = vmatmul.mubr.bf16.gmra.mrb[44].mxu0 %v5571_v51  ;;  %v1226_v57 = vrot.slane %v1225_v49, 4  ;;  %v1244_v46 = vrot.slane %v1242_v43, 5  ;;  %v1382_v35 = vshll.u32 %v5593_v24, 16  ;;  %v1387_v12 = vshrl.u32 %v5594_v9, 16  ;;  %v6724_v53 = vld [vmem:[%s8776_s3 + $0x480] sm:$0xff]   ;;  %v6727_v49 = vld [vmem:[%s8776_s3 + $0x4c8] sm:$0xff]  }
  0x87   : > { %6265 = vmatprep.subr.bf16.mxu1 %v6708_v14  ;;  %6228 = vmatpush3.bf16.msra.mxu0 %v6712_v44  ;;  %v1240_v61 = vrot.slane %v1239_v60, 4  ;;  %v1390_v11 = vshll.u32 %v5594_v9, 16  ;;  %v1375_v0 = vrot.slane %v1373_v13, 4  ;;  %v1378_v37 = vrot.slane %v1376_v40, 5  ;;  %v7850_v43 = vld [vmem:[%s7595_s28 + $0x18] sm:$0xf] }
  0x88   : > { %4740 = vmatprep.mubr.bf16.mxu1 %v5591_v47  ;;  %6229 = vmatprep.subr.bf16.mxu0 %v6715_v56  ;;  %v1231_v34 = vsel %vm7074_vm4, %v1226_v57, %v1230_v45  ;;  %v1396_v19 = vshll.u32 %v5595_v55, 16  ;;  %v1384_v14 = vrot.slane %v1382_v35, 5  ;;  %v1389_v50 = vrot.slane %v1387_v12, 4  ;;  %v6726_v47 = vld [vmem:[%s8776_s3 + $0x408] sm:$0xff]   ;;  %v5597_v60 = vld [vmem:[%s7595_s28 + $0x1c] sm:$0x1] }
  0x89   : > { %v1245_v3 = vsel %vm7074_vm4, %v1240_v61, %v1244_v46  ;;  %v1392_v17 = vrot.slane %v1390_v11, 5  ;;  %v1514_v18 = vrot.slane %v5593_v24, 5  ;;  %v1379_v20 = vor.u32 %v1378_v37, %v1375_v0  ;;  %v7854_v56 = vld [vmem:[%s7595_s28 + $0x20] sm:$0xf]  ;;  %v5599_v57 = vld [vmem:[%s7595_s28 + $0x24] sm:$0x1] }
  0x8a   : > { %6266 = vmatpush3.bf16.msra.mxu1 %v6710_v21  ;;  %v5579_v10 = vcombine.low %v1231_v34, %v1245_v3  ;;  %v1398_v38 = vrot.slane %v1396_v19, 5  ;;  %v7803_v21 = vld [vmem:[%s7595_s28 + $0x10] sm:$0xf]  ;;  %v1518_v62 = vrot.slane %v5595_v55, 5  ;;  %v1625_v15 = vshrl.u32 %v7806_v22, 16  ;;  %v6728_v40 = vld [vmem:[%s8776_s3 + $0x488] sm:$0xff]  }
  0x8b   : > { %6267 = vmatprep.subr.bf16.mxu1 %v6713_v42  ;;  %6230 = vmatpush3.bf16.msra.mxu0 %v6716_v8  ;;  %v1393_v7 = vor.u32 %v1392_v17, %v1389_v50  ;;  %v1611_v23 = vshrl.u32 %v7803_v21, 16  ;;  %v1614_v25 = vshll.u32 %v7803_v21, 16  ;;  %v1380_v58 = vrot.slane %v1379_v20, 4  ;;  %v7869_v0 = vld [vmem:[%s7595_s28 + $0x20] sm:$0xf]  ;;  %v6733_v20 = vld [vmem:[%s8776_s3 + $0x4d0] sm:$0xff]  }
  0x8c   : > { %6295 = vmatprep.subr.bf16.mxu0 %v6720_v5  ;;  %v5644_v39 = vcombine.low %v7803_v21, %v7806_v22  ;;  %v1628_v27 = vshll.u32 %v7806_v22, 16  ;;  %v5616_v28 = vrot.slane %v7786_v32, 9  ;;  %v5608_v4 = vcombine.low %v7786_v32, %v5594_v9  ;;  %v7872_v37 = vld [vmem:[%s7595_s28 + $0x28] sm:$0xf] }
  0x8d   : > { %4741 = vmatmul.mubr.bf16.gmra.mrb[44].mxu1 %v5579_v10  ;;  %v1394_v26 = vrot.slane %v1393_v7, 4  ;;  %v1385_v33 = vsel %vm7074_vm4, %v1380_v58, %v1384_v14  ;;  %v5617_v29 = vrot.slane %v5594_v9, 9  ;;  %v1613_v44 = vrot.slane %v1611_v23, 4  ;;  %v6730_v10 = vld [vmem:[%s8776_s3 + $0x450] sm:$0xff]  }
  0x8e   : > { %6268 = vmatpush3.bf16.msra.mxu1 %v6714_v30  ;;  %4846 = vmatprep.mubr.bf16.mxu1 %v5644_v39  ;;  %v1616_v6 = vrot.slane %v1614_v25, 5  ;;  %v1515_v16 = vsel %vm7090_vm5, %v5616_v28, %v1514_v18  ;;  %v1627_v36 = vrot.slane %v1625_v15, 4  ;;  %v1630_v41 = vrot.slane %v1628_v27, 5  ;;  %v6725_v30 = vld [vmem:[%s8776_s3 + $0x448] sm:$0xff]   ;;  %v6732_v18 = vld [vmem:[%s8776_s3 + $0x410] sm:$0xff]  }
  0x8f   : > { %6269 = vmatprep.subr.bf16.mxu1 %v6717_v63  ;;  %v1399_v51 = vsel %vm7074_vm4, %v1394_v26, %v1398_v38  ;;  %v1519_v48 = vsel %vm7090_vm5, %v5617_v29, %v1518_v62  ;;  %v5652_v45 = vrot.slane %v7803_v21, 9  ;;  %v1401_v46 = vshrl.u32 %v7850_v43, 16  ;;  %v6734_v28 = vld [vmem:[%s8776_s3 + $0x490] sm:$0xff]   ;;  %v8094_v21 = vld [vmem:[%s8066_s9 + $0xc] sm:$0x1] }
  0x90   : > { %v5612_v2 = vcombine.low %v1385_v33, %v1399_v51  ;;  %v5624_v42 = vcombine.low %v1515_v16, %v1519_v48  ;;  %v1404_v61 = vshll.u32 %v7850_v43, 16  ;;  %v1410_v8 = vshll.u32 %v5597_v60, 16  ;;  %v6736_v16 = vld [vmem:[%s8776_s3 + $0x418] sm:$0xff]   ;;  %v5601_v48 = vld [vmem:[%s7595_s28 + $0x2c] sm:$0x1] }
  0x91   : > { %v1415_v34 = vshrl.u32 %v7854_v56, 16  ;;  %v1617_v63 = vor.u32 %v1616_v6, %v1613_v44  ;;  %v1631_v32 = vor.u32 %v1630_v41, %v1627_v36  ;;  %v1418_v24 = vshll.u32 %v7854_v56, 16  ;;  %v7921_v36 = vld [vmem:[%s7595_s28 + $0x28] sm:$0xf]  ;;  %v5603_v41 = vld [vmem:[%s7595_s28 + $0x34] sm:$0x1] }
  0x92   : > { %6270 = vmatpush3.bf16.msra.mxu1 %v6718_v59  ;;  %4781 = vmatprep.mubr.bf16.mxu0 %v5612_v2  ;;  %v1424_v3 = vshll.u32 %v5599_v57, 16  ;;  %v1403_v9 = vrot.slane %v1401_v46, 4  ;;  %v1406_v55 = vrot.slane %v1404_v61, 5  ;;  %v5653_v35 = vrot.slane %v7806_v22, 9  ;;  %v6737_v2 = vld [vmem:[%s8776_s3 + $0x4d8] sm:$0xff]   ;;  %v6760_v22 = vld [vmem:[%s8776_s3 + $0x500] sm:$0xff]  }
  0x93   : > { %6335 = vmatprep.subr.bf16.mxu1 %v6723_v31  ;;  %4782 = vmatmul.mubr.bf16.vlgmr.msra.gmra.mrb[48].mxu0 %v5608_v4  ;;  %v1417_v13 = vrot.slane %v1415_v34, 4  ;;  %v1412_v12 = vrot.slane %v1410_v8, 5  ;;  %v1420_v11 = vrot.slane %v1418_v24, 5  ;;  %v7874_v19 = vrot.slane %v1617_v63, 4  ;;  %v6735_v31 = vld [vmem:[%s8776_s3 + $0x458] sm:$0xff]   ;;  %v6740_v8 = vld [vmem:[%s8776_s3 + $0x460] sm:$0xff]  }
  0x94   : > { %6296 = vmatpush3.bf16.msra.mxu0 %v6722_v54  ;;  %v1407_v59 = vor.u32 %v1406_v55, %v1403_v9  ;;  %v1426_v50 = vrot.slane %v1424_v3, 5  ;;  %v5645_v17 = vcombine.low %v7869_v0, %v7872_v37  ;;  %v7884_v38 = vrot.slane %v1631_v32, 4  ;;  %v6738_v61 = vld [vmem:[%s8776_s3 + $0x498] sm:$0xff]   ;;  %v7940_v24 = vld [vmem:[%s7595_s28 + $0x30] sm:$0xf] }
  0x95   : > { %4847 = vmatmul.mubr.bf16.vlgmr.msra.gmra.mrb[48].mxu1 %v5624_v42  ;;  %6297 = vmatprep.subr.bf16.mxu0 %v6725_v30  ;;  %v1421_v14 = vor.u32 %v1420_v11, %v1417_v13  ;;  %v1639_v7 = vshrl.u32 %v7869_v0, 16  ;;  %v5618_v23 = vrot.slane %v7850_v43, 9  ;;  %v1522_v58 = vrot.slane %v5597_v60, 5  ;;  %v7943_v3 = vld [vmem:[%s7595_s28 + $0x38] sm:$0xf] }
  0x96   : > { %6336 = vmatpush3.bf16.msra.mxu1 %v6724_v53  ;;  %v1408_v5 = vrot.slane %v1407_v59, 4  ;;  %4854 = vmatprep.mubr.bf16.mxu1 %v5645_v17  ;;  %v5619_v62 = vrot.slane %v7854_v56, 9  ;;  %v1526_v39 = vrot.slane %v5599_v57, 5  ;;  %v5609_v26 = vcombine.low %v7850_v43, %v7854_v56  ;;  %v7925_v53 = vld [vmem:[%s7595_s28 + $0x30] sm:$0xf] }
  0x97   : > { %6337 = vmatprep.subr.bf16.mxu1 %v6727_v49  ;;  %v1422_v25 = vrot.slane %v1421_v14, 4  ;;  %v1642_v27 = vshll.u32 %v7869_v0, 16  ;;  %v1653_v4 = vshrl.u32 %v7872_v37, 16  ;;  %v1523_v54 = vsel %vm7090_vm5, %v5618_v23, %v1522_v58 }
  0x98   : > { %6298 = vmatpush3.bf16.msra.mxu0 %v6726_v47  ;;  %v1413_v15 = vsel %vm7074_vm4, %v1408_v5, %v1412_v12  ;;  %v1527_v29 = vsel %vm7090_vm5, %v5619_v62, %v1526_v39  ;;  %v1656_v44 = vshll.u32 %v7872_v37, 16  ;;  %v1429_v42 = vshrl.u32 %v7921_v36, 16  ;;  %v6744_v62 = vld [vmem:[%s8776_s3 + $0x4a0] sm:$0xff]  }
  0x99   : > { %6299 = vmatprep.subr.bf16.mxu0 %v6730_v10  ;;  %v1427_v33 = vsel %vm7074_vm4, %v1422_v25, %v1426_v50  ;;  %v5625_v6 = vcombine.low %v1523_v54, %v1527_v29  ;;  %v1432_v30 = vshll.u32 %v7921_v36, 16  ;;  %v1438_v47 = vshll.u32 %v5601_v48, 16  ;;  %v6743_v10 = vld [vmem:[%s8776_s3 + $0x4e0] sm:$0xff]  }
  0x9a   : > { %6338 = vmatpush3.bf16.msra.mxu1 %v6728_v40  ;;  %v5613_v51 = vcombine.low %v1413_v15, %v1427_v33  ;;  %v1443_v49 = vshrl.u32 %v7925_v53, 16  ;;  %v1446_v43 = vshll.u32 %v7925_v53, 16  ;;  %v1452_v60 = vshll.u32 %v5603_v41, 16  ;;  %v6742_v40 = vld [vmem:[%s8776_s3 + $0x420] sm:$0xff]   ;;  %v6745_v33 = vld [vmem:[%s8776_s3 + $0x468] sm:$0xff]  }
  0x9b   : > { %6339 = vmatprep.subr.bf16.mxu1 %v6733_v20  ;;  %v1431_v56 = vrot.slane %v1429_v42, 4  ;;  %v1434_v57 = vrot.slane %v1432_v30, 5  ;;  %v1440_v34 = vrot.slane %v1438_v47, 5  ;;  %v5646_v13 = vcombine.low %v7940_v24, %v7943_v3 }
  0x9c   : > { %6300 = vmatpush3.bf16.msra.mxu0 %v6732_v18  ;;  %4789 = vmatprep.mubr.bf16.mxu0 %v5613_v51  ;;  %v1445_v46 = vrot.slane %v1443_v49, 4  ;;  %v1448_v63 = vrot.slane %v1446_v43, 5  ;;  %v1454_v55 = vrot.slane %v1452_v60, 5  ;;  %v5654_v12 = vrot.slane %v7869_v0, 9  ;;  %v6746_v51 = vld [vmem:[%s8776_s3 + $0x428] sm:$0xff]  }
  0x9d   : > { %6301 = vmatprep.subr.bf16.mxu0 %v6735_v31  ;;  %4855 = vmatmul.mubr.bf16.gmra.mrb[52].mxu1 %v5625_v6  ;;  %v1435_v32 = vor.u32 %v1434_v57, %v1431_v56  ;;  %v1667_v59 = vshrl.u32 %v7940_v24, 16  ;;  %v5620_v14 = vrot.slane %v7921_v36, 9  ;;  %v5655_v50 = vrot.slane %v7872_v37, 9  ;;  %v6747_v6 = vld [vmem:[%s8776_s3 + $0x4e8] sm:$0xff]   ;;  %v8164_v0 = vld [vmem:[%s8066_s9 + $0x1c] sm:$0x1] }
  0x9e   : > { %6340 = vmatpush3.bf16.msra.mxu1 %v6734_v28  ;;  %4790 = vmatmul.mubr.bf16.gmra.mrb[52].mxu0 %v5609_v26  ;;  %v1449_v9 = vor.u32 %v1448_v63, %v1445_v46  ;;  %v1530_v18 = vrot.slane %v5601_v48, 5  ;;  %v5621_v20 = vrot.slane %v7925_v53, 9  ;;  %v1534_v5 = vrot.slane %v5603_v41, 5  ;;  %v5607_v48 = vld [vmem:[%s7595_s28 + $0x44] sm:$0x1]  ;;  %v6748_v57 = vld [vmem:[%s8776_s3 + $0x4a8] sm:$0xff]  }
  0x9f   : > { %6341 = vmatprep.subr.bf16.mxu1 %v6737_v2  ;;  %v1436_v11 = vrot.slane %v1435_v32, 4  ;;  %4862 = vmatprep.mubr.bf16.mxu1 %v5646_v13  ;;  %v5610_v25 = vcombine.low %v7921_v36, %v7925_v53  ;;  %v1670_v58 = vshll.u32 %v7940_v24, 16  ;;  %v1681_v15 = vshrl.u32 %v7943_v3, 16  ;;  %v5605_v2 = vld [vmem:[%s7595_s28 + $0x3c] sm:$0x1]  ;;  %v6750_v46 = vld [vmem:[%s8776_s3 + $0x470] sm:$0xff]  }
  0xa0   : > { %6302 = vmatpush3.bf16.msra.mxu0 %v6736_v16  ;;  %v1450_v17 = vrot.slane %v1449_v9, 4  ;;  %v1531_v26 = vsel %vm7090_vm5, %v5620_v14, %v1530_v18  ;;  %v1535_v28 = vsel %vm7090_vm5, %v5621_v20, %v1534_v5  ;;  %v1684_v29 = vshll.u32 %v7943_v3, 16  ;;  %v7990_v16 = vld [vmem:[%s7595_s28 + $0x38] sm:$0xf]  ;;  %v7994_v36 = vld [vmem:[%s7595_s28 + $0x40] sm:$0xf] }
  0xa1   : > { %6303 = vmatprep.subr.bf16.mxu0 %v6740_v8  ;;  %v1441_v23 = vsel %vm7074_vm4, %v1436_v11, %v1440_v34  ;;  %v5626_v31 = vcombine.low %v1531_v26, %v1535_v28  ;;  %v1457_v53 = vshrl.u32 %v7990_v16, 16  ;;  %v1460_v41 = vshll.u32 %v7990_v16, 16  ;;  %v8010_v32 = vld [vmem:[%s7595_s28 + $0x40] sm:$0xf]  ;;  %v8013_v9 = vld [vmem:[%s7595_s28 + $0x48] sm:$0xf] }
  0xa2   : > { %6342 = vmatpush3.bf16.msra.mxu1 %v6738_v61  ;;  %v1455_v39 = vsel %vm7074_vm4, %v1450_v17, %v1454_v55  ;;  %v1466_v42 = vshll.u32 %v5605_v2, 16  ;;  %v1471_v30 = vshrl.u32 %v7994_v36, 16  ;;  %v1474_v47 = vshll.u32 %v7994_v36, 16 }
  0xa3   : > { %6343 = vmatprep.subr.bf16.mxu1 %v6743_v10  ;;  %v5614_v54 = vcombine.low %v1441_v23, %v1455_v39  ;;  %v1480_v49 = vshll.u32 %v5607_v48, 16  ;;  %v1459_v43 = vrot.slane %v1457_v53, 4  ;;  %v1462_v60 = vrot.slane %v1460_v41, 5  ;;  %v6752_v10 = vld [vmem:[%s8776_s3 + $0x430] sm:$0xff]   ;;  %v6757_v53 = vld [vmem:[%s8776_s3 + $0x4f8] sm:$0xff]  }
  0xa4   : > { %6304 = vmatpush3.bf16.msra.mxu0 %v6742_v40  ;;  %v1473_v56 = vrot.slane %v1471_v30, 4  ;;  %v1641_v61 = vrot.slane %v1639_v7, 4  ;;  %v1468_v8 = vrot.slane %v1466_v42, 5  ;;  %v1476_v34 = vrot.slane %v1474_v47, 5  ;;  %v6753_v7 = vld [vmem:[%s8776_s3 + $0x4f0] sm:$0xff]  }
  0xa5   : > { %6305 = vmatprep.subr.bf16.mxu0 %v6745_v33  ;;  %4797 = vmatprep.mubr.bf16.mxu0 %v5614_v54  ;;  %v1463_v63 = vor.u32 %v1462_v60, %v1459_v43  ;;  %v1482_v13 = vrot.slane %v1480_v49, 5  ;;  %v5647_v40 = vcombine.low %v8010_v32, %v8013_v9  ;;  %v1644_v11 = vrot.slane %v1642_v27, 5  ;;  %v5629_v42 = vld [vmem:[%s7595_s28 + $0x14] sm:$0x1]  ;;  %v5631_v30 = vld [vmem:[%s7595_s28 + $0x1c] sm:$0x1] }
  0xa6   : > { %6344 = vmatpush3.bf16.msra.mxu1 %v6744_v62  ;;  %4798 = vmatmul.mubr.bf16.gmra.mrb[56].mxu0 %v5610_v25  ;;  %v1477_v55 = vor.u32 %v1476_v34, %v1473_v56  ;;  %v1695_v17 = vshrl.u32 %v8010_v32, 16  ;;  %v5622_v18 = vrot.slane %v7990_v16, 9  ;;  %v8029_v20 = vrot.slane %v1653_v4, 4  ;;  %v6754_v4 = vld [vmem:[%s8776_s3 + $0x4b0] sm:$0xff]   ;;  %v6758_v60 = vld [vmem:[%s8776_s3 + $0x4b8] sm:$0xff]   ;;  %v6759_v34 = vld [vmem:[%s8776_s3 + $0x540] sm:$0xff]  }
  0xa7   : > { %4863 = vmatmul.mubr.bf16.gmra.mrb[56].mxu1 %v5626_v31  ;;  %6345 = vmatprep.subr.bf16.mxu1 %v6747_v6  ;;  %v1464_v14 = vrot.slane %v1463_v63, 4  ;;  %v1538_v23 = vrot.slane %v5605_v2, 5  ;;  %v5623_v25 = vrot.slane %v7994_v36, 9  ;;  %v1542_v62 = vrot.slane %v5607_v48, 5  ;;  %v8085_v63 = vld [vmem:[%s8066_s9] sm:$0xf] }
  0xa8   : > { %6306 = vmatpush3.bf16.msra.mxu0 %v6746_v51  ;;  %v1478_v5 = vrot.slane %v1477_v55, 4  ;;  %4870 = vmatprep.mubr.bf16.mxu1 %v5647_v40  ;;  %v5611_v27 = vcombine.low %v7990_v16, %v7994_v36  ;;  %v1698_v26 = vshll.u32 %v8010_v32, 16  ;;  %v1709_v33 = vshrl.u32 %v8013_v9, 16  ;;  %v6755_v51 = vld [vmem:[%s8776_s3 + $0x478] sm:$0xff]   ;;  %v8091_v40 = vld [vmem:[%s8066_s9 + $0x8] sm:$0xf] }
  0xa9   : > { %6307 = vmatprep.subr.bf16.mxu0 %v6750_v46  ;;  %v1469_v39 = vsel %vm7074_vm4, %v1464_v14, %v1468_v8  ;;  %v1539_v54 = vsel %vm7090_vm5, %v5622_v18, %v1538_v23  ;;  %v1543_v31 = vsel %vm7090_vm5, %v5623_v25, %v1542_v62  ;;  %v1712_v16 = vshll.u32 %v8013_v9, 16  ;;  %v6756_v36 = vld [vmem:[%s8776_s3 + $0x438] sm:$0xff]  }
  0xaa   : > { %6346 = vmatpush3.bf16.msra.mxu1 %v6748_v57  ;;  %v1483_v28 = vsel %vm7074_vm4, %v1478_v5, %v1482_v13  ;;  %v5627_v2 = vcombine.low %v1539_v54, %v1543_v31  ;;  %v1645_v48 = vor.u32 %v1644_v11, %v1641_v61  ;;  %v1658_v41 = vrot.slane %v1656_v44, 5  ;;  %v8088_v13 = vld [vmem:[%s8066_s9 + $0x4] sm:$0x1] }
  0xab   : > { %6347 = vmatprep.subr.bf16.mxu1 %v6753_v7  ;;  %v5615_v6 = vcombine.low %v1469_v39, %v1483_v28  ;;  %v1620_v47 = vshll.u32 %v5629_v42, 16  ;;  %v1634_v49 = vshll.u32 %v5631_v30, 16  ;;  %v1752_v43 = vrot.slane %v5629_v42, 5 }
  0xac   : > { %6308 = vmatpush3.bf16.msra.mxu0 %v6752_v10  ;;  %v1756_v44 = vrot.slane %v5631_v30, 5  ;;  %v8071_v56 = vrot.slane %v1645_v48, 4  ;;  %v1849_v7 = vshrl.u32 %v8085_v63, 16  ;;  %v1852_v11 = vshll.u32 %v8085_v63, 16  ;;  %v5633_v30 = vld [vmem:[%s7595_s28 + $0x24] sm:$0x1] }
  0xad   : > { %6309 = vmatprep.subr.bf16.mxu0 %v6755_v51  ;;  %4805 = vmatprep.mubr.bf16.mxu0 %v5615_v6  ;;  %v1622_v57 = vrot.slane %v1620_v47, 5  ;;  %v1636_v46 = vrot.slane %v1634_v49, 5  ;;  %v1753_v61 = vsel %vm7090_vm5, %v5652_v45, %v1752_v43  ;;  %v1659_v45 = vor.u32 %v1658_v41, %v8029_v20  ;;  %v6763_v43 = vld [vmem:[%s8776_s3 + $0x580] sm:$0xff]  }
  0xae   : > { %6348 = vmatpush3.bf16.msra.mxu1 %v6754_v4  ;;  %4806 = vmatmul.mubr.bf16.gmra.mrb[60].mxu0 %v5611_v27  ;;  %v1757_v8 = vsel %vm7090_vm5, %v5653_v35, %v1756_v44  ;;  %v1858_v18 = vshll.u32 %v8088_v13, 16  ;;  %v1863_v5 = vshrl.u32 %v8091_v40, 16  ;;  %v1866_v20 = vshll.u32 %v8091_v40, 16  ;;  %v5635_v44 = vld [vmem:[%s7595_s28 + $0x2c] sm:$0x1] }
  0xaf   : > { %4871 = vmatmul.mubr.bf16.gmra.mrb[60].mxu1 %v5627_v2  ;;  %6349 = vmatprep.subr.bf16.mxu1 %v6757_v53  ;;  %v5660_v55 = vcombine.low %v1753_v61, %v1757_v8  ;;  %v1623_v35 = vsel %vm7074_vm4, %v7874_v19, %v1622_v57  ;;  %v1637_v10 = vsel %vm7074_vm4, %v7884_v38, %v1636_v46  ;;  %v6762_v19 = vld [vmem:[%s8776_s3 + $0x5c0] sm:$0xff]   ;;  %v1851_v23 = vrot.slane %v1849_v7, 4  ;;  %v6765_v53 = vld [vmem:[%s8776_s3 + $0x508] sm:$0xff]  }
  0xb0   : > { %6310 = vmatpush3.bf16.msra.mxu0 %v6756_v36  ;;  %v5648_v14 = vcombine.low %v1623_v35, %v1637_v10  ;;  %v1854_v25 = vrot.slane %v1852_v11, 5  ;;  %v1872_v38 = vshll.u32 %v8094_v21, 16  ;;  %v5656_v62 = vrot.slane %v7940_v24, 9  ;;  %v6764_v36 = vld [vmem:[%s8776_s3 + $0x548] sm:$0xff]   ;;  %v8151_v35 = vld [vmem:[%s8066_s9 + $0x10] sm:$0xf] }
  0xb1   : > { %6375 = vmatprep.subr.bf16.mxu0 %v6759_v34  ;;  %4911 = vmatprep.mubr.bf16.mxu0 %v5660_v55  ;;  %v1865_v39 = vrot.slane %v1863_v5, 4  ;;  %v1868_v27 = vrot.slane %v1866_v20, 5  ;;  %v1660_v4 = vrot.slane %v1659_v45, 4  ;;  %v5657_v28 = vrot.slane %v7943_v3, 9  ;;  %v6766_v61 = vld [vmem:[%s8776_s3 + $0x5c8] sm:$0xff]  }
  0xb2   : > { %6350 = vmatpush3.bf16.msra.mxu1 %v6758_v60  ;;  %v1855_v54 = vor.u32 %v1854_v25, %v1851_v23  ;;  %v1860_v31 = vrot.slane %v1858_v18, 5  ;;  %v1990_v51 = vrot.slane %v8088_v13, 5  ;;  %v1874_v2 = vrot.slane %v1872_v38, 5  ;;  %v8161_v18 = vld [vmem:[%s8066_s9 + $0x18] sm:$0xf] }
  0xb3   : > { %6415 = vmatprep.subr.bf16.mxu1 %v6762_v19  ;;  %v1869_v6 = vor.u32 %v1868_v27, %v1865_v39  ;;  %v1994_v42 = vrot.slane %v8094_v21, 5  ;;  %v5664_v49 = vcombine.low %v8085_v63, %v8091_v40  ;;  %v1760_v60 = vrot.slane %v5633_v30, 5  ;;  %v6767_v39 = vld [vmem:[%s8776_s3 + $0x588] sm:$0xff]  }
  0xb4   : > { %v1856_v48 = vrot.slane %v1855_v54, 4  ;;  %v8136_v57 = vrot.slane %v1667_v59, 4  ;;  %v1764_v8 = vrot.slane %v5635_v44, 5  ;;  %v1648_v34 = vshll.u32 %v5633_v30, 16  ;;  %v6798_v21 = vld [vmem:[%s8776_s3 + $0x648] sm:$0xff]  }
  0xb5   : > { %v1870_v41 = vrot.slane %v1869_v6, 4  ;;  %v1662_v55 = vshll.u32 %v5635_v44, 16  ;;  %v1761_v59 = vsel %vm7090_vm5, %v5654_v12, %v1760_v60  ;;  %v1877_v12 = vshrl.u32 %v8151_v35, 16  ;;  %v6775_v60 = vld [vmem:[%s8776_s3 + $0x5d8] sm:$0xff]  }
  0xb6   : > { %4912 = vmatmul.mubr.bf16.vlgmr.msra.gmra.mrb[64].mxu0 %v5648_v14  ;;  %v1861_v47 = vsel %vm7074_vm4, %v1856_v48, %v1860_v31  ;;  %v1765_v10 = vsel %vm7090_vm5, %v5655_v50, %v1764_v8  ;;  %v1650_v7 = vrot.slane %v1648_v34, 5  ;;  %v8158_v14 = vld [vmem:[%s8066_s9 + $0x14] sm:$0x1]  ;;  %v1880_v20 = vshll.u32 %v8151_v35, 16  ;;  %v5639_v34 = vld [vmem:[%s7595_s28 + $0x3c] sm:$0x1] }
  0xb7   : > { %6376 = vmatpush3.bf16.msra.mxu0 %v6760_v22  ;;  %v1875_v46 = vsel %vm7074_vm4, %v1870_v41, %v1874_v2  ;;  %v6768_v22 = vld [vmem:[%s8776_s3 + $0x550] sm:$0xff]   ;;  %v1664_v11 = vrot.slane %v1662_v55, 5  ;;  %v5661_v5 = vcombine.low %v1761_v59, %v1765_v10  ;;  %v1886_v37 = vshll.u32 %v8158_v14, 16 }
  0xb8   : > { %6377 = vmatprep.subr.bf16.mxu0 %v6764_v36  ;;  %v5668_v45 = vcombine.low %v1861_v47, %v1875_v46  ;;  %v6769_v50 = vld [vmem:[%s8776_s3 + $0x510] sm:$0xff]   ;;  %v1651_v19 = vsel %vm7074_vm4, %v8071_v56, %v1650_v7  ;;  %v1891_v25 = vshrl.u32 %v8161_v18, 16  ;;  %v1894_v38 = vshll.u32 %v8161_v18, 16  ;;  %v6773_v47 = vld [vmem:[%s8776_s3 + $0x558] sm:$0xff]  }
  0xb9   : > { %v1665_v23 = vsel %vm7074_vm4, %v1660_v4, %v1664_v11  ;;  %4919 = vmatprep.mubr.bf16.mxu0 %v5661_v5  ;;  %v1879_v54 = vrot.slane %v1877_v12, 4  ;;  %v1882_v31 = vrot.slane %v1880_v20, 5  ;;  %v1888_v6 = vrot.slane %v1886_v37, 5  ;;  %v6771_v4 = vld [vmem:[%s8776_s3 + $0x5d0] sm:$0xff]   ;;  %v6777_v11 = vld [vmem:[%s8776_s3 + $0x560] sm:$0xff]  }
  0xba   : > { %4976 = vmatprep.mubr.bf16.mxu1 %v5668_v45  ;;  %v5649_v27 = vcombine.low %v1651_v19, %v1665_v23  ;;  %v1893_v2 = vrot.slane %v1891_v25, 4  ;;  %v1896_v56 = vrot.slane %v1894_v38, 5  ;;  %v1900_v36 = vshll.u32 %v8164_v0, 16  ;;  %v5637_v46 = vld [vmem:[%s7595_s28 + $0x34] sm:$0x1] }
  0xbb   : > { %6378 = vmatpush3.bf16.msra.mxu0 %v6765_v53  ;;  %4977 = vmatmul.mubr.bf16.vlgmr.msra.gmra.mrb[64].mxu1 %v5664_v49  ;;  %v1883_v48 = vor.u32 %v1882_v31, %v1879_v54  ;;  %v6772_v53 = vld [vmem:[%s8776_s3 + $0x590] sm:$0xff]   ;;  %v5665_v8 = vcombine.low %v8151_v35, %v8161_v18  ;;  %v1768_v55 = vrot.slane %v5637_v46, 5  ;;  %v1772_v59 = vrot.slane %v5639_v34, 5  ;;  %v8228_v23 = vld [vmem:[%s8066_s9 + $0x20] sm:$0xf] }
  0xbc   : > { %6379 = vmatprep.subr.bf16.mxu0 %v6768_v22  ;;  %6416 = vmatpush3.bf16.msra.mxu1 %v6763_v43  ;;  %v1897_v41 = vor.u32 %v1896_v56, %v1893_v2  ;;  %v1902_v30 = vrot.slane %v1900_v36, 5  ;;  %v6774_v43 = vld [vmem:[%s8776_s3 + $0x518] sm:$0xff]   ;;  %v1672_v10 = vrot.slane %v1670_v58, 5  ;;  %v1676_v7 = vshll.u32 %v5637_v46, 16  ;;  %v8234_v38 = vld [vmem:[%s8066_s9 + $0x28] sm:$0xf] }
  0xbd   : > { %6417 = vmatprep.subr.bf16.mxu1 %v6766_v61  ;;  %v1884_v49 = vrot.slane %v1883_v48, 4  ;;  %v6776_v22 = vld [vmem:[%s8776_s3 + $0x598] sm:$0xff]   ;;  %v1769_v12 = vsel %vm7090_vm5, %v5656_v62, %v1768_v55  ;;  %v1683_v20 = vrot.slane %v1681_v15, 4  ;;  %v1686_v58 = vrot.slane %v1684_v29, 5  ;;  %v8231_v62 = vld [vmem:[%s8066_s9 + $0x24] sm:$0x1] }
  0xbe   : > { %4920 = vmatmul.mubr.bf16.gmra.mrb[68].mxu0 %v5649_v27  ;;  %v1898_v44 = vrot.slane %v1897_v41, 4  ;;  %v1773_v37 = vsel %vm7090_vm5, %v5657_v28, %v1772_v59  ;;  %v1678_v19 = vrot.slane %v1676_v7, 5  ;;  %v1690_v24 = vshll.u32 %v5639_v34, 16  ;;  %v8237_v29 = vld [vmem:[%s8066_s9 + $0x2c] sm:$0x1]  ;;  %v6778_v41 = vld [vmem:[%s8776_s3 + $0x520] sm:$0xff]  }
  0xbf   : > { %6380 = vmatpush3.bf16.msra.mxu0 %v6769_v50  ;;  %v1889_v61 = vsel %vm7074_vm4, %v1884_v49, %v1888_v6  ;;  %v1673_v50 = vor.u32 %v1672_v10, %v8136_v57  ;;  %v5662_v15 = vcombine.low %v1769_v12, %v1773_v37  ;;  %v1687_v25 = vor.u32 %v1686_v58, %v1683_v20  ;;  %v6781_v46 = vld [vmem:[%s8776_s3 + $0x5a0] sm:$0xff]   ;;  %v6782_v34 = vld [vmem:[%s8776_s3 + $0x568] sm:$0xff]  }
  0xc0   : > { %6418 = vmatpush3.bf16.msra.mxu1 %v6767_v39  ;;  %6381 = vmatprep.subr.bf16.mxu0 %v6773_v47  ;;  %v1903_v45 = vsel %vm7074_vm4, %v1898_v44, %v1902_v30  ;;  %v1905_v3 = vshrl.u32 %v8228_v23, 16  ;;  %v1908_v28 = vshll.u32 %v8228_v23, 16  ;;  %v1692_v39 = vrot.slane %v1690_v24, 5  ;;  %v6783_v55 = vld [vmem:[%s8776_s3 + $0x528] sm:$0xff]   ;;  %v5641_v7 = vld [vmem:[%s7595_s28 + $0x44] sm:$0x1] }
  0xc1   : > { %6419 = vmatprep.subr.bf16.mxu1 %v6771_v4  ;;  %v5669_v5 = vcombine.low %v1889_v61, %v1903_v45  ;;  %v1674_v57 = vrot.slane %v1673_v50, 4  ;;  %v1914_v27 = vshll.u32 %v8231_v62, 16  ;;  %v1919_v54 = vshrl.u32 %v8234_v38, 16  ;;  %4927 = vmatprep.mubr.bf16.mxu0 %v5662_v15  ;;  %v6784_v10 = vld [vmem:[%s8776_s3 + $0x5e8] sm:$0xff]  }
  0xc2   : > { %v1688_v31 = vrot.slane %v1687_v25, 4  ;;  %v1907_v6 = vrot.slane %v1905_v3, 4  ;;  %v1910_v2 = vrot.slane %v1908_v28, 5  ;;  %v1922_v56 = vshll.u32 %v8234_v38, 16  ;;  %v6785_v50 = vld [vmem:[%s8776_s3 + $0x5a8] sm:$0xff]  }
  0xc3   : > { %6382 = vmatpush3.bf16.msra.mxu0 %v6774_v43  ;;  %4984 = vmatprep.mubr.bf16.mxu1 %v5669_v5  ;;  %v1679_v36 = vsel %vm7074_vm4, %v1674_v57, %v1678_v19  ;;  %v1916_v4 = vrot.slane %v1914_v27, 5  ;;  %v1921_v48 = vrot.slane %v1919_v54, 4  ;;  %v6780_v43 = vld [vmem:[%s8776_s3 + $0x5e0] sm:$0xff]   ;;  %v5643_v5 = vld [vmem:[%s7595_s28 + $0x4c] sm:$0x1]  ;;  %v1776_v12 = vrot.slane %v5641_v7, 5 }
  0xc4   : > { %6420 = vmatpush3.bf16.msra.mxu1 %v6772_v53  ;;  %6383 = vmatprep.subr.bf16.mxu0 %v6777_v11  ;;  %v1928_v53 = vshll.u32 %v8237_v29, 16  ;;  %v1693_v30 = vsel %vm7074_vm4, %v1688_v31, %v1692_v39  ;;  %v1911_v47 = vor.u32 %v1910_v2, %v1907_v6  ;;  %v1924_v49 = vrot.slane %v1922_v56, 5  ;;  %v8296_v27 = vld [vmem:[%s8066_s9 + $0x30] sm:$0xf]  ;;  %v8302_v6 = vld [vmem:[%s8066_s9 + $0x34] sm:$0x1] }
  0xc5   : > { %6421 = vmatprep.subr.bf16.mxu1 %v6775_v60  ;;  %4985 = vmatmul.mubr.bf16.gmra.mrb[68].mxu1 %v5665_v8  ;;  %v5650_v44 = vcombine.low %v1679_v36, %v1693_v30  ;;  %v5666_v11 = vcombine.low %v8228_v23, %v8234_v38  ;;  %v5659_v20 = vrot.slane %v8013_v9, 9  ;;  %v1780_v37 = vrot.slane %v5643_v5, 5  ;;  %v8305_v2 = vld [vmem:[%s8066_s9 + $0x38] sm:$0xf] }
  0xc6   : > { %v1930_v60 = vrot.slane %v1928_v53, 5  ;;  %v1912_v61 = vrot.slane %v1911_v47, 4  ;;  %v1925_v8 = vor.u32 %v1924_v49, %v1921_v48  ;;  %v1697_v19 = vrot.slane %v1695_v17, 4  ;;  %v6789_v53 = vld [vmem:[%s8776_s3 + $0x5f0] sm:$0xff]  }
  0xc7   : > { %6384 = vmatpush3.bf16.msra.mxu0 %v6778_v41  ;;  %v1700_v24 = vrot.slane %v1698_v26, 5  ;;  %v1704_v3 = vshll.u32 %v5641_v7, 16  ;;  %v1711_v28 = vrot.slane %v1709_v33, 4  ;;  %v1781_v57 = vsel %vm7090_vm5, %v5659_v20, %v1780_v37  ;;  %v6786_v26 = vld [vmem:[%s8776_s3 + $0x570] sm:$0xff]   ;;  %v6792_v7 = vld [vmem:[%s8776_s3 + $0x538] sm:$0xff]  }
  0xc8   : > { %6422 = vmatpush3.bf16.msra.mxu1 %v6776_v22  ;;  %4928 = vmatmul.mubr.bf16.gmra.mrb[72].mxu0 %v5650_v44  ;;  %v5658_v22 = vrot.slane %v8010_v32, 9  ;;  %v1917_v45 = vsel %vm7074_vm4, %v1912_v61, %v1916_v4  ;;  %v1926_v59 = vrot.slane %v1925_v8, 4  ;;  %v1714_v17 = vrot.slane %v1712_v16, 5  ;;  %v6787_v33 = vld [vmem:[%s8776_s3 + $0x530] sm:$0xff]   ;;  %v8309_v4 = vld [vmem:[%s8066_s9 + $0x3c] sm:$0x1] }
  0xc9   : > { %6423 = vmatprep.subr.bf16.mxu1 %v6780_v43  ;;  %6385 = vmatprep.subr.bf16.mxu0 %v6782_v34  ;;  %v1701_v39 = vor.u32 %v1700_v24, %v1697_v19  ;;  %v1718_v32 = vshll.u32 %v5643_v5, 16  ;;  %v1706_v31 = vrot.slane %v1704_v3, 5  ;;  %v1933_v9 = vshrl.u32 %v8296_v27, 16  ;;  %v6790_v61 = vld [vmem:[%s8776_s3 + $0x5b0] sm:$0xff]   ;;  %v6793_v20 = vld [vmem:[%s8776_s3 + $0x5f8] sm:$0xff]  }
  0xca   : > { %v1931_v58 = vsel %vm7074_vm4, %v1926_v59, %v1930_v60  ;;  %v1777_v25 = vsel %vm7090_vm5, %v5658_v22, %v1776_v12  ;;  %v1715_v56 = vor.u32 %v1714_v17, %v1711_v28  ;;  %v1936_v48 = vshll.u32 %v8296_v27, 16  ;;  %v6791_v22 = vld [vmem:[%s8776_s3 + $0x578] sm:$0xff]   ;;  %v5684_v24 = vld [vmem:[%s8066_s9 + $0x8] sm:$0xf] }
  0xcb   : > { %6386 = vmatpush3.bf16.msra.mxu0 %v6783_v55  ;;  %v5670_v15 = vcombine.low %v1917_v45, %v1931_v58  ;;  %v5663_v54 = vcombine.low %v1777_v25, %v1781_v57  ;;  %v1702_v16 = vrot.slane %v1701_v39, 4  ;;  %v1720_v36 = vrot.slane %v1718_v32, 5  ;;  %v6795_v37 = vld [vmem:[%s8776_s3 + $0x5b8] sm:$0xff]  }
  0xcc   : > { %6424 = vmatpush3.bf16.msra.mxu1 %v6781_v46  ;;  %6387 = vmatprep.subr.bf16.mxu0 %v6786_v26  ;;  %v1935_v41 = vrot.slane %v1933_v9, 4  ;;  %v1942_v30 = vshll.u32 %v8302_v6, 16  ;;  %v1947_v47 = vshrl.u32 %v8305_v2, 16  ;;  %v1950_v49 = vshll.u32 %v8305_v2, 16 }
  0xcd   : > { %6425 = vmatprep.subr.bf16.mxu1 %v6784_v10  ;;  %4992 = vmatprep.mubr.bf16.mxu1 %v5670_v15  ;;  %v1707_v43 = vsel %vm7074_vm4, %v1702_v16, %v1706_v31  ;;  %v1716_v44 = vrot.slane %v1715_v56, 4  ;;  %v1938_v60 = vrot.slane %v1936_v48, 5  ;;  %v1956_v46 = vshll.u32 %v8309_v4, 16  ;;  %v5686_v15 = vld [vmem:[%s8066_s9 + $0x10] sm:$0xf] }
  0xce   : > { %4993 = vmatmul.mubr.bf16.gmra.mrb[72].mxu1 %v5666_v11  ;;  %4935 = vmatprep.mubr.bf16.mxu0 %v5663_v54  ;;  %v1944_v8 = vrot.slane %v1942_v30, 5  ;;  %v1949_v34 = vrot.slane %v1947_v47, 4  ;;  %v1952_v55 = vrot.slane %v1950_v49, 5  ;;  %v5667_v19 = vcombine.low %v8296_v27, %v8305_v2  ;;  %v5685_v16 = vld [vmem:[%s8066_s9 + $0xc] sm:$0x1]  ;;  %v6797_v30 = vld [vmem:[%s8776_s3 + $0x600] sm:$0xff]  }
  0xcf   : > { %6388 = vmatpush3.bf16.msra.mxu0 %v6787_v33  ;;  %v1721_v45 = vsel %vm7074_vm4, %v1716_v44, %v1720_v36  ;;  %v1939_v59 = vor.u32 %v1938_v60, %v1935_v41  ;;  %v1958_v10 = vrot.slane %v1956_v46, 5  ;;  %v5700_v3 = vcombine.low %v5684_v24, %v5686_v15  ;;  %v6796_v33 = vld [vmem:[%s8776_s3 + $0x640] sm:$0xff]  }
  0xd0   : > { %6426 = vmatpush3.bf16.msra.mxu1 %v6785_v50  ;;  %v5651_v11 = vcombine.low %v1707_v43, %v1721_v45  ;;  %v1953_v5 = vor.u32 %v1952_v55, %v1949_v34  ;;  %6389 = vmatprep.subr.bf16.mxu0 %v6791_v22  ;;  %v2087_v28 = vshrl.u32 %v5684_v24, 16  ;;  %v2090_v57 = vshll.u32 %v5684_v24, 16 }
  0xd1   : > { %6427 = vmatprep.subr.bf16.mxu1 %v6789_v53  ;;  %v1940_v12 = vrot.slane %v1939_v59, 4  ;;  %v2101_v17 = vshrl.u32 %v5686_v15, 16  ;;  %v2104_v32 = vshll.u32 %v5686_v15, 16  ;;  %v5672_v26 = vrot.slane %v8085_v63, 9  ;;  %v5687_v63 = vld [vmem:[%s8066_s9 + $0x14] sm:$0x1] }
  0xd2   : > { %4936 = vmatmul.mubr.bf16.gmra.mrb[76].mxu0 %v5651_v11  ;;  %v1954_v58 = vrot.slane %v1953_v5, 4  ;;  %v2089_v54 = vrot.slane %v2087_v28, 4  ;;  %v2092_v31 = vrot.slane %v2090_v57, 5  ;;  %v5673_v9 = vrot.slane %v8091_v40, 9  ;;  %v6800_v59 = vld [vmem:[%s8776_s3 + $0x608] sm:$0xff]  }
  0xd3   : > { %6390 = vmatpush3.bf16.msra.mxu0 %v6792_v7  ;;  %v1945_v50 = vsel %vm7074_vm4, %v1940_v12, %v1944_v8  ;;  %5041 = vmatprep.mubr.bf16.mxu0 %v5700_v3  ;;  %v5708_v56 = vrot.slane %v5684_v24, 9  ;;  %v2103_v36 = vrot.slane %v2101_v17, 4  ;;  %v2106_v48 = vrot.slane %v2104_v32, 5  ;;  %v5690_v12 = vld [vmem:[%s8066_s9 + $0x20] sm:$0xf] }
  0xd4   : > { %6428 = vmatpush3.bf16.msra.mxu1 %v6790_v61  ;;  %v1959_v25 = vsel %vm7074_vm4, %v1954_v58, %v1958_v10  ;;  %v1991_v53 = vsel %vm7090_vm5, %v5672_v26, %v1990_v51  ;;  %6455 = vmatprep.subr.bf16.mxu0 %v6796_v33  ;;  %v2096_v41 = vshll.u32 %v5685_v16, 16  ;;  %v2093_v47 = vor.u32 %v2092_v31, %v2089_v54  ;;  %v5688_v10 = vld [vmem:[%s8066_s9 + $0x18] sm:$0xf]  ;;  %v5691_v17 = vld [vmem:[%s8066_s9 + $0x24] sm:$0x1] }
  0xd5   : > { %6429 = vmatprep.subr.bf16.mxu1 %v6793_v20  ;;  %v5671_v39 = vcombine.low %v1945_v50, %v1959_v25  ;;  %v1995_v40 = vsel %vm7090_vm5, %v5673_v9, %v1994_v42  ;;  %v2110_v49 = vshll.u32 %v5687_v63, 16  ;;  %v2228_v43 = vrot.slane %v5685_v16, 5  ;;  %v6799_v42 = vld [vmem:[%s8776_s3 + $0x680] sm:$0xff]  }
  0xd6   : > { %v2107_v13 = vor.u32 %v2106_v48, %v2103_v36  ;;  %v5680_v44 = vcombine.low %v1991_v53, %v1995_v40  ;;  %v2098_v51 = vrot.slane %v2096_v41, 5  ;;  %v5709_v60 = vrot.slane %v5686_v15, 9  ;;  %v6802_v15 = vld [vmem:[%s8776_s3 + $0x650] sm:$0xff]   ;;  %v6805_v53 = vld [vmem:[%s8776_s3 + $0x658] sm:$0xff]  }
  0xd7   : > { %5000 = vmatprep.mubr.bf16.mxu1 %v5671_v39  ;;  %v2094_v46 = vrot.slane %v2093_v47, 4  ;;  %v2112_v61 = vrot.slane %v2110_v49, 5  ;;  %v2229_v8 = vsel %vm7090_vm5, %v5708_v56, %v2228_v43  ;;  %v2232_v34 = vrot.slane %v5687_v63, 5  ;;  %v5689_v39 = vld [vmem:[%s8066_s9 + $0x1c] sm:$0x1]  ;;  %v6806_v47 = vld [vmem:[%s8776_s3 + $0x690] sm:$0xff]  }
  0xd8   : > { %6430 = vmatpush3.bf16.msra.mxu1 %v6795_v37  ;;  %v2108_v55 = vrot.slane %v2107_v13, 4  ;;  %v5674_v7 = vrot.slane %v8151_v35, 9  ;;  %v2115_v20 = vshrl.u32 %v5688_v10, 16  ;;  %v2118_v58 = vshll.u32 %v5688_v10, 16  ;;  %v6803_v35 = vld [vmem:[%s8776_s3 + $0x688] sm:$0xff]   ;;  %v6807_v13 = vld [vmem:[%s8776_s3 + $0x618] sm:$0xff]  }
  0xd9   : > { %5001 = vmatmul.mubr.bf16.gmra.mrb[76].mxu1 %v5667_v19  ;;  %v2233_v22 = vsel %vm7090_vm5, %v5709_v60, %v2232_v34  ;;  %v2099_v45 = vsel %vm7074_vm4, %v2094_v46, %v2098_v51  ;;  %6507 = vmatprep.subr.bf16.mxu1 %v6799_v42  ;;  %v5701_v50 = vcombine.low %v5688_v10, %v5690_v12  ;;  %v2129_v19 = vshrl.u32 %v5690_v12, 16  ;;  %v5692_v60 = vld [vmem:[%s8066_s9 + $0x28] sm:$0xf]  ;;  %v5694_v46 = vld [vmem:[%s8066_s9 + $0x30] sm:$0xf] }
  0xda   : > { %5042 = vmatmul.mubr.bf16.vlgmr.msra.gmra.mrb[80].mxu0 %v5680_v44  ;;  %v5716_v11 = vcombine.low %v2229_v8, %v2233_v22  ;;  %v2113_v5 = vsel %vm7074_vm4, %v2108_v55, %v2112_v61  ;;  %v2132_v24 = vshll.u32 %v5690_v12, 16  ;;  %v1998_v25 = vrot.slane %v8158_v14, 5  ;;  %v6809_v55 = vld [vmem:[%s8776_s3 + $0x660] sm:$0xff]  }
  0xdb   : > { %6456 = vmatpush3.bf16.msra.mxu0 %v6797_v30  ;;  %v5704_v37 = vcombine.low %v2099_v45, %v2113_v5  ;;  %v5675_v3 = vrot.slane %v8161_v18, 9  ;;  %v2002_v28 = vrot.slane %v8164_v0, 5  ;;  %v5710_v57 = vrot.slane %v5688_v10, 9  ;;  %5049 = vmatprep.mubr.bf16.mxu0 %v5701_v50  ;;  %v6804_v0 = vld [vmem:[%s8776_s3 + $0x610] sm:$0xff]   ;;  %v6810_v10 = vld [vmem:[%s8776_s3 + $0x698] sm:$0xff]  }
  0xdc   : > { %6457 = vmatprep.subr.bf16.mxu0 %v6798_v21  ;;  %5106 = vmatprep.mubr.bf16.mxu1 %v5716_v11  ;;  %v1999_v32 = vsel %vm7090_vm5, %v5674_v7, %v1998_v25  ;;  %v2236_v33 = vrot.slane %v5689_v39, 5  ;;  %v5711_v54 = vrot.slane %v5690_v12, 9  ;;  %v2240_v18 = vrot.slane %v5691_v17, 5  ;;  %v6812_v25 = vld [vmem:[%s8776_s3 + $0x668] sm:$0xff]  }
  0xdd   : > { %v2003_v26 = vsel %vm7090_vm5, %v5675_v3, %v2002_v28  ;;  %v2117_v31 = vrot.slane %v2115_v20, 4  ;;  %v2120_v9 = vrot.slane %v2118_v58, 5  ;;  %v2124_v56 = vshll.u32 %v5689_v39, 16  ;;  %v6811_v20 = vld [vmem:[%s8776_s3 + $0x620] sm:$0xff]   ;;  %v5693_v58 = vld [vmem:[%s8066_s9 + $0x2c] sm:$0x1] }
  0xde   : > { %v5681_v14 = vcombine.low %v1999_v32, %v2003_v26  ;;  %v2237_v16 = vsel %vm7090_vm5, %v5710_v57, %v2236_v33  ;;  %v2131_v36 = vrot.slane %v2129_v19, 4  ;;  %v2134_v48 = vrot.slane %v2132_v24, 5 }
  0xdf   : > { %6458 = vmatpush3.bf16.msra.mxu0 %v6800_v59  ;;  %v2241_v63 = vsel %vm7090_vm5, %v5711_v54, %v2240_v18  ;;  %v2121_v41 = vor.u32 %v2120_v9, %v2117_v31  ;;  %v2138_v30 = vshll.u32 %v5691_v17, 16  ;;  %v2126_v49 = vrot.slane %v2124_v56, 5  ;;  %v6813_v17 = vld [vmem:[%s8776_s3 + $0x6a0] sm:$0xff]  }
  0xe0   : > { %6459 = vmatprep.subr.bf16.mxu0 %v6802_v15  ;;  %v5717_v40 = vcombine.low %v2237_v16, %v2241_v63  ;;  %v2135_v43 = vor.u32 %v2134_v48, %v2131_v36  ;;  %v5702_v8 = vcombine.low %v5692_v60, %v5694_v46  ;;  %v2143_v34 = vshrl.u32 %v5692_v60, 16  ;;  %v5696_v16 = vld [vmem:[%s8066_s9 + $0x38] sm:$0xf]  ;;  %v5698_v56 = vld [vmem:[%s8066_s9 + $0x40] sm:$0xf] }
  0xe1   : > { %5107 = vmatmul.mubr.bf16.vlgmr.msra.gmra.mrb[80].mxu1 %v5704_v37  ;;  %v2122_v44 = vrot.slane %v2121_v41, 4  ;;  %v2140_v51 = vrot.slane %v2138_v30, 5  ;;  %v2146_v21 = vshll.u32 %v5692_v60, 16  ;;  %v2157_v22 = vshrl.u32 %v5694_v46, 16  ;;  %v5695_v37 = vld [vmem:[%s8066_s9 + $0x34] sm:$0x1] }
  0xe2   : > { %6508 = vmatpush3.bf16.msra.mxu1 %v6799_v42  ;;  %5050 = vmatmul.mubr.bf16.gmra.mrb[84].mxu0 %v5681_v14  ;;  %v2136_v61 = vrot.slane %v2135_v43, 4  ;;  %v2160_v45 = vshll.u32 %v5694_v46, 16  ;;  %v5676_v59 = vrot.slane %v8228_v23, 9  ;;  %v2006_v11 = vrot.slane %v8231_v62, 5  ;;  %v6816_v30 = vld [vmem:[%s8776_s3 + $0x670] sm:$0xff]  }
  0xe3   : > { %6509 = vmatprep.subr.bf16.mxu1 %v6803_v35  ;;  %6460 = vmatpush3.bf16.msra.mxu0 %v6804_v0  ;;  %v2127_v42 = vsel %vm7074_vm4, %v2122_v44, %v2126_v49  ;;  %v5677_v5 = vrot.slane %v8234_v38, 9  ;;  %v2010_v12 = vrot.slane %v8237_v29, 5  ;;  %v5712_v62 = vrot.slane %v5692_v60, 9  ;;  %v6814_v0 = vld [vmem:[%s8776_s3 + $0x628] sm:$0xff]  }
  0xe4   : > { %6461 = vmatprep.subr.bf16.mxu0 %v6805_v53  ;;  %5114 = vmatprep.mubr.bf16.mxu1 %v5717_v40  ;;  %v2141_v7 = vsel %vm7074_vm4, %v2136_v61, %v2140_v51  ;;  %v2007_v50 = vsel %vm7090_vm5, %v5676_v59, %v2006_v11  ;;  %v2244_v38 = vrot.slane %v5693_v58, 5  ;;  %v5713_v24 = vrot.slane %v5694_v46, 9  ;;  %v6817_v46 = vld [vmem:[%s8776_s3 + $0x6a8] sm:$0xff]   ;;  %v5699_v61 = vld [vmem:[%s8066_s9 + $0x44] sm:$0x1] }
  0xe5   : > { %v5705_v23 = vcombine.low %v2127_v42, %v2141_v7  ;;  %5057 = vmatprep.mubr.bf16.mxu0 %v5702_v8  ;;  %v2011_v19 = vsel %vm7090_vm5, %v5677_v5, %v2010_v12  ;;  %v2248_v15 = vrot.slane %v5695_v37, 5  ;;  %v2148_v28 = vrot.slane %v2146_v21, 5  ;;  %v6819_v12 = vld [vmem:[%s8776_s3 + $0x678] sm:$0xff]  }
  0xe6   : > { %6510 = vmatpush3.bf16.msra.mxu1 %v6803_v35  ;;  %v5682_v29 = vcombine.low %v2007_v50, %v2011_v19  ;;  %v2145_v35 = vrot.slane %v2143_v34, 4  ;;  %v2245_v3 = vsel %vm7090_vm5, %v5712_v62, %v2244_v38  ;;  %v2152_v57 = vshll.u32 %v5693_v58, 16  ;;  %v6821_v38 = vld [vmem:[%s8776_s3 + $0x638] sm:$0xff]  }
  0xe7   : > { %6511 = vmatprep.subr.bf16.mxu1 %v6806_v47  ;;  %6462 = vmatpush3.bf16.msra.mxu0 %v6807_v13  ;;  %v2159_v39 = vrot.slane %v2157_v22, 4  ;;  %v2249_v32 = vsel %vm7090_vm5, %v5713_v24, %v2248_v15  ;;  %v2162_v26 = vrot.slane %v2160_v45, 5  ;;  %v2166_v33 = vshll.u32 %v5695_v37, 16  ;;  %v6818_v22 = vld [vmem:[%s8776_s3 + $0x630] sm:$0xff]  }
  0xe8   : > { %6463 = vmatprep.subr.bf16.mxu0 %v6809_v55  ;;  %v5718_v54 = vcombine.low %v2245_v3, %v2249_v32  ;;  %v2149_v14 = vor.u32 %v2148_v28, %v2145_v35  ;;  %v2154_v18 = vrot.slane %v2152_v57, 5  ;;  %v5678_v36 = vrot.slane %v8296_v27, 9  ;;  %v6820_v37 = vld [vmem:[%s8776_s3 + $0x6b0] sm:$0xff]   ;;  %v8496_v3 = vld [vmem:[%s8066_s9 + $0x18] sm:$0xf] }
  0xe9   : > { %5115 = vmatmul.mubr.bf16.gmra.mrb[84].mxu1 %v5705_v23  ;;  %v2163_v31 = vor.u32 %v2162_v26, %v2159_v39  ;;  %v2168_v9 = vrot.slane %v2166_v33, 5  ;;  %v5703_v53 = vcombine.low %v5696_v16, %v5698_v56  ;;  %v2171_v63 = vshrl.u32 %v5696_v16, 16  ;;  %v8492_v15 = vld [vmem:[%s8066_s9 + $0x10] sm:$0xf]  ;;  %v5721_v35 = vld [vmem:[%s8066_s9 + $0x14] sm:$0x1] }
  0xea   : > { %6512 = vmatpush3.bf16.msra.mxu1 %v6806_v47  ;;  %5058 = vmatmul.mubr.bf16.gmra.mrb[88].mxu0 %v5682_v29  ;;  %v2150_v48 = vrot.slane %v2149_v14, 4  ;;  %v2174_v41 = vshll.u32 %v5696_v16, 16  ;;  %v2185_v40 = vshrl.u32 %v5698_v56, 16  ;;  %v2188_v49 = vshll.u32 %v5698_v56, 16  ;;  %v5723_v28 = vld [vmem:[%s8066_s9 + $0x1c] sm:$0x1] }
  0xeb   : > { %6513 = vmatprep.subr.bf16.mxu1 %v6810_v10  ;;  %6464 = vmatpush3.bf16.msra.mxu0 %v6811_v20  ;;  %v2164_v47 = vrot.slane %v2163_v31, 4  ;;  %v2014_v43 = vrot.slane %v8302_v6, 5  ;;  %v5679_v13 = vrot.slane %v8305_v2, 9  ;;  %v2018_v44 = vrot.slane %v8309_v4, 5  ;;  %v5697_v6 = vld [vmem:[%s8066_s9 + $0x3c] sm:$0x1] }
  0xec   : > { %6465 = vmatprep.subr.bf16.mxu0 %v6812_v25  ;;  %5122 = vmatprep.mubr.bf16.mxu1 %v5718_v54  ;;  %v2155_v27 = vsel %vm7074_vm4, %v2150_v48, %v2154_v18  ;;  %v5714_v8 = vrot.slane %v5696_v16, 9  ;;  %v2252_v21 = vrot.slane %v5697_v6, 5  ;;  %v5715_v4 = vrot.slane %v5698_v56, 9  ;;  %v6823_v33 = vld [vmem:[%s8776_s3 + $0x6b8] sm:$0xff]   ;;  %v8513_v48 = vld [vmem:[%s8066_s9 + $0x20] sm:$0xf] }
  0xed   : > { %5065 = vmatprep.mubr.bf16.mxu0 %v5703_v53  ;;  %v2169_v51 = vsel %vm7074_vm4, %v2164_v47, %v2168_v9  ;;  %v2015_v60 = vsel %vm7090_vm5, %v5678_v36, %v2014_v43  ;;  %v2019_v2 = vsel %vm7090_vm5, %v5679_v13, %v2018_v44  ;;  %v2256_v42 = vrot.slane %v5699_v61, 5 }
  0xee   : > { %6514 = vmatpush3.bf16.msra.mxu1 %v6810_v10  ;;  %v5706_v34 = vcombine.low %v2155_v27, %v2169_v51  ;;  %v5683_v55 = vcombine.low %v2015_v60, %v2019_v2  ;;  %v2173_v45 = vrot.slane %v2171_v63, 4  ;;  %v2176_v59 = vrot.slane %v2174_v41, 5  ;;  %v8525_v51 = vld [vmem:[%s8066_s9 + $0x28] sm:$0xf] }
  0xef   : > { %6515 = vmatprep.subr.bf16.mxu1 %v6813_v17  ;;  %6466 = vmatpush3.bf16.msra.mxu0 %v6814_v0  ;;  %v2253_v10 = vsel %vm7090_vm5, %v5714_v8, %v2252_v21  ;;  %v2180_v7 = vshll.u32 %v5697_v6, 16  ;;  %v2187_v11 = vrot.slane %v2185_v40, 4  ;;  %v2190_v5 = vrot.slane %v2188_v49, 5  ;;  %v5725_v40 = vld [vmem:[%s8066_s9 + $0x24] sm:$0x1] }
  0xf0   : > { %6467 = vmatprep.subr.bf16.mxu0 %v6816_v30  ;;  %v2257_v20 = vsel %vm7090_vm5, %v5715_v4, %v2256_v42  ;;  %v2177_v23 = vor.u32 %v2176_v59, %v2173_v45  ;;  %v2194_v58 = vshll.u32 %v5699_v61, 16  ;;  %v2325_v57 = vshrl.u32 %v8492_v15, 16  ;;  %v5727_v6 = vld [vmem:[%s8066_s9 + $0x2c] sm:$0x1] }
  0xf1   : > { %5123 = vmatmul.mubr.bf16.gmra.mrb[88].mxu1 %v5706_v34  ;;  %v5719_v50 = vcombine.low %v2253_v10, %v2257_v20  ;;  %v2182_v19 = vrot.slane %v2180_v7, 5  ;;  %v2191_v62 = vor.u32 %v2190_v5, %v2187_v11  ;;  %v2334_v32 = vshll.u32 %v5721_v35, 16  ;;  %v8547_v20 = vld [vmem:[%s8066_s9 + $0x30] sm:$0xf] }
  0xf2   : > { %6516 = vmatpush3.bf16.msra.mxu1 %v6813_v17  ;;  %5066 = vmatmul.mubr.bf16.gmra.mrb[92].mxu0 %v5683_v55  ;;  %v2178_v29 = vrot.slane %v2177_v23, 4  ;;  %v2196_v24 = vrot.slane %v2194_v58, 5  ;;  %v2328_v17 = vshll.u32 %v8492_v15, 16  ;;  %v2339_v26 = vshrl.u32 %v8496_v3, 16 }
  0xf3   : > { %6517 = vmatprep.subr.bf16.mxu1 %v6817_v46  ;;  %6468 = vmatpush3.bf16.msra.mxu0 %v6818_v22  ;;  %v2192_v25 = vrot.slane %v2191_v62, 4  ;;  %v2327_v14 = vrot.slane %v2325_v57, 4  ;;  %v2342_v18 = vshll.u32 %v8496_v3, 16  ;;  %v2348_v0 = vshll.u32 %v5723_v28, 16  ;;  %v8556_v62 = vld [vmem:[%s8066_s9 + $0x38] sm:$0xf] }
  0xf4   : > { %6469 = vmatprep.subr.bf16.mxu0 %v6819_v12  ;;  %5130 = vmatprep.mubr.bf16.mxu1 %v5719_v50  ;;  %v2183_v39 = vsel %vm7074_vm4, %v2178_v29, %v2182_v19  ;;  %v2330_v16 = vrot.slane %v2328_v17, 5  ;;  %v2336_v56 = vrot.slane %v2334_v32, 5  ;;  %v2341_v36 = vrot.slane %v2339_v26, 4  ;;  %v8553_v19 = vld [vmem:[%s8066_s9 + $0x34] sm:$0x1] }
  0xf5   : > { %v2197_v54 = vsel %vm7074_vm4, %v2192_v25, %v2196_v24  ;;  %v2344_v63 = vrot.slane %v2342_v18, 5  ;;  %v2350_v41 = vrot.slane %v2348_v0, 5  ;;  %v5736_v30 = vcombine.low %v8492_v15, %v8496_v3 }
  0xf6   : > { %6518 = vmatpush3.bf16.msra.mxu1 %v6817_v46  ;;  %v5707_v9 = vcombine.low %v2183_v39, %v2197_v54  ;;  %v5744_v47 = vrot.slane %v8492_v15, 9  ;;  %v2331_v43 = vor.u32 %v2330_v16, %v2327_v14  ;;  %v2466_v27 = vrot.slane %v5721_v35, 5  ;;  %v8560_v35 = vld [vmem:[%s8066_s9 + $0x3c] sm:$0x1] }
  0xf7   : > { %6519 = vmatprep.subr.bf16.mxu1 %v6820_v37  ;;  %6470 = vmatpush3.bf16.msra.mxu0 %v6821_v38  ;;  %v5745_v13 = vrot.slane %v8496_v3, 9  ;;  %v2470_v44 = vrot.slane %v5723_v28, 5  ;;  %v2345_v46 = vor.u32 %v2344_v63, %v2341_v36  ;;  %v5746_v61 = vrot.slane %v8513_v48, 9 }
  0xf8   : > { %v2474_v8 = vrot.slane %v5725_v40, 5  ;;  %v5747_v34 = vrot.slane %v8525_v51, 9  ;;  %v2332_v21 = vrot.slane %v2331_v43, 4  ;;  %v2467_v4 = vsel %vm7090_vm5, %v5744_v47, %v2466_v27 }
  0xf9   : > { %5131 = vmatmul.mubr.bf16.gmra.mrb[92].mxu1 %v5707_v9  ;;  %v2471_v55 = vsel %vm7090_vm5, %v5745_v13, %v2470_v44  ;;  %v2478_v42 = vrot.slane %v5727_v6, 5  ;;  %v2346_v22 = vrot.slane %v2345_v46, 4  ;;  %v2353_v10 = vshrl.u32 %v8513_v48, 16 }
  0xfa   : > { %6520 = vmatpush3.bf16.msra.mxu1 %v6820_v37  ;;  %v5752_v45 = vcombine.low %v2467_v4, %v2471_v55  ;;  %v2475_v59 = vsel %vm7090_vm5, %v5746_v61, %v2474_v8  ;;  %v2337_v7 = vsel %vm7074_vm4, %v2332_v21, %v2336_v56  ;;  %v2356_v5 = vshll.u32 %v8513_v48, 16  ;;  %v8593_v8 = vld [vmem:[%s8777_s4] ss:$0 sm:$0xff] }
  0xfb   : > { %6521 = vmatprep.subr.bf16.mxu1 %v6823_v33  ;;  %v2479_v11 = vsel %vm7090_vm5, %v5747_v34, %v2478_v42  ;;  %v2362_v12 = vshll.u32 %v5725_v40, 16  ;;  %v2351_v23 = vsel %vm7074_vm4, %v2346_v22, %v2350_v41  ;;  %v2355_v37 = vrot.slane %v2353_v10, 4 }
  0xfc   : > { %6523 = vmatprep.mubr.bf16.mxu1 %v5752_v45  ;;  %v5753_v58 = vcombine.low %v2475_v59, %v2479_v11  ;;  %v2367_v50 = vshrl.u32 %v8525_v51, 16  ;;  %v5740_v38 = vcombine.low %v2337_v7, %v2351_v23  ;;  %v2358_v29 = vrot.slane %v2356_v5, 5  ;;  %v8603_v45 = vld [vmem:[%s8066_s9 + $0x40] sm:$0xf]  ;;  %v5733_v59 = vld [vmem:[%s8066_s9 + $0x44] sm:$0x1] }
  0xfd   : > { %v8510_v31 = vpop.f32.mrb[0].mxu0  ;;  %v2364_v24 = vrot.slane %v2362_v12, 5  ;;  %v2370_v15 = vshll.u32 %v8525_v51, 16  ;;  %v2376_v28 = vshll.u32 %v5727_v6, 16  ;;  %v5737_v57 = vcombine.low %v8513_v48, %v8525_v51 }
  0xfe   : > { %v8515_v53 = vpop.f32.mrb[1].mxu0  ;;  %6522 = vmatpush3.bf16.msra.mxu1 %v6823_v33  ;;  %v2369_v3 = vrot.slane %v2367_v50, 4  ;;  %v2381_v39 = vshrl.u32 %v8547_v20, 16  ;;  %5171 = vmatprep.mubr.bf16.mxu0 %v5740_v38  ;;  %v2359_v26 = vor.u32 %v2358_v29, %v2355_v37  ;;  %v2384_v54 = vshll.u32 %v8547_v20, 16 }
  0xff   : > { %v8521_v49 = vpop.f32.mrb[2].mxu0  ;;  %v8527_v60 = vpop.f32.mrb[0].mxu1  ;;  %v2372_v33 = vrot.slane %v2370_v15, 5  ;;  %v2390_v14 = vshll.u32 %v8553_v19, 16  ;;  %5172 = vmatmul.mubr.bf16.vlgmr.msra.gmra.mrb[96].mxu0 %v5736_v30  ;;  %v2378_v9 = vrot.slane %v2376_v28, 5  ;;  %v2395_v56 = vshrl.u32 %v8556_v62, 16 }
 0x100   : > { %v8532_v2 = vpop.f32.mrb[3].mxu0  ;;  %v8562_v25 = vpop.f32.mrb[1].mxu1  ;;  %v2383_v16 = vrot.slane %v2381_v39, 4  ;;  %v2398_v36 = vshll.u32 %v8556_v62, 16  ;;  %v2360_v47 = vrot.slane %v2359_v26, 4  ;;  %v2386_v43 = vrot.slane %v2384_v54, 5 }
 0x101   : > { %v8567_v17 = vpop.f32.mrb[2].mxu1  ;;  %6524 = vmatmul.mubr.bf16.vlgmr.msra.gmra.mrb[96].mxu1 %v5753_v58  ;;  %v2373_v40 = vor.u32 %v2372_v33, %v2369_v3  ;;  %v2392_v27 = vrot.slane %v2390_v14, 5  ;;  %v2397_v30 = vrot.slane %v2395_v56, 4  ;;  %v2404_v6 = vshll.u32 %v8560_v35, 16  ;;  %v8622_v15 = vld [vmem:[%s8066_s9 + $0x4c] sm:$0x1] }
 0x102   : > { %v8573_v18 = vpop.f32.mrb[3].mxu1  ;;  %v2400_v46 = vrot.slane %v2398_v36, 5  ;;  %v5738_v61 = vcombine.low %v8547_v20, %v8556_v62  ;;  %v2365_v4 = vsel %vm7074_vm4, %v2360_v47, %v2364_v24  ;;  %v2387_v42 = vor.u32 %v2386_v43, %v2383_v16 }
 0x103   : > { %v2374_v55 = vrot.slane %v2373_v40, 4  ;;  %v5748_v22 = vrot.slane %v8547_v20, 9  ;;  %v2406_v5 = vrot.slane %v2404_v6, 5  ;;  %v2482_v12 = vrot.slane %v8553_v19, 5 }
 0x104   : > { %v2401_v11 = vor.u32 %v2400_v46, %v2397_v30  ;;  %v5749_v23 = vrot.slane %v8556_v62, 9  ;;  %v2388_v38 = vrot.slane %v2387_v42, 4  ;;  %v2486_v29 = vrot.slane %v8560_v35, 5 }
 0x105   : > { %v2379_v50 = vsel %vm7074_vm4, %v2374_v55, %v2378_v9  ;;  %v5993_v24 = vadd.f32 %v8515_v53, %v8510_v31  ;;  %v2483_v26 = vsel %vm7090_vm5, %v5748_v22, %v2482_v12  ;;  %v5750_v33 = vrot.slane %v8603_v45, 9  ;;  %v8641_v9 = vld [vmem:[%s8066_s9 + $0x48] sm:$0xf]  ;;  %s5477_s9 = sshll.u32 %s8802_s18, 3 }
 0x106   : > { %v5741_v28 = vcombine.low %v2365_v4, %v2379_v50  ;;  %v2402_v39 = vrot.slane %v2401_v11, 4  ;;  %v2393_v31 = vsel %vm7074_vm4, %v2388_v38, %v2392_v27  ;;  %v2487_v53 = vsel %vm7090_vm5, %v5749_v23, %v2486_v29  ;;  %s357_s26 = sadd.s32 %s5478_s25, %s5477_s9 }
 0x107   : > { %v8569_v32 = vpop.f32.mrb[4].mxu0  ;;  %v8581_v41 = vpop.f32.mrb[4].mxu1  ;;  %v4394_v35 = vadd.f32 %v5993_v24, %v8593_v8  ;;  %v2490_v16 = vrot.slane %v5733_v59, 5  ;;  %v5754_v40 = vcombine.low %v2483_v26, %v2487_v53  ;;  %v5751_v43 = vrot.slane %v8641_v9, 9  ;;  %s5479_s28 = sshll.u32 %s357_s26, 3 }
 0x108   : > { %v8575_v0 = vpop.f32.mrb[5].mxu0  ;;  %v8585_v44 = vpop.f32.mrb[5].mxu1  ;;  %5179 = vmatprep.mubr.bf16.mxu0 %v5741_v28  ;;  %v2407_v47 = vsel %vm7074_vm4, %v2402_v39, %v2406_v5  ;;  %v2494_v27 = vrot.slane %v8622_v15, 5  ;;  %v5996_v55 = vadd.f32 %v8532_v2, %v8521_v49  ;;  %v6033_v42 = vadd.f32 %v8562_v25, %v8527_v60  ;;  %s8743_s19 = scalar_lea.vmem %s8778_s5, %s5479_s28 }
 0x109   : > { %v8579_v63 = vpop.f32.mrb[6].mxu0  ;;  %v8595_v34 = vpop.f32.mrb[6].mxu1  ;;  %5180 = vmatmul.mubr.bf16.gmra.mrb[100].mxu0 %v5737_v57  ;;  %v5742_v6 = vcombine.low %v2393_v31, %v2407_v47  ;;  %v2491_v4 = vsel %vm7090_vm5, %v5750_v33, %v2490_v16  ;;  %6527 = vmatprep.mubr.bf16.mxu1 %v5754_v40  ;;  %v2409_v48 = vshrl.u32 %v8603_v45, 16  ;;  %v2412_v51 = vshll.u32 %v8603_v45, 16 }
 0x10a   : > { %v8583_v13 = vpop.f32.mrb[7].mxu0  ;;  %v8606_v10 = vpop.f32.mrb[7].mxu1  ;;  %v2495_v5 = vsel %vm7090_vm5, %v5751_v43, %v2494_v27  ;;  %v2418_v57 = vshll.u32 %v5733_v59, 16  ;;  %v4397_v2 = vadd.f32 %v5996_v55, %v8593_v8  ;;  %v8673_v60 = vadd.f32 %v6033_v42, %v4394_v35 }
 0x10b   : > { %5187 = vmatprep.mubr.bf16.mxu0 %v5742_v6  ;;  %v5755_v49 = vcombine.low %v2491_v4, %v2495_v5  ;;  %v2423_v25 = vshrl.u32 %v8641_v9, 16  ;;  %v2411_v29 = vrot.slane %v2409_v48, 4  ;;  %v2414_v1 = vrot.slane %v2412_v51, 5 }
 0x10c   : > { %v2420_v24 = vrot.slane %v2418_v57, 5  ;;  %v2426_v28 = vshll.u32 %v8641_v9, 16  ;;  %v2432_v33 = vshll.u32 %v8622_v15, 16  ;;  %v6036_v31 = vadd.f32 %v8573_v18, %v8567_v17 }
 0x10d   : > { %6528 = vmatmul.mubr.bf16.gmra.mrb[100].mxu1 %v5755_v49  ;;  %v2425_v59 = vrot.slane %v2423_v25, 4  ;;  %v5739_v53 = vcombine.low %v8603_v45, %v8641_v9  ;;  %v2415_v47 = vor.u32 %v2414_v1, %v2411_v29  ;;  %v5999_v43 = vadd.f32 %v8575_v0, %v8569_v32 }
 0x10e   : > { %v2428_v40 = vrot.slane %v2426_v28, 5  ;;  %v6002_v27 = vadd.f32 %v8583_v13, %v8579_v63  ;;  %v2434_v55 = vrot.slane %v2432_v33, 5  ;;  %v4462_v15 = vadd.f32 %v6036_v31, %v4397_v2 }
 0x10f   : > { %v8597_v21 = vpop.f32.mrb[8].mxu0  ;;  %v8614_v37 = vpop.f32.mrb[8].mxu1  ;;  %v6039_v17 = vadd.f32 %v8585_v44, %v8581_v41  ;;  %v6042_v18 = vadd.f32 %v8606_v10, %v8595_v34  ;;  %v2416_v48 = vrot.slane %v2415_v47, 4  ;;  %v4402_v57 = vadd.f32 %v5999_v43, %v8593_v8 }
 0x110   : > { %v8608_v7 = vpop.f32.mrb[9].mxu0  ;;  %v8626_v19 = vpop.f32.mrb[9].mxu1  ;;  %v2429_v51 = vor.u32 %v2428_v40, %v2425_v59  ;;  %v4405_v32 = vadd.f32 %v6002_v27, %v8593_v8 }
 0x111   : > { %v8612_v58 = vpop.f32.mrb[10].mxu0  ;;  %v8631_v54 = vpop.f32.mrb[10].mxu1  ;;  %5188 = vmatmul.mubr.bf16.gmra.mrb[104].mxu0 %v5738_v61  ;;  %v6005_v41 = vadd.f32 %v8608_v7, %v8597_v21  ;;  %v6045_v44 = vadd.f32 %v8626_v19, %v8614_v37  ;;  %v2421_v2 = vsel %vm7074_vm4, %v2416_v48, %v2420_v24  ;;  %v4467_v20 = vadd.f32 %v6039_v17, %v4402_v57 }
 0x112   : > { %v8624_v3 = vpop.f32.mrb[11].mxu0  ;;  %v8643_v56 = vpop.f32.mrb[11].mxu1  ;;  %v2430_v25 = vrot.slane %v2429_v51, 4  ;;  %v4470_v62 = vadd.f32 %v6042_v18, %v4405_v32 }
 0x113   : > { %v6008_v13 = vadd.f32 %v8624_v3, %v8612_v58  ;;  %v6048_v34 = vadd.f32 %v8643_v56, %v8631_v54  ;;  %v4410_v21 = vadd.f32 %v6005_v41, %v8593_v8 }
 0x114   : > { %v2435_v54 = vsel %vm7074_vm4, %v2430_v25, %v2434_v55 }
 0x115   : > { %v4413_v7 = vadd.f32 %v6008_v13, %v8593_v8  ;;  %v5743_v33 = vcombine.low %v2421_v2, %v2435_v54  ;;  %v4475_v31 = vadd.f32 %v6045_v44, %v4410_v21 }
 0x117   : > { %v8633_v14 = vpop.f32.mrb[12].mxu0  ;;  %v8653_v46 = vpop.f32.mrb[12].mxu1  ;;  %v4478_v47 = vadd.f32 %v6048_v34, %v4413_v7  ;;  %5195 = vmatprep.mubr.bf16.mxu0 %v5743_v33 }
 0x118   : > { %v8645_v36 = vpop.f32.mrb[13].mxu0  ;;  %v8666_v11 = vpop.f32.mrb[13].mxu1 }
 0x119   : > { %v8651_v30 = vpop.f32.mrb[14].mxu0  ;;  %v6052_v12 = vpop.f32.mrb[14].mxu1  ;;  %v6011_v58 = vadd.f32 %v8645_v36, %v8633_v14  ;;  %v6051_v56 = vadd.f32 %v8666_v11, %v8653_v46  ;;  %5196 = vmatmul.mubr.bf16.gmra.mrb[108].mxu0 %v5739_v53 }
 0x11a   : > { %v8664_v22 = vpop.f32.mrb[15].mxu0  ;;  %v6053_v50 = vpop.f32.mrb[15].mxu1 }
 0x11b   : > { %v6014_v37 = vadd.f32 %v8664_v22, %v8651_v30  ;;  %v6054_v1 = vadd.f32 %v6053_v50, %v6052_v12  ;;  %v4418_v14 = vadd.f32 %v6011_v58, %v8593_v8 }
 0x11d   : > { %v4421_v30 = vadd.f32 %v6014_v37, %v8593_v8  ;;  %v4483_v46 = vadd.f32 %v6051_v56, %v4418_v14 }
 0x11f   : > { %v6071_v23 = vpop.f32.mrb[16].mxu0  ;;  %v4486_v17 = vadd.f32 %v6054_v1, %v4421_v30 }
 0x120   : > { %v6072_v38 = vpop.f32.mrb[17].mxu0 }
 0x121   : > { %v6074_v39 = vpop.f32.mrb[18].mxu0  ;;  %v6073_v24 = vadd.f32 %v6072_v38, %v6071_v23 }
 0x122   : > { %v6111_v26 = vpop.f32.mrb[16].mxu1  ;;  %v6075_v35 = vpop.f32.mrb[19].mxu0 }
 0x123   : > { %v6112_v16 = vpop.f32.mrb[17].mxu1  ;;  %v4524_v22 = vadd.f32 %v6073_v24, %v8673_v60  ;;  %v6076_v52 = vadd.f32 %v6075_v35, %v6074_v39 }
 0x124   : > { %v6114_v6 = vpop.f32.mrb[18].mxu1  ;;  %v6113_v43 = vadd.f32 %v6112_v16, %v6111_v26 }
 0x125   : > { %v6115_v42 = vpop.f32.mrb[19].mxu1  ;;  %v4527_v18 = vadd.f32 %v6076_v52, %v4462_v15 }
 0x126   : > { %v6116_v11 = vadd.f32 %v6115_v42, %v6114_v6  ;;  %v4589_v48 = vadd.f32 %v6113_v43, %v4524_v22 }
 0x127   : > { %v6077_v4 = vpop.f32.mrb[20].mxu0 }
 0x128   : > { %v6078_v5 = vpop.f32.mrb[21].mxu0  ;;  %v4592_v6 = vadd.f32 %v6116_v11, %v4527_v18 }
 0x129   : > { %v6080_v0 = vpop.f32.mrb[22].mxu0  ;;  %v6079_v12 = vadd.f32 %v6078_v5, %v6077_v4 }
 0x12a   : > { %v6081_v10 = vpop.f32.mrb[23].mxu0 }
 0x12b   : > { %v6082_v23 = vadd.f32 %v6081_v10, %v6080_v0  ;;  %v4532_v8 = vadd.f32 %v6079_v12, %v4467_v20 }
 0x12d   : > { %v4535_v60 = vadd.f32 %v6082_v23, %v4470_v62 }
 0x12e   : > { %v6117_v63 = vpop.f32.mrb[20].mxu1 }
 0x12f   : > { %v6118_v49 = vpop.f32.mrb[21].mxu1  ;;  %v6083_v29 = vpop.f32.mrb[24].mxu0 }
 0x130   : > { %v6120_v61 = vpop.f32.mrb[22].mxu1  ;;  %v6084_v19 = vpop.f32.mrb[25].mxu0  ;;  %v6119_v51 = vadd.f32 %v6118_v49, %v6117_v63 }
 0x131   : > { %v6121_v3 = vpop.f32.mrb[23].mxu1  ;;  %v6086_v28 = vpop.f32.mrb[26].mxu0  ;;  %v6085_v26 = vadd.f32 %v6084_v19, %v6083_v29 }
 0x132   : > { %v6087_v36 = vpop.f32.mrb[27].mxu0  ;;  %v6122_v39 = vadd.f32 %v6121_v3, %v6120_v61  ;;  %v4597_v41 = vadd.f32 %v6119_v51, %v4532_v8 }
 0x133   : > { %v6088_v4 = vadd.f32 %v6087_v36, %v6086_v28  ;;  %v4540_v13 = vadd.f32 %v6085_v26, %v4475_v31 }
 0x134   : > { %v4600_v63 = vadd.f32 %v6122_v39, %v4535_v60 }
 0x135   : > { %v4543_v45 = vadd.f32 %v6088_v4, %v4478_v47 }
 0x136   : > { %v6123_v59 = vpop.f32.mrb[24].mxu1 }
 0x137   : > { %v6124_v40 = vpop.f32.mrb[25].mxu1 }
 0x138   : > { %v6126_v27 = vpop.f32.mrb[26].mxu1  ;;  %v6125_v42 = vadd.f32 %v6124_v40, %v6123_v59 }
 0x139   : > { %v6089_v55 = vpop.f32.mrb[28].mxu0  ;;  %v6127_v50 = vpop.f32.mrb[27].mxu1 }
 0x13a   : > { %v6090_v38 = vpop.f32.mrb[29].mxu0  ;;  %v6128_v5 = vadd.f32 %v6127_v50, %v6126_v27  ;;  %v4605_v20 = vadd.f32 %v6125_v42, %v4540_v13 }
 0x13b   : > { %v6092_v57 = vpop.f32.mrb[30].mxu0  ;;  %v6091_v44 = vadd.f32 %v6090_v38, %v6089_v55 }
 0x13c   : > { %v6093_v35 = vpop.f32.mrb[31].mxu0  ;;  %v4608_v7 = vadd.f32 %v6128_v5, %v4543_v45 }
 0x13d   : > { %v6094_v9 = vadd.f32 %v6093_v35, %v6092_v57  ;;  %v4548_v62 = vadd.f32 %v6091_v44, %v4483_v46 }
 0x13f   : > { %v4551_v58 = vadd.f32 %v6094_v9, %v4486_v17 }
 0x140   : > { %v6129_v32 = vpop.f32.mrb[28].mxu1 }
 0x141   : > { %v6130_v16 = vpop.f32.mrb[29].mxu1  ;;  %v6151_v15 = vpop.f32.mrb[32].mxu0 }
 0x142   : > { %v6132_v0 = vpop.f32.mrb[30].mxu1  ;;  %v6152_v10 = vpop.f32.mrb[33].mxu0  ;;  %v6131_v53 = vadd.f32 %v6130_v16, %v6129_v32 }
 0x143   : > { %v6133_v34 = vpop.f32.mrb[31].mxu1  ;;  %v6154_v2 = vpop.f32.mrb[34].mxu0  ;;  %v6153_v61 = vadd.f32 %v6152_v10, %v6151_v15 }
 0x144   : > { %v6134_v49 = vadd.f32 %v6133_v34, %v6132_v0  ;;  %v6155_v29 = vpop.f32.mrb[35].mxu0  ;;  %v4613_v56 = vadd.f32 %v6131_v53, %v4548_v62 }
 0x145   : > { %v6156_v37 = vadd.f32 %v6155_v29, %v6154_v2  ;;  %v4654_v1 = vadd.f32 %v6153_v61, %v4589_v48 }
 0x146   : > { %v4616_v59 = vadd.f32 %v6134_v49, %v4551_v58 }
 0x147   : > { %v4657_v33 = vadd.f32 %v6156_v37, %v4592_v6 }
 0x148   : > { %v6191_v25 = vpop.f32.mrb[32].mxu1 }
 0x149   : > { %v6192_v21 = vpop.f32.mrb[33].mxu1  ;;  %v6157_v54 = vpop.f32.mrb[36].mxu0 }
 0x14a   : > { %v6193_v3 = vadd.f32 %v6192_v21, %v6191_v25  ;;  %v6194_v19 = vpop.f32.mrb[34].mxu1  ;;  %v6158_v28 = vpop.f32.mrb[37].mxu0 }
 0x14b   : > { %v6195_v24 = vpop.f32.mrb[35].mxu1  ;;  %v6159_v47 = vadd.f32 %v6158_v28, %v6157_v54  ;;  %v6160_v14 = vpop.f32.mrb[38].mxu0 }
 0x14c   : > { %v6196_v31 = vadd.f32 %v6195_v24, %v6194_v19  ;;  %v4719_v36 = vadd.f32 %v6193_v3, %v4654_v1  ;;  %v6161_v40 = vpop.f32.mrb[39].mxu0 }
 0x14d   : > { %v4662_v22 = vadd.f32 %v6159_v47, %v4597_v41  ;;  %v6162_v43 = vadd.f32 %v6161_v40, %v6160_v14 }
 0x14e   : > { %v4722_v30 = vadd.f32 %v6196_v31, %v4657_v33 }
 0x14f   : > { %v4665_v55 = vadd.f32 %v6162_v43, %v4600_v63 }
 0x150   : > { %v6197_v52 = vpop.f32.mrb[36].mxu1 }
 0x151   : > { %v6198_v27 = vpop.f32.mrb[37].mxu1  ;;  %v6163_v38 = vpop.f32.mrb[40].mxu0 }
 0x152   : > { %v6199_v46 = vadd.f32 %v6198_v27, %v6197_v52  ;;  %v6200_v11 = vpop.f32.mrb[38].mxu1  ;;  %v6164_v17 = vpop.f32.mrb[41].mxu0 }
 0x153   : > { %v6201_v12 = vpop.f32.mrb[39].mxu1  ;;  %v6165_v48 = vadd.f32 %v6164_v17, %v6163_v38  ;;  %v6166_v51 = vpop.f32.mrb[42].mxu0 }
 0x154   : > { %v4727_v23 = vadd.f32 %v6199_v46, %v4662_v22  ;;  %v6202_v50 = vadd.f32 %v6201_v12, %v6200_v11  ;;  %v6167_v57 = vpop.f32.mrb[43].mxu0 }
 0x155   : > { %v4670_v32 = vadd.f32 %v6165_v48, %v4605_v20  ;;  %v6168_v8 = vadd.f32 %v6167_v57, %v6166_v51 }
 0x156   : > { %v4730_v18 = vadd.f32 %v6202_v50, %v4665_v55 }
 0x157   : > { %v4673_v60 = vadd.f32 %v6168_v8, %v4608_v7 }
 0x158   : > { %v6203_v39 = vpop.f32.mrb[40].mxu1 }
 0x159   : > { %v6204_v26 = vpop.f32.mrb[41].mxu1  ;;  %v6169_v4 = vpop.f32.mrb[44].mxu0 }
 0x15a   : > { %v6205_v35 = vadd.f32 %v6204_v26, %v6203_v39  ;;  %v6206_v16 = vpop.f32.mrb[42].mxu1  ;;  %v6170_v0 = vpop.f32.mrb[45].mxu0 }
 0x15b   : > { %v6207_v6 = vpop.f32.mrb[43].mxu1  ;;  %v6171_v15 = vadd.f32 %v6170_v0, %v6169_v4  ;;  %v6172_v41 = vpop.f32.mrb[46].mxu0 }
 0x15c   : > { %v4735_v42 = vadd.f32 %v6205_v35, %v4670_v32  ;;  %v6208_v5 = vadd.f32 %v6207_v6, %v6206_v16  ;;  %v6173_v13 = vpop.f32.mrb[47].mxu0 }
 0x15d   : > { %v4678_v44 = vadd.f32 %v6171_v15, %v4613_v56  ;;  %v6174_v34 = vadd.f32 %v6173_v13, %v6172_v41 }
 0x15e   : > { %v4738_v63 = vadd.f32 %v6208_v5, %v4673_v60 }
 0x15f   : > { %v4681_v10 = vadd.f32 %v6174_v34, %v4616_v59 }
 0x160   : > { %v6209_v45 = vpop.f32.mrb[44].mxu1 }
 0x161   : > { %v6210_v9 = vpop.f32.mrb[45].mxu1 }
 0x162   : > { %v6211_v53 = vadd.f32 %v6210_v9, %v6209_v45  ;;  %v6212_v49 = vpop.f32.mrb[46].mxu1 }
 0x163   : > { %v6213_v2 = vpop.f32.mrb[47].mxu1 }
 0x164   : > { %v4743_v25 = vadd.f32 %v6211_v53, %v4678_v44  ;;  %v6214_v20 = vadd.f32 %v6213_v2, %v6212_v49 }
 0x166   : > { %v4746_v62 = vadd.f32 %v6214_v20, %v4681_v10  ;;  %v6231_v61 = vpop.f32.mrb[48].mxu0 }
 0x167   : > { %v6232_v21 = vpop.f32.mrb[49].mxu0 }
 0x168   : > { %v6271_v29 = vpop.f32.mrb[48].mxu1  ;;  %v6233_v58 = vadd.f32 %v6232_v21, %v6231_v61  ;;  %v6234_v37 = vpop.f32.mrb[50].mxu0 }
 0x169   : > { %v6272_v7 = vpop.f32.mrb[49].mxu1  ;;  %v6235_v54 = vpop.f32.mrb[51].mxu0 }
 0x16a   : > { %v6273_v3 = vadd.f32 %v6272_v7, %v6271_v29  ;;  %v6274_v19 = vpop.f32.mrb[50].mxu1  ;;  %v4784_v1 = vadd.f32 %v6233_v58, %v4719_v36  ;;  %v6236_v24 = vadd.f32 %v6235_v54, %v6234_v37 }
 0x16b   : > { %v6275_v56 = vpop.f32.mrb[51].mxu1 }
 0x16c   : > { %v6276_v28 = vadd.f32 %v6275_v56, %v6274_v19  ;;  %v4787_v59 = vadd.f32 %v6236_v24, %v4722_v30  ;;  %v4849_v33 = vadd.f32 %v6273_v3, %v4784_v1 }
 0x16e   : > { %v4852_v31 = vadd.f32 %v6276_v28, %v4787_v59 }
 0x170   : > { %v6277_v47 = vpop.f32.mrb[52].mxu1 }
 0x171   : > { %v6237_v14 = vpop.f32.mrb[52].mxu0  ;;  %v6278_v40 = vpop.f32.mrb[53].mxu1 }
 0x172   : > { %v6238_v22 = vpop.f32.mrb[53].mxu0  ;;  %v6279_v52 = vadd.f32 %v6278_v40, %v6277_v47  ;;  %v6280_v43 = vpop.f32.mrb[54].mxu1 }
 0x173   : > { %v6239_v27 = vadd.f32 %v6238_v22, %v6237_v14  ;;  %v6240_v55 = vpop.f32.mrb[54].mxu0  ;;  %v6281_v46 = vpop.f32.mrb[55].mxu1 }
 0x174   : > { %v6241_v11 = vpop.f32.mrb[55].mxu0  ;;  %v6282_v12 = vadd.f32 %v6281_v46, %v6280_v43 }
 0x175   : > { %v4792_v50 = vadd.f32 %v6239_v27, %v4727_v23  ;;  %v6242_v38 = vadd.f32 %v6241_v11, %v6240_v55 }
 0x177   : > { %v4795_v17 = vadd.f32 %v6242_v38, %v4730_v18  ;;  %v4857_v36 = vadd.f32 %v6279_v52, %v4792_v50 }
 0x179   : > { %v4860_v48 = vadd.f32 %v6282_v12, %v4795_v17  ;;  %v6243_v30 = vpop.f32.mrb[56].mxu0 }
 0x17a   : > { %v6283_v51 = vpop.f32.mrb[56].mxu1  ;;  %v6244_v32 = vpop.f32.mrb[57].mxu0 }
 0x17b   : > { %v6284_v57 = vpop.f32.mrb[57].mxu1  ;;  %v6245_v39 = vadd.f32 %v6244_v32, %v6243_v30  ;;  %v6246_v26 = vpop.f32.mrb[58].mxu0 }
 0x17c   : > { %v6285_v8 = vadd.f32 %v6284_v57, %v6283_v51  ;;  %v6286_v60 = vpop.f32.mrb[58].mxu1  ;;  %v6247_v16 = vpop.f32.mrb[59].mxu0 }
 0x17d   : > { %v6287_v35 = vpop.f32.mrb[59].mxu1  ;;  %v4800_v4 = vadd.f32 %v6245_v39, %v4735_v42  ;;  %v6248_v5 = vadd.f32 %v6247_v16, %v6246_v26 }
 0x17e   : > { %v6288_v6 = vadd.f32 %v6287_v35, %v6286_v60 }
 0x17f   : > { %v4803_v0 = vadd.f32 %v6248_v5, %v4738_v63  ;;  %v4865_v15 = vadd.f32 %v6285_v8, %v4800_v4 }
 0x181   : > { %v4868_v23 = vadd.f32 %v6288_v6, %v4803_v0  ;;  %v6249_v18 = vpop.f32.mrb[60].mxu0 }
 0x182   : > { %v6289_v41 = vpop.f32.mrb[60].mxu1  ;;  %v6250_v44 = vpop.f32.mrb[61].mxu0 }
 0x183   : > { %v6290_v13 = vpop.f32.mrb[61].mxu1  ;;  %v6251_v45 = vadd.f32 %v6250_v44, %v6249_v18  ;;  %v6252_v9 = vpop.f32.mrb[62].mxu0 }
 0x184   : > { %v6291_v34 = vadd.f32 %v6290_v13, %v6289_v41  ;;  %v6292_v10 = vpop.f32.mrb[62].mxu1  ;;  %v6253_v49 = vpop.f32.mrb[63].mxu0 }
 0x185   : > { %v6293_v53 = vpop.f32.mrb[63].mxu1  ;;  %v4808_v20 = vadd.f32 %v6251_v45, %v4743_v25  ;;  %v6254_v61 = vadd.f32 %v6253_v49, %v6252_v9 }
 0x186   : > { %v6294_v2 = vadd.f32 %v6293_v53, %v6292_v10 }
 0x187   : > { %v4811_v29 = vadd.f32 %v6254_v61, %v4746_v62  ;;  %v4873_v21 = vadd.f32 %v6291_v34, %v4808_v20 }
 0x189   : > { %v4876_v42 = vadd.f32 %v6294_v2, %v4811_v29  ;;  %v6311_v7 = vpop.f32.mrb[64].mxu0 }
 0x18a   : > { %v6312_v63 = vpop.f32.mrb[65].mxu0 }
 0x18b   : > { %v6313_v58 = vadd.f32 %v6312_v63, %v6311_v7  ;;  %v6314_v37 = vpop.f32.mrb[66].mxu0 }
 0x18c   : > { %v6315_v3 = vpop.f32.mrb[67].mxu0 }
 0x18d   : > { %v4914_v19 = vadd.f32 %v6313_v58, %v4849_v33  ;;  %v6316_v54 = vadd.f32 %v6315_v3, %v6314_v37 }
 0x18e   : > { %v6351_v1 = vpop.f32.mrb[64].mxu1 }
 0x18f   : > { %v4917_v56 = vadd.f32 %v6316_v54, %v4852_v31  ;;  %v6352_v24 = vpop.f32.mrb[65].mxu1 }
 0x190   : > { %v6353_v28 = vadd.f32 %v6352_v24, %v6351_v1  ;;  %v6354_v59 = vpop.f32.mrb[66].mxu1 }
 0x191   : > { %v6355_v47 = vpop.f32.mrb[67].mxu1  ;;  %v6317_v14 = vpop.f32.mrb[68].mxu0 }
 0x192   : > { %v4979_v40 = vadd.f32 %v6353_v28, %v4914_v19  ;;  %v6356_v25 = vadd.f32 %v6355_v47, %v6354_v59  ;;  %v6318_v22 = vpop.f32.mrb[69].mxu0 }
 0x193   : > { %v6319_v62 = vadd.f32 %v6318_v22, %v6317_v14  ;;  %v6320_v52 = vpop.f32.mrb[70].mxu0 }
 0x194   : > { %v4982_v43 = vadd.f32 %v6356_v25, %v4917_v56  ;;  %v6321_v27 = vpop.f32.mrb[71].mxu0 }
 0x195   : > { %v4922_v55 = vadd.f32 %v6319_v62, %v4857_v36  ;;  %v6322_v46 = vadd.f32 %v6321_v27, %v6320_v52 }
 0x197   : > { %v4925_v11 = vadd.f32 %v6322_v46, %v4860_v48 }
 0x198   : > { %v6357_v12 = vpop.f32.mrb[68].mxu1 }
 0x199   : > { %v6358_v33 = vpop.f32.mrb[69].mxu1 }
 0x19a   : > { %v6359_v50 = vadd.f32 %v6358_v33, %v6357_v12  ;;  %v6360_v31 = vpop.f32.mrb[70].mxu1 }
 0x19b   : > { %v6361_v38 = vpop.f32.mrb[71].mxu1  ;;  %v6323_v57 = vpop.f32.mrb[72].mxu0 }
 0x19c   : > { %v4987_v17 = vadd.f32 %v6359_v50, %v4922_v55  ;;  %v6362_v51 = vadd.f32 %v6361_v38, %v6360_v31  ;;  %v6324_v32 = vpop.f32.mrb[73].mxu0 }
 0x19d   : > { %v6325_v8 = vadd.f32 %v6324_v32, %v6323_v57  ;;  %v6326_v60 = vpop.f32.mrb[74].mxu0 }
 0x19e   : > { %v4990_v30 = vadd.f32 %v6362_v51, %v4925_v11  ;;  %v6327_v39 = vpop.f32.mrb[75].mxu0 }
 0x19f   : > { %v4930_v26 = vadd.f32 %v6325_v8, %v4865_v15  ;;  %v6328_v35 = vadd.f32 %v6327_v39, %v6326_v60 }
 0x1a1   : > { %v4933_v16 = vadd.f32 %v6328_v35, %v4868_v23  ;;  %v6363_v6 = vpop.f32.mrb[72].mxu1 }
 0x1a2   : > { %v6364_v36 = vpop.f32.mrb[73].mxu1 }
 0x1a3   : > { %v6365_v4 = vadd.f32 %v6364_v36, %v6363_v6  ;;  %v6366_v48 = vpop.f32.mrb[74].mxu1 }
 0x1a4   : > { %v6367_v5 = vpop.f32.mrb[75].mxu1 }
 0x1a5   : > { %v4995_v0 = vadd.f32 %v6365_v4, %v4930_v26  ;;  %v6368_v41 = vadd.f32 %v6367_v5, %v6366_v48  ;;  %v6329_v13 = vpop.f32.mrb[76].mxu0 }
 0x1a6   : > { %v6330_v44 = vpop.f32.mrb[77].mxu0 }
 0x1a7   : > { %v4998_v18 = vadd.f32 %v6368_v41, %v4933_v16  ;;  %v6331_v34 = vadd.f32 %v6330_v44, %v6329_v13  ;;  %v6332_v10 = vpop.f32.mrb[78].mxu0 }
 0x1a8   : > { %v6333_v45 = vpop.f32.mrb[79].mxu0 }
 0x1a9   : > { %v4938_v9 = vadd.f32 %v6331_v34, %v4873_v21  ;;  %v6334_v53 = vadd.f32 %v6333_v45, %v6332_v10 }
 0x1ab   : > { %v4941_v2 = vadd.f32 %v6334_v53, %v4876_v42 }
 0x1ac   : > { %v6369_v49 = vpop.f32.mrb[76].mxu1 }
 0x1ad   : > { %v6370_v15 = vpop.f32.mrb[77].mxu1  ;;  %v6391_v29 = vpop.f32.mrb[80].mxu0 }
 0x1ae   : > { %v6371_v20 = vadd.f32 %v6370_v15, %v6369_v49  ;;  %v6372_v23 = vpop.f32.mrb[78].mxu1  ;;  %v6392_v58 = vpop.f32.mrb[81].mxu0 }
 0x1af   : > { %v6373_v61 = vpop.f32.mrb[79].mxu1  ;;  %v6393_v37 = vadd.f32 %v6392_v58, %v6391_v29  ;;  %v6394_v3 = vpop.f32.mrb[82].mxu0 }
 0x1b0   : > { %v5003_v7 = vadd.f32 %v6371_v20, %v4938_v9  ;;  %v6374_v63 = vadd.f32 %v6373_v61, %v6372_v23  ;;  %v6395_v54 = vpop.f32.mrb[83].mxu0 }
 0x1b1   : > { %v5044_v56 = vadd.f32 %v6393_v37, %v4979_v40  ;;  %v6396_v1 = vadd.f32 %v6395_v54, %v6394_v3 }
 0x1b2   : > { %v5006_v19 = vadd.f32 %v6374_v63, %v4941_v2 }
 0x1b3   : > { %v5047_v28 = vadd.f32 %v6396_v1, %v4982_v43 }
 0x1b4   : > { %v6431_v24 = vpop.f32.mrb[80].mxu1 }
 0x1b5   : > { %v6432_v21 = vpop.f32.mrb[81].mxu1  ;;  %v6397_v22 = vpop.f32.mrb[84].mxu0 }
 0x1b6   : > { %v6433_v59 = vadd.f32 %v6432_v21, %v6431_v24  ;;  %v6434_v47 = vpop.f32.mrb[82].mxu1  ;;  %v6398_v62 = vpop.f32.mrb[85].mxu0 }
 0x1b7   : > { %v6435_v42 = vpop.f32.mrb[83].mxu1  ;;  %v6399_v27 = vadd.f32 %v6398_v62, %v6397_v22  ;;  %v6400_v55 = vpop.f32.mrb[86].mxu0 }
 0x1b8   : > { %v8721_v14 = vadd.f32 %v6433_v59, %v5044_v56  ;;  %v6436_v25 = vadd.f32 %v6435_v42, %v6434_v47  ;;  %v6401_v46 = vpop.f32.mrb[87].mxu0 }
 0x1b9   : > { %v5052_v11 = vadd.f32 %v6399_v27, %v4987_v17  ;;  %v6402_v12 = vadd.f32 %v6401_v46, %v6400_v55 }
 0x1ba   : > { %v8723_v52 = vadd.f32 %v6436_v25, %v5047_v28 }
 0x1bb   : > { %v5055_v40 = vadd.f32 %v6402_v12, %v4990_v30 }
 0x1bc   : > { %v6437_v33 = vpop.f32.mrb[84].mxu1 }
 0x1bd   : > { %v6438_v50 = vpop.f32.mrb[85].mxu1  ;;  %v6403_v38 = vpop.f32.mrb[88].mxu0 }
 0x1be   : > { %v6439_v43 = vadd.f32 %v6438_v50, %v6437_v33  ;;  %v6440_v31 = vpop.f32.mrb[86].mxu1  ;;  %v6404_v57 = vpop.f32.mrb[89].mxu0 }
 0x1bf   : > { %v6441_v51 = vpop.f32.mrb[87].mxu1  ;;  %v6405_v60 = vadd.f32 %v6404_v57, %v6403_v38  ;;  %v6406_v39 = vpop.f32.mrb[90].mxu0 }
 0x1c0   : > { %v8725_v32 = vadd.f32 %v6439_v43, %v5052_v11  ;;  %v6442_v8 = vadd.f32 %v6441_v51, %v6440_v31  ;;  %v6407_v26 = vpop.f32.mrb[91].mxu0 }
 0x1c1   : > { %v5060_v16 = vadd.f32 %v6405_v60, %v4995_v0  ;;  %v6408_v6 = vadd.f32 %v6407_v26, %v6406_v39 }
 0x1c2   : > { %v8727_v35 = vadd.f32 %v6442_v8, %v5055_v40 }
 0x1c3   : > { %v5063_v17 = vadd.f32 %v6408_v6, %v4998_v18 }
 0x1c4   : > { %v6443_v36 = vpop.f32.mrb[88].mxu1 }
 0x1c5   : > { %v6444_v30 = vpop.f32.mrb[89].mxu1  ;;  %v6409_v4 = vpop.f32.mrb[92].mxu0 }
 0x1c6   : > { %v6445_v48 = vadd.f32 %v6444_v30, %v6443_v36  ;;  %v6446_v5 = vpop.f32.mrb[90].mxu1  ;;  %v6410_v41 = vpop.f32.mrb[93].mxu0 }
 0x1c7   : > { %v6447_v13 = vpop.f32.mrb[91].mxu1  ;;  %v6411_v44 = vadd.f32 %v6410_v41, %v6409_v4  ;;  %v6412_v34 = vpop.f32.mrb[94].mxu0 }
 0x1c8   : > { %v8729_v10 = vadd.f32 %v6445_v48, %v5060_v16  ;;  %v6448_v45 = vadd.f32 %v6447_v13, %v6446_v5  ;;  %v6413_v9 = vpop.f32.mrb[95].mxu0 }
 0x1c9   : > { %v5068_v53 = vadd.f32 %v6411_v44, %v5003_v7  ;;  %v6414_v0 = vadd.f32 %v6413_v9, %v6412_v34 }
 0x1ca   : > { %v5128_v49 = vadd.f32 %v6448_v45, %v5063_v17 }
 0x1cb   : > { %v5071_v18 = vadd.f32 %v6414_v0, %v5006_v19 }
 0x1cc   : > { %v6449_v2 = vpop.f32.mrb[92].mxu1 }
 0x1cd   : > { %v6450_v15 = vpop.f32.mrb[93].mxu1 }
 0x1ce   : > { %v6451_v20 = vadd.f32 %v6450_v15, %v6449_v2  ;;  %v6452_v23 = vpop.f32.mrb[94].mxu1 }
 0x1cf   : > { %v6453_v61 = vpop.f32.mrb[95].mxu1 }
 0x1d0   : > { %v8733_v29 = vadd.f32 %v6451_v20, %v5068_v53  ;;  %v6454_v63 = vadd.f32 %v6453_v61, %v6452_v23 }
 0x1d2   : > { %v8735_v58 = vadd.f32 %v6454_v63, %v5071_v18  ;;  %v6471_v3 = vpop.f32.mrb[96].mxu0 }
 0x1d3   : > { %v6472_v54 = vpop.f32.mrb[97].mxu0 }
 0x1d4   : > { %v6525_v37 = vpop.f32.mrb[96].mxu1  ;;  %v6473_v56 = vadd.f32 %v6472_v54, %v6471_v3  ;;  %v6474_v1 = vpop.f32.mrb[98].mxu0 }
 0x1d5   : > { %v5238_v7 = vpop.f32.mrb[97].mxu1  ;;  %v6475_v28 = vpop.f32.mrb[99].mxu0 }
 0x1d6   : > { %v6526_v19 = vpop.f32.mrb[98].mxu1  ;;  %v6476_v21 = vadd.f32 %v6475_v28, %v6474_v1  ;;  %v5174_v59 = vadd.f32 %v6473_v56, %v8721_v14 }
 0x1d7   : > { %v5241_v24 = vpop.f32.mrb[99].mxu1 }
 0x1d8   : > { %v5239_v47 = vadd.f32 %v5238_v7, %v5174_v59  ;;  %v5177_v42 = vadd.f32 %v6476_v21, %v8723_v52 }
 0x1da   : > { %v5269_v25 = vmax.f32 %v5239_v47, 0.0  ;;  %v5242_v22 = vadd.f32 %v5241_v24, %v5177_v42 }
 0x1dc   : > { %v6477_v62 = vpop.f32.mrb[100].mxu0  ;;  %5277 = vst [vmem:[%s8743_s19] sm:$0xff] %v5269_v25  ;;  %v5270_v27 = vmax.f32 %v5242_v22, 0.0 }
 0x1dd   : > { %v6478_v55 = vpop.f32.mrb[101].mxu0 }
 0x1de   : > { %v6479_v46 = vadd.f32 %v6478_v55, %v6477_v62  ;;  %v6480_v11 = vpop.f32.mrb[102].mxu0  ;;  %5278 = vst [vmem:[%s8743_s19 + $0x8] sm:$0xff] %v5270_v27 }
 0x1df   : > { %v6481_v14 = vpop.f32.mrb[103].mxu0 }
 0x1e0   : > { %v5182_v52 = vadd.f32 %v6479_v46, %v8725_v32  ;;  %v6482_v12 = vadd.f32 %v6481_v14, %v6480_v11  ;;  %v6529_v40 = vpop.f32.mrb[100].mxu1 }
 0x1e1   : > { %v5254_v33 = vpop.f32.mrb[101].mxu1 }
 0x1e2   : > { %v5247_v50 = vadd.f32 %v6525_v37, %v5182_v52  ;;  %v5185_v43 = vadd.f32 %v6482_v12, %v8727_v35  ;;  %v6530_v31 = vpop.f32.mrb[102].mxu1 }
 0x1e3   : > { %v5257_v38 = vpop.f32.mrb[103].mxu1 }
 0x1e4   : > { %v5271_v51 = vmax.f32 %v5247_v50, 0.0  ;;  %v5250_v57 = vadd.f32 %v6526_v19, %v5185_v43  ;;  %v6483_v8 = vpop.f32.mrb[104].mxu0 }
 0x1e5   : > { %v6484_v60 = vpop.f32.mrb[105].mxu0 }
 0x1e6   : > { %5279 = vst [vmem:[%s8743_s19 + $0x10] sm:$0xff] %v5271_v51  ;;  %v5272_v39 = vmax.f32 %v5250_v57, 0.0  ;;  %v6485_v26 = vadd.f32 %v6484_v60, %v6483_v8  ;;  %v6486_v16 = vpop.f32.mrb[106].mxu0 }
 0x1e7   : > { %v6487_v32 = vpop.f32.mrb[107].mxu0 }
 0x1e8   : > { %5280 = vst [vmem:[%s8743_s19 + $0x18] sm:$0xff] %v5272_v39  ;;  %v6488_v6 = vadd.f32 %v6487_v32, %v6486_v16  ;;  %v5190_v17 = vadd.f32 %v6485_v26, %v8729_v10 }
 0x1ea   : > { %v5255_v36 = vadd.f32 %v5254_v33, %v5190_v17  ;;  %v5193_v30 = vadd.f32 %v6488_v6, %v5128_v49 }
 0x1ec   : > { %v5273_v35 = vmax.f32 %v5255_v36, 0.0  ;;  %v5258_v4 = vadd.f32 %v5257_v38, %v5193_v30  ;;  %v6489_v48 = vpop.f32.mrb[108].mxu0 }
 0x1ed   : > { %v6490_v5 = vpop.f32.mrb[109].mxu0 }
 0x1ee   : > { %5281 = vst [vmem:[%s8743_s19 + $0x20] sm:$0xff] %v5273_v35  ;;  %v5274_v41 = vmax.f32 %v5258_v4, 0.0  ;;  %v6491_v13 = vadd.f32 %v6490_v5, %v6489_v48  ;;  %v6492_v44 = vpop.f32.mrb[110].mxu0 }
 0x1ef   : > { %v6493_v34 = vpop.f32.mrb[111].mxu0 }
 0x1f0   : > { %5282 = vst [vmem:[%s8743_s19 + $0x28] sm:$0xff] %v5274_v41  ;;  %v5198_v45 = vadd.f32 %v6491_v13, %v8733_v29  ;;  %v6494_v9 = vadd.f32 %v6493_v34, %v6492_v44 }
 0x1f2   : > { %v5263_v53 = vadd.f32 %v6529_v40, %v5198_v45  ;;  %v5201_v10 = vadd.f32 %v6494_v9, %v8735_v58 }
 0x1f4   : > { %v5275_v0 = vmax.f32 %v5263_v53, 0.0  ;;  %v5266_v49 = vadd.f32 %v6530_v31, %v5201_v10 }
 0x1f6   : > { %5283 = vst [vmem:[%s8743_s19 + $0x30] sm:$0xff] %v5275_v0  ;;  %v5276_v18 = vmax.f32 %v5266_v49, 0.0 }
 0x1f8   : > { %5284 = vst [vmem:[%s8743_s19 + $0x38] sm:$0xff] %v5276_v18 }
 0x1f9 PF: > { %s15_s22 = sadd.s32 1, %s6865_s22   ;;  %s8785_s18 = smov %s6857_s20 }
 0x1fa   : > { %p12_p10 = scmp.ge.s32.totalorder %s15_s22, 18   ;;  %s8786_s19 = smov %s6861_s21 }
 0x1fb   : > { %s8787_s20 = smov %s8790_s23  ;;  %s8788_s21 = smov %s8794_s24 }
 0x1fc   :  { %14 = sbr.rel (!%p12_p10) target bundleno = 3 (0x3), region = 85 }

</bundles_post_ra>
